<compile_context>
chip_gen: v7x
topology: tpu7x:2x2x1
jax: 0.10.0
libtpu: 0.0.40
codegen_flags: <defaults>
</compile_context>

<pallas_src>
import functools

import jax
import jax.numpy as jnp
from jax.experimental import pallas as pl
from jax.experimental.pallas import tpu as pltpu

LN_EPS = 1e-5            # torch.nn.LayerNorm default
ROW_TILE_MAX = 128       # tokens (rows of B*T) per grid step for row-tiled kernels
GH_TILE_MAX = 64         # (group*head) batches per grid step for the attention kernel
VMEM_LIMIT = 32 * 1024 * 1024   # safe on v5e/v6e/v7x scoped-VMEM budgets


# ---------------------------------------------------------------------------
# small helpers
# ---------------------------------------------------------------------------
def _round_up(x, m):
    return ((x + m - 1) // m) * m


def _tile(n, max_tile):
    """Pick a tile size (<= max_tile, multiple of 8) and the padded extent."""
    t = min(max_tile, _round_up(n, 8))
    return t, _round_up(n, t)


def _pad_dim0(a, n_pad):
    if a.shape[0] == n_pad:
        return a
    pad = [(0, n_pad - a.shape[0])] + [(0, 0)] * (a.ndim - 1)
    return jnp.pad(a, pad)


def _mosaic_params():
    return pltpu.CompilerParams(
        dimension_semantics=("parallel",),
        vmem_limit_bytes=VMEM_LIMIT,
    )


# ---------------------------------------------------------------------------
# kernels
# ---------------------------------------------------------------------------
def _layernorm(x, g, b):
    x = x.astype(jnp.float32)
    mu = jnp.mean(x, axis=-1, keepdims=True)
    var = jnp.mean(jnp.square(x - mu), axis=-1, keepdims=True)
    return (x - mu) * jax.lax.rsqrt(var + LN_EPS) * g + b


def ln_qkv_kernel(x_ref, g_ref, b_ref, w_ref, o_ref):
    # o = LayerNorm(x) @ W_qkv   (bias-free, like nn.Linear(..., bias=False)); bf16 out.
    y = _layernorm(x_ref[...], g_ref[...], b_ref[...])
    o_ref[...] = jnp.dot(
        y.astype(w_ref.dtype), w_ref[...], preferred_element_type=jnp.float32
    ).astype(o_ref.dtype)


def attention_kernel(q_ref, k_ref, v_ref, o_ref, *, scale):
    # Batched (group x head on the leading axis) scaled-dot-product attention.
    q = q_ref[...]
    k = k_ref[...]
    v = v_ref[...]
    s = jnp.einsum("gqd,gkd->gqk", q, k, preferred_element_type=jnp.float32) * scale
    s = s - jnp.max(s, axis=-1, keepdims=True)
    p = jnp.exp(s)
    p = p * pl.reciprocal(jnp.sum(p, axis=-1, keepdims=True), approx=True)
    ctx = jnp.einsum("gqk,gkd->gqd", p.astype(v.dtype), v,
                     preferred_element_type=jnp.float32)
    o_ref[...] = ctx.astype(o_ref.dtype)


def proj_residual_kernel(a_ref, w_ref, r_ref, o_ref):
    # o = attn_heads @ W_0 + residual   (residual buffer is aliased to the output)
    o_ref[...] = (
        jnp.dot(a_ref[...], w_ref[...], preferred_element_type=jnp.float32)
        + r_ref[...]
    )


def _erf(x):
    # Abramowitz & Stegun 7.1.26 (|abs err| < 1.5e-7): exact-GELU at f32 accuracy; the
    # rational term uses the EUP approx reciprocal, exp also hits the EUP.
    a1, a2, a3, a4, a5 = 0.254829592, -0.284496736, 1.421413741, -1.453152027, 1.061405429
    p = 0.3275911
    sgn = jnp.where(x >= 0.0, 1.0, -1.0)
    z = jnp.abs(x)
    t = pl.reciprocal(1.0 + p * z, approx=True)
    poly = t * (a1 + t * (a2 + t * (a3 + t * (a4 + t * a5))))
    return sgn * (1.0 - poly * jnp.exp(-z * z))


def mlp_kernel(x_ref, g_ref, b_ref, w1_ref, b1_ref, w2_ref, b2_ref, o_ref):
    # o = Linear2(GELU(Linear1(LayerNorm(x)))) + x   (dropout = identity in eval)
    x = x_ref[...].astype(jnp.float32)
    y = _layernorm(x, g_ref[...], b_ref[...])
    h = jnp.dot(y.astype(w1_ref.dtype), w1_ref[...],
                preferred_element_type=jnp.float32) + b1_ref[...]
    h = 0.5 * h * (1.0 + _erf(h * 0.7071067811865476))   # exact GELU (nn.GELU default)
    out = jnp.dot(h.astype(w2_ref.dtype), w2_ref[...],
                  preferred_element_type=jnp.float32) + b2_ref[...]
    o_ref[...] = out + x


# ---------------------------------------------------------------------------
# pallas_call wrappers (row/group tiled, resident weights, aliased residuals)
# ---------------------------------------------------------------------------
def _ln_qkv(x_pad, ln_g, ln_b, w_qkv, row_tile):
    rows_pad, d = x_pad.shape
    n_out = w_qkv.shape[1]
    flops = 2 * rows_pad * d * n_out + 10 * rows_pad * d
    bytes_acc = (x_pad.size * 4 + w_qkv.size * 2 + rows_pad * n_out * 2 + 2 * d * 4)
    return pl.pallas_call(
        ln_qkv_kernel,
        out_shape=jax.ShapeDtypeStruct((rows_pad, n_out), jnp.bfloat16),
        grid=(rows_pad // row_tile,),
        in_specs=[
            pl.BlockSpec((row_tile, d), lambda i: (i, 0)),
            pl.BlockSpec((1, d), lambda i: (0, 0)),
            pl.BlockSpec((1, d), lambda i: (0, 0)),
            pl.BlockSpec((d, n_out), lambda i: (0, 0)),        # resident weight
        ],
        out_specs=pl.BlockSpec((row_tile, n_out), lambda i: (i, 0)),
        compiler_params=_mosaic_params(),
        cost_estimate=pl.CostEstimate(flops=flops, transcendentals=0,
                                      bytes_accessed=bytes_acc),
    )(x_pad, ln_g, ln_b, w_qkv)


def _attention(qg, kg, vg, gh_tile, scale):
    ghp, seq, dh = qg.shape
    flops = 4 * ghp * seq * seq * dh
    bytes_acc = 4 * ghp * seq * dh * 2
    spec = pl.BlockSpec((gh_tile, seq, dh), lambda i: (i, 0, 0))
    return pl.pallas_call(
        functools.partial(attention_kernel, scale=scale),
        out_shape=jax.ShapeDtypeStruct((ghp, seq, dh), jnp.bfloat16),
        grid=(ghp // gh_tile,),
        in_specs=[spec, spec, spec],
        out_specs=spec,
        compiler_params=_mosaic_params(),
        cost_estimate=pl.CostEstimate(flops=flops, transcendentals=ghp * seq * seq,
                                      bytes_accessed=bytes_acc),
    )(qg, kg, vg)


def _proj_residual(a_pad, w0, res_pad, row_tile):
    rows_pad, k = a_pad.shape
    d = w0.shape[1]
    flops = 2 * rows_pad * k * d
    bytes_acc = a_pad.size * 2 + w0.size * 2 + res_pad.size * 4 + rows_pad * d * 4
    return pl.pallas_call(
        proj_residual_kernel,
        out_shape=jax.ShapeDtypeStruct((rows_pad, d), jnp.float32),
        grid=(rows_pad // row_tile,),
        in_specs=[
            pl.BlockSpec((row_tile, k), lambda i: (i, 0)),
            pl.BlockSpec((k, d), lambda i: (0, 0)),            # resident weight
            pl.BlockSpec((row_tile, d), lambda i: (i, 0)),
        ],
        out_specs=pl.BlockSpec((row_tile, d), lambda i: (i, 0)),
        input_output_aliases={2: 0},                           # residual buffer -> output
        compiler_params=_mosaic_params(),
        cost_estimate=pl.CostEstimate(flops=flops, transcendentals=0,
                                      bytes_accessed=bytes_acc),
    )(a_pad, w0, res_pad)


def _mlp(x_pad, m, row_tile):
    rows_pad, d = x_pad.shape
    dl = m["w1"].shape[1]
    flops = 4 * rows_pad * d * dl + 20 * rows_pad * dl
    bytes_acc = x_pad.size * 4 * 2 + m["w1"].size * 2 + m["w2"].size * 2
    return pl.pallas_call(
        mlp_kernel,
        out_shape=jax.ShapeDtypeStruct((rows_pad, d), jnp.float32),
        grid=(rows_pad // row_tile,),
        in_specs=[
            pl.BlockSpec((row_tile, d), lambda i: (i, 0)),
            pl.BlockSpec((1, d), lambda i: (0, 0)),
            pl.BlockSpec((1, d), lambda i: (0, 0)),
            pl.BlockSpec((d, dl), lambda i: (0, 0)),           # resident weights
            pl.BlockSpec((1, dl), lambda i: (0, 0)),
            pl.BlockSpec((dl, d), lambda i: (0, 0)),
            pl.BlockSpec((1, d), lambda i: (0, 0)),
        ],
        out_specs=pl.BlockSpec((row_tile, d), lambda i: (i, 0)),
        input_output_aliases={0: 0},                           # x / residual -> output
        compiler_params=_mosaic_params(),
        cost_estimate=pl.CostEstimate(flops=flops, transcendentals=rows_pad * dl,
                                      bytes_accessed=bytes_acc),
    )(x_pad, m["ln_g"], m["ln_b"], m["w1"], m["b1"], m["w2"], m["b2"])


# ---------------------------------------------------------------------------
# SpacetimeMHSA (pre-LN, residual) — divided space/time attention with cls token
# ---------------------------------------------------------------------------
def spacetime_attention(x, params, *, frames, patches, heads, space_att):
    B, T, D = x.shape
    F, P, H = frames, patches, heads
    Dh = D // H
    _dim = H * Dh
    assert T == 1 + F * P

    rows = B * T
    row_tile, rows_pad = _tile(rows, ROW_TILE_MAX)
    x_pad = _pad_dim0(x.reshape(rows, D), rows_pad)

    # fused LayerNorm + QKV projection (row-tiled, bf16 MXU, f32 LN/accumulate)
    qkv = _ln_qkv(x_pad, params["ln_g"], params["ln_b"], params["w_qkv"], row_tile)
    qkv = qkv[:rows].reshape(B, T, 3, H, Dh)   # '(k h d)' packing of the fused W_qkv cols
    q, k, v = qkv[:, :, 0], qkv[:, :, 1], qkv[:, :, 2]        # (B, T, H, Dh), bf16

    def group(t):
        cls = t[:, 0]                                          # (B, H, Dh)
        rest = t[:, 1:].reshape(B, F, P, H, Dh)
        if space_att:   # attend over patches; group by frame
            rest = rest.transpose(0, 1, 3, 2, 4)               # (B, F, H, P, Dh)
            grp, seq = F, P + 1
        else:           # attend over frames; group by patch
            rest = rest.transpose(0, 2, 3, 1, 4)               # (B, P, H, F, Dh)
            grp, seq = P, F + 1
        cls_b = jnp.broadcast_to(cls[:, None, :, None, :], (B, grp, H, 1, Dh))
        full = jnp.concatenate([cls_b, rest], axis=3)          # (B, grp, H, seq, Dh)
        return full.reshape(B * grp * H, seq, Dh), grp, seq

    qg, grp, seq = group(q)
    kg, _, _ = group(k)
    vg, _, _ = group(v)

    gh = B * grp * H
    gh_tile, gh_pad = _tile(gh, GH_TILE_MAX)
    qg = _pad_dim0(qg, gh_pad)
    kg = _pad_dim0(kg, gh_pad)
    vg = _pad_dim0(vg, gh_pad)

    scale = float(Dh) ** -0.5
    attn = _attention(qg, kg, vg, gh_tile, scale)[:gh]
    attn = attn.reshape(B, grp, H, seq, Dh)

    # TODO(synk): cls-token fold-back uses the official TimeSformer convention (replicate
    # cls into every group, attend, then mean over groups); the SpacetimeMHSA source was
    # not provided with the module snippet.
    cls_out = jnp.mean(attn[:, :, :, 0, :].astype(jnp.float32), axis=1)
    cls_out = cls_out.reshape(B, 1, _dim).astype(jnp.bfloat16)
    rest_out = attn[:, :, :, 1:, :]                            # (B, grp, H, seq-1, Dh)
    if space_att:
        rest_out = rest_out.transpose(0, 1, 3, 2, 4)           # (B, F, P, H, Dh)
    else:
        rest_out = rest_out.transpose(0, 3, 1, 2, 4)           # (B, F, P, H, Dh)
    rest_out = rest_out.reshape(B, F * P, _dim)
    attn_tok = jnp.concatenate([cls_out, rest_out], axis=1).reshape(rows, _dim)
    attn_pad = _pad_dim0(attn_tok, rows_pad)

    # output projection + residual add (row-tiled, residual buffer aliased to output)
    out = _proj_residual(attn_pad, params["w_0"], x_pad, row_tile)
    return out[:rows].reshape(B, T, D)


# ---------------------------------------------------------------------------
# TimeSformerBlock forward:  x = time_att(x)+x ; x = space_att(x)+x ; x = mlp(x)+x
# ---------------------------------------------------------------------------
def timesformer_block(x, params, *, frames, patches, heads):
    x = spacetime_attention(x, params["time"], frames=frames, patches=patches,
                            heads=heads, space_att=False)   # residual fused in kernel
    x = spacetime_attention(x, params["space"], frames=frames, patches=patches,
                            heads=heads, space_att=True)
    B, T, D = x.shape
    rows = B * T
    row_tile, rows_pad = _tile(rows, ROW_TILE_MAX)
    x_pad = _pad_dim0(x.reshape(rows, D), rows_pad)
    out = _mlp(x_pad, params["mlp"], row_tile)
    return out[:rows].reshape(B, T, D)


# ---------------------------------------------------------------------------
# Deterministic synthetic parameters (shapes from the module's __init__)
# ---------------------------------------------------------------------------
def init_params(key, dim, heads, dim_linear_block):
    _dim = (dim // heads) * heads
    ks = jax.random.split(key, 16)

    def lin(k, fan_in, fan_out):
        w = jax.random.normal(k, (fan_in, fan_out), jnp.float32) * (fan_in ** -0.5)
        return w.astype(jnp.bfloat16)          # weights stored bf16 for the MXU

    def ln(kg, kb, d):
        return (1.0 + 0.02 * jax.random.normal(kg, (1, d), jnp.float32),
                0.02 * jax.random.normal(kb, (1, d), jnp.float32))

    tg, tb = ln(ks[0], ks[1], dim)
    sg, sb = ln(ks[2], ks[3], dim)
    mg, mb = ln(ks[4], ks[5], dim)
    return {
        "time": {"ln_g": tg, "ln_b": tb,
                 "w_qkv": lin(ks[6], dim, 3 * _dim),
                 "w_0": lin(ks[7], _dim, dim)},
        "space": {"ln_g": sg, "ln_b": sb,
                  "w_qkv": lin(ks[8], dim, 3 * _dim),
                  "w_0": lin(ks[9], _dim, dim)},
        "mlp": {"ln_g": mg, "ln_b": mb,
                "w1": lin(ks[10], dim, dim_linear_block),
                "b1": 0.02 * jax.random.normal(ks[11], (1, dim_linear_block), jnp.float32),
                "w2": lin(ks[12], dim_linear_block, dim),
                "b2": 0.02 * jax.random.normal(ks[13], (1, dim), jnp.float32)},
    }


if __name__ == "__main__":
    # Small, module-consistent shapes: TimeSformerBlock(frames=4, patches=16, dim=64,
    # heads=4, dim_linear_block=128, classification=True) -> tokens = 1 + 4*16 = 65.
    # Rows = 2*65 = 130 -> row grid of 2 steps; time-attention groups = 128 -> grid of 2.
    B, FRAMES, PATCHES, DIM, HEADS, DIM_LINEAR = 2, 4, 16, 64, 4, 128
    T = 1 + FRAMES * PATCHES

    key = jax.random.PRNGKey(0)
    kx, kp = jax.random.split(key)
    x = jax.random.normal(kx, (B, T, DIM), jnp.float32)
    params = init_params(kp, DIM, HEADS, DIM_LINEAR)

    fn = jax.jit(functools.partial(timesformer_block,
                                   frames=FRAMES, patches=PATCHES, heads=HEADS))
    y = fn(x, params)
    jax.block_until_ready(y)
    assert y.shape == (B, T, DIM) and y.dtype == jnp.float32
    assert bool(jnp.all(jnp.isfinite(y)))
    print("KERNEL_OK")
</pallas_src>

<mosaic_0001>
module attributes {stable_mosaic.version = 11 : i64} {
  func.func @ln_qkv_kernel(%arg0: i32, %arg1: memref<128x64xf32, #tpu.memory_space<vmem>>, %arg2: memref<1x64xf32, #tpu.memory_space<vmem>>, %arg3: memref<1x64xf32, #tpu.memory_space<vmem>>, %arg4: memref<64x192xbf16, #tpu.memory_space<vmem>>, %arg5: memref<128x192xbf16, #tpu.memory_space<vmem>>) attributes {dimension_semantics = [#tpu.dimension_semantics<parallel>], iteration_bounds = array<i64: 2>, scalar_prefetch = 0 : i64, scratch_operands = 0 : i64, tpu.core_type = #tpu.core_type<tc>, window_params = [{transform_indices = @transform_0, window_bounds = array<i64: 128, 64>}, {pipeline_mode = #tpu.pipeline_mode<synchronous>, transform_indices = @transform_1, window_bounds = array<i64: 1, 64>}, {pipeline_mode = #tpu.pipeline_mode<synchronous>, transform_indices = @transform_2, window_bounds = array<i64: 1, 64>}, {pipeline_mode = #tpu.pipeline_mode<synchronous>, transform_indices = @transform_3, window_bounds = array<i64: 64, 192>}, {transform_indices = @transform_4, window_bounds = array<i64: 128, 192>}]} {
    %c0 = arith.constant 0 : index
    %c0_0 = arith.constant 0 : index
    %0 = vector.load %arg1[%c0, %c0_0] : memref<128x64xf32, #tpu.memory_space<vmem>>, vector<128x64xf32>
    %c0_1 = arith.constant 0 : index
    %c0_2 = arith.constant 0 : index
    %1 = vector.load %arg2[%c0_1, %c0_2] : memref<1x64xf32, #tpu.memory_space<vmem>>, vector<1x64xf32>
    %c0_3 = arith.constant 0 : index
    %c0_4 = arith.constant 0 : index
    %2 = vector.load %arg3[%c0_3, %c0_4] : memref<1x64xf32, #tpu.memory_space<vmem>>, vector<1x64xf32>
    %cst = arith.constant dense<0.000000e+00> : vector<128xf32>
    %3 = vector.multi_reduction <add>, %0, %cst [1] : vector<128x64xf32> to vector<128xf32>
    %4 = vector.shape_cast %3 : vector<128xf32> to vector<128x1xf32>
    %cst_5 = arith.constant 6.400000e+01 : f32
    %5 = vector.broadcast %cst_5 : f32 to vector<128x1xf32>
    %6 = arith.divf %4, %5 : vector<128x1xf32>
    %7 = vector.broadcast %6 : vector<128x1xf32> to vector<128x64xf32>
    %8 = arith.subf %0, %7 : vector<128x64xf32>
    %9 = arith.mulf %8, %8 : vector<128x64xf32>
    %cst_6 = arith.constant dense<0.000000e+00> : vector<128xf32>
    %10 = vector.multi_reduction <add>, %9, %cst_6 [1] : vector<128x64xf32> to vector<128xf32>
    %11 = vector.shape_cast %10 : vector<128xf32> to vector<128x1xf32>
    %cst_7 = arith.constant 6.400000e+01 : f32
    %12 = vector.broadcast %cst_7 : f32 to vector<128x1xf32>
    %13 = arith.divf %11, %12 : vector<128x1xf32>
    %14 = vector.broadcast %6 : vector<128x1xf32> to vector<128x64xf32>
    %15 = arith.subf %0, %14 : vector<128x64xf32>
    %cst_8 = arith.constant 9.99999974E-6 : f32
    %16 = vector.broadcast %cst_8 : f32 to vector<128x1xf32>
    %17 = arith.addf %13, %16 : vector<128x1xf32>
    %18 = math.rsqrt %17 : vector<128x1xf32>
    %19 = vector.broadcast %18 : vector<128x1xf32> to vector<128x64xf32>
    %20 = arith.mulf %15, %19 : vector<128x64xf32>
    %21 = vector.broadcast %1 : vector<1x64xf32> to vector<128x64xf32>
    %22 = arith.mulf %20, %21 : vector<128x64xf32>
    %23 = vector.broadcast %2 : vector<1x64xf32> to vector<128x64xf32>
    %24 = arith.addf %22, %23 : vector<128x64xf32>
    %25 = arith.truncf %24 : vector<128x64xf32> to vector<128x64xbf16>
    %c0_9 = arith.constant 0 : index
    %c0_10 = arith.constant 0 : index
    %26 = vector.load %arg4[%c0_9, %c0_10] : memref<64x192xbf16, #tpu.memory_space<vmem>>, vector<64x192xbf16>
    %cst_11 = arith.constant dense<0.000000e+00> : vector<128x192xf32>
    %27 = tpu.matmul %25, %26, %cst_11 {dimension_numbers = #tpu.dot_dimension_numbers<[1], [0], [0], [1], [0, 0, 1, 1], [], []>} : vector<128x64xbf16>, vector<64x192xbf16>, vector<128x192xf32> -> vector<128x192xf32>
    %28 = arith.truncf %27 : vector<128x192xf32> to vector<128x192xbf16>
    %c0_12 = arith.constant 0 : index
    %c0_13 = arith.constant 0 : index
    %29 = vector.load %arg5[%c0_12, %c0_13] : memref<128x192xbf16, #tpu.memory_space<vmem>>, vector<128x192xbf16>
    tpu.vector_store %arg5[%c0_12, %c0_13], %28 {strides = array<i32>} : memref<128x192xbf16, #tpu.memory_space<vmem>>, vector<128x192xbf16>,
    return
  }
  func.func @transform_0(%arg0: i32) -> (i32, i32) {
    %c0_i32 = arith.constant 0 : i32
    %c0_i32_0 = arith.constant 0 : i32
    return %arg0, %c0_i32 : i32, i32
  }
  func.func @transform_1(%arg0: i32) -> (i32, i32) {
    %c0_i32 = arith.constant 0 : i32
    %c0_i32_0 = arith.constant 0 : i32
    %c0_i32_1 = arith.constant 0 : i32
    return %c0_i32, %c0_i32_0 : i32, i32
  }
  func.func @transform_2(%arg0: i32) -> (i32, i32) {
    %c0_i32 = arith.constant 0 : i32
    %c0_i32_0 = arith.constant 0 : i32
    %c0_i32_1 = arith.constant 0 : i32
    return %c0_i32, %c0_i32_0 : i32, i32
  }
  func.func @transform_3(%arg0: i32) -> (i32, i32) {
    %c0_i32 = arith.constant 0 : i32
    %c0_i32_0 = arith.constant 0 : i32
    %c0_i32_1 = arith.constant 0 : i32
    return %c0_i32, %c0_i32_0 : i32, i32
  }
  func.func @transform_4(%arg0: i32) -> (i32, i32) {
    %c0_i32 = arith.constant 0 : i32
    %c0_i32_0 = arith.constant 0 : i32
    return %arg0, %c0_i32 : i32, i32
  }
}

module attributes {stable_mosaic.version = 11 : i64} {
  func.func @attention_kernel(%arg0: i32, %arg1: memref<64x5x16xbf16, #tpu.memory_space<vmem>>, %arg2: memref<64x5x16xbf16, #tpu.memory_space<vmem>>, %arg3: memref<64x5x16xbf16, #tpu.memory_space<vmem>>, %arg4: memref<64x5x16xbf16, #tpu.memory_space<vmem>>) attributes {dimension_semantics = [#tpu.dimension_semantics<parallel>], iteration_bounds = array<i64: 2>, scalar_prefetch = 0 : i64, scratch_operands = 0 : i64, tpu.core_type = #tpu.core_type<tc>, window_params = [{transform_indices = @transform_0, window_bounds = array<i64: 64, 5, 16>}, {transform_indices = @transform_1, window_bounds = array<i64: 64, 5, 16>}, {transform_indices = @transform_2, window_bounds = array<i64: 64, 5, 16>}, {transform_indices = @transform_3, window_bounds = array<i64: 64, 5, 16>}]} {
    %c0 = arith.constant 0 : index
    %c0_0 = arith.constant 0 : index
    %c0_1 = arith.constant 0 : index
    %0 = vector.load %arg1[%c0, %c0_0, %c0_1] : memref<64x5x16xbf16, #tpu.memory_space<vmem>>, vector<64x5x16xbf16>
    %c0_2 = arith.constant 0 : index
    %c0_3 = arith.constant 0 : index
    %c0_4 = arith.constant 0 : index
    %1 = vector.load %arg2[%c0_2, %c0_3, %c0_4] : memref<64x5x16xbf16, #tpu.memory_space<vmem>>, vector<64x5x16xbf16>
    %c0_5 = arith.constant 0 : index
    %c0_6 = arith.constant 0 : index
    %c0_7 = arith.constant 0 : index
    %2 = vector.load %arg3[%c0_5, %c0_6, %c0_7] : memref<64x5x16xbf16, #tpu.memory_space<vmem>>, vector<64x5x16xbf16>
    "tpu.trace_start"() <{level = 10 : i32, message = "gqd,gkd->gqk"}> : () -> ()
    %cst = arith.constant dense<0.000000e+00> : vector<64x5x5xf32>
    %3 = tpu.matmul %0, %1, %cst {dimension_numbers = #tpu.dot_dimension_numbers<[2], [2], [1], [1], [0, 0, 0, 1, 1, 1], [0], [0]>} : vector<64x5x16xbf16>, vector<64x5x16xbf16>, vector<64x5x5xf32> -> vector<64x5x5xf32>
    "tpu.trace_stop"() : () -> ()
    %cst_8 = arith.constant 2.500000e-01 : f32
    %4 = vector.broadcast %cst_8 : f32 to vector<64x5x5xf32>
    %5 = arith.mulf %3, %4 : vector<64x5x5xf32>
    %cst_9 = arith.constant dense<0xFF800000> : vector<64x5xf32>
    %6 = vector.multi_reduction <maximumf>, %5, %cst_9 [2] : vector<64x5x5xf32> to vector<64x5xf32>
    %7 = vector.shape_cast %6 : vector<64x5xf32> to vector<64x5x1xf32>
    %8 = vector.broadcast %7 : vector<64x5x1xf32> to vector<64x5x5xf32>
    %9 = arith.subf %5, %8 : vector<64x5x5xf32>
    %10 = math.exp %9 : vector<64x5x5xf32>
    %cst_10 = arith.constant dense<0.000000e+00> : vector<64x5xf32>
    %11 = vector.multi_reduction <add>, %10, %cst_10 [2] : vector<64x5x5xf32> to vector<64x5xf32>
    %12 = vector.shape_cast %11 : vector<64x5xf32> to vector<64x5x1xf32>
    %13 = tpu.reciprocal %12 {approx = true} : vector<64x5x1xf32> -> vector<64x5x1xf32>
    %14 = vector.broadcast %13 : vector<64x5x1xf32> to vector<64x5x5xf32>
    %15 = arith.mulf %10, %14 : vector<64x5x5xf32>
    %16 = arith.truncf %15 : vector<64x5x5xf32> to vector<64x5x5xbf16>
    "tpu.trace_start"() <{level = 10 : i32, message = "gqk,gkd->gqd"}> : () -> ()
    %cst_11 = arith.constant dense<0.000000e+00> : vector<64x5x16xf32>
    %17 = tpu.matmul %16, %2, %cst_11 {dimension_numbers = #tpu.dot_dimension_numbers<[2], [1], [1], [2], [0, 0, 0, 1, 1, 2], [0], [0]>} : vector<64x5x5xbf16>, vector<64x5x16xbf16>, vector<64x5x16xf32> -> vector<64x5x16xf32>
    "tpu.trace_stop"() : () -> ()
    %18 = arith.truncf %17 : vector<64x5x16xf32> to vector<64x5x16xbf16>
    %c0_12 = arith.constant 0 : index
    %c0_13 = arith.constant 0 : index
    %c0_14 = arith.constant 0 : index
    %19 = vector.load %arg4[%c0_12, %c0_13, %c0_14] : memref<64x5x16xbf16, #tpu.memory_space<vmem>>, vector<64x5x16xbf16>
    tpu.vector_store %arg4[%c0_12, %c0_13, %c0_14], %18 {strides = array<i32>} : memref<64x5x16xbf16, #tpu.memory_space<vmem>>, vector<64x5x16xbf16>,
    return
  }
  func.func @transform_0(%arg0: i32) -> (i32, i32, i32) {
    %c0_i32 = arith.constant 0 : i32
    %c0_i32_0 = arith.constant 0 : i32
    %c0_i32_1 = arith.constant 0 : i32
    return %arg0, %c0_i32, %c0_i32_0 : i32, i32, i32
  }
  func.func @transform_1(%arg0: i32) -> (i32, i32, i32) {
    %c0_i32 = arith.constant 0 : i32
    %c0_i32_0 = arith.constant 0 : i32
    %c0_i32_1 = arith.constant 0 : i32
    return %arg0, %c0_i32, %c0_i32_0 : i32, i32, i32
  }
  func.func @transform_2(%arg0: i32) -> (i32, i32, i32) {
    %c0_i32 = arith.constant 0 : i32
    %c0_i32_0 = arith.constant 0 : i32
    %c0_i32_1 = arith.constant 0 : i32
    return %arg0, %c0_i32, %c0_i32_0 : i32, i32, i32
  }
  func.func @transform_3(%arg0: i32) -> (i32, i32, i32) {
    %c0_i32 = arith.constant 0 : i32
    %c0_i32_0 = arith.constant 0 : i32
    %c0_i32_1 = arith.constant 0 : i32
    return %arg0, %c0_i32, %c0_i32_0 : i32, i32, i32
  }
}

module attributes {stable_mosaic.version = 11 : i64} {
  func.func @proj_residual_kernel(%arg0: i32, %arg1: memref<128x64xbf16, #tpu.memory_space<vmem>>, %arg2: memref<64x64xbf16, #tpu.memory_space<vmem>>, %arg3: memref<128x64xf32, #tpu.memory_space<vmem>>, %arg4: memref<128x64xf32, #tpu.memory_space<vmem>>) attributes {dimension_semantics = [#tpu.dimension_semantics<parallel>], iteration_bounds = array<i64: 2>, scalar_prefetch = 0 : i64, scratch_operands = 0 : i64, tpu.core_type = #tpu.core_type<tc>, window_params = [{transform_indices = @transform_0, window_bounds = array<i64: 128, 64>}, {pipeline_mode = #tpu.pipeline_mode<synchronous>, transform_indices = @transform_1, window_bounds = array<i64: 64, 64>}, {transform_indices = @transform_2, window_bounds = array<i64: 128, 64>}, {transform_indices = @transform_3, window_bounds = array<i64: 128, 64>}]} {
    %c0 = arith.constant 0 : index
    %c0_0 = arith.constant 0 : index
    %0 = vector.load %arg1[%c0, %c0_0] : memref<128x64xbf16, #tpu.memory_space<vmem>>, vector<128x64xbf16>
    %c0_1 = arith.constant 0 : index
    %c0_2 = arith.constant 0 : index
    %1 = vector.load %arg2[%c0_1, %c0_2] : memref<64x64xbf16, #tpu.memory_space<vmem>>, vector<64x64xbf16>
    %cst = arith.constant dense<0.000000e+00> : vector<128x64xf32>
    %2 = tpu.matmul %0, %1, %cst {dimension_numbers = #tpu.dot_dimension_numbers<[1], [0], [0], [1], [0, 0, 1, 1], [], []>} : vector<128x64xbf16>, vector<64x64xbf16>, vector<128x64xf32> -> vector<128x64xf32>
    %c0_3 = arith.constant 0 : index
    %c0_4 = arith.constant 0 : index
    %3 = vector.load %arg3[%c0_3, %c0_4] : memref<128x64xf32, #tpu.memory_space<vmem>>, vector<128x64xf32>
    %4 = arith.addf %2, %3 : vector<128x64xf32>
    %c0_5 = arith.constant 0 : index
    %c0_6 = arith.constant 0 : index
    %5 = vector.load %arg4[%c0_5, %c0_6] : memref<128x64xf32, #tpu.memory_space<vmem>>, vector<128x64xf32>
    tpu.vector_store %arg4[%c0_5, %c0_6], %4 {strides = array<i32>} : memref<128x64xf32, #tpu.memory_space<vmem>>, vector<128x64xf32>,
    return
  }
  func.func @transform_0(%arg0: i32) -> (i32, i32) {
    %c0_i32 = arith.constant 0 : i32
    %c0_i32_0 = arith.constant 0 : i32
    return %arg0, %c0_i32 : i32, i32
  }
  func.func @transform_1(%arg0: i32) -> (i32, i32) {
    %c0_i32 = arith.constant 0 : i32
    %c0_i32_0 = arith.constant 0 : i32
    %c0_i32_1 = arith.constant 0 : i32
    return %c0_i32, %c0_i32_0 : i32, i32
  }
  func.func @transform_2(%arg0: i32) -> (i32, i32) {
    %c0_i32 = arith.constant 0 : i32
    %c0_i32_0 = arith.constant 0 : i32
    return %arg0, %c0_i32 : i32, i32
  }
  func.func @transform_3(%arg0: i32) -> (i32, i32) {
    %c0_i32 = arith.constant 0 : i32
    %c0_i32_0 = arith.constant 0 : i32
    return %arg0, %c0_i32 : i32, i32
  }
}

module attributes {stable_mosaic.version = 11 : i64} {
  func.func @attention_kernel(%arg0: i32, %arg1: memref<32x17x16xbf16, #tpu.memory_space<vmem>>, %arg2: memref<32x17x16xbf16, #tpu.memory_space<vmem>>, %arg3: memref<32x17x16xbf16, #tpu.memory_space<vmem>>, %arg4: memref<32x17x16xbf16, #tpu.memory_space<vmem>>) attributes {dimension_semantics = [#tpu.dimension_semantics<parallel>], iteration_bounds = array<i64: 1>, scalar_prefetch = 0 : i64, scratch_operands = 0 : i64, tpu.core_type = #tpu.core_type<tc>, window_params = [{transform_indices = @transform_0, window_bounds = array<i64: 32, 17, 16>}, {transform_indices = @transform_1, window_bounds = array<i64: 32, 17, 16>}, {transform_indices = @transform_2, window_bounds = array<i64: 32, 17, 16>}, {transform_indices = @transform_3, window_bounds = array<i64: 32, 17, 16>}]} {
    %c0 = arith.constant 0 : index
    %c0_0 = arith.constant 0 : index
    %c0_1 = arith.constant 0 : index
    %0 = vector.load %arg1[%c0, %c0_0, %c0_1] : memref<32x17x16xbf16, #tpu.memory_space<vmem>>, vector<32x17x16xbf16>
    %c0_2 = arith.constant 0 : index
    %c0_3 = arith.constant 0 : index
    %c0_4 = arith.constant 0 : index
    %1 = vector.load %arg2[%c0_2, %c0_3, %c0_4] : memref<32x17x16xbf16, #tpu.memory_space<vmem>>, vector<32x17x16xbf16>
    %c0_5 = arith.constant 0 : index
    %c0_6 = arith.constant 0 : index
    %c0_7 = arith.constant 0 : index
    %2 = vector.load %arg3[%c0_5, %c0_6, %c0_7] : memref<32x17x16xbf16, #tpu.memory_space<vmem>>, vector<32x17x16xbf16>
    "tpu.trace_start"() <{level = 10 : i32, message = "gqd,gkd->gqk"}> : () -> ()
    %cst = arith.constant dense<0.000000e+00> : vector<32x17x17xf32>
    %3 = tpu.matmul %0, %1, %cst {dimension_numbers = #tpu.dot_dimension_numbers<[2], [2], [1], [1], [0, 0, 0, 1, 1, 1], [0], [0]>} : vector<32x17x16xbf16>, vector<32x17x16xbf16>, vector<32x17x17xf32> -> vector<32x17x17xf32>
    "tpu.trace_stop"() : () -> ()
    %cst_8 = arith.constant 2.500000e-01 : f32
    %4 = vector.broadcast %cst_8 : f32 to vector<32x17x17xf32>
    %5 = arith.mulf %3, %4 : vector<32x17x17xf32>
    %cst_9 = arith.constant dense<0xFF800000> : vector<32x17xf32>
    %6 = vector.multi_reduction <maximumf>, %5, %cst_9 [2] : vector<32x17x17xf32> to vector<32x17xf32>
    %7 = vector.shape_cast %6 : vector<32x17xf32> to vector<32x17x1xf32>
    %8 = vector.broadcast %7 : vector<32x17x1xf32> to vector<32x17x17xf32>
    %9 = arith.subf %5, %8 : vector<32x17x17xf32>
    %10 = math.exp %9 : vector<32x17x17xf32>
    %cst_10 = arith.constant dense<0.000000e+00> : vector<32x17xf32>
    %11 = vector.multi_reduction <add>, %10, %cst_10 [2] : vector<32x17x17xf32> to vector<32x17xf32>
    %12 = vector.shape_cast %11 : vector<32x17xf32> to vector<32x17x1xf32>
    %13 = tpu.reciprocal %12 {approx = true} : vector<32x17x1xf32> -> vector<32x17x1xf32>
    %14 = vector.broadcast %13 : vector<32x17x1xf32> to vector<32x17x17xf32>
    %15 = arith.mulf %10, %14 : vector<32x17x17xf32>
    %16 = arith.truncf %15 : vector<32x17x17xf32> to vector<32x17x17xbf16>
    "tpu.trace_start"() <{level = 10 : i32, message = "gqk,gkd->gqd"}> : () -> ()
    %cst_11 = arith.constant dense<0.000000e+00> : vector<32x17x16xf32>
    %17 = tpu.matmul %16, %2, %cst_11 {dimension_numbers = #tpu.dot_dimension_numbers<[2], [1], [1], [2], [0, 0, 0, 1, 1, 2], [0], [0]>} : vector<32x17x17xbf16>, vector<32x17x16xbf16>, vector<32x17x16xf32> -> vector<32x17x16xf32>
    "tpu.trace_stop"() : () -> ()
    %18 = arith.truncf %17 : vector<32x17x16xf32> to vector<32x17x16xbf16>
    %c0_12 = arith.constant 0 : index
    %c0_13 = arith.constant 0 : index
    %c0_14 = arith.constant 0 : index
    %19 = vector.load %arg4[%c0_12, %c0_13, %c0_14] : memref<32x17x16xbf16, #tpu.memory_space<vmem>>, vector<32x17x16xbf16>
    tpu.vector_store %arg4[%c0_12, %c0_13, %c0_14], %18 {strides = array<i32>} : memref<32x17x16xbf16, #tpu.memory_space<vmem>>, vector<32x17x16xbf16>,
    return
  }
  func.func @transform_0(%arg0: i32) -> (i32, i32, i32) {
    %c0_i32 = arith.constant 0 : i32
    %c0_i32_0 = arith.constant 0 : i32
    %c0_i32_1 = arith.constant 0 : i32
    return %arg0, %c0_i32, %c0_i32_0 : i32, i32, i32
  }
  func.func @transform_1(%arg0: i32) -> (i32, i32, i32) {
    %c0_i32 = arith.constant 0 : i32
    %c0_i32_0 = arith.constant 0 : i32
    %c0_i32_1 = arith.constant 0 : i32
    return %arg0, %c0_i32, %c0_i32_0 : i32, i32, i32
  }
  func.func @transform_2(%arg0: i32) -> (i32, i32, i32) {
    %c0_i32 = arith.constant 0 : i32
    %c0_i32_0 = arith.constant 0 : i32
    %c0_i32_1 = arith.constant 0 : i32
    return %arg0, %c0_i32, %c0_i32_0 : i32, i32, i32
  }
  func.func @transform_3(%arg0: i32) -> (i32, i32, i32) {
    %c0_i32 = arith.constant 0 : i32
    %c0_i32_0 = arith.constant 0 : i32
    %c0_i32_1 = arith.constant 0 : i32
    return %arg0, %c0_i32, %c0_i32_0 : i32, i32, i32
  }
}

module attributes {stable_mosaic.version = 11 : i64} {
  func.func @mlp_kernel(%arg0: i32, %arg1: memref<128x64xf32, #tpu.memory_space<vmem>>, %arg2: memref<1x64xf32, #tpu.memory_space<vmem>>, %arg3: memref<1x64xf32, #tpu.memory_space<vmem>>, %arg4: memref<64x128xbf16, #tpu.memory_space<vmem>>, %arg5: memref<1x128xf32, #tpu.memory_space<vmem>>, %arg6: memref<128x64xbf16, #tpu.memory_space<vmem>>, %arg7: memref<1x64xf32, #tpu.memory_space<vmem>>, %arg8: memref<128x64xf32, #tpu.memory_space<vmem>>) attributes {dimension_semantics = [#tpu.dimension_semantics<parallel>], iteration_bounds = array<i64: 2>, scalar_prefetch = 0 : i64, scratch_operands = 0 : i64, tpu.core_type = #tpu.core_type<tc>, window_params = [{transform_indices = @transform_0, window_bounds = array<i64: 128, 64>}, {pipeline_mode = #tpu.pipeline_mode<synchronous>, transform_indices = @transform_1, window_bounds = array<i64: 1, 64>}, {pipeline_mode = #tpu.pipeline_mode<synchronous>, transform_indices = @transform_2, window_bounds = array<i64: 1, 64>}, {pipeline_mode = #tpu.pipeline_mode<synchronous>, transform_indices = @transform_3, window_bounds = array<i64: 64, 128>}, {pipeline_mode = #tpu.pipeline_mode<synchronous>, transform_indices = @transform_4, window_bounds = array<i64: 1, 128>}, {pipeline_mode = #tpu.pipeline_mode<synchronous>, transform_indices = @transform_5, window_bounds = array<i64: 128, 64>}, {pipeline_mode = #tpu.pipeline_mode<synchronous>, transform_indices = @transform_6, window_bounds = array<i64: 1, 64>}, {transform_indices = @transform_7, window_bounds = array<i64: 128, 64>}]} {
    %c0 = arith.constant 0 : index
    %c0_0 = arith.constant 0 : index
    %0 = vector.load %arg1[%c0, %c0_0] : memref<128x64xf32, #tpu.memory_space<vmem>>, vector<128x64xf32>
    %c0_1 = arith.constant 0 : index
    %c0_2 = arith.constant 0 : index
    %1 = vector.load %arg2[%c0_1, %c0_2] : memref<1x64xf32, #tpu.memory_space<vmem>>, vector<1x64xf32>
    %c0_3 = arith.constant 0 : index
    %c0_4 = arith.constant 0 : index
    %2 = vector.load %arg3[%c0_3, %c0_4] : memref<1x64xf32, #tpu.memory_space<vmem>>, vector<1x64xf32>
    %cst = arith.constant dense<0.000000e+00> : vector<128xf32>
    %3 = vector.multi_reduction <add>, %0, %cst [1] : vector<128x64xf32> to vector<128xf32>
    %4 = vector.shape_cast %3 : vector<128xf32> to vector<128x1xf32>
    %cst_5 = arith.constant 6.400000e+01 : f32
    %5 = vector.broadcast %cst_5 : f32 to vector<128x1xf32>
    %6 = arith.divf %4, %5 : vector<128x1xf32>
    %7 = vector.broadcast %6 : vector<128x1xf32> to vector<128x64xf32>
    %8 = arith.subf %0, %7 : vector<128x64xf32>
    %9 = arith.mulf %8, %8 : vector<128x64xf32>
    %cst_6 = arith.constant dense<0.000000e+00> : vector<128xf32>
    %10 = vector.multi_reduction <add>, %9, %cst_6 [1] : vector<128x64xf32> to vector<128xf32>
    %11 = vector.shape_cast %10 : vector<128xf32> to vector<128x1xf32>
    %cst_7 = arith.constant 6.400000e+01 : f32
    %12 = vector.broadcast %cst_7 : f32 to vector<128x1xf32>
    %13 = arith.divf %11, %12 : vector<128x1xf32>
    %14 = vector.broadcast %6 : vector<128x1xf32> to vector<128x64xf32>
    %15 = arith.subf %0, %14 : vector<128x64xf32>
    %cst_8 = arith.constant 9.99999974E-6 : f32
    %16 = vector.broadcast %cst_8 : f32 to vector<128x1xf32>
    %17 = arith.addf %13, %16 : vector<128x1xf32>
    %18 = math.rsqrt %17 : vector<128x1xf32>
    %19 = vector.broadcast %18 : vector<128x1xf32> to vector<128x64xf32>
    %20 = arith.mulf %15, %19 : vector<128x64xf32>
    %21 = vector.broadcast %1 : vector<1x64xf32> to vector<128x64xf32>
    %22 = arith.mulf %20, %21 : vector<128x64xf32>
    %23 = vector.broadcast %2 : vector<1x64xf32> to vector<128x64xf32>
    %24 = arith.addf %22, %23 : vector<128x64xf32>
    %25 = arith.truncf %24 : vector<128x64xf32> to vector<128x64xbf16>
    %c0_9 = arith.constant 0 : index
    %c0_10 = arith.constant 0 : index
    %26 = vector.load %arg4[%c0_9, %c0_10] : memref<64x128xbf16, #tpu.memory_space<vmem>>, vector<64x128xbf16>
    %cst_11 = arith.constant dense<0.000000e+00> : vector<128x128xf32>
    %27 = tpu.matmul %25, %26, %cst_11 {dimension_numbers = #tpu.dot_dimension_numbers<[1], [0], [0], [1], [0, 0, 1, 1], [], []>} : vector<128x64xbf16>, vector<64x128xbf16>, vector<128x128xf32> -> vector<128x128xf32>
    %c0_12 = arith.constant 0 : index
    %c0_13 = arith.constant 0 : index
    %28 = vector.load %arg5[%c0_12, %c0_13] : memref<1x128xf32, #tpu.memory_space<vmem>>, vector<1x128xf32>
    %29 = vector.broadcast %28 : vector<1x128xf32> to vector<128x128xf32>
    %30 = arith.addf %27, %29 : vector<128x128xf32>
    %cst_14 = arith.constant 5.000000e-01 : f32
    %31 = vector.broadcast %cst_14 : f32 to vector<128x128xf32>
    %32 = arith.mulf %31, %30 : vector<128x128xf32>
    %cst_15 = arith.constant 0.707106769 : f32
    %33 = vector.broadcast %cst_15 : f32 to vector<128x128xf32>
    %34 = arith.mulf %30, %33 : vector<128x128xf32>
    %cst_16 = arith.constant 0.000000e+00 : f32
    %35 = vector.broadcast %cst_16 : f32 to vector<128x128xf32>
    %36 = arith.cmpf oge, %34, %35 : vector<128x128xf32>
    %cst_17 = arith.constant 1.000000e+00 : f32
    %cst_18 = arith.constant -1.000000e+00 : f32
    %37 = vector.broadcast %cst_17 : f32 to vector<128x128xf32>
    %38 = vector.broadcast %cst_18 : f32 to vector<128x128xf32>
    %39 = arith.select %36, %37, %38 : vector<128x128xi1>, vector<128x128xf32>
    %40 = math.absf %34 : vector<128x128xf32>
    %cst_19 = arith.constant 0.327591091 : f32
    %41 = vector.broadcast %cst_19 : f32 to vector<128x128xf32>
    %42 = arith.mulf %41, %40 : vector<128x128xf32>
    %cst_20 = arith.constant 1.000000e+00 : f32
    %43 = vector.broadcast %cst_20 : f32 to vector<128x128xf32>
    %44 = arith.addf %43, %42 : vector<128x128xf32>
    %45 = tpu.reciprocal %44 {approx = true} : vector<128x128xf32> -> vector<128x128xf32>
    %cst_21 = arith.constant 1.06140542 : f32
    %46 = vector.broadcast %cst_21 : f32 to vector<128x128xf32>
    %47 = arith.mulf %45, %46 : vector<128x128xf32>
    %cst_22 = arith.constant -1.45315206 : f32
    %48 = vector.broadcast %cst_22 : f32 to vector<128x128xf32>
    %49 = arith.addf %48, %47 : vector<128x128xf32>
    %50 = arith.mulf %45, %49 : vector<128x128xf32>
    %cst_23 = arith.constant 1.42141378 : f32
    %51 = vector.broadcast %cst_23 : f32 to vector<128x128xf32>
    %52 = arith.addf %51, %50 : vector<128x128xf32>
    %53 = arith.mulf %45, %52 : vector<128x128xf32>
    %cst_24 = arith.constant -0.284496725 : f32
    %54 = vector.broadcast %cst_24 : f32 to vector<128x128xf32>
    %55 = arith.addf %54, %53 : vector<128x128xf32>
    %56 = arith.mulf %45, %55 : vector<128x128xf32>
    %cst_25 = arith.constant 0.254829586 : f32
    %57 = vector.broadcast %cst_25 : f32 to vector<128x128xf32>
    %58 = arith.addf %57, %56 : vector<128x128xf32>
    %59 = arith.mulf %45, %58 : vector<128x128xf32>
    %cst_26 = arith.constant 0.000000e+00 : f32
    %60 = vector.broadcast %cst_26 : f32 to vector<128x128xf32>
    %61 = arith.subf %60, %40 : vector<128x128xf32>
    %62 = arith.mulf %61, %40 : vector<128x128xf32>
    %63 = math.exp %62 : vector<128x128xf32>
    %64 = arith.mulf %59, %63 : vector<128x128xf32>
    %cst_27 = arith.constant 1.000000e+00 : f32
    %65 = vector.broadcast %cst_27 : f32 to vector<128x128xf32>
    %66 = arith.subf %65, %64 : vector<128x128xf32>
    %67 = arith.mulf %39, %66 : vector<128x128xf32>
    %cst_28 = arith.constant 1.000000e+00 : f32
    %68 = vector.broadcast %cst_28 : f32 to vector<128x128xf32>
    %69 = arith.addf %68, %67 : vector<128x128xf32>
    %70 = arith.mulf %32, %69 : vector<128x128xf32>
    %71 = arith.truncf %70 : vector<128x128xf32> to vector<128x128xbf16>
    %c0_29 = arith.constant 0 : index
    %c0_30 = arith.constant 0 : index
    %72 = vector.load %arg6[%c0_29, %c0_30] : memref<128x64xbf16, #tpu.memory_space<vmem>>, vector<128x64xbf16>
    %cst_31 = arith.constant dense<0.000000e+00> : vector<128x64xf32>
    %73 = tpu.matmul %71, %72, %cst_31 {dimension_numbers = #tpu.dot_dimension_numbers<[1], [0], [0], [1], [0, 0, 1, 1], [], []>} : vector<128x128xbf16>, vector<128x64xbf16>, vector<128x64xf32> -> vector<128x64xf32>
    %c0_32 = arith.constant 0 : index
    %c0_33 = arith.constant 0 : index
    %74 = vector.load %arg7[%c0_32, %c0_33] : memref<1x64xf32, #tpu.memory_space<vmem>>, vector<1x64xf32>
    %75 = vector.broadcast %74 : vector<1x64xf32> to vector<128x64xf32>
    %76 = arith.addf %73, %75 : vector<128x64xf32>
    %77 = arith.addf %76, %0 : vector<128x64xf32>
    %c0_34 = arith.constant 0 : index
    %c0_35 = arith.constant 0 : index
    %78 = vector.load %arg8[%c0_34, %c0_35] : memref<128x64xf32, #tpu.memory_space<vmem>>, vector<128x64xf32>
    tpu.vector_store %arg8[%c0_34, %c0_35], %77 {strides = array<i32>} : memref<128x64xf32, #tpu.memory_space<vmem>>, vector<128x64xf32>,
    return
  }
  func.func @transform_0(%arg0: i32) -> (i32, i32) {
    %c0_i32 = arith.constant 0 : i32
    %c0_i32_0 = arith.constant 0 : i32
    return %arg0, %c0_i32 : i32, i32
  }
  func.func @transform_1(%arg0: i32) -> (i32, i32) {
    %c0_i32 = arith.constant 0 : i32
    %c0_i32_0 = arith.constant 0 : i32
    %c0_i32_1 = arith.constant 0 : i32
    return %c0_i32, %c0_i32_0 : i32, i32
  }
  func.func @transform_2(%arg0: i32) -> (i32, i32) {
    %c0_i32 = arith.constant 0 : i32
    %c0_i32_0 = arith.constant 0 : i32
    %c0_i32_1 = arith.constant 0 : i32
    return %c0_i32, %c0_i32_0 : i32, i32
  }
  func.func @transform_3(%arg0: i32) -> (i32, i32) {
    %c0_i32 = arith.constant 0 : i32
    %c0_i32_0 = arith.constant 0 : i32
    %c0_i32_1 = arith.constant 0 : i32
    return %c0_i32, %c0_i32_0 : i32, i32
  }
  func.func @transform_4(%arg0: i32) -> (i32, i32) {
    %c0_i32 = arith.constant 0 : i32
    %c0_i32_0 = arith.constant 0 : i32
    %c0_i32_1 = arith.constant 0 : i32
    return %c0_i32, %c0_i32_0 : i32, i32
  }
  func.func @transform_5(%arg0: i32) -> (i32, i32) {
    %c0_i32 = arith.constant 0 : i32
    %c0_i32_0 = arith.constant 0 : i32
    %c0_i32_1 = arith.constant 0 : i32
    return %c0_i32, %c0_i32_0 : i32, i32
  }
  func.func @transform_6(%arg0: i32) -> (i32, i32) {
    %c0_i32 = arith.constant 0 : i32
    %c0_i32_0 = arith.constant 0 : i32
    %c0_i32_1 = arith.constant 0 : i32
    return %c0_i32, %c0_i32_0 : i32, i32
  }
  func.func @transform_7(%arg0: i32) -> (i32, i32) {
    %c0_i32 = arith.constant 0 : i32
    %c0_i32_0 = arith.constant 0 : i32
    return %arg0, %c0_i32 : i32, i32
  }
}

</mosaic_0001>

<bundles_post_ra>
// kernel: timesformer_block.7
= control target key start
LH: loop header
LB: loop body
LE: loop exit
PB: predicated region body
PF: predicated region fallthrough
CT: control target
= control target key end

     0   :  { %s1000_s15 = smov 0   ;;  %s1330_s0 = inlined_call_operand.vmem [shape: f32[256,64], index: 0, kind: input, shape index: {}]   ;;  %s1331_s1 = inlined_call_operand.vmem [shape: f32[1,64], index: 1, kind: input, shape index: {}]   ;;  %s1332_s2 = inlined_call_operand.vmem [shape: f32[1,64], index: 2, kind: input, shape index: {}]   ;;  %s1333_s3 = inlined_call_operand.vmem [shape: bf16[64,192], index: 3, kind: input, shape index: {}]   ;;  %s1334_s4 = inlined_call_operand.vmem [shape: bf16[256,192], index: 4, kind: output, shape index: {}]  }
   0x1 LB: > { %s842_s16 = sadd.s32 4294967295, %s972_s15   ;;  %p846_p0 = scmp.ge.s32.totalorder %s972_s15, 1  ;;  %s972_s15 = sphi %s1000_s15, %s14_s15  }
   0x2   : > { %p163_p1 = scmp.lt.s32.totalorder %s972_s15, 3 }
   0x4   : > { %p164_p2 = pnand %p846_p0, %p163_p1 }
   0x5   : > { %s847_s17 = sshll.u32 (!%p164_p2), %s842_s16, 4  ;;  %vm222_vm0 = vcmask (!%p164_p2), 523264   ;;  %vm765_vm1 = vcmask (!%p164_p2), 1043456   ;;  %vm766_vm2 = vcmask (!%p164_p2), 523268  }
   0x6   : > { %167 = sbr.rel (%p164_p2) target bundleno = 582 (0x246), region = 36  ;;  %p191_p3 = scmp.lt.s32.totalorder (!%p164_p2), %s847_s17, 31  ;;  %vm1275_vm3 = vmor (!%p164_p2), %vm766_vm2, %vm765_vm1 }
   0xd   : > { %s1338_s17 = smov (!%p191_p3, %s847_s17), 31 }
   0xe   : > { %s848_s18 = sshll.u32 %s1338_s17, 3 }
   0xf   : > { %s1016_s21 = scalar_lea.vmem %s1330_s0, %s848_s18 }
  0x10   : > { %v204_v0 = vld [vmem:[%s1016_s21] sm:$0xff]  ;;  %v205_v2 = vld [vmem:[%s1016_s21 + $0x8] sm:$0xff]  ;;  %v206_v8 = vld [vmem:[%s1016_s21 + $0x10] sm:$0xff] }
  0x11   : > { %v212_v1 = vld [vmem:[%s1016_s21 + $0x40] sm:$0xff]  ;;  %v223_v3 = vsel %vm222_vm0, %v204_v0, 0.0  ;;  %v213_v5 = vld [vmem:[%s1016_s21 + $0x48] sm:$0xff]  ;;  %v226_v6 = vsel %vm222_vm0, %v205_v2, 0.0  ;;  %v207_v9 = vld [vmem:[%s1016_s21 + $0x18] sm:$0xff]  ;;  %v229_v10 = vsel %vm222_vm0, %v206_v8, 0.0 }
  0x12   : > { %v247_v4 = vsel %vm222_vm0, %v212_v1, 0.0  ;;  %224 = vadd.xlane.f32.xlu0 %v223_v3  ;;  %v250_v7 = vsel %vm222_vm0, %v213_v5, 0.0  ;;  %v232_v11 = vsel %vm222_vm0, %v207_v9, 0.0  ;;  %v1031_v12 = vld [vmem:[%s1016_s21 + $0x50] sm:$0xff]  ;;  %v1034_v13 = vld [vmem:[%s1016_s21 + $0x58] sm:$0xff]  ;;  %v1041_v16 = vld [vmem:[%s1016_s21 + $0x20] sm:$0xff] }
  0x13   : > { %248 = vadd.xlane.f32.xlu1 %v247_v4  ;;  %v253_v14 = vsel %vm222_vm0, %v1031_v12, 0.0  ;;  %v256_v15 = vsel %vm222_vm0, %v1034_v13, 0.0  ;;  %v1044_v17 = vld [vmem:[%s1016_s21 + $0x28] sm:$0xff]  ;;  %v235_v18 = vsel %vm222_vm0, %v1041_v16, 0.0  ;;  %v1051_v20 = vld [vmem:[%s1016_s21 + $0x60] sm:$0xff]  ;;  %v1061_v24 = vld [vmem:[%s1016_s21 + $0x30] sm:$0xff] }
  0x14   : > { %v238_v19 = vsel %vm222_vm0, %v1044_v17, 0.0  ;;  %v1054_v21 = vld [vmem:[%s1016_s21 + $0x68] sm:$0xff]  ;;  %v259_v22 = vsel %vm222_vm0, %v1051_v20, 0.0  ;;  %v1064_v25 = vld [vmem:[%s1016_s21 + $0x38] sm:$0xff]  ;;  %v241_v26 = vsel %vm222_vm0, %v1061_v24, 0.0  ;;  %v1071_v28 = vld [vmem:[%s1016_s21 + $0x70] sm:$0xff] }
  0x15   : > { %v262_v23 = vsel %vm222_vm0, %v1054_v21, 0.0  ;;  %v244_v27 = vsel %vm222_vm0, %v1064_v25, 0.0  ;;  %v1074_v29 = vld [vmem:[%s1016_s21 + $0x78] sm:$0xff]  ;;  %v265_v30 = vsel %vm222_vm0, %v1071_v28, 0.0  ;;  %s1273_s21 = scalar_lea.vmem %s1334_s4, %s848_s18 }
  0x16   : > { %227 = vadd.xlane.f32.xlu0 %v226_v6  ;;  %v268_v31 = vsel %vm222_vm0, %v1074_v29, 0.0 }
  0x17   : > { %251 = vadd.xlane.f32.xlu1 %v250_v7 }
  0x1a   : > { %230 = vadd.xlane.f32.xlu0 %v229_v10 }
  0x1b   : > { %233 = vadd.xlane.f32.xlu1 %v232_v11 }
  0x1e   : > { %254 = vadd.xlane.f32.xlu0 %v253_v14 }
  0x1f   : > { %257 = vadd.xlane.f32.xlu1 %v256_v15 }
  0x22   : > { %236 = vadd.xlane.f32.xlu0 %v235_v18 }
  0x23   : > { %239 = vadd.xlane.f32.xlu1 %v238_v19 }
  0x26   : > { %260 = vadd.xlane.f32.xlu0 %v259_v22 }
  0x27   : > { %263 = vadd.xlane.f32.xlu1 %v262_v23 }
  0x2a   : > { %242 = vadd.xlane.f32.xlu0 %v241_v26 }
  0x2b   : > { %245 = vadd.xlane.f32.xlu1 %v244_v27 }
  0x2e   : > { %266 = vadd.xlane.f32.xlu0 %v265_v30 }
  0x2f   : > { %269 = vadd.xlane.f32.xlu1 %v268_v31 }
  0x9f   : > { %v225_v32 = vpop.xlane.xlu0 %224 }
  0xa0   : > { %v249_v33 = vpop.xlane.xlu1 %248  ;;  %v272_v34 = vmul.f32 0.015625, %v225_v32 }
  0xa1   : > { %v280_v35 = vmul.f32 0.015625, %v249_v33 }
  0xa2   : > { %v1080_v36 = vsub.f32 %v204_v0, %v272_v34 }
  0xa3   : > { %v1082_v37 = vsub.f32 %v212_v1, %v280_v35  ;;  %v228_v38 = vpop.xlane.xlu0 %227 }
  0xa4   : > { %v252_v39 = vpop.xlane.xlu1 %251  ;;  %v273_v40 = vmul.f32 0.015625, %v228_v38  ;;  %v304_v42 = vmul.f32 %v1080_v36, %v1080_v36 }
  0xa5   : > { %v281_v41 = vmul.f32 0.015625, %v252_v39  ;;  %v312_v43 = vmul.f32 %v1082_v37, %v1082_v37 }
  0xa6   : > { %v1088_v44 = vsub.f32 %v205_v2, %v273_v40  ;;  %v320_v46 = vsel %vm222_vm0, %v304_v42, 0.0 }
  0xa7   : > { %v1090_v45 = vsub.f32 %v213_v5, %v281_v41  ;;  %321 = vadd.xlane.f32.xlu0 %v320_v46  ;;  %v231_v47 = vpop.xlane.xlu0 %230  ;;  %v344_v49 = vsel %vm222_vm0, %v312_v43, 0.0 }
  0xa8   : > { %v234_v48 = vpop.xlane.xlu1 %233  ;;  %v274_v50 = vmul.f32 0.015625, %v231_v47  ;;  %v305_v52 = vmul.f32 %v1088_v44, %v1088_v44 }
  0xa9   : > { %v275_v51 = vmul.f32 0.015625, %v234_v48  ;;  %v313_v53 = vmul.f32 %v1090_v45, %v1090_v45 }
  0xaa   : > { %v1098_v54 = vsub.f32 %v206_v8, %v274_v50  ;;  %v323_v56 = vsel %vm222_vm0, %v305_v52, 0.0 }
  0xab   : > { %v1100_v55 = vsub.f32 %v207_v9, %v275_v51  ;;  %345 = vadd.xlane.f32.xlu0 %v344_v49  ;;  %324 = vadd.xlane.f32.xlu1 %v323_v56  ;;  %v255_v57 = vpop.xlane.xlu0 %254  ;;  %v347_v59 = vsel %vm222_vm0, %v313_v53, 0.0  ;;  %v922_v49 = vld [vmem:[%s1333_s3 + $0x4] ss:$8 sps:$4 sm:$0xff]   ;;  %v925_v53 = vld [vmem:[%s1333_s3 + $0x14] ss:$8 sps:$4 sm:$0xff]  }
  0xac   : > { %v258_v58 = vpop.xlane.xlu1 %257  ;;  %v282_v60 = vmul.f32 0.015625, %v255_v57  ;;  %v306_v62 = vmul.f32 %v1098_v54, %v1098_v54  ;;  %556 = vmatprep.subr.bf16.mxu0 %v922_v49  ;;  %905 = vmatprep.subr.bf16.mxu1 %v922_v49  ;;  %v927_v57 = vld [vmem:[%s1333_s3 + $0x10] ss:$8 sps:$4 sm:$0xff]  }
  0xad   : > { %v283_v61 = vmul.f32 0.015625, %v258_v58  ;;  %v307_v63 = vmul.f32 %v1100_v55, %v1100_v55  ;;  %v928_v58 = vld [vmem:[%s1333_s3 + $0x24] ss:$8 sps:$4 sm:$0xff]  }
  0xae   : > { %v1109_v0 = vsub.f32 %v1031_v12, %v282_v60  ;;  %v326_v2 = vsel %vm222_vm0, %v306_v62, 0.0  ;;  %v931_v60 = vld [vmem:[%s1333_s3 + $0x34] ss:$8 sps:$4 sm:$0xff]   ;;  %v974_v62 = vmov 0  }
  0xaf   : > { %v1112_v1 = vsub.f32 %v1034_v13, %v283_v61  ;;  %348 = vadd.xlane.f32.xlu1 %v347_v59  ;;  %327 = vadd.xlane.f32.xlu0 %v326_v2  ;;  %v237_v3 = vpop.xlane.xlu0 %236  ;;  %v329_v5 = vsel %vm222_vm0, %v307_v63, 0.0  ;;  %v930_v59 = vld [vmem:[%s1333_s3 + $0x20] ss:$8 sps:$4 sm:$0xff]   ;;  %v933_v61 = vld [vmem:[%s1333_s3 + $0x30] ss:$8 sps:$4 sm:$0xff]  }
  0xb0   : > { %v240_v4 = vpop.xlane.xlu1 %239  ;;  %v276_v6 = vmul.f32 0.015625, %v237_v3  ;;  %v314_v8 = vmul.f32 %v1109_v0, %v1109_v0  ;;  %588 = vmatprep.mubr.bf16.mxu0 %v974_v62  ;;  %628 = vmatprep.mubr.bf16.mxu1 %v974_v62 }
  0xb1   : > { %v277_v7 = vmul.f32 0.015625, %v240_v4  ;;  %v315_v9 = vmul.f32 %v1112_v1, %v1112_v1 }
  0xb2   : > { %v1121_v10 = vsub.f32 %v1041_v16, %v276_v6  ;;  %v350_v12 = vsel %vm222_vm0, %v314_v8, 0.0 }
  0xb3   : > { %v1124_v11 = vsub.f32 %v1044_v17, %v277_v7  ;;  %330 = vadd.xlane.f32.xlu1 %v329_v5  ;;  %351 = vadd.xlane.f32.xlu0 %v350_v12  ;;  %v261_v13 = vpop.xlane.xlu0 %260  ;;  %v353_v15 = vsel %vm222_vm0, %v315_v9, 0.0 }
  0xb4   : > { %v264_v14 = vpop.xlane.xlu1 %263  ;;  %v284_v18 = vmul.f32 0.015625, %v261_v13  ;;  %v308_v22 = vmul.f32 %v1121_v10, %v1121_v10 }
  0xb5   : > { %v285_v19 = vmul.f32 0.015625, %v264_v14  ;;  %v309_v16 = vmul.f32 %v1124_v11, %v1124_v11 }
  0xb6   : > { %v1133_v23 = vsub.f32 %v1051_v20, %v284_v18  ;;  %v332_v26 = vsel %vm222_vm0, %v308_v22, 0.0 }
  0xb7   : > { %v1136_v17 = vsub.f32 %v1054_v21, %v285_v19  ;;  %354 = vadd.xlane.f32.xlu1 %v353_v15  ;;  %333 = vadd.xlane.f32.xlu0 %v332_v26  ;;  %v243_v27 = vpop.xlane.xlu0 %242  ;;  %v335_v31 = vsel %vm222_vm0, %v309_v16, 0.0 }
  0xb8   : > { %v246_v30 = vpop.xlane.xlu1 %245  ;;  %v278_v32 = vmul.f32 0.015625, %v243_v27  ;;  %v316_v34 = vmul.f32 %v1133_v23, %v1133_v23 }
  0xb9   : > { %v279_v33 = vmul.f32 0.015625, %v246_v30  ;;  %v317_v20 = vmul.f32 %v1136_v17, %v1136_v17 }
  0xba   : > { %v1145_v35 = vsub.f32 %v1061_v24, %v278_v32  ;;  %v356_v38 = vsel %vm222_vm0, %v316_v34, 0.0 }
  0xbb   : > { %v1148_v21 = vsub.f32 %v1064_v25, %v279_v33  ;;  %336 = vadd.xlane.f32.xlu1 %v335_v31  ;;  %357 = vadd.xlane.f32.xlu0 %v356_v38  ;;  %v267_v39 = vpop.xlane.xlu0 %266  ;;  %v359_v41 = vsel %vm222_vm0, %v317_v20, 0.0 }
  0xbc   : > { %v270_v40 = vpop.xlane.xlu1 %269  ;;  %v286_v42 = vmul.f32 0.015625, %v267_v39  ;;  %v310_v46 = vmul.f32 %v1145_v35, %v1145_v35 }
  0xbd   : > { %v287_v43 = vmul.f32 0.015625, %v270_v40  ;;  %v311_v24 = vmul.f32 %v1148_v21, %v1148_v21  ;;  %v1200_v40 = vld [vmem:[%s1331_s1] ss:$0 sm:$0xff] }
  0xbe   : > { %v1157_v47 = vsub.f32 %v1071_v28, %v286_v42  ;;  %v338_v48 = vsel %vm222_vm0, %v310_v46, 0.0 }
  0xbf   : > { %v1160_v25 = vsub.f32 %v1074_v29, %v287_v43  ;;  %360 = vadd.xlane.f32.xlu1 %v359_v41  ;;  %339 = vadd.xlane.f32.xlu0 %v338_v48  ;;  %v341_v50 = vsel %vm222_vm0, %v311_v24, 0.0  ;;  %v924_v29 = vld [vmem:[%s1333_s3] ss:$8 sps:$4 sm:$0xff]  }
  0xc0   : > { %v318_v51 = vmul.f32 %v1157_v47, %v1157_v47  ;;  %557 = vmatpush1.bf16.msra.mxu0 %v924_v29  ;;  %909 = vmatpush1.bf16.msra.mxu1 %v924_v29  ;;  %v1208_v29 = vld [vmem:[%s1332_s2] ss:$0 sm:$0xff] }
  0xc1   : > { %v319_v28 = vmul.f32 %v1160_v25, %v1160_v25  ;;  %558 = vmatprep.subr.bf16.mxu0 %v925_v53  ;;  %906 = vmatprep.subr.bf16.mxu1 %v925_v53 }
  0xc2   : > { %v362_v52 = vsel %vm222_vm0, %v318_v51, 0.0 }
  0xc3   : > { %342 = vadd.xlane.f32.xlu1 %v341_v50  ;;  %363 = vadd.xlane.f32.xlu0 %v362_v52  ;;  %v365_v56 = vsel %vm222_vm0, %v319_v28, 0.0 }
  0xc4   : > { %559 = vmatpush1.bf16.msra.mxu0 %v927_v57  ;;  %910 = vmatpush1.bf16.msra.mxu1 %v927_v57 }
  0xc5   : > { %560 = vmatprep.subr.bf16.mxu0 %v928_v58  ;;  %907 = vmatprep.subr.bf16.mxu1 %v928_v58 }
  0xc7   : > { %366 = vadd.xlane.f32.xlu1 %v365_v56 }
  0xc8   : > { %561 = vmatpush1.bf16.msra.mxu0 %v930_v59  ;;  %911 = vmatpush1.bf16.msra.mxu1 %v930_v59 }
  0xc9   : > { %562 = vmatprep.subr.bf16.mxu0 %v931_v60  ;;  %908 = vmatprep.subr.bf16.mxu1 %v931_v60 }
  0xcc   : > { %563 = vmatpush1.bf16.msra.mxu0 %v933_v61  ;;  %912 = vmatpush1.bf16.msra.mxu1 %v933_v61 }
 0x134   : > { %v322_v63 = vpop.xlane.xlu0 %321 }
 0x135   : > { %v368_v2 = vmul.f32 0.015625, %v322_v63 }
 0x137   : > { %v384_v3 = vadd.f32 1e-05, %v368_v2 }
 0x138   : > { %v325_v4 = vpop.xlane.xlu1 %324  ;;  %v346_v5 = vpop.xlane.xlu0 %345 }
 0x139   : > { %934 = vrsqrt.f32 %v384_v3  ;;  %v369_v6 = vmul.f32 0.015625, %v325_v4  ;;  %v376_v7 = vmul.f32 0.015625, %v346_v5 }
 0x13b   : > { %v385_v8 = vadd.f32 1e-05, %v369_v6  ;;  %v392_v9 = vadd.f32 1e-05, %v376_v7 }
 0x13c   : > { %v349_v12 = vpop.xlane.xlu1 %348  ;;  %v328_v13 = vpop.xlane.xlu0 %327 }
 0x13d   : > { %936 = vrsqrt.f32 %v385_v8  ;;  %v377_v14 = vmul.f32 0.015625, %v349_v12  ;;  %v370_v15 = vmul.f32 0.015625, %v328_v13 }
 0x13e   : > { %938 = vrsqrt.f32 %v392_v9 }
 0x13f   : > { %v393_v18 = vadd.f32 1e-05, %v377_v14  ;;  %v386_v19 = vadd.f32 1e-05, %v370_v15 }
 0x140   : > { %v331_v22 = vpop.xlane.xlu1 %330  ;;  %v352_v16 = vpop.xlane.xlu0 %351 }
 0x141   : > { %940 = vrsqrt.f32 %v393_v18  ;;  %v371_v26 = vmul.f32 0.015625, %v331_v22  ;;  %v378_v27 = vmul.f32 0.015625, %v352_v16 }
 0x142   : > { %942 = vrsqrt.f32 %v386_v19 }
 0x143   : > { %v935_v30 = vpop.eup %934  ;;  %v387_v31 = vadd.f32 1e-05, %v371_v26  ;;  %v394_v32 = vadd.f32 1e-05, %v378_v27 }
 0x144   : > { %v416_v33 = vmul.f32 %v935_v30, %v1080_v36  ;;  %v355_v34 = vpop.xlane.xlu1 %354  ;;  %v334_v20 = vpop.xlane.xlu0 %333 }
 0x145   : > { %944 = vrsqrt.f32 %v387_v31  ;;  %v379_v38 = vmul.f32 0.015625, %v355_v34  ;;  %v372_v39 = vmul.f32 0.015625, %v334_v20 }
 0x146   : > { %946 = vrsqrt.f32 %v394_v32  ;;  %v438_v36 = vmul.f32 %v1200_v40, %v416_v33 }
 0x147   : > { %v937_v41 = vpop.eup %936  ;;  %v395_v42 = vadd.f32 1e-05, %v379_v38  ;;  %v388_v43 = vadd.f32 1e-05, %v372_v39 }
 0x148   : > { %v939_v46 = vpop.eup %938  ;;  %v417_v24 = vmul.f32 %v937_v41, %v1088_v44  ;;  %v337_v48 = vpop.xlane.xlu1 %336 }
 0x149   : > { %v358_v49 = vpop.xlane.xlu0 %357  ;;  %v424_v50 = vmul.f32 %v939_v46, %v1082_v37  ;;  %948 = vrsqrt.f32 %v395_v42  ;;  %v373_v51 = vmul.f32 0.015625, %v337_v48  ;;  %v460_v37 = vadd.f32 %v1208_v29, %v438_v36 }
 0x14a   : > { %v380_v28 = vmul.f32 0.015625, %v358_v49  ;;  %950 = vrsqrt.f32 %v388_v43  ;;  %v439_v52 = vmul.f32 %v1200_v40, %v417_v24 }
 0x14b   : > { %v941_v53 = vpop.eup %940  ;;  %v389_v56 = vadd.f32 1e-05, %v373_v51  ;;  %v446_v63 = vmul.f32 %v1200_v40, %v424_v50 }
 0x14c   : > { %v396_v44 = vadd.f32 1e-05, %v380_v28  ;;  %v943_v57 = vpop.eup %942  ;;  %v425_v58 = vmul.f32 %v941_v53, %v1090_v45  ;;  %v361_v59 = vpop.xlane.xlu1 %360  ;;  %v461_v61 = vadd.f32 %v1208_v29, %v439_v52 }
 0x14d   : > { %v340_v60 = vpop.xlane.xlu0 %339  ;;  %v418_v2 = vmul.f32 %v943_v57, %v1098_v54  ;;  %952 = vrsqrt.f32 %v389_v56  ;;  %v381_v3 = vmul.f32 0.015625, %v361_v59  ;;  %v468_v15 = vadd.f32 %v1208_v29, %v446_v63 }
 0x14e   : > { %v374_v4 = vmul.f32 0.015625, %v340_v60  ;;  %954 = vrsqrt.f32 %v396_v44  ;;  %v476_v5 = vpack.c.bf16 %v461_v61, %v460_v37  ;;  %v447_v6 = vmul.f32 %v1200_v40, %v425_v58 }
 0x14f   : > { %v945_v7 = vpop.eup %944  ;;  %v397_v8 = vadd.f32 1e-05, %v381_v3  ;;  %v440_v18 = vmul.f32 %v1200_v40, %v418_v2 }
 0x150   : > { %v390_v45 = vadd.f32 1e-05, %v374_v4  ;;  %v947_v9 = vpop.eup %946  ;;  %v419_v12 = vmul.f32 %v945_v7, %v1100_v55  ;;  %v343_v13 = vpop.xlane.xlu1 %342  ;;  %862 = vmatmul.mubr.msk.bf16.vlgmr.msra.gmra.mrb[0].mxu0 %vm222_vm0, %v476_v5  ;;  %v469_v54 = vadd.f32 %v1208_v29, %v447_v6 }
 0x151   : > { %v364_v14 = vpop.xlane.xlu0 %363  ;;  %v426_v19 = vmul.f32 %v947_v9, %v1109_v0  ;;  %956 = vrsqrt.f32 %v397_v8  ;;  %v375_v22 = vmul.f32 0.015625, %v343_v13  ;;  %598 = vmatprep.mubr.bf16.mxu0 %v974_v62  ;;  %v462_v0 = vadd.f32 %v1208_v29, %v440_v18 }
 0x152   : > { %v382_v16 = vmul.f32 0.015625, %v364_v14  ;;  %958 = vrsqrt.f32 %v390_v45  ;;  %v480_v26 = vpack.c.bf16 %v469_v54, %v468_v15  ;;  %v441_v55 = vmul.f32 %v1200_v40, %v419_v12 }
 0x153   : > { %v949_v27 = vpop.eup %948  ;;  %v391_v30 = vadd.f32 1e-05, %v375_v22  ;;  %v448_v38 = vmul.f32 %v1200_v40, %v426_v19 }
 0x154   : > { %v398_v31 = vadd.f32 1e-05, %v382_v16  ;;  %v951_v32 = vpop.eup %950  ;;  %v427_v33 = vmul.f32 %v949_v27, %v1112_v1  ;;  %v367_v34 = vpop.xlane.xlu1 %366  ;;  %866 = vmatmul.mubr.msk.bf16.vlgmr.msra.gmra.mrb[0].mxu1 %vm222_vm0, %v480_v26  ;;  %v463_v20 = vadd.f32 %v1208_v29, %v441_v55 }
 0x155   : > { %v420_v39 = vmul.f32 %v951_v32, %v1121_v10  ;;  %960 = vrsqrt.f32 %v391_v30  ;;  %v383_v41 = vmul.f32 0.015625, %v367_v34  ;;  %638 = vmatprep.mubr.bf16.mxu1 %v974_v62  ;;  %v470_v49 = vadd.f32 %v1208_v29, %v448_v38 }
 0x156   : > { %962 = vrsqrt.f32 %v398_v31  ;;  %v477_v42 = vpack.c.bf16 %v463_v20, %v462_v0  ;;  %v449_v43 = vmul.f32 %v1200_v40, %v427_v33 }
 0x157   : > { %v953_v1 = vpop.eup %952  ;;  %v399_v46 = vadd.f32 1e-05, %v383_v41  ;;  %v442_v10 = vmul.f32 %v1200_v40, %v420_v39 }
 0x158   : > { %v955_v24 = vpop.eup %954  ;;  %v421_v48 = vmul.f32 %v953_v1, %v1124_v11  ;;  %863 = vmatmul.mubr.msk.bf16.gmra.mrb[4].mxu0 %vm222_vm0, %v477_v42  ;;  %v471_v36 = vadd.f32 %v1208_v29, %v449_v43 }
 0x159   : > { %v428_v50 = vmul.f32 %v955_v24, %v1133_v23  ;;  %964 = vrsqrt.f32 %v399_v46  ;;  %608 = vmatprep.mubr.bf16.mxu0 %v974_v62  ;;  %v464_v56 = vadd.f32 %v1208_v29, %v442_v10 }
 0x15a   : > { %v481_v51 = vpack.c.bf16 %v471_v36, %v470_v49  ;;  %v443_v28 = vmul.f32 %v1200_v40, %v421_v48 }
 0x15b   : > { %v957_v52 = vpop.eup %956  ;;  %v450_v57 = vmul.f32 %v1200_v40, %v428_v50 }
 0x15c   : > { %v959_v53 = vpop.eup %958  ;;  %v429_v11 = vmul.f32 %v957_v52, %v1136_v17  ;;  %867 = vmatmul.mubr.msk.bf16.gmra.mrb[4].mxu1 %vm222_vm0, %v481_v51  ;;  %v465_v44 = vadd.f32 %v1208_v29, %v443_v28 }
 0x15d   : > { %v422_v23 = vmul.f32 %v959_v53, %v1145_v35  ;;  %648 = vmatprep.mubr.bf16.mxu1 %v974_v62  ;;  %v472_v17 = vadd.f32 %v1208_v29, %v450_v57 }
 0x15e   : > { %v478_v58 = vpack.c.bf16 %v465_v44, %v464_v56  ;;  %v451_v59 = vmul.f32 %v1200_v40, %v429_v11 }
 0x15f   : > { %v961_v60 = vpop.eup %960  ;;  %v444_v2 = vmul.f32 %v1200_v40, %v422_v23 }
 0x160   : > { %v963_v37 = vpop.eup %962  ;;  %v423_v61 = vmul.f32 %v961_v60, %v1148_v21  ;;  %864 = vmatmul.mubr.msk.bf16.gmra.mrb[8].mxu0 %vm222_vm0, %v478_v58  ;;  %v473_v63 = vadd.f32 %v1208_v29, %v451_v59 }
 0x161   : > { %v430_v3 = vmul.f32 %v963_v37, %v1157_v47  ;;  %618 = vmatprep.mubr.bf16.mxu0 %v974_v62  ;;  %v466_v21 = vadd.f32 %v1208_v29, %v444_v2 }
 0x162   : > { %v482_v35 = vpack.c.bf16 %v473_v63, %v472_v17  ;;  %v445_v4 = vmul.f32 %v1200_v40, %v423_v61 }
 0x163   : > { %v965_v5 = vpop.eup %964  ;;  %v452_v8 = vmul.f32 %v1200_v40, %v430_v3 }
 0x164   : > { %v431_v6 = vmul.f32 %v965_v5, %v1160_v25  ;;  %868 = vmatmul.mubr.msk.bf16.gmra.mrb[8].mxu1 %vm222_vm0, %v482_v35  ;;  %v467_v7 = vadd.f32 %v1208_v29, %v445_v4 }
 0x165   : > { %658 = vmatprep.mubr.bf16.mxu1 %v974_v62  ;;  %v474_v9 = vadd.f32 %v1208_v29, %v452_v8 }
 0x166   : > { %v479_v47 = vpack.c.bf16 %v467_v7, %v466_v21  ;;  %v453_v45 = vmul.f32 %v1200_v40, %v431_v6 }
 0x168   : > { %865 = vmatmul.mubr.msk.bf16.gmra.mrb[12].mxu0 %vm222_vm0, %v479_v47  ;;  %v475_v25 = vadd.f32 %v1208_v29, %v453_v45 }
 0x16a   : > { %v483_v12 = vpack.c.bf16 %v475_v25, %v474_v9 }
 0x16c   : > { %869 = vmatmul.mubr.msk.bf16.gmra.mrb[12].mxu1 %vm222_vm0, %v483_v12 }
 0x223   : > { %v590_v13 = vpop.f32.mrb[0].mxu0 }
 0x224   : > { %v592_v62 = vpop.f32.mrb[1].mxu0 }
 0x225   : > { %v889_v29 = vpack.c.bf16 %v592_v62, %v590_v13  ;;  %v594_v14 = vpop.f32.mrb[2].mxu0 }
 0x226   : > { %v596_v15 = vpop.f32.mrb[3].mxu0 }
 0x227   : > { %768 = vst.msk [vmem:[%s1273_s21] sm:$0xff] %vm1275_vm3, %v889_v29  ;;  %v890_v54 = vpack.c.bf16 %v596_v15, %v594_v14  ;;  %v630_v18 = vpop.f32.mrb[0].mxu1 }
 0x228   : > { %v632_v19 = vpop.f32.mrb[1].mxu1 }
 0x229   : > { %769 = vst.msk [vmem:[%s1273_s21 + $0x8] sm:$0xff] %vm1275_vm3, %v890_v54  ;;  %v897_v22 = vpack.c.bf16 %v632_v19, %v630_v18  ;;  %v634_v16 = vpop.f32.mrb[2].mxu1 }
 0x22a   : > { %v636_v26 = vpop.f32.mrb[3].mxu1 }
 0x22b   : > { %776 = vst.msk [vmem:[%s1273_s21 + $0x40] sm:$0xff] %vm1275_vm3, %v897_v22  ;;  %v898_v55 = vpack.c.bf16 %v636_v26, %v634_v16  ;;  %v600_v27 = vpop.f32.mrb[4].mxu0 }
 0x22c   : > { %v602_v30 = vpop.f32.mrb[5].mxu0 }
 0x22d   : > { %777 = vst.msk [vmem:[%s1273_s21 + $0x48] sm:$0xff] %vm1275_vm3, %v898_v55  ;;  %v891_v31 = vpack.c.bf16 %v602_v30, %v600_v27  ;;  %v604_v32 = vpop.f32.mrb[6].mxu0 }
 0x22e   : > { %v606_v33 = vpop.f32.mrb[7].mxu0 }
 0x22f   : > { %770 = vst.msk [vmem:[%s1273_s21 + $0x10] sm:$0xff] %vm1275_vm3, %v891_v31  ;;  %v892_v34 = vpack.c.bf16 %v606_v33, %v604_v32  ;;  %v640_v0 = vpop.f32.mrb[4].mxu1 }
 0x230   : > { %v642_v20 = vpop.f32.mrb[5].mxu1 }
 0x231   : > { %771 = vst.msk [vmem:[%s1273_s21 + $0x18] sm:$0xff] %vm1275_vm3, %v892_v34  ;;  %v899_v38 = vpack.c.bf16 %v642_v20, %v640_v0  ;;  %v644_v39 = vpop.f32.mrb[6].mxu1 }
 0x232   : > { %v646_v41 = vpop.f32.mrb[7].mxu1 }
 0x233   : > { %778 = vst.msk [vmem:[%s1273_s21 + $0x50] sm:$0xff] %vm1275_vm3, %v899_v38  ;;  %v900_v42 = vpack.c.bf16 %v646_v41, %v644_v39  ;;  %v610_v43 = vpop.f32.mrb[8].mxu0 }
 0x234   : > { %v612_v1 = vpop.f32.mrb[9].mxu0 }
 0x235   : > { %779 = vst.msk [vmem:[%s1273_s21 + $0x58] sm:$0xff] %vm1275_vm3, %v900_v42  ;;  %v893_v46 = vpack.c.bf16 %v612_v1, %v610_v43  ;;  %v614_v24 = vpop.f32.mrb[10].mxu0 }
 0x236   : > { %v616_v48 = vpop.f32.mrb[11].mxu0 }
 0x237   : > { %772 = vst.msk [vmem:[%s1273_s21 + $0x20] sm:$0xff] %vm1275_vm3, %v893_v46  ;;  %v894_v49 = vpack.c.bf16 %v616_v48, %v614_v24  ;;  %v650_v36 = vpop.f32.mrb[8].mxu1 }
 0x238   : > { %v652_v10 = vpop.f32.mrb[9].mxu1 }
 0x239   : > { %773 = vst.msk [vmem:[%s1273_s21 + $0x28] sm:$0xff] %vm1275_vm3, %v894_v49  ;;  %v901_v50 = vpack.c.bf16 %v652_v10, %v650_v36  ;;  %v654_v51 = vpop.f32.mrb[10].mxu1 }
 0x23a   : > { %v656_v28 = vpop.f32.mrb[11].mxu1 }
 0x23b   : > { %780 = vst.msk [vmem:[%s1273_s21 + $0x60] sm:$0xff] %vm1275_vm3, %v901_v50  ;;  %v902_v52 = vpack.c.bf16 %v656_v28, %v654_v51  ;;  %v620_v53 = vpop.f32.mrb[12].mxu0 }
 0x23c   : > { %v622_v11 = vpop.f32.mrb[13].mxu0 }
 0x23d   : > { %781 = vst.msk [vmem:[%s1273_s21 + $0x68] sm:$0xff] %vm1275_vm3, %v902_v52  ;;  %v895_v56 = vpack.c.bf16 %v622_v11, %v620_v53  ;;  %v624_v44 = vpop.f32.mrb[14].mxu0 }
 0x23e   : > { %v626_v57 = vpop.f32.mrb[15].mxu0 }
 0x23f   : > { %774 = vst.msk [vmem:[%s1273_s21 + $0x30] sm:$0xff] %vm1275_vm3, %v895_v56  ;;  %v896_v23 = vpack.c.bf16 %v626_v57, %v624_v44  ;;  %v660_v58 = vpop.f32.mrb[12].mxu1 }
 0x240   : > { %v662_v59 = vpop.f32.mrb[13].mxu1 }
 0x241   : > { %775 = vst.msk [vmem:[%s1273_s21 + $0x38] sm:$0xff] %vm1275_vm3, %v896_v23  ;;  %v903_v60 = vpack.c.bf16 %v662_v59, %v660_v58  ;;  %v664_v37 = vpop.f32.mrb[14].mxu1 }
 0x242   : > { %v666_v61 = vpop.f32.mrb[15].mxu1 }
 0x243   : > { %782 = vst.msk [vmem:[%s1273_s21 + $0x70] sm:$0xff] %vm1275_vm3, %v903_v60  ;;  %v904_v17 = vpack.c.bf16 %v666_v61, %v664_v37 }
 0x245   : > { %783 = vst.msk [vmem:[%s1273_s21 + $0x78] sm:$0xff] %vm1275_vm3, %v904_v17 }
 0x246 PF: > { %s14_s15 = sadd.s32 1, %s972_s15  }
 0x247   : > { %p11_p4 = scmp.ge.s32.totalorder %s14_s15, 4  }
 0x249   :  { %13 = sbr.rel (!%p11_p4) target bundleno = 1 (0x1), region = 66 }

// kernel: timesformer_block.9
= control target key start
LH: loop header
LB: loop body
LE: loop exit
PB: predicated region body
PF: predicated region fallthrough
CT: control target
= control target key end

     0   :  { %s632_s12 = smov 0   ;;  %s710_s0 = inlined_call_operand.vmem [shape: bf16[256,64], index: 0, kind: input, shape index: {}]   ;;  %s711_s1 = inlined_call_operand.vmem [shape: bf16[64,64], index: 1, kind: input, shape index: {}]   ;;  %s712_s2 = inlined_call_operand.vmem [shape: f32[256,64], index: 2, kind: input, shape index: {}, may-alias: {2,3}]   ;;  %s713_s3 = inlined_call_operand.vmem [shape: f32[256,64], index: 3, kind: output, shape index: {}, may-alias: {2,3}]  }
   0x1 LB: > { %s507_s13 = sadd.s32 4294967295, %s610_s12   ;;  %p511_p0 = scmp.ge.s32.totalorder %s610_s12, 1  ;;  %s610_s12 = sphi %s632_s12, %s13_s12  }
   0x2   : > { %p149_p1 = scmp.lt.s32.totalorder %s610_s12, 3 }
   0x4   : > { %p150_p2 = pnand %p511_p0, %p149_p1 }
   0x5   : > { %v592_v0 = vld [vmem:[%s711_s1] sm:$0xff] (!%p150_p2)   ;;  %s512_s16 = sshll.u32 (!%p150_p2), %s507_s13, 4  ;;  %v593_v1 = vld [vmem:[%s711_s1 + $0x8] sm:$0xff] (!%p150_p2)   ;;  %v594_v2 = vld [vmem:[%s711_s1 + $0x10] sm:$0xff] (!%p150_p2)   ;;  %vm301_vm0 = vcmask (!%p150_p2), 523264  }
   0x6   : > { %153 = sbr.rel (%p150_p2) target bundleno = 248 (0xf8), region = 32  ;;  %p179_p3 = scmp.lt.s32.totalorder (!%p150_p2), %s512_s16, 31  ;;  %552 = vmatprep.subr.bf16.mxu0 (!%p150_p2), %v592_v0  ;;  %576 = vmatprep.subr.bf16.mxu1 (!%p150_p2), %v592_v0  ;;  %v595_v3 = vld [vmem:[%s711_s1 + $0x18] sm:$0xff] (!%p150_p2)  }
   0x7   : > { %553 = vmatpush3.bf16.msra.mxu0 (!%p150_p2), %v592_v0  ;;  %580 = vmatpush3.bf16.msra.mxu1 (!%p150_p2), %v592_v0 }
   0x8   : > { %554 = vmatprep.subr.bf16.mxu0 (!%p150_p2), %v593_v1  ;;  %577 = vmatprep.subr.bf16.mxu1 (!%p150_p2), %v593_v1 }
   0xb   : > { %555 = vmatpush3.bf16.msra.mxu0 (!%p150_p2), %v593_v1  ;;  %581 = vmatpush3.bf16.msra.mxu1 (!%p150_p2), %v593_v1 }
   0xc   : > { %556 = vmatprep.subr.bf16.mxu0 (!%p150_p2), %v594_v2  ;;  %578 = vmatprep.subr.bf16.mxu1 (!%p150_p2), %v594_v2 }
   0xd   : > { %s715_s16 = smov (!%p179_p3, %s512_s16), 31 }
   0xe   : > { %s513_s21 = sshll.u32 %s715_s16, 2  ;;  %s515_s27 = sshll.u32 %s715_s16, 3 }
   0xf   : > { %s182_s26 = scalar_lea.vmem %s710_s0, %s513_s21  ;;  %557 = vmatpush3.bf16.msra.mxu0 %v594_v2  ;;  %582 = vmatpush3.bf16.msra.mxu1 %v594_v2  ;;  %s188_s30 = scalar_lea.vmem %s712_s2, %s515_s27 }
  0x10   : > { %v596_v4 = vld [vmem:[%s182_s26] sm:$0xff]   ;;  %558 = vmatprep.subr.bf16.mxu0 %v595_v3  ;;  %579 = vmatprep.subr.bf16.mxu1 %v595_v3  ;;  %v598_v6 = vld [vmem:[%s182_s26 + $0x8] sm:$0xff]   ;;  %v600_v8 = vld [vmem:[%s182_s26 + $0x10] sm:$0xff]   ;;  %s673_s6 = scalar_lea.vmem %s713_s3, %s515_s27 }
  0x11   : > { %v597_v5 = vld [vmem:[%s182_s26 + $0x20] sm:$0xff]   ;;  %560 = vmatprep.mubr.msk.bf16.mxu0 %vm301_vm0, %v596_v4  ;;  %v599_v7 = vld [vmem:[%s182_s26 + $0x28] sm:$0xff]   ;;  %v601_v9 = vld [vmem:[%s182_s26 + $0x30] sm:$0xff]  }
  0x12   : > { %568 = vmatprep.mubr.msk.bf16.mxu1 %vm301_vm0, %v597_v5  ;;  %v602_v10 = vld [vmem:[%s182_s26 + $0x18] sm:$0xff]   ;;  %v223_v12 = vld [vmem:[%s188_s30 + $0x10] sm:$0xff]  ;;  %v221_v14 = vld [vmem:[%s188_s30] sm:$0xff] }
  0x13   : > { %559 = vmatpush3.bf16.msra.mxu0 %v595_v3  ;;  %583 = vmatpush3.bf16.msra.mxu1 %v595_v3  ;;  %v603_v11 = vld [vmem:[%s182_s26 + $0x38] sm:$0xff]   ;;  %v231_v13 = vld [vmem:[%s188_s30 + $0x50] sm:$0xff]  ;;  %v229_v15 = vld [vmem:[%s188_s30 + $0x40] sm:$0xff] }
  0x14   : > { %v224_v16 = vld [vmem:[%s188_s30 + $0x18] sm:$0xff]  ;;  %v222_v18 = vld [vmem:[%s188_s30 + $0x8] sm:$0xff]  ;;  %v227_v20 = vld [vmem:[%s188_s30 + $0x30] sm:$0xff] }
  0x15   : > { %v232_v17 = vld [vmem:[%s188_s30 + $0x58] sm:$0xff]  ;;  %v230_v19 = vld [vmem:[%s188_s30 + $0x48] sm:$0xff]  ;;  %v235_v21 = vld [vmem:[%s188_s30 + $0x70] sm:$0xff] }
  0x16   : > { %561 = vmatmul.mubr.msk.bf16.vlgmr.msra.gmra.mrb[0].mxu0 %vm301_vm0, %v598_v6  ;;  %569 = vmatmul.mubr.msk.bf16.vlgmr.msra.gmra.mrb[0].mxu1 %vm301_vm0, %v599_v7  ;;  %v225_v22 = vld [vmem:[%s188_s30 + $0x20] sm:$0xff]  ;;  %v228_v24 = vld [vmem:[%s188_s30 + $0x38] sm:$0xff]  ;;  %v226_v28 = vld [vmem:[%s188_s30 + $0x28] sm:$0xff] }
  0x17   : > { %564 = vmatprep.mubr.msk.bf16.mxu0 %vm301_vm0, %v600_v8  ;;  %572 = vmatprep.mubr.msk.bf16.mxu1 %vm301_vm0, %v601_v9  ;;  %v233_v23 = vld [vmem:[%s188_s30 + $0x60] sm:$0xff]  ;;  %v236_v27 = vld [vmem:[%s188_s30 + $0x78] sm:$0xff]  ;;  %v234_v29 = vld [vmem:[%s188_s30 + $0x68] sm:$0xff] }
  0x1e   : > { %565 = vmatmul.mubr.msk.bf16.gmra.mrb[4].mxu0 %vm301_vm0, %v602_v10  ;;  %573 = vmatmul.mubr.msk.bf16.gmra.mrb[4].mxu1 %vm301_vm0, %v603_v11 }
  0xe9   : > { %v562_v25 = vpop.f32.mrb[0].mxu0  ;;  %v570_v26 = vpop.f32.mrb[0].mxu1 }
  0xea   : > { %v369_v30 = vadd.f32 %v562_v25, %v223_v12  ;;  %v401_v31 = vadd.f32 %v570_v26, %v231_v13  ;;  %v360_v32 = vpop.f32.mrb[1].mxu0  ;;  %v392_v33 = vpop.f32.mrb[1].mxu1 }
  0xeb   : > { %v361_v34 = vadd.f32 %v360_v32, %v221_v14  ;;  %v393_v35 = vadd.f32 %v392_v33, %v229_v15  ;;  %v563_v36 = vpop.f32.mrb[2].mxu0  ;;  %v571_v37 = vpop.f32.mrb[2].mxu1 }
  0xec   : > { %v372_v38 = vadd.f32 %v563_v36, %v224_v16  ;;  %v404_v39 = vadd.f32 %v571_v37, %v232_v17  ;;  %v363_v40 = vpop.f32.mrb[3].mxu0  ;;  %v395_v41 = vpop.f32.mrb[3].mxu1  ;;  %425 = vst.msk [vmem:[%s673_s6 + $0x10] sm:$0xff] %vm301_vm0, %v369_v30  ;;  %433 = vst.msk [vmem:[%s673_s6 + $0x50] sm:$0xff] %vm301_vm0, %v401_v31 }
  0xed   : > { %v364_v42 = vadd.f32 %v363_v40, %v222_v18  ;;  %v396_v43 = vadd.f32 %v395_v41, %v230_v19  ;;  %423 = vst.msk [vmem:[%s673_s6] sm:$0xff] %vm301_vm0, %v361_v34  ;;  %431 = vst.msk [vmem:[%s673_s6 + $0x40] sm:$0xff] %vm301_vm0, %v393_v35 }
  0xee   : > { %426 = vst.msk [vmem:[%s673_s6 + $0x18] sm:$0xff] %vm301_vm0, %v372_v38  ;;  %434 = vst.msk [vmem:[%s673_s6 + $0x58] sm:$0xff] %vm301_vm0, %v404_v39 }
  0xef   : > { %424 = vst.msk [vmem:[%s673_s6 + $0x8] sm:$0xff] %vm301_vm0, %v364_v42  ;;  %432 = vst.msk [vmem:[%s673_s6 + $0x48] sm:$0xff] %vm301_vm0, %v396_v43 }
  0xf1   : > { %v566_v44 = vpop.f32.mrb[4].mxu0  ;;  %v574_v45 = vpop.f32.mrb[4].mxu1 }
  0xf2   : > { %v385_v46 = vadd.f32 %v566_v44, %v227_v20  ;;  %v417_v47 = vadd.f32 %v574_v45, %v235_v21  ;;  %v376_v48 = vpop.f32.mrb[5].mxu0  ;;  %v408_v49 = vpop.f32.mrb[5].mxu1 }
  0xf3   : > { %v377_v50 = vadd.f32 %v376_v48, %v225_v22  ;;  %v409_v51 = vadd.f32 %v408_v49, %v233_v23  ;;  %v567_v52 = vpop.f32.mrb[6].mxu0  ;;  %v575_v53 = vpop.f32.mrb[6].mxu1 }
  0xf4   : > { %v388_v54 = vadd.f32 %v567_v52, %v228_v24  ;;  %v420_v55 = vadd.f32 %v575_v53, %v236_v27  ;;  %v379_v56 = vpop.f32.mrb[7].mxu0  ;;  %v411_v57 = vpop.f32.mrb[7].mxu1  ;;  %429 = vst.msk [vmem:[%s673_s6 + $0x30] sm:$0xff] %vm301_vm0, %v385_v46  ;;  %437 = vst.msk [vmem:[%s673_s6 + $0x70] sm:$0xff] %vm301_vm0, %v417_v47 }
  0xf5   : > { %v380_v58 = vadd.f32 %v379_v56, %v226_v28  ;;  %v412_v59 = vadd.f32 %v411_v57, %v234_v29  ;;  %427 = vst.msk [vmem:[%s673_s6 + $0x20] sm:$0xff] %vm301_vm0, %v377_v50  ;;  %435 = vst.msk [vmem:[%s673_s6 + $0x60] sm:$0xff] %vm301_vm0, %v409_v51 }
  0xf6   : > { %430 = vst.msk [vmem:[%s673_s6 + $0x38] sm:$0xff] %vm301_vm0, %v388_v54  ;;  %438 = vst.msk [vmem:[%s673_s6 + $0x78] sm:$0xff] %vm301_vm0, %v420_v55 }
  0xf7   : > { %428 = vst.msk [vmem:[%s673_s6 + $0x28] sm:$0xff] %vm301_vm0, %v380_v58  ;;  %436 = vst.msk [vmem:[%s673_s6 + $0x68] sm:$0xff] %vm301_vm0, %v412_v59 }
  0xf8 PF: > { %s13_s12 = sadd.s32 1, %s610_s12  }
  0xf9   : > { %p10_p4 = scmp.ge.s32.totalorder %s13_s12, 4  }
  0xfb   :  { %12 = sbr.rel (!%p10_p4) target bundleno = 1 (0x1), region = 65 }

// kernel: timesformer_block.8
= control target key start
LH: loop header
LB: loop body
LE: loop exit
PB: predicated region body
PF: predicated region fallthrough
CT: control target
= control target key end

     0   :  { %s8942_s12 = smov 0   ;;  %s10835_s0 = inlined_call_operand.vmem [shape: bf16[128,5,16], index: 0, kind: input, shape index: {}]   ;;  %s10836_s1 = inlined_call_operand.vmem [shape: bf16[128,5,16], index: 1, kind: input, shape index: {}]   ;;  %s10837_s2 = inlined_call_operand.vmem [shape: bf16[128,5,16], index: 2, kind: input, shape index: {}]   ;;  %s10838_s3 = inlined_call_operand.vmem [shape: bf16[128,5,16], index: 3, kind: output, shape index: {}]  }
   0x1 LB: > { %s7477_s13 = sadd.s32 4294967295, %s8917_s12   ;;  %p7481_p0 = scmp.ge.s32.totalorder %s8917_s12, 1  ;;  %s8917_s12 = sphi %s8942_s12, %s13_s12  }
   0x2   : > { %p160_p1 = scmp.lt.s32.totalorder %s8917_s12, 3 }
   0x4   : > { %p161_p2 = pnand %p7481_p0, %p160_p1 }
   0x6   : > { %164 = sbr.rel (%p161_p2) target bundleno = 1158 (0x486), region = 32 }
   0xd   : > { %s7482_s14 = sshll.u32 %s7477_s13, 6  ;;  %v10839_v0 = vmov 0.0   ;;  %vm8920_vm0 = vmmov 0   ;;  %vm411_vm1 = vcmask 130048   ;;  %vm3420_vm2 = vcmask 36864  }
   0xe   : > { %7876 = vmatprep.subr.bf16.mxu0 %v10839_v0  ;;  %7882 = vmatprep.subr.bf16.mxu1 %v10839_v0  ;;  %p195_p3 = scmp.lt.s32.totalorder %s7482_s14, 127  ;;  %vm4193_vm3 = vcmask 1041408   ;;  %vm4194_vm4 = vcmask 1042432   ;;  %vm4189_vm5 = vcmask 39936   ;;  %vm7202_vm6 = vcmask 124928  }
   0xf   : > { %7878 = vmatprep.mubr.msk.bf16.mxu0 %vm8920_vm0, %v10839_v0  ;;  %7884 = vmatprep.mubr.msk.bf16.mxu1 %vm8920_vm0, %v10839_v0  ;;  %vm7203_vm7 = vsmask.f32 2304 }
  0x10   : > { %s10890_s14 = smov (!%p195_p3, %s7482_s14), 127  ;;  %vm10377_vm8 = vmand %vm7202_vm6, %vm7203_vm7 }
  0x11   : > { %s8956_s15 = sshll.u32 %s10890_s14, 2 }
  0x12   : > { %s8962_s18 = scalar_lea.vmem %s10836_s1, %s8956_s15  ;;  %s8972_s21 = scalar_lea.vmem %s10835_s0, %s8956_s15 }
  0x13   : > { %v283_v1 = vld [vmem:[%s8962_s18] sm:$0x7]  ;;  %v284_v2 = vld [vmem:[%s8962_s18 + $0x4] sm:$0x7]  ;;  %v285_v5 = vld [vmem:[%s8962_s18 + $0x8] sm:$0x7]  ;;  %s9635_s24 = scalar_lea.vmem %s10837_s2, %s8956_s15  ;;  %s10362_s27 = scalar_lea.vmem %s10838_s3, %s8956_s15 }
  0x14   : > { %v416_v3 = vsel %vm411_vm1, %v283_v1, 0  ;;  %v462_v4 = vsel %vm411_vm1, %v284_v2, 0  ;;  %v286_v6 = vld [vmem:[%s8962_s18 + $0xc] sm:$0x7]  ;;  %v219_v7 = vld [vmem:[%s8972_s21] sm:$0x7] }
  0x15   : > { %7877 = vmatpush3.bf16.xpose.msra.mxu0 %v416_v3  ;;  %7883 = vmatpush3.bf16.xpose.msra.mxu1 %v462_v4  ;;  %v220_v8 = vld [vmem:[%s8972_s21 + $0x4] sm:$0x7]  ;;  %v508_v9 = vsel %vm411_vm1, %v285_v5, 0  ;;  %v554_v10 = vsel %vm411_vm1, %v286_v6, 0  ;;  %v287_v11 = vld [vmem:[%s8962_s18 + $0x10] sm:$0x7] }
  0x16   : > { %7888 = vmatprep.subr.bf16.mxu0 %v10839_v0  ;;  %7894 = vmatprep.subr.bf16.mxu1 %v10839_v0  ;;  %v288_v12 = vld [vmem:[%s8962_s18 + $0x14] sm:$0x7]  ;;  %v221_v13 = vld [vmem:[%s8972_s21 + $0x8] sm:$0x7]  ;;  %v222_v14 = vld [vmem:[%s8972_s21 + $0xc] sm:$0x7] }
  0x17   : > { %v600_v15 = vsel %vm411_vm1, %v287_v11, 0  ;;  %v646_v16 = vsel %vm411_vm1, %v288_v12, 0  ;;  %v289_v17 = vld [vmem:[%s8962_s18 + $0x18] sm:$0x7]  ;;  %v290_v18 = vld [vmem:[%s8962_s18 + $0x1c] sm:$0x7] }
  0x18   : > { %v223_v19 = vld [vmem:[%s8972_s21 + $0x10] sm:$0x7]  ;;  %v224_v20 = vld [vmem:[%s8972_s21 + $0x14] sm:$0x7]  ;;  %v692_v21 = vsel %vm411_vm1, %v289_v17, 0  ;;  %v738_v22 = vsel %vm411_vm1, %v290_v18, 0 }
  0x19   : > { %v291_v23 = vld [vmem:[%s8962_s18 + $0x20] sm:$0x7]  ;;  %v292_v24 = vld [vmem:[%s8962_s18 + $0x24] sm:$0x7]  ;;  %v225_v25 = vld [vmem:[%s8972_s21 + $0x18] sm:$0x7] }
  0x1a   : > { %v226_v26 = vld [vmem:[%s8972_s21 + $0x1c] sm:$0x7]  ;;  %v784_v27 = vsel %vm411_vm1, %v291_v23, 0  ;;  %v830_v28 = vsel %vm411_vm1, %v292_v24, 0  ;;  %v293_v29 = vld [vmem:[%s8962_s18 + $0x28] sm:$0x7] }
  0x1b   : > { %v294_v30 = vld [vmem:[%s8962_s18 + $0x2c] sm:$0x7]  ;;  %v227_v31 = vld [vmem:[%s8972_s21 + $0x20] sm:$0x7]  ;;  %v228_v32 = vld [vmem:[%s8972_s21 + $0x24] sm:$0x7] }
  0x1c   : > { %7879 = vmatmul.mubr.msk.bf16.vlgmr.msra.gmra.mrb[0].mxu0 %vm411_vm1, %v219_v7  ;;  %7885 = vmatmul.mubr.msk.bf16.vlgmr.msra.gmra.mrb[0].mxu1 %vm411_vm1, %v220_v8  ;;  %v876_v33 = vsel %vm411_vm1, %v293_v29, 0  ;;  %v922_v34 = vsel %vm411_vm1, %v294_v30, 0  ;;  %v295_v35 = vld [vmem:[%s8962_s18 + $0x30] sm:$0x7]  ;;  %v296_v36 = vld [vmem:[%s8962_s18 + $0x34] sm:$0x7] }
  0x1d   : > { %7889 = vmatpush3.bf16.xpose.msra.mxu0 %v508_v9  ;;  %7895 = vmatpush3.bf16.xpose.msra.mxu1 %v554_v10  ;;  %v229_v37 = vld [vmem:[%s8972_s21 + $0x28] sm:$0x7]  ;;  %v230_v38 = vld [vmem:[%s8972_s21 + $0x2c] sm:$0x7]  ;;  %v968_v39 = vsel %vm411_vm1, %v295_v35, 0  ;;  %v1014_v40 = vsel %vm411_vm1, %v296_v36, 0 }
  0x1e   : > { %7890 = vmatprep.mubr.msk.bf16.mxu0 %vm8920_vm0, %v10839_v0  ;;  %7896 = vmatprep.mubr.msk.bf16.mxu1 %vm8920_vm0, %v10839_v0  ;;  %v297_v41 = vld [vmem:[%s8962_s18 + $0x38] sm:$0x7]  ;;  %v298_v42 = vld [vmem:[%s8962_s18 + $0x3c] sm:$0x7]  ;;  %v231_v43 = vld [vmem:[%s8972_s21 + $0x30] sm:$0x7] }
  0x1f   : > { %7900 = vmatprep.subr.bf16.mxu0 %v10839_v0  ;;  %7906 = vmatprep.subr.bf16.mxu1 %v10839_v0  ;;  %v232_v44 = vld [vmem:[%s8972_s21 + $0x34] sm:$0x7]  ;;  %v1060_v45 = vsel %vm411_vm1, %v297_v41, 0  ;;  %v1106_v46 = vsel %vm411_vm1, %v298_v42, 0  ;;  %v299_v47 = vld [vmem:[%s8962_s18 + $0x40] sm:$0x7] }
  0x20   : > { %v300_v48 = vld [vmem:[%s8962_s18 + $0x44] sm:$0x7]  ;;  %v233_v49 = vld [vmem:[%s8972_s21 + $0x38] sm:$0x7]  ;;  %v234_v50 = vld [vmem:[%s8972_s21 + $0x3c] sm:$0x7] }
  0x21   : > { %v1152_v51 = vsel %vm411_vm1, %v299_v47, 0  ;;  %v1198_v52 = vsel %vm411_vm1, %v300_v48, 0  ;;  %v301_v53 = vld [vmem:[%s8962_s18 + $0x48] sm:$0x7]  ;;  %v302_v54 = vld [vmem:[%s8962_s18 + $0x4c] sm:$0x7] }
  0x22   : > { %v235_v55 = vld [vmem:[%s8972_s21 + $0x40] sm:$0x7]  ;;  %v236_v56 = vld [vmem:[%s8972_s21 + $0x44] sm:$0x7]  ;;  %v1244_v57 = vsel %vm411_vm1, %v301_v53, 0  ;;  %v1290_v58 = vsel %vm411_vm1, %v302_v54, 0 }
  0x23   : > { %v303_v59 = vld [vmem:[%s8962_s18 + $0x50] sm:$0x7]  ;;  %v304_v60 = vld [vmem:[%s8962_s18 + $0x54] sm:$0x7]  ;;  %v237_v61 = vld [vmem:[%s8972_s21 + $0x48] sm:$0x7] }
  0x24   : > { %7891 = vmatmul.mubr.msk.bf16.vlgmr.msra.gmra.mrb[4].mxu0 %vm411_vm1, %v221_v13  ;;  %7897 = vmatmul.mubr.msk.bf16.vlgmr.msra.gmra.mrb[4].mxu1 %vm411_vm1, %v222_v14  ;;  %v238_v62 = vld [vmem:[%s8972_s21 + $0x4c] sm:$0x7]  ;;  %v1336_v63 = vsel %vm411_vm1, %v303_v59, 0  ;;  %v1382_v1 = vsel %vm411_vm1, %v304_v60, 0  ;;  %v305_v2 = vld [vmem:[%s8962_s18 + $0x58] sm:$0x7] }
  0x25   : > { %7901 = vmatpush3.bf16.xpose.msra.mxu0 %v600_v15  ;;  %7907 = vmatpush3.bf16.xpose.msra.mxu1 %v646_v16  ;;  %v306_v3 = vld [vmem:[%s8962_s18 + $0x5c] sm:$0x7]  ;;  %v239_v4 = vld [vmem:[%s8972_s21 + $0x50] sm:$0x7]  ;;  %v240_v5 = vld [vmem:[%s8972_s21 + $0x54] sm:$0x7] }
  0x26   : > { %7902 = vmatprep.mubr.msk.bf16.mxu0 %vm8920_vm0, %v10839_v0  ;;  %7908 = vmatprep.mubr.msk.bf16.mxu1 %vm8920_vm0, %v10839_v0  ;;  %v1428_v6 = vsel %vm411_vm1, %v305_v2, 0  ;;  %v1474_v7 = vsel %vm411_vm1, %v306_v3, 0  ;;  %v307_v8 = vld [vmem:[%s8962_s18 + $0x60] sm:$0x7]  ;;  %v308_v9 = vld [vmem:[%s8962_s18 + $0x64] sm:$0x7] }
  0x27   : > { %7912 = vmatprep.subr.bf16.mxu0 %v10839_v0  ;;  %7918 = vmatprep.subr.bf16.mxu1 %v10839_v0  ;;  %v241_v10 = vld [vmem:[%s8972_s21 + $0x58] sm:$0x7]  ;;  %v242_v11 = vld [vmem:[%s8972_s21 + $0x5c] sm:$0x7]  ;;  %v1520_v12 = vsel %vm411_vm1, %v307_v8, 0  ;;  %v1566_v13 = vsel %vm411_vm1, %v308_v9, 0 }
  0x28   : > { %v309_v14 = vld [vmem:[%s8962_s18 + $0x68] sm:$0x7]  ;;  %v310_v15 = vld [vmem:[%s8962_s18 + $0x6c] sm:$0x7]  ;;  %v243_v16 = vld [vmem:[%s8972_s21 + $0x60] sm:$0x7] }
  0x29   : > { %v244_v17 = vld [vmem:[%s8972_s21 + $0x64] sm:$0x7]  ;;  %v1612_v18 = vsel %vm411_vm1, %v309_v14, 0  ;;  %v246_v23 = vld [vmem:[%s8972_s21 + $0x6c] sm:$0x7] }
  0x2a   : > { %v248_v29 = vld [vmem:[%s8972_s21 + $0x74] sm:$0x7]  ;;  %v250_v35 = vld [vmem:[%s8972_s21 + $0x7c] sm:$0x7]  ;;  %v252_v41 = vld [vmem:[%s8972_s21 + $0x84] sm:$0x7] }
  0x2b   : > { %v254_v47 = vld [vmem:[%s8972_s21 + $0x8c] sm:$0x7]  ;;  %v256_v53 = vld [vmem:[%s8972_s21 + $0x94] sm:$0x7]  ;;  %v258_v59 = vld [vmem:[%s8972_s21 + $0x9c] sm:$0x7] }
  0x2c   : > { %7903 = vmatmul.mubr.msk.bf16.vlgmr.msra.gmra.mrb[8].mxu0 %vm411_vm1, %v223_v19  ;;  %7909 = vmatmul.mubr.msk.bf16.vlgmr.msra.gmra.mrb[8].mxu1 %vm411_vm1, %v224_v20  ;;  %v1658_v19 = vsel %vm411_vm1, %v310_v15, 0  ;;  %v311_v20 = vld [vmem:[%s8962_s18 + $0x70] sm:$0x7]  ;;  %v260_v2 = vld [vmem:[%s8972_s21 + $0xa4] sm:$0x7] }
  0x2d   : > { %7913 = vmatpush3.bf16.xpose.msra.mxu0 %v692_v21  ;;  %7919 = vmatpush3.bf16.xpose.msra.mxu1 %v738_v22  ;;  %v312_v21 = vld [vmem:[%s8962_s18 + $0x74] sm:$0x7]  ;;  %v245_v22 = vld [vmem:[%s8972_s21 + $0x68] sm:$0x7]  ;;  %v1704_v24 = vsel %vm411_vm1, %v311_v20, 0 }
  0x2e   : > { %7914 = vmatprep.mubr.msk.bf16.mxu0 %vm8920_vm0, %v10839_v0  ;;  %7920 = vmatprep.mubr.msk.bf16.mxu1 %vm8920_vm0, %v10839_v0  ;;  %v262_v8 = vld [vmem:[%s8972_s21 + $0xac] sm:$0x7]  ;;  %v264_v14 = vld [vmem:[%s8972_s21 + $0xb4] sm:$0x7]  ;;  %v266_v20 = vld [vmem:[%s8972_s21 + $0xbc] sm:$0x7] }
  0x2f   : > { %7924 = vmatprep.subr.bf16.mxu0 %v10839_v0  ;;  %7930 = vmatprep.subr.bf16.mxu1 %v10839_v0 }
  0x34   : > { %7915 = vmatmul.mubr.msk.bf16.vlgmr.msra.gmra.mrb[12].mxu0 %vm411_vm1, %v225_v25  ;;  %7921 = vmatmul.mubr.msk.bf16.vlgmr.msra.gmra.mrb[12].mxu1 %vm411_vm1, %v226_v26  ;;  %v1750_v25 = vsel %vm411_vm1, %v312_v21, 0  ;;  %v313_v26 = vld [vmem:[%s8962_s18 + $0x78] sm:$0x7] }
  0x35   : > { %7925 = vmatpush3.bf16.xpose.msra.mxu0 %v784_v27  ;;  %7931 = vmatpush3.bf16.xpose.msra.mxu1 %v830_v28  ;;  %v314_v27 = vld [vmem:[%s8962_s18 + $0x7c] sm:$0x7]  ;;  %v247_v28 = vld [vmem:[%s8972_s21 + $0x70] sm:$0x7]  ;;  %v1796_v30 = vsel %vm411_vm1, %v313_v26, 0 }
  0x36   : > { %7926 = vmatprep.mubr.msk.bf16.mxu0 %vm8920_vm0, %v10839_v0  ;;  %7932 = vmatprep.mubr.msk.bf16.mxu1 %vm8920_vm0, %v10839_v0  ;;  %v268_v26 = vld [vmem:[%s8972_s21 + $0xc4] sm:$0x7] }
  0x37   : > { %7936 = vmatprep.subr.bf16.mxu0 %v10839_v0  ;;  %7942 = vmatprep.subr.bf16.mxu1 %v10839_v0 }
  0x3c   : > { %7927 = vmatmul.mubr.msk.bf16.vlgmr.msra.gmra.mrb[16].mxu0 %vm411_vm1, %v227_v31  ;;  %7933 = vmatmul.mubr.msk.bf16.vlgmr.msra.gmra.mrb[16].mxu1 %vm411_vm1, %v228_v32  ;;  %v1842_v31 = vsel %vm411_vm1, %v314_v27, 0  ;;  %v315_v32 = vld [vmem:[%s8962_s18 + $0x80] sm:$0x7] }
  0x3d   : > { %7937 = vmatpush3.bf16.xpose.msra.mxu0 %v876_v33  ;;  %7943 = vmatpush3.bf16.xpose.msra.mxu1 %v922_v34  ;;  %v316_v33 = vld [vmem:[%s8962_s18 + $0x84] sm:$0x7]  ;;  %v249_v34 = vld [vmem:[%s8972_s21 + $0x78] sm:$0x7]  ;;  %v1888_v36 = vsel %vm411_vm1, %v315_v32, 0 }
  0x3e   : > { %7938 = vmatprep.mubr.msk.bf16.mxu0 %vm8920_vm0, %v10839_v0  ;;  %7944 = vmatprep.mubr.msk.bf16.mxu1 %vm8920_vm0, %v10839_v0  ;;  %v270_v32 = vld [vmem:[%s8972_s21 + $0xcc] sm:$0x7] }
  0x3f   : > { %7948 = vmatprep.subr.bf16.mxu0 %v10839_v0  ;;  %7954 = vmatprep.subr.bf16.mxu1 %v10839_v0 }
  0x44   : > { %7939 = vmatmul.mubr.msk.bf16.vlgmr.msra.gmra.mrb[20].mxu0 %vm411_vm1, %v229_v37  ;;  %7945 = vmatmul.mubr.msk.bf16.vlgmr.msra.gmra.mrb[20].mxu1 %vm411_vm1, %v230_v38  ;;  %v1934_v37 = vsel %vm411_vm1, %v316_v33, 0  ;;  %v317_v38 = vld [vmem:[%s8962_s18 + $0x88] sm:$0x7] }
  0x45   : > { %7949 = vmatpush3.bf16.xpose.msra.mxu0 %v968_v39  ;;  %7955 = vmatpush3.bf16.xpose.msra.mxu1 %v1014_v40  ;;  %v318_v39 = vld [vmem:[%s8962_s18 + $0x8c] sm:$0x7]  ;;  %v251_v40 = vld [vmem:[%s8972_s21 + $0x80] sm:$0x7]  ;;  %v1980_v42 = vsel %vm411_vm1, %v317_v38, 0 }
  0x46   : > { %7950 = vmatprep.mubr.msk.bf16.mxu0 %vm8920_vm0, %v10839_v0  ;;  %7956 = vmatprep.mubr.msk.bf16.mxu1 %vm8920_vm0, %v10839_v0  ;;  %v272_v38 = vld [vmem:[%s8972_s21 + $0xd4] sm:$0x7] }
  0x47   : > { %7960 = vmatprep.subr.bf16.mxu0 %v10839_v0  ;;  %7966 = vmatprep.subr.bf16.mxu1 %v10839_v0 }
  0x4c   : > { %7951 = vmatmul.mubr.msk.bf16.vlgmr.msra.gmra.mrb[24].mxu0 %vm411_vm1, %v231_v43  ;;  %7957 = vmatmul.mubr.msk.bf16.vlgmr.msra.gmra.mrb[24].mxu1 %vm411_vm1, %v232_v44  ;;  %v2026_v43 = vsel %vm411_vm1, %v318_v39, 0  ;;  %v319_v44 = vld [vmem:[%s8962_s18 + $0x90] sm:$0x7] }
  0x4d   : > { %7961 = vmatpush3.bf16.xpose.msra.mxu0 %v1060_v45  ;;  %7967 = vmatpush3.bf16.xpose.msra.mxu1 %v1106_v46  ;;  %v320_v45 = vld [vmem:[%s8962_s18 + $0x94] sm:$0x7]  ;;  %v253_v46 = vld [vmem:[%s8972_s21 + $0x88] sm:$0x7]  ;;  %v2072_v48 = vsel %vm411_vm1, %v319_v44, 0 }
  0x4e   : > { %7962 = vmatprep.mubr.msk.bf16.mxu0 %vm8920_vm0, %v10839_v0  ;;  %7968 = vmatprep.mubr.msk.bf16.mxu1 %vm8920_vm0, %v10839_v0  ;;  %v340_v44 = vld [vmem:[%s8962_s18 + $0xe4] sm:$0x7] }
  0x4f   : > { %7972 = vmatprep.subr.bf16.mxu0 %v10839_v0  ;;  %7978 = vmatprep.subr.bf16.mxu1 %v10839_v0 }
  0x54   : > { %7963 = vmatmul.mubr.msk.bf16.vlgmr.msra.gmra.mrb[28].mxu0 %vm411_vm1, %v233_v49  ;;  %7969 = vmatmul.mubr.msk.bf16.vlgmr.msra.gmra.mrb[28].mxu1 %vm411_vm1, %v234_v50  ;;  %v2118_v49 = vsel %vm411_vm1, %v320_v45, 0  ;;  %v321_v50 = vld [vmem:[%s8962_s18 + $0x98] sm:$0x7] }
  0x55   : > { %7973 = vmatpush3.bf16.xpose.msra.mxu0 %v1152_v51  ;;  %7979 = vmatpush3.bf16.xpose.msra.mxu1 %v1198_v52  ;;  %v322_v51 = vld [vmem:[%s8962_s18 + $0x9c] sm:$0x7]  ;;  %v255_v52 = vld [vmem:[%s8972_s21 + $0x90] sm:$0x7]  ;;  %v2164_v54 = vsel %vm411_vm1, %v321_v50, 0 }
  0x56   : > { %7974 = vmatprep.mubr.msk.bf16.mxu0 %vm8920_vm0, %v10839_v0  ;;  %7980 = vmatprep.mubr.msk.bf16.mxu1 %vm8920_vm0, %v10839_v0 }
  0x57   : > { %7984 = vmatprep.subr.bf16.mxu0 %v10839_v0  ;;  %7990 = vmatprep.subr.bf16.mxu1 %v10839_v0 }
  0x5c   : > { %7975 = vmatmul.mubr.msk.bf16.vlgmr.msra.gmra.mrb[32].mxu0 %vm411_vm1, %v235_v55  ;;  %7981 = vmatmul.mubr.msk.bf16.vlgmr.msra.gmra.mrb[32].mxu1 %vm411_vm1, %v236_v56  ;;  %v2210_v55 = vsel %vm411_vm1, %v322_v51, 0  ;;  %v323_v56 = vld [vmem:[%s8962_s18 + $0xa0] sm:$0x7]  ;;  %v273_v51 = vld [vmem:[%s8972_s21 + $0xd8] sm:$0x7] }
  0x5d   : > { %7985 = vmatpush3.bf16.xpose.msra.mxu0 %v1244_v57  ;;  %7991 = vmatpush3.bf16.xpose.msra.mxu1 %v1290_v58  ;;  %v324_v57 = vld [vmem:[%s8962_s18 + $0xa4] sm:$0x7]  ;;  %v257_v58 = vld [vmem:[%s8972_s21 + $0x98] sm:$0x7]  ;;  %v2256_v60 = vsel %vm411_vm1, %v323_v56, 0 }
  0x5e   : > { %7986 = vmatprep.mubr.msk.bf16.mxu0 %vm8920_vm0, %v10839_v0  ;;  %7992 = vmatprep.mubr.msk.bf16.mxu1 %vm8920_vm0, %v10839_v0 }
  0x5f   : > { %7996 = vmatprep.subr.bf16.mxu0 %v10839_v0  ;;  %8002 = vmatprep.subr.bf16.mxu1 %v10839_v0 }
  0x64   : > { %7987 = vmatmul.mubr.msk.bf16.vlgmr.msra.gmra.mrb[36].mxu0 %vm411_vm1, %v237_v61  ;;  %7993 = vmatmul.mubr.msk.bf16.vlgmr.msra.gmra.mrb[36].mxu1 %vm411_vm1, %v238_v62  ;;  %v2302_v61 = vsel %vm411_vm1, %v324_v57, 0  ;;  %v325_v62 = vld [vmem:[%s8962_s18 + $0xa8] sm:$0x7]  ;;  %v3038_v57 = vsel %vm411_vm1, %v340_v44, 0 }
  0x65   : > { %7997 = vmatpush3.bf16.xpose.msra.mxu0 %v1336_v63  ;;  %8003 = vmatpush3.bf16.xpose.msra.mxu1 %v1382_v1  ;;  %v326_v63 = vld [vmem:[%s8962_s18 + $0xac] sm:$0x7]  ;;  %v259_v1 = vld [vmem:[%s8972_s21 + $0xa0] sm:$0x7]  ;;  %v2348_v3 = vsel %vm411_vm1, %v325_v62, 0 }
  0x66   : > { %7998 = vmatprep.mubr.msk.bf16.mxu0 %vm8920_vm0, %v10839_v0  ;;  %8004 = vmatprep.mubr.msk.bf16.mxu1 %vm8920_vm0, %v10839_v0 }
  0x67   : > { %8008 = vmatprep.subr.bf16.mxu0 %v10839_v0  ;;  %8014 = vmatprep.subr.bf16.mxu1 %v10839_v0 }
  0x6c   : > { %7999 = vmatmul.mubr.msk.bf16.vlgmr.msra.gmra.mrb[40].mxu0 %vm411_vm1, %v239_v4  ;;  %8005 = vmatmul.mubr.msk.bf16.vlgmr.msra.gmra.mrb[40].mxu1 %vm411_vm1, %v240_v5  ;;  %v2394_v4 = vsel %vm411_vm1, %v326_v63, 0  ;;  %v327_v5 = vld [vmem:[%s8962_s18 + $0xb0] sm:$0x7] }
  0x6d   : > { %8009 = vmatpush3.bf16.xpose.msra.mxu0 %v1428_v6  ;;  %8015 = vmatpush3.bf16.xpose.msra.mxu1 %v1474_v7  ;;  %v328_v6 = vld [vmem:[%s8962_s18 + $0xb4] sm:$0x7]  ;;  %v261_v7 = vld [vmem:[%s8972_s21 + $0xa8] sm:$0x7]  ;;  %v2440_v9 = vsel %vm411_vm1, %v327_v5, 0 }
  0x6e   : > { %8010 = vmatprep.mubr.msk.bf16.mxu0 %vm8920_vm0, %v10839_v0  ;;  %8016 = vmatprep.mubr.msk.bf16.mxu1 %vm8920_vm0, %v10839_v0 }
  0x6f   : > { %8020 = vmatprep.subr.bf16.mxu0 %v10839_v0  ;;  %8026 = vmatprep.subr.bf16.mxu1 %v10839_v0 }
  0x74   : > { %8011 = vmatmul.mubr.msk.bf16.vlgmr.msra.gmra.mrb[44].mxu0 %vm411_vm1, %v241_v10  ;;  %8017 = vmatmul.mubr.msk.bf16.vlgmr.msra.gmra.mrb[44].mxu1 %vm411_vm1, %v242_v11  ;;  %v2486_v10 = vsel %vm411_vm1, %v328_v6, 0  ;;  %v329_v11 = vld [vmem:[%s8962_s18 + $0xb8] sm:$0x7] }
  0x75   : > { %8021 = vmatpush3.bf16.xpose.msra.mxu0 %v1520_v12  ;;  %8027 = vmatpush3.bf16.xpose.msra.mxu1 %v1566_v13  ;;  %v330_v12 = vld [vmem:[%s8962_s18 + $0xbc] sm:$0x7]  ;;  %v263_v13 = vld [vmem:[%s8972_s21 + $0xb0] sm:$0x7]  ;;  %v2532_v15 = vsel %vm411_vm1, %v329_v11, 0 }
  0x76   : > { %8022 = vmatprep.mubr.msk.bf16.mxu0 %vm8920_vm0, %v10839_v0  ;;  %8032 = vmatprep.subr.bf16.mxu0 %v10839_v0  ;;  %v341_v11 = vld [vmem:[%s8962_s18 + $0xe8] sm:$0x7] }
  0x77   : > { %8028 = vmatprep.mubr.msk.bf16.mxu1 %vm8920_vm0, %v10839_v0  ;;  %8038 = vmatprep.subr.bf16.mxu1 %v10839_v0 }
  0x7c   : > { %8023 = vmatmul.mubr.msk.bf16.vlgmr.msra.gmra.mrb[48].mxu0 %vm411_vm1, %v243_v16  ;;  %8029 = vmatmul.mubr.msk.bf16.vlgmr.msra.gmra.mrb[48].mxu1 %vm411_vm1, %v244_v17  ;;  %v2578_v16 = vsel %vm411_vm1, %v330_v12, 0  ;;  %v331_v17 = vld [vmem:[%s8962_s18 + $0xc0] sm:$0x7] }
  0x7d   : > { %8033 = vmatpush3.bf16.xpose.msra.mxu0 %v1612_v18  ;;  %8039 = vmatpush3.bf16.xpose.msra.mxu1 %v1658_v19  ;;  %v332_v18 = vld [vmem:[%s8962_s18 + $0xc4] sm:$0x7]  ;;  %v265_v19 = vld [vmem:[%s8972_s21 + $0xb8] sm:$0x7]  ;;  %v2624_v21 = vsel %vm411_vm1, %v331_v17, 0 }
  0x7e   : > { %8034 = vmatprep.mubr.msk.bf16.mxu0 %vm8920_vm0, %v10839_v0  ;;  %8044 = vmatprep.subr.bf16.mxu0 %v10839_v0 }
  0x7f   : > { %8040 = vmatprep.mubr.msk.bf16.mxu1 %vm8920_vm0, %v10839_v0  ;;  %8050 = vmatprep.subr.bf16.mxu1 %v10839_v0 }
  0x84   : > { %8035 = vmatmul.mubr.msk.bf16.vlgmr.msra.gmra.mrb[52].mxu0 %vm411_vm1, %v245_v22  ;;  %8041 = vmatmul.mubr.msk.bf16.vlgmr.msra.gmra.mrb[52].mxu1 %vm411_vm1, %v246_v23  ;;  %v2670_v22 = vsel %vm411_vm1, %v332_v18, 0  ;;  %v333_v23 = vld [vmem:[%s8962_s18 + $0xc8] sm:$0x7] }
  0x85   : > { %8045 = vmatpush3.bf16.xpose.msra.mxu0 %v1704_v24  ;;  %8051 = vmatpush3.bf16.xpose.msra.mxu1 %v1750_v25  ;;  %v334_v24 = vld [vmem:[%s8962_s18 + $0xcc] sm:$0x7]  ;;  %v267_v25 = vld [vmem:[%s8972_s21 + $0xc0] sm:$0x7]  ;;  %v2716_v27 = vsel %vm411_vm1, %v333_v23, 0 }
  0x86   : > { %8046 = vmatprep.mubr.msk.bf16.mxu0 %vm8920_vm0, %v10839_v0  ;;  %8056 = vmatprep.subr.bf16.mxu0 %v10839_v0 }
  0x87   : > { %8052 = vmatprep.mubr.msk.bf16.mxu1 %vm8920_vm0, %v10839_v0  ;;  %8062 = vmatprep.subr.bf16.mxu1 %v10839_v0 }
  0x8c   : > { %8047 = vmatmul.mubr.msk.bf16.vlgmr.msra.gmra.mrb[56].mxu0 %vm411_vm1, %v247_v28  ;;  %8053 = vmatmul.mubr.msk.bf16.vlgmr.msra.gmra.mrb[56].mxu1 %vm411_vm1, %v248_v29  ;;  %v2762_v28 = vsel %vm411_vm1, %v334_v24, 0  ;;  %v335_v29 = vld [vmem:[%s8962_s18 + $0xd0] sm:$0x7] }
  0x8d   : > { %8057 = vmatpush3.bf16.xpose.msra.mxu0 %v1796_v30  ;;  %8063 = vmatpush3.bf16.xpose.msra.mxu1 %v1842_v31  ;;  %v336_v30 = vld [vmem:[%s8962_s18 + $0xd4] sm:$0x7]  ;;  %v269_v31 = vld [vmem:[%s8972_s21 + $0xc8] sm:$0x7]  ;;  %v2808_v33 = vsel %vm411_vm1, %v335_v29, 0 }
  0x8e   : > { %8058 = vmatprep.mubr.msk.bf16.mxu0 %vm8920_vm0, %v10839_v0  ;;  %8068 = vmatprep.subr.bf16.mxu0 %v10839_v0  ;;  %v343_v29 = vld [vmem:[%s8962_s18 + $0xf0] sm:$0x7] }
  0x8f   : > { %8064 = vmatprep.mubr.msk.bf16.mxu1 %vm8920_vm0, %v10839_v0  ;;  %8074 = vmatprep.subr.bf16.mxu1 %v10839_v0 }
  0x94   : > { %8059 = vmatmul.mubr.msk.bf16.vlgmr.msra.gmra.mrb[60].mxu0 %vm411_vm1, %v249_v34  ;;  %8065 = vmatmul.mubr.msk.bf16.vlgmr.msra.gmra.mrb[60].mxu1 %vm411_vm1, %v250_v35  ;;  %v2854_v34 = vsel %vm411_vm1, %v336_v30, 0  ;;  %v337_v35 = vld [vmem:[%s8962_s18 + $0xd8] sm:$0x7] }
  0x95   : > { %8069 = vmatpush3.bf16.xpose.msra.mxu0 %v1888_v36  ;;  %8075 = vmatpush3.bf16.xpose.msra.mxu1 %v1934_v37  ;;  %v338_v36 = vld [vmem:[%s8962_s18 + $0xdc] sm:$0x7]  ;;  %v271_v37 = vld [vmem:[%s8972_s21 + $0xd0] sm:$0x7]  ;;  %v2900_v39 = vsel %vm411_vm1, %v337_v35, 0 }
  0x96   : > { %8070 = vmatprep.mubr.msk.bf16.mxu0 %vm8920_vm0, %v10839_v0  ;;  %8080 = vmatprep.subr.bf16.mxu0 %v10839_v0 }
  0x97   : > { %8076 = vmatprep.mubr.msk.bf16.mxu1 %vm8920_vm0, %v10839_v0  ;;  %8086 = vmatprep.subr.bf16.mxu1 %v10839_v0 }
  0x9c   : > { %8071 = vmatmul.mubr.msk.bf16.vlgmr.msra.gmra.mrb[64].mxu0 %vm411_vm1, %v251_v40  ;;  %8077 = vmatmul.mubr.msk.bf16.vlgmr.msra.gmra.mrb[64].mxu1 %vm411_vm1, %v252_v41  ;;  %v2946_v40 = vsel %vm411_vm1, %v338_v36, 0 }
  0x9d   : > { %8081 = vmatpush3.bf16.xpose.msra.mxu0 %v1980_v42  ;;  %8087 = vmatpush3.bf16.xpose.msra.mxu1 %v2026_v43  ;;  %v339_v43 = vld [vmem:[%s8962_s18 + $0xe0] sm:$0x7] }
  0x9e   : > { %8082 = vmatprep.mubr.msk.bf16.mxu0 %vm8920_vm0, %v10839_v0  ;;  %8092 = vmatprep.subr.bf16.mxu0 %v10839_v0  ;;  %v2992_v56 = vsel %vm411_vm1, %v339_v43, 0 }
  0x9f   : > { %8088 = vmatprep.mubr.msk.bf16.mxu1 %vm8920_vm0, %v10839_v0  ;;  %8098 = vmatprep.subr.bf16.mxu1 %v10839_v0 }
  0xa4   : > { %8083 = vmatmul.mubr.msk.bf16.vlgmr.msra.gmra.mrb[68].mxu0 %vm411_vm1, %v253_v46  ;;  %8089 = vmatmul.mubr.msk.bf16.vlgmr.msra.gmra.mrb[68].mxu1 %vm411_vm1, %v254_v47 }
  0xa5   : > { %8093 = vmatpush3.bf16.xpose.msra.mxu0 %v2072_v48  ;;  %8099 = vmatpush3.bf16.xpose.msra.mxu1 %v2118_v49 }
  0xa6   : > { %8094 = vmatprep.mubr.msk.bf16.mxu0 %vm8920_vm0, %v10839_v0  ;;  %8104 = vmatprep.subr.bf16.mxu0 %v10839_v0 }
  0xa7   : > { %8100 = vmatprep.mubr.msk.bf16.mxu1 %vm8920_vm0, %v10839_v0  ;;  %8110 = vmatprep.subr.bf16.mxu1 %v10839_v0 }
  0xac   : > { %8095 = vmatmul.mubr.msk.bf16.vlgmr.msra.gmra.mrb[72].mxu0 %vm411_vm1, %v255_v52  ;;  %8101 = vmatmul.mubr.msk.bf16.vlgmr.msra.gmra.mrb[72].mxu1 %vm411_vm1, %v256_v53  ;;  %v274_v52 = vld [vmem:[%s8972_s21 + $0xdc] sm:$0x7] }
  0xad   : > { %8105 = vmatpush3.bf16.xpose.msra.mxu0 %v2164_v54  ;;  %8111 = vmatpush3.bf16.xpose.msra.mxu1 %v2210_v55 }
  0xae   : > { %8106 = vmatprep.mubr.msk.bf16.mxu0 %vm8920_vm0, %v10839_v0  ;;  %8116 = vmatprep.subr.bf16.mxu0 %v10839_v0 }
  0xaf   : > { %8112 = vmatprep.mubr.msk.bf16.mxu1 %vm8920_vm0, %v10839_v0  ;;  %8122 = vmatprep.subr.bf16.mxu1 %v10839_v0 }
  0xb4   : > { %8107 = vmatmul.mubr.msk.bf16.vlgmr.msra.gmra.mrb[76].mxu0 %vm411_vm1, %v257_v58  ;;  %8113 = vmatmul.mubr.msk.bf16.vlgmr.msra.gmra.mrb[76].mxu1 %vm411_vm1, %v258_v59 }
  0xb5   : > { %8117 = vmatpush3.bf16.xpose.msra.mxu0 %v2256_v60  ;;  %8123 = vmatpush3.bf16.xpose.msra.mxu1 %v2302_v61 }
  0xb6   : > { %8118 = vmatprep.mubr.msk.bf16.mxu0 %vm8920_vm0, %v10839_v0  ;;  %8128 = vmatprep.subr.bf16.mxu0 %v10839_v0 }
  0xb7   : > { %8124 = vmatprep.mubr.msk.bf16.mxu1 %vm8920_vm0, %v10839_v0  ;;  %8134 = vmatprep.subr.bf16.mxu1 %v10839_v0 }
  0xbc   : > { %8119 = vmatmul.mubr.msk.bf16.vlgmr.msra.gmra.mrb[80].mxu0 %vm411_vm1, %v259_v1  ;;  %8125 = vmatmul.mubr.msk.bf16.vlgmr.msra.gmra.mrb[80].mxu1 %vm411_vm1, %v260_v2 }
  0xbd   : > { %8129 = vmatpush3.bf16.xpose.msra.mxu0 %v2348_v3  ;;  %8135 = vmatpush3.bf16.xpose.msra.mxu1 %v2394_v4  ;;  %v275_v4 = vld [vmem:[%s8972_s21 + $0xe0] sm:$0x7] }
  0xbe   : > { %8130 = vmatprep.mubr.msk.bf16.mxu0 %vm8920_vm0, %v10839_v0  ;;  %8140 = vmatprep.subr.bf16.mxu0 %v10839_v0 }
  0xbf   : > { %8136 = vmatprep.mubr.msk.bf16.mxu1 %vm8920_vm0, %v10839_v0  ;;  %8146 = vmatprep.subr.bf16.mxu1 %v10839_v0 }
  0xc4   : > { %8131 = vmatmul.mubr.msk.bf16.vlgmr.msra.gmra.mrb[84].mxu0 %vm411_vm1, %v261_v7  ;;  %8137 = vmatmul.mubr.msk.bf16.vlgmr.msra.gmra.mrb[84].mxu1 %vm411_vm1, %v262_v8 }
  0xc5   : > { %8141 = vmatpush3.bf16.xpose.msra.mxu0 %v2440_v9  ;;  %8147 = vmatpush3.bf16.xpose.msra.mxu1 %v2486_v10 }
  0xc6   : > { %8142 = vmatprep.mubr.msk.bf16.mxu0 %vm8920_vm0, %v10839_v0  ;;  %8152 = vmatprep.subr.bf16.mxu0 %v10839_v0 }
  0xc7   : > { %8148 = vmatprep.mubr.msk.bf16.mxu1 %vm8920_vm0, %v10839_v0  ;;  %8158 = vmatprep.subr.bf16.mxu1 %v10839_v0 }
  0xcc   : > { %8143 = vmatmul.mubr.msk.bf16.vlgmr.msra.gmra.mrb[88].mxu0 %vm411_vm1, %v263_v13  ;;  %8149 = vmatmul.mubr.msk.bf16.vlgmr.msra.gmra.mrb[88].mxu1 %vm411_vm1, %v264_v14 }
  0xcd   : > { %8153 = vmatpush3.bf16.xpose.msra.mxu0 %v2532_v15  ;;  %8159 = vmatpush3.bf16.xpose.msra.mxu1 %v2578_v16  ;;  %v3084_v16 = vsel %vm411_vm1, %v341_v11, 0 }
  0xce   : > { %8154 = vmatprep.mubr.msk.bf16.mxu0 %vm8920_vm0, %v10839_v0  ;;  %8160 = vmatprep.mubr.msk.bf16.mxu1 %vm8920_vm0, %v10839_v0 }
  0xcf   : > { %8164 = vmatprep.subr.bf16.mxu0 %v10839_v0  ;;  %8170 = vmatprep.subr.bf16.mxu1 %v10839_v0 }
  0xd4   : > { %8155 = vmatmul.mubr.msk.bf16.vlgmr.msra.gmra.mrb[92].mxu0 %vm411_vm1, %v265_v19  ;;  %8161 = vmatmul.mubr.msk.bf16.vlgmr.msra.gmra.mrb[92].mxu1 %vm411_vm1, %v266_v20  ;;  %v276_v19 = vld [vmem:[%s8972_s21 + $0xe4] sm:$0x7]  ;;  %v342_v20 = vld [vmem:[%s8962_s18 + $0xec] sm:$0x7] }
  0xd5   : > { %8165 = vmatpush3.bf16.xpose.msra.mxu0 %v2624_v21  ;;  %8171 = vmatpush3.bf16.xpose.msra.mxu1 %v2670_v22 }
  0xd6   : > { %8166 = vmatprep.mubr.msk.bf16.mxu0 %vm8920_vm0, %v10839_v0  ;;  %8176 = vmatprep.subr.bf16.mxu0 %v10839_v0 }
  0xd7   : > { %8172 = vmatprep.mubr.msk.bf16.mxu1 %vm8920_vm0, %v10839_v0  ;;  %8182 = vmatprep.subr.bf16.mxu1 %v10839_v0 }
  0xdc   : > { %8167 = vmatmul.mubr.msk.bf16.vlgmr.msra.gmra.mrb[96].mxu0 %vm411_vm1, %v267_v25  ;;  %8173 = vmatmul.mubr.msk.bf16.vlgmr.msra.gmra.mrb[96].mxu1 %vm411_vm1, %v268_v26  ;;  %v3130_v25 = vsel %vm411_vm1, %v342_v20, 0 }
  0xdd   : > { %8177 = vmatpush3.bf16.xpose.msra.mxu0 %v2716_v27  ;;  %8183 = vmatpush3.bf16.xpose.msra.mxu1 %v2762_v28  ;;  %v277_v28 = vld [vmem:[%s8972_s21 + $0xe8] sm:$0x7] }
  0xde   : > { %8178 = vmatprep.mubr.msk.bf16.mxu0 %vm8920_vm0, %v10839_v0  ;;  %8188 = vmatprep.subr.bf16.mxu0 %v10839_v0 }
  0xdf   : > { %8184 = vmatprep.mubr.msk.bf16.mxu1 %vm8920_vm0, %v10839_v0  ;;  %8194 = vmatprep.subr.bf16.mxu1 %v10839_v0 }
  0xe4   : > { %8179 = vmatmul.mubr.msk.bf16.vlgmr.msra.gmra.mrb[100].mxu0 %vm411_vm1, %v269_v31  ;;  %8185 = vmatmul.mubr.msk.bf16.vlgmr.msra.gmra.mrb[100].mxu1 %vm411_vm1, %v270_v32 }
  0xe5   : > { %8189 = vmatpush3.bf16.xpose.msra.mxu0 %v2808_v33  ;;  %8195 = vmatpush3.bf16.xpose.msra.mxu1 %v2854_v34  ;;  %v3176_v34 = vsel %vm411_vm1, %v343_v29, 0 }
  0xe6   : > { %8190 = vmatprep.mubr.msk.bf16.mxu0 %vm8920_vm0, %v10839_v0  ;;  %8200 = vmatprep.subr.bf16.mxu0 %v10839_v0 }
  0xe7   : > { %8196 = vmatprep.mubr.msk.bf16.mxu1 %vm8920_vm0, %v10839_v0  ;;  %8206 = vmatprep.subr.bf16.mxu1 %v10839_v0 }
  0xec   : > { %8191 = vmatmul.mubr.msk.bf16.vlgmr.msra.gmra.mrb[104].mxu0 %vm411_vm1, %v271_v37  ;;  %8197 = vmatmul.mubr.msk.bf16.vlgmr.msra.gmra.mrb[104].mxu1 %vm411_vm1, %v272_v38  ;;  %v278_v37 = vld [vmem:[%s8972_s21 + $0xec] sm:$0x7]  ;;  %v344_v38 = vld [vmem:[%s8962_s18 + $0xf4] sm:$0x7] }
  0xed   : > { %8201 = vmatpush3.bf16.xpose.msra.mxu0 %v2900_v39  ;;  %8207 = vmatpush3.bf16.xpose.msra.mxu1 %v2946_v40  ;;  %v3222_v43 = vsel %vm411_vm1, %v344_v38, 0 }
  0xee   : > { %8202 = vmatprep.mubr.msk.bf16.mxu0 %vm8920_vm0, %v10839_v0  ;;  %8212 = vmatprep.subr.bf16.mxu0 %v10839_v0 }
  0xef   : > { %v452_v41 = vpop.f32.mrb[0].mxu0  ;;  %v498_v42 = vpop.f32.mrb[0].mxu1  ;;  %8208 = vmatprep.mubr.msk.bf16.mxu1 %vm8920_vm0, %v10839_v0  ;;  %8218 = vmatprep.subr.bf16.mxu1 %v10839_v0 }
  0xf0   : > { %v9356_v45 = vmul.f32 0.25, %v452_v41  ;;  %v7880_v46 = vpop.f32.mrb[1].mxu0  ;;  %v9358_v47 = vmul.f32 0.25, %v498_v42  ;;  %v7886_v48 = vpop.f32.mrb[1].mxu1 }
  0xf1   : > { %v455_v49 = vpop.f32.mrb[2].mxu0  ;;  %v501_v50 = vpop.f32.mrb[2].mxu1  ;;  %v279_v48 = vld [vmem:[%s8972_s21 + $0xf0] sm:$0x7] }
  0xf2   : > { %v7881_v53 = vpop.f32.mrb[3].mxu0  ;;  %v3421_v54 = vsel %vm3420_vm2, %v9356_v45, -inf  ;;  %v7887_v55 = vpop.f32.mrb[3].mxu1  ;;  %v3424_v58 = vsel %vm3420_vm2, %v9358_v47, -inf }
  0xf3   : > { %3422 = vmax.xlane.f32.xlu0 %v3421_v54  ;;  %v345_v53 = vld [vmem:[%s8962_s18 + $0xf8] sm:$0x7] }
  0xf4   : > { %8203 = vmatmul.mubr.msk.bf16.vlgmr.msra.gmra.mrb[108].mxu0 %vm411_vm1, %v273_v51  ;;  %8209 = vmatmul.mubr.msk.bf16.vlgmr.msra.gmra.mrb[108].mxu1 %vm411_vm1, %v274_v52 }
  0xf5   : > { %8213 = vmatpush3.bf16.xpose.msra.mxu0 %v2992_v56  ;;  %8219 = vmatpush3.bf16.xpose.msra.mxu1 %v3038_v57  ;;  %v3268_v56 = vsel %vm411_vm1, %v345_v53, 0  ;;  %v280_v57 = vld [vmem:[%s8972_s21 + $0xf4] sm:$0x7] }
  0xf6   : > { %8214 = vmatprep.mubr.msk.bf16.mxu0 %vm8920_vm0, %v10839_v0  ;;  %8224 = vmatprep.subr.bf16.mxu0 %v10839_v0 }
  0xf7   : > { %3425 = vmax.xlane.f32.xlu0 %v3424_v58  ;;  %v544_v59 = vpop.f32.mrb[4].mxu0  ;;  %v590_v60 = vpop.f32.mrb[4].mxu1  ;;  %8220 = vmatprep.mubr.msk.bf16.mxu1 %vm8920_vm0, %v10839_v0 }
  0xf8   : > { %v9375_v61 = vmul.f32 0.25, %v544_v59  ;;  %v7892_v62 = vpop.f32.mrb[5].mxu0  ;;  %v9377_v63 = vmul.f32 0.25, %v590_v60  ;;  %v7898_v1 = vpop.f32.mrb[5].mxu1  ;;  %8230 = vmatprep.subr.bf16.mxu1 %v10839_v0 }
  0xf9   : > { %v547_v2 = vpop.f32.mrb[6].mxu0  ;;  %v593_v3 = vpop.f32.mrb[6].mxu1  ;;  %v346_v1 = vld [vmem:[%s8962_s18 + $0xfc] sm:$0x7] }
  0xfa   : > { %v7893_v5 = vpop.f32.mrb[7].mxu0  ;;  %v3427_v6 = vsel %vm3420_vm2, %v9375_v61, -inf  ;;  %v7899_v7 = vpop.f32.mrb[7].mxu1  ;;  %v3430_v8 = vsel %vm3420_vm2, %v9377_v63, -inf  ;;  %v3314_v2 = vsel %vm411_vm1, %v346_v1, 0 }
  0xfb   : > { %3428 = vmax.xlane.f32.xlu1 %v3427_v6  ;;  %v281_v3 = vld [vmem:[%s8972_s21 + $0xf8] sm:$0x7] }
  0xfc   : > { %8215 = vmatmul.mubr.msk.bf16.vlgmr.msra.gmra.mrb[112].mxu0 %vm411_vm1, %v275_v4  ;;  %8221 = vmatmul.mubr.msk.bf16.vlgmr.msra.gmra.mrb[112].mxu1 %vm411_vm1, %v276_v19 }
  0xfd   : > { %8226 = vmatprep.mubr.msk.bf16.mxu0 %vm8920_vm0, %v10839_v0  ;;  %8225 = vmatpush3.bf16.xpose.msra.mxu0 %v3084_v16 }
  0xfe   : > { %8236 = vmatprep.subr.bf16.mxu0 %v10839_v0  ;;  %8231 = vmatpush3.bf16.xpose.msra.mxu1 %v3130_v25 }
  0xff   : > { %v682_v9 = vpop.f32.mrb[8].mxu1  ;;  %3431 = vmax.xlane.f32.xlu1 %v3430_v8  ;;  %v636_v10 = vpop.f32.mrb[8].mxu0  ;;  %8232 = vmatprep.mubr.msk.bf16.mxu1 %vm8920_vm0, %v10839_v0 }
 0x100   : > { %v9389_v12 = vmul.f32 0.25, %v682_v9  ;;  %v9391_v13 = vmul.f32 0.25, %v636_v10  ;;  %v7904_v14 = vpop.f32.mrb[9].mxu0  ;;  %v7910_v15 = vpop.f32.mrb[9].mxu1  ;;  %8242 = vmatprep.subr.bf16.mxu1 %v10839_v0 }
 0x101   : > { %v685_v17 = vpop.f32.mrb[10].mxu1  ;;  %v639_v18 = vpop.f32.mrb[10].mxu0  ;;  %v282_v14 = vld [vmem:[%s8972_s21 + $0xfc] sm:$0x7] }
 0x102   : > { %v3436_v21 = vsel %vm3420_vm2, %v9389_v12, -inf  ;;  %v3433_v22 = vsel %vm3420_vm2, %v9391_v13, -inf  ;;  %v7905_v23 = vpop.f32.mrb[11].mxu0  ;;  %v7911_v24 = vpop.f32.mrb[11].mxu1 }
 0x103   : > { %3437 = vmax.xlane.f32.xlu1 %v3436_v21  ;;  %3434 = vmax.xlane.f32.xlu0 %v3433_v22 }
 0x104   : > { %8227 = vmatmul.mubr.msk.bf16.vlgmr.msra.gmra.mrb[116].mxu0 %vm411_vm1, %v277_v28 }
 0x105   : > { %8237 = vmatpush3.bf16.xpose.msra.mxu0 %v3176_v34  ;;  %8238 = vmatprep.mubr.msk.bf16.mxu0 %vm8920_vm0, %v10839_v0 }
 0x106   : > { %8248 = vmatprep.subr.bf16.mxu0 %v10839_v0  ;;  %8233 = vmatmul.mubr.msk.bf16.vlgmr.msra.gmra.mrb[116].mxu1 %vm411_vm1, %v278_v37 }
 0x107   : > { %v728_v26 = vpop.f32.mrb[12].mxu0  ;;  %v774_v27 = vpop.f32.mrb[12].mxu1  ;;  %8243 = vmatpush3.bf16.xpose.msra.mxu1 %v3222_v43  ;;  %8244 = vmatprep.mubr.msk.bf16.mxu1 %vm8920_vm0, %v10839_v0 }
 0x108   : > { %v9408_v30 = vmul.f32 0.25, %v728_v26  ;;  %v9410_v31 = vmul.f32 0.25, %v774_v27  ;;  %v7916_v32 = vpop.f32.mrb[13].mxu0  ;;  %v7922_v33 = vpop.f32.mrb[13].mxu1  ;;  %8254 = vmatprep.subr.bf16.mxu1 %v10839_v0 }
 0x109   : > { %v777_v35 = vpop.f32.mrb[14].mxu1  ;;  %v731_v36 = vpop.f32.mrb[14].mxu0 }
 0x10a   : > { %v3442_v39 = vsel %vm3420_vm2, %v9410_v31, -inf  ;;  %v3439_v40 = vsel %vm3420_vm2, %v9408_v30, -inf  ;;  %v7917_v41 = vpop.f32.mrb[15].mxu0  ;;  %v7923_v42 = vpop.f32.mrb[15].mxu1 }
 0x10b   : > { %3443 = vmax.xlane.f32.xlu1 %v3442_v39  ;;  %3440 = vmax.xlane.f32.xlu0 %v3439_v40 }
 0x10c   : > { %8239 = vmatmul.mubr.msk.bf16.vlgmr.msra.gmra.mrb[120].mxu0 %vm411_vm1, %v279_v48 }
 0x10d   : > { %8250 = vmatprep.mubr.msk.bf16.mxu0 %vm8920_vm0, %v10839_v0  ;;  %8249 = vmatpush3.bf16.xpose.msra.mxu0 %v3268_v56 }
 0x10e   : > { %8245 = vmatmul.mubr.msk.bf16.vlgmr.msra.gmra.mrb[120].mxu1 %vm411_vm1, %v280_v57  ;;  %8260 = vmatprep.subr.bf16.mxu0 %v10839_v0 }
 0x10f   : > { %v820_v44 = vpop.f32.mrb[16].mxu0  ;;  %v866_v46 = vpop.f32.mrb[16].mxu1  ;;  %8255 = vmatpush3.bf16.xpose.msra.mxu1 %v3314_v2  ;;  %8256 = vmatprep.mubr.msk.bf16.mxu1 %vm8920_vm0, %v10839_v0 }
 0x110   : > { %v9429_v49 = vmul.f32 0.25, %v820_v44  ;;  %v9431_v50 = vmul.f32 0.25, %v866_v46  ;;  %v7928_v51 = vpop.f32.mrb[17].mxu0  ;;  %v7934_v52 = vpop.f32.mrb[17].mxu1  ;;  %8266 = vmatprep.subr.bf16.mxu1 %v10839_v0 }
 0x111   : > { %v869_v54 = vpop.f32.mrb[18].mxu1  ;;  %v823_v55 = vpop.f32.mrb[18].mxu0 }
 0x112   : > { %v3448_v58 = vsel %vm3420_vm2, %v9431_v50, -inf  ;;  %v3445_v59 = vsel %vm3420_vm2, %v9429_v49, -inf  ;;  %v7929_v60 = vpop.f32.mrb[19].mxu0  ;;  %v7935_v62 = vpop.f32.mrb[19].mxu1 }
 0x113   : > { %3449 = vmax.xlane.f32.xlu1 %v3448_v58  ;;  %3446 = vmax.xlane.f32.xlu0 %v3445_v59 }
 0x114   : > { %8251 = vmatmul.mubr.msk.bf16.vlgmr.msra.gmra.mrb[124].mxu0 %vm411_vm1, %v281_v3 }
 0x115   : > { %8262 = vmatprep.mubr.msk.bf16.mxu0 %vm8920_vm0, %v10839_v0 }
 0x116   : > { %8257 = vmatmul.mubr.msk.bf16.vlgmr.msra.gmra.mrb[124].mxu1 %vm411_vm1, %v282_v14 }
 0x117   : > { %v912_v4 = vpop.f32.mrb[20].mxu0  ;;  %v958_v5 = vpop.f32.mrb[20].mxu1  ;;  %8268 = vmatprep.mubr.msk.bf16.mxu1 %vm8920_vm0, %v10839_v0 }
 0x118   : > { %v9451_v6 = vmul.f32 0.25, %v912_v4  ;;  %v9453_v7 = vmul.f32 0.25, %v958_v5  ;;  %v7940_v8 = vpop.f32.mrb[21].mxu0  ;;  %v7946_v9 = vpop.f32.mrb[21].mxu1 }
 0x119   : > { %v961_v10 = vpop.f32.mrb[22].mxu1  ;;  %v915_v11 = vpop.f32.mrb[22].mxu0 }
 0x11a   : > { %v3454_v15 = vsel %vm3420_vm2, %v9453_v7, -inf  ;;  %v3451_v16 = vsel %vm3420_vm2, %v9451_v6, -inf  ;;  %v7941_v17 = vpop.f32.mrb[23].mxu0  ;;  %v7947_v18 = vpop.f32.mrb[23].mxu1 }
 0x11b   : > { %3455 = vmax.xlane.f32.xlu1 %v3454_v15  ;;  %3452 = vmax.xlane.f32.xlu0 %v3451_v16 }
 0x11f   : > { %v1004_v19 = vpop.f32.mrb[24].mxu0  ;;  %v1050_v20 = vpop.f32.mrb[24].mxu1 }
 0x120   : > { %v9466_v21 = vmul.f32 0.25, %v1004_v19  ;;  %v9468_v22 = vmul.f32 0.25, %v1050_v20  ;;  %v7952_v23 = vpop.f32.mrb[25].mxu0  ;;  %v7958_v24 = vpop.f32.mrb[25].mxu1 }
 0x121   : > { %v1053_v25 = vpop.f32.mrb[26].mxu1  ;;  %v1007_v26 = vpop.f32.mrb[26].mxu0 }
 0x122   : > { %v3460_v27 = vsel %vm3420_vm2, %v9468_v22, -inf  ;;  %v3457_v28 = vsel %vm3420_vm2, %v9466_v21, -inf  ;;  %v7953_v29 = vpop.f32.mrb[27].mxu0  ;;  %v7959_v32 = vpop.f32.mrb[27].mxu1 }
 0x123   : > { %3461 = vmax.xlane.f32.xlu1 %v3460_v27  ;;  %3458 = vmax.xlane.f32.xlu0 %v3457_v28 }
 0x127   : > { %v1096_v33 = vpop.f32.mrb[28].mxu0  ;;  %v1142_v34 = vpop.f32.mrb[28].mxu1 }
 0x128   : > { %v9474_v35 = vmul.f32 0.25, %v1096_v33  ;;  %v9476_v36 = vmul.f32 0.25, %v1142_v34  ;;  %v7964_v37 = vpop.f32.mrb[29].mxu0  ;;  %v7970_v38 = vpop.f32.mrb[29].mxu1 }
 0x129   : > { %v1145_v39 = vpop.f32.mrb[30].mxu1  ;;  %v1099_v40 = vpop.f32.mrb[30].mxu0 }
 0x12a   : > { %v3466_v41 = vsel %vm3420_vm2, %v9476_v36, -inf  ;;  %v3463_v42 = vsel %vm3420_vm2, %v9474_v35, -inf  ;;  %v7965_v43 = vpop.f32.mrb[31].mxu0  ;;  %v7971_v44 = vpop.f32.mrb[31].mxu1 }
 0x12b   : > { %3467 = vmax.xlane.f32.xlu1 %v3466_v41  ;;  %3464 = vmax.xlane.f32.xlu0 %v3463_v42 }
 0x12f   : > { %v1188_v46 = vpop.f32.mrb[32].mxu0  ;;  %v1234_v48 = vpop.f32.mrb[32].mxu1 }
 0x130   : > { %v9482_v51 = vmul.f32 0.25, %v1188_v46  ;;  %v9484_v52 = vmul.f32 0.25, %v1234_v48  ;;  %v7976_v53 = vpop.f32.mrb[33].mxu0  ;;  %v7982_v54 = vpop.f32.mrb[33].mxu1 }
 0x131   : > { %v1191_v55 = vpop.f32.mrb[34].mxu0  ;;  %v1237_v56 = vpop.f32.mrb[34].mxu1 }
 0x132   : > { %v3472_v57 = vsel %vm3420_vm2, %v9484_v52, -inf  ;;  %v3469_v58 = vsel %vm3420_vm2, %v9482_v51, -inf  ;;  %v7977_v59 = vpop.f32.mrb[35].mxu0  ;;  %v7983_v60 = vpop.f32.mrb[35].mxu1 }
 0x133   : > { %3473 = vmax.xlane.f32.xlu1 %v3472_v57  ;;  %3470 = vmax.xlane.f32.xlu0 %v3469_v58 }
 0x137   : > { %v1280_v62 = vpop.f32.mrb[36].mxu0  ;;  %v1326_v1 = vpop.f32.mrb[36].mxu1 }
 0x138   : > { %v9490_v2 = vmul.f32 0.25, %v1280_v62  ;;  %v9492_v3 = vmul.f32 0.25, %v1326_v1  ;;  %v7988_v4 = vpop.f32.mrb[37].mxu0  ;;  %v7994_v5 = vpop.f32.mrb[37].mxu1 }
 0x139   : > { %v1283_v8 = vpop.f32.mrb[38].mxu0  ;;  %v1329_v9 = vpop.f32.mrb[38].mxu1 }
 0x13a   : > { %v3478_v10 = vsel %vm3420_vm2, %v9492_v3, -inf  ;;  %v3475_v11 = vsel %vm3420_vm2, %v9490_v2, -inf  ;;  %v7989_v14 = vpop.f32.mrb[39].mxu0  ;;  %v7995_v15 = vpop.f32.mrb[39].mxu1 }
 0x13b   : > { %3479 = vmax.xlane.f32.xlu1 %v3478_v10  ;;  %3476 = vmax.xlane.f32.xlu0 %v3475_v11 }
 0x13f   : > { %v1372_v16 = vpop.f32.mrb[40].mxu0  ;;  %v1418_v17 = vpop.f32.mrb[40].mxu1 }
 0x140   : > { %v9498_v18 = vmul.f32 0.25, %v1372_v16  ;;  %v9500_v19 = vmul.f32 0.25, %v1418_v17  ;;  %v8000_v20 = vpop.f32.mrb[41].mxu0  ;;  %v8006_v23 = vpop.f32.mrb[41].mxu1 }
 0x141   : > { %v1375_v24 = vpop.f32.mrb[42].mxu0  ;;  %v1421_v25 = vpop.f32.mrb[42].mxu1 }
 0x142   : > { %v3484_v26 = vsel %vm3420_vm2, %v9500_v19, -inf  ;;  %v3481_v27 = vsel %vm3420_vm2, %v9498_v18, -inf  ;;  %v8001_v28 = vpop.f32.mrb[43].mxu0  ;;  %v8007_v29 = vpop.f32.mrb[43].mxu1 }
 0x143   : > { %3485 = vmax.xlane.f32.xlu1 %v3484_v26  ;;  %3482 = vmax.xlane.f32.xlu0 %v3481_v27 }
 0x147   : > { %v1464_v32 = vpop.f32.mrb[44].mxu0  ;;  %v1510_v33 = vpop.f32.mrb[44].mxu1 }
 0x148   : > { %v9506_v34 = vmul.f32 0.25, %v1464_v32  ;;  %v9508_v37 = vmul.f32 0.25, %v1510_v33  ;;  %v8018_v38 = vpop.f32.mrb[45].mxu1  ;;  %v8012_v39 = vpop.f32.mrb[45].mxu0 }
 0x149   : > { %v1467_v40 = vpop.f32.mrb[46].mxu0  ;;  %v1513_v41 = vpop.f32.mrb[46].mxu1 }
 0x14a   : > { %v3490_v42 = vsel %vm3420_vm2, %v9508_v37, -inf  ;;  %v3487_v43 = vsel %vm3420_vm2, %v9506_v34, -inf  ;;  %v8013_v44 = vpop.f32.mrb[47].mxu0  ;;  %v8019_v46 = vpop.f32.mrb[47].mxu1 }
 0x14b   : > { %3491 = vmax.xlane.f32.xlu1 %v3490_v42  ;;  %3488 = vmax.xlane.f32.xlu0 %v3487_v43 }
 0x14f   : > { %v9514_v48 = vpop.f32.mrb[48].mxu0  ;;  %v9516_v53 = vpop.f32.mrb[48].mxu1 }
 0x150   : > { %v8024_v54 = vpop.f32.mrb[49].mxu0  ;;  %v8030_v55 = vpop.f32.mrb[49].mxu1 }
 0x151   : > { %v1605_v56 = vpop.f32.mrb[50].mxu1  ;;  %v1559_v57 = vpop.f32.mrb[50].mxu0 }
 0x152   : > { %v8025_v58 = vpop.f32.mrb[51].mxu0  ;;  %v8031_v59 = vpop.f32.mrb[51].mxu1 }
 0x157   : > { %v9518_v60 = vpop.f32.mrb[52].mxu0  ;;  %v9520_v62 = vpop.f32.mrb[52].mxu1 }
 0x158   : > { %v8036_v1 = vpop.f32.mrb[53].mxu0  ;;  %v8042_v4 = vpop.f32.mrb[53].mxu1 }
 0x159   : > { %v1697_v5 = vpop.f32.mrb[54].mxu1  ;;  %v1651_v8 = vpop.f32.mrb[54].mxu0 }
 0x15a   : > { %v8037_v9 = vpop.f32.mrb[55].mxu0  ;;  %v8043_v10 = vpop.f32.mrb[55].mxu1 }
 0x15f   : > { %v9522_v11 = vpop.f32.mrb[56].mxu0  ;;  %v9524_v14 = vpop.f32.mrb[56].mxu1 }
 0x160   : > { %v8048_v15 = vpop.f32.mrb[57].mxu0  ;;  %v8054_v16 = vpop.f32.mrb[57].mxu1 }
 0x161   : > { %v1789_v17 = vpop.f32.mrb[58].mxu1  ;;  %v1743_v20 = vpop.f32.mrb[58].mxu0 }
 0x162   : > { %v8049_v23 = vpop.f32.mrb[59].mxu0  ;;  %v8055_v24 = vpop.f32.mrb[59].mxu1 }
 0x167   : > { %v9526_v25 = vpop.f32.mrb[60].mxu0  ;;  %v9528_v26 = vpop.f32.mrb[60].mxu1 }
 0x168   : > { %v8060_v27 = vpop.f32.mrb[61].mxu0  ;;  %v8066_v28 = vpop.f32.mrb[61].mxu1 }
 0x169   : > { %v1881_v29 = vpop.f32.mrb[62].mxu1  ;;  %v1835_v32 = vpop.f32.mrb[62].mxu0 }
 0x16a   : > { %v8061_v33 = vpop.f32.mrb[63].mxu0  ;;  %v8067_v38 = vpop.f32.mrb[63].mxu1 }
 0x16f   : > { %v9530_v39 = vpop.f32.mrb[64].mxu0  ;;  %v9532_v40 = vpop.f32.mrb[64].mxu1 }
 0x170   : > { %v8072_v41 = vpop.f32.mrb[65].mxu0  ;;  %v8078_v42 = vpop.f32.mrb[65].mxu1 }
 0x171   : > { %v1973_v43 = vpop.f32.mrb[66].mxu1  ;;  %v1927_v44 = vpop.f32.mrb[66].mxu0 }
 0x172   : > { %v8073_v46 = vpop.f32.mrb[67].mxu0  ;;  %v8079_v54 = vpop.f32.mrb[67].mxu1 }
 0x177   : > { %v9534_v55 = vpop.f32.mrb[68].mxu0  ;;  %v9536_v56 = vpop.f32.mrb[68].mxu1 }
 0x178   : > { %v8084_v57 = vpop.f32.mrb[69].mxu0  ;;  %v8090_v58 = vpop.f32.mrb[69].mxu1 }
 0x179   : > { %v2065_v59 = vpop.f32.mrb[70].mxu1  ;;  %v2019_v1 = vpop.f32.mrb[70].mxu0 }
 0x17a   : > { %v8085_v4 = vpop.f32.mrb[71].mxu0  ;;  %v8091_v5 = vpop.f32.mrb[71].mxu1 }
 0x17b   : > { %v9551_v4 = vmul.f32 0.25, %v9514_v48 }
 0x17f   : > { %v9538_v8 = vpop.f32.mrb[72].mxu0  ;;  %v9540_v9 = vpop.f32.mrb[72].mxu1 }
 0x180   : > { %v3423_v10 = vpop.xlane.xlu0 %3422  ;;  %v8096_v15 = vpop.f32.mrb[73].mxu0 }
 0x181   : > { %v3613_v16 = vsub.f32 %v9356_v45, %v3423_v10  ;;  %v8102_v17 = vpop.f32.mrb[73].mxu1  ;;  %v2111_v20 = vpop.f32.mrb[74].mxu0 }
 0x182   : > { %v2157_v23 = vpop.f32.mrb[74].mxu1  ;;  %v8097_v24 = vpop.f32.mrb[75].mxu0 }
 0x183   : > { %v3677_v27 = vmul.f32 1.442695, %v3613_v16  ;;  %v8103_v28 = vpop.f32.mrb[75].mxu1 }
 0x184   : > { %v3426_v29 = vpop.xlane.xlu0 %3425  ;;  %v3493_v28 = vsel %vm3420_vm2, %v9551_v4, -inf }
 0x185   : > { %8655 = vpow2.f32 %v3677_v27  ;;  %v3614_v32 = vsub.f32 %v9358_v47, %v3426_v29  ;;  %v9564_v27 = vmul.f32 0.25, %v9516_v53  ;;  %v9575_v53 = vmul.f32 0.25, %v9518_v60 }
 0x187   : > { %v3679_v33 = vmul.f32 1.442695, %v3614_v32  ;;  %v9544_v38 = vpop.f32.mrb[76].mxu0  ;;  %v9546_v41 = vpop.f32.mrb[76].mxu1 }
 0x188   : > { %v3429_v42 = vpop.xlane.xlu1 %3428  ;;  %v8108_v43 = vpop.f32.mrb[77].mxu0 }
 0x189   : > { %8657 = vpow2.f32 %v3679_v33  ;;  %v3615_v45 = vsub.f32 %v9375_v61, %v3429_v42  ;;  %v8114_v44 = vpop.f32.mrb[77].mxu1  ;;  %v2203_v46 = vpop.f32.mrb[78].mxu0 }
 0x18a   : > { %v2249_v54 = vpop.f32.mrb[78].mxu1  ;;  %v8109_v57 = vpop.f32.mrb[79].mxu0 }
 0x18b   : > { %v3681_v58 = vmul.f32 1.442695, %v3615_v45  ;;  %v8115_v59 = vpop.f32.mrb[79].mxu1 }
 0x18c   : > { %v3432_v1 = vpop.xlane.xlu1 %3431 }
 0x18d   : > { %8659 = vpow2.f32 %v3681_v58  ;;  %v3616_v47 = vsub.f32 %v9377_v63, %v3432_v1 }
 0x18f   : > { %v9553_v5 = vpop.eup %8655  ;;  %v3683_v10 = vmul.f32 1.442695, %v3616_v47  ;;  %v9555_v15 = vpop.f32.mrb[80].mxu0 }
 0x190   : > { %v9557_v16 = vpop.f32.mrb[80].mxu1  ;;  %v3438_v61 = vpop.xlane.xlu1 %3437  ;;  %v3805_v20 = vsel %vm3420_vm2, %v9553_v5, 0.0 }
 0x191   : > { %v3435_v17 = vpop.xlane.xlu0 %3434  ;;  %8661 = vpow2.f32 %v3683_v10  ;;  %v3618_v23 = vsub.f32 %v9389_v12, %v3438_v61  ;;  %3806 = vadd.xlane.f32.xlu0 %v3805_v20  ;;  %v8120_v48 = vpop.f32.mrb[81].mxu0  ;;  %v3499_v20 = vsel %vm3420_vm2, %v9575_v53, -inf }
 0x192   : > { %v3617_v63 = vsub.f32 %v9391_v13, %v3435_v17  ;;  %v8126_v24 = vpop.f32.mrb[81].mxu1  ;;  %v2295_v29 = vpop.f32.mrb[82].mxu0  ;;  %v3496_v13 = vsel %vm3420_vm2, %v9564_v27, -inf  ;;  %v9588_v17 = vmul.f32 0.25, %v9520_v62 }
 0x193   : > { %v2341_v32 = vpop.f32.mrb[82].mxu1  ;;  %v9568_v33 = vpop.eup %8657  ;;  %v3687_v42 = vmul.f32 1.442695, %v3618_v23 }
 0x194   : > { %v3685_v43 = vmul.f32 1.442695, %v3617_v63  ;;  %v8121_v45 = vpop.f32.mrb[83].mxu0  ;;  %v8127_v44 = vpop.f32.mrb[83].mxu1  ;;  %v3808_v12 = vsel %vm3420_vm2, %v9568_v33, 0.0  ;;  %v3502_v62 = vsel %vm3420_vm2, %v9588_v17, -inf }
 0x195   : > { %3809 = vadd.xlane.f32.xlu1 %v3808_v12  ;;  %3494 = vmax.xlane.f32.xlu0 %v3493_v28  ;;  %v9599_v32 = vmul.f32 0.25, %v9522_v11 }
 0x196   : > { %8663 = vpow2.f32 %v3685_v43 }
 0x197   : > { %v9577_v46 = vpop.eup %8659  ;;  %8665 = vpow2.f32 %v3687_v42  ;;  %v9579_v54 = vpop.f32.mrb[84].mxu0 }
 0x198   : > { %v9581_v57 = vpop.f32.mrb[84].mxu1  ;;  %v3444_v58 = vpop.xlane.xlu1 %3443  ;;  %v3811_v1 = vsel %vm3420_vm2, %v9577_v46, 0.0 }
 0x199   : > { %v3441_v59 = vpop.xlane.xlu0 %3440  ;;  %v3620_v47 = vsub.f32 %v9410_v31, %v3444_v58  ;;  %3497 = vmax.xlane.f32.xlu1 %v3496_v13  ;;  %3812 = vadd.xlane.f32.xlu0 %v3811_v1  ;;  %v8132_v60 = vpop.f32.mrb[85].mxu0 }
 0x19a   : > { %v3619_v10 = vsub.f32 %v9408_v30, %v3441_v59  ;;  %v8138_v61 = vpop.f32.mrb[85].mxu1  ;;  %v2387_v23 = vpop.f32.mrb[86].mxu0  ;;  %v3505_v60 = vsel %vm3420_vm2, %v9599_v32, -inf }
 0x19b   : > { %v2433_v63 = vpop.f32.mrb[86].mxu1  ;;  %v9592_v48 = vpop.eup %8661  ;;  %v3691_v24 = vmul.f32 1.442695, %v3620_v47 }
 0x19c   : > { %v3689_v28 = vmul.f32 1.442695, %v3619_v10  ;;  %v8133_v29 = vpop.f32.mrb[87].mxu0  ;;  %v8139_v31 = vpop.f32.mrb[87].mxu1  ;;  %v3814_v30 = vsel %vm3420_vm2, %v9592_v48, 0.0  ;;  %v9614_v10 = vmul.f32 0.25, %v9524_v14 }
 0x19d   : > { %3815 = vadd.xlane.f32.xlu1 %v3814_v30  ;;  %3500 = vmax.xlane.f32.xlu0 %v3499_v20 }
 0x19e   : > { %8667 = vpow2.f32 %v3689_v28  ;;  %v3508_v14 = vsel %vm3420_vm2, %v9614_v10, -inf  ;;  %v9623_v28 = vmul.f32 0.25, %v9526_v25 }
 0x19f   : > { %8669 = vpow2.f32 %v3691_v24  ;;  %v9601_v42 = vpop.f32.mrb[88].mxu0  ;;  %v9603_v43 = vpop.f32.mrb[88].mxu1 }
 0x1a0   : > { %v9605_v45 = vpop.eup %8663  ;;  %v3450_v44 = vpop.xlane.xlu1 %3449 }
 0x1a1   : > { %v3447_v12 = vpop.xlane.xlu0 %3446  ;;  %v9607_v13 = vpop.eup %8665  ;;  %v3622_v58 = vsub.f32 %v9431_v50, %v3450_v44  ;;  %3503 = vmax.xlane.f32.xlu1 %v3502_v62  ;;  %v3817_v11 = vsel %vm3420_vm2, %v9605_v45, 0.0 }
 0x1a2   : > { %v3621_v59 = vsub.f32 %v9429_v49, %v3447_v12  ;;  %v8144_v1 = vpop.f32.mrb[89].mxu0  ;;  %v8150_v47 = vpop.f32.mrb[89].mxu1  ;;  %3818 = vadd.xlane.f32.xlu0 %v3817_v11  ;;  %v3820_v24 = vsel %vm3420_vm2, %v9607_v13, 0.0  ;;  %v347_v11 = vld [vmem:[%s9635_s24] sm:$0x7] }
 0x1a3   : > { %v2479_v61 = vpop.f32.mrb[90].mxu0  ;;  %v2525_v20 = vpop.f32.mrb[90].mxu1  ;;  %v3695_v23 = vmul.f32 1.442695, %v3622_v58  ;;  %v8921_v1 = vmov 65535  }
 0x1a4   : > { %v3693_v63 = vmul.f32 1.442695, %v3621_v59  ;;  %v8145_v50 = vpop.f32.mrb[91].mxu0  ;;  %v8151_v49 = vpop.f32.mrb[91].mxu1  ;;  %v4195_v47 = vsel %vm4193_vm3, 4294967295, %v8921_v1  ;;  %v9645_v20 = vmul.f32 0.25, %v9528_v26 }
 0x1a5   : > { %3821 = vadd.xlane.f32.xlu1 %v3820_v24  ;;  %v348_v26 = vld [vmem:[%s9635_s24 + $0x4] sm:$0x7] }
 0x1a6   : > { %8671 = vpow2.f32 %v3693_v63  ;;  %3506 = vmax.xlane.f32.xlu0 %v3505_v60 }
 0x1a7   : > { %8673 = vpow2.f32 %v3695_v23  ;;  %v9625_v29 = vpop.f32.mrb[92].mxu0  ;;  %v9627_v31 = vpop.f32.mrb[92].mxu1  ;;  %v3511_v23 = vsel %vm3420_vm2, %v9623_v28, -inf }
 0x1a8   : > { %v9629_v30 = vpop.eup %8667  ;;  %v3456_v62 = vpop.xlane.xlu1 %3455 }
 0x1a9   : > { %v3453_v44 = vpop.xlane.xlu0 %3452  ;;  %v9637_v12 = vpop.eup %8669  ;;  %v3624_v25 = vsub.f32 %v9453_v7, %v3456_v62  ;;  %3509 = vmax.xlane.f32.xlu1 %v3508_v14  ;;  %v3823_v59 = vsel %vm3420_vm2, %v9629_v30, 0.0  ;;  %v9649_v7 = vsel %vm4194_vm4, %v4195_v47, 0 }
 0x1aa   : > { %v3623_v58 = vsub.f32 %v9451_v6, %v3453_v44  ;;  %v8162_v60 = vpop.f32.mrb[93].mxu1  ;;  %v8156_v61 = vpop.f32.mrb[93].mxu0  ;;  %3824 = vadd.xlane.f32.xlu0 %v3823_v59  ;;  %v4198_v24 = vand.u32 %v9649_v7, %v347_v11  ;;  %v3826_v44 = vsel %vm3420_vm2, %v9637_v12, 0.0  ;;  %v3514_v59 = vsel %vm3420_vm2, %v9645_v20, -inf }
 0x1ab   : > { %v2571_v6 = vpop.f32.mrb[94].mxu0  ;;  %v2617_v63 = vpop.f32.mrb[94].mxu1  ;;  %v3699_v50 = vmul.f32 1.442695, %v3624_v25  ;;  %v4244_v1 = vand.u32 %v9649_v7, %v348_v26  ;;  %v9660_v25 = vmul.f32 0.25, %v9530_v39  ;;  %v9672_v39 = vmul.f32 0.25, %v9532_v40 }
 0x1ac   : > { %v3697_v49 = vmul.f32 1.442695, %v3623_v58  ;;  %v8157_v14 = vpop.f32.mrb[95].mxu0  ;;  %v8163_v62 = vpop.f32.mrb[95].mxu1  ;;  %8261 = vmatpush3.bf16.msra.mxu0 %v4198_v24  ;;  %v9685_v26 = vmul.f32 0.25, %v9534_v55  ;;  %v9696_v55 = vmul.f32 0.25, %v9536_v56 }
 0x1ad   : > { %3827 = vadd.xlane.f32.xlu1 %v3826_v44  ;;  %8272 = vmatprep.subr.bf16.mxu0 %v10839_v0  ;;  %v3520_v40 = vsel %vm3420_vm2, %v9672_v39, -inf }
 0x1ae   : > { %8675 = vpow2.f32 %v3697_v49  ;;  %3512 = vmax.xlane.f32.xlu0 %v3511_v23  ;;  %8267 = vmatpush3.bf16.msra.mxu1 %v4244_v1  ;;  %v3517_v49 = vsel %vm3420_vm2, %v9660_v25, -inf }
 0x1af   : > { %8677 = vpow2.f32 %v3699_v50  ;;  %8278 = vmatprep.subr.bf16.mxu1 %v10839_v0  ;;  %v9678_v24 = vpop.f32.mrb[96].mxu0 }
 0x1b0   : > { %v9662_v58 = vpop.eup %8671  ;;  %v3462_v11 = vpop.xlane.xlu1 %3461 }
 0x1b1   : > { %v3459_v47 = vpop.xlane.xlu0 %3458  ;;  %v9664_v60 = vpop.eup %8673  ;;  %v3626_v61 = vsub.f32 %v9468_v22, %v3462_v11  ;;  %3515 = vmax.xlane.f32.xlu1 %v3514_v59  ;;  %v3829_v6 = vsel %vm3420_vm2, %v9662_v58, 0.0 }
 0x1b2   : > { %v3625_v23 = vsub.f32 %v9466_v21, %v3459_v47  ;;  %3830 = vadd.xlane.f32.xlu0 %v3829_v6  ;;  %v3832_v22 = vsel %vm3420_vm2, %v9664_v60, 0.0  ;;  %v9680_v21 = vpop.f32.mrb[96].mxu1  ;;  %v8168_v14 = vpop.f32.mrb[97].mxu0 }
 0x1b3   : > { %v3703_v63 = vmul.f32 1.442695, %v3626_v61  ;;  %v8174_v62 = vpop.f32.mrb[97].mxu1  ;;  %v2663_v44 = vpop.f32.mrb[98].mxu0 }
 0x1b4   : > { %v3701_v50 = vmul.f32 1.442695, %v3625_v23  ;;  %v2709_v59 = vpop.f32.mrb[98].mxu1  ;;  %v8169_v1 = vpop.f32.mrb[99].mxu0  ;;  %v3523_v62 = vsel %vm3420_vm2, %v9685_v26, -inf }
 0x1b5   : > { %3833 = vadd.xlane.f32.xlu1 %v3832_v22  ;;  %v9709_v59 = vmul.f32 0.25, %v9538_v8  ;;  %v9720_v8 = vmul.f32 0.25, %v9540_v9 }
 0x1b6   : > { %8679 = vpow2.f32 %v3701_v50  ;;  %3518 = vmax.xlane.f32.xlu0 %v3517_v49 }
 0x1b7   : > { %8681 = vpow2.f32 %v3703_v63  ;;  %v8175_v63 = vpop.f32.mrb[99].mxu1  ;;  %v3529_v0 = vsel %vm3420_vm2, %v9709_v59, -inf }
 0x1b8   : > { %v9687_v11 = vpop.eup %8675  ;;  %v3468_v47 = vpop.xlane.xlu1 %3467 }
 0x1b9   : > { %v3465_v61 = vpop.xlane.xlu0 %3464  ;;  %v9689_v23 = vpop.eup %8677  ;;  %v3628_v6 = vsub.f32 %v9476_v36, %v3468_v47  ;;  %3521 = vmax.xlane.f32.xlu1 %v3520_v40  ;;  %v3835_v49 = vsel %vm3420_vm2, %v9687_v11, 0.0 }
 0x1ba   : > { %v3627_v50 = vsub.f32 %v9474_v35, %v3465_v61  ;;  %3836 = vadd.xlane.f32.xlu0 %v3835_v49  ;;  %v3838_v44 = vsel %vm3420_vm2, %v9689_v23, 0.0  ;;  %v9702_v36 = vpop.f32.mrb[100].mxu0  ;;  %v3526_v35 = vsel %vm3420_vm2, %v9696_v55, -inf  ;;  %v9706_v40 = vpop.f32.mrb[100].mxu1 }
 0x1bb   : > { %v3707_v22 = vmul.f32 1.442695, %v3628_v6  ;;  %v8180_v56 = vpop.f32.mrb[101].mxu0  ;;  %v8186_v1 = vpop.f32.mrb[101].mxu1 }
 0x1bc   : > { %v3705_v14 = vmul.f32 1.442695, %v3627_v50  ;;  %v2755_v47 = vpop.f32.mrb[102].mxu0 }
 0x1bd   : > { %3839 = vadd.xlane.f32.xlu1 %v3838_v44  ;;  %v8181_v44 = vpop.f32.mrb[103].mxu0 }
 0x1be   : > { %8683 = vpow2.f32 %v3705_v14  ;;  %3524 = vmax.xlane.f32.xlu0 %v3523_v62 }
 0x1bf   : > { %8685 = vpow2.f32 %v3707_v22  ;;  %v2801_v22 = vpop.f32.mrb[102].mxu1 }
 0x1c0   : > { %v9711_v61 = vpop.eup %8679  ;;  %v3474_v6 = vpop.xlane.xlu1 %3473 }
 0x1c1   : > { %10856 = vst [vmem:[#allocation2_spill] sm:$0xff] %v9711_v61  ;;  %v3471_v50 = vpop.xlane.xlu0 %3470  ;;  %v9713_v49 = vpop.eup %8681  ;;  %v3630_v63 = vsub.f32 %v9484_v52, %v3474_v6  ;;  %3527 = vmax.xlane.f32.xlu1 %v3526_v35  ;;  %v3841_v62 = vsel %vm3420_vm2, %v9711_v61, 0.0  ;;  %v3532_v35 = vsel %vm3420_vm2, %v9720_v8, -inf }
 0x1c2   : > { %10857 = vst [vmem:[#allocation3_spill] sm:$0xff] %v9713_v49  ;;  %v3629_v14 = vsub.f32 %v9482_v51, %v3471_v50  ;;  %3842 = vadd.xlane.f32.xlu0 %v3841_v62  ;;  %v8187_v56 = vpop.f32.mrb[103].mxu1  ;;  %v3844_v52 = vsel %vm3420_vm2, %v9713_v49, 0.0  ;;  %v9726_v51 = vpop.f32.mrb[104].mxu0  ;;  %v9733_v50 = vmul.f32 0.25, %v9544_v38  ;;  %v9744_v38 = vmul.f32 0.25, %v9546_v41 }
 0x1c3   : > { %v3711_v1 = vmul.f32 1.442695, %v3630_v63  ;;  %v9730_v6 = vpop.f32.mrb[104].mxu1  ;;  %v8192_v9 = vpop.f32.mrb[105].mxu0 }
 0x1c4   : > { %v3709_v47 = vmul.f32 1.442695, %v3629_v14  ;;  %v8198_v63 = vpop.f32.mrb[105].mxu1  ;;  %v2847_v14 = vpop.f32.mrb[106].mxu0  ;;  %v3535_v61 = vsel %vm3420_vm2, %v9733_v50, -inf }
 0x1c5   : > { %3845 = vadd.xlane.f32.xlu1 %v3844_v52  ;;  %v8193_v9 = vpop.f32.mrb[107].mxu0 }
 0x1c6   : > { %8687 = vpow2.f32 %v3709_v47  ;;  %3530 = vmax.xlane.f32.xlu0 %v3529_v0 }
 0x1c7   : > { %8689 = vpow2.f32 %v3711_v1  ;;  %v2893_v1 = vpop.f32.mrb[106].mxu1 }
 0x1c8   : > { %v9735_v62 = vpop.eup %8683  ;;  %v3480_v22 = vpop.xlane.xlu1 %3479 }
 0x1c9   : > { %10858 = vst [vmem:[#allocation4_spill] sm:$0xff] %v9735_v62  ;;  %v3477_v44 = vpop.xlane.xlu0 %3476  ;;  %v9737_v56 = vpop.eup %8685  ;;  %v3632_v0 = vsub.f32 %v9492_v3, %v3480_v22  ;;  %3533 = vmax.xlane.f32.xlu1 %v3532_v35  ;;  %v3847_v52 = vsel %vm3420_vm2, %v9735_v62, 0.0  ;;  %v3538_v35 = vsel %vm3420_vm2, %v9744_v38, -inf }
 0x1ca   : > { %10859 = vst [vmem:[#allocation5_spill] sm:$0xff] %v9737_v56  ;;  %v3631_v47 = vsub.f32 %v9490_v2, %v3477_v44  ;;  %3848 = vadd.xlane.f32.xlu0 %v3847_v52  ;;  %v8199_v63 = vpop.f32.mrb[107].mxu1  ;;  %v3850_v3 = vsel %vm3420_vm2, %v9737_v56, 0.0  ;;  %v9750_v2 = vpop.f32.mrb[108].mxu0  ;;  %v9757_v44 = vmul.f32 0.25, %v9555_v15  ;;  %v9768_v15 = vmul.f32 0.25, %v9557_v16 }
 0x1cb   : > { %v3715_v14 = vmul.f32 1.442695, %v3632_v0  ;;  %v9754_v22 = vpop.f32.mrb[108].mxu1  ;;  %v8204_v41 = vpop.f32.mrb[109].mxu0 }
 0x1cc   : > { %v3713_v49 = vmul.f32 1.442695, %v3631_v47  ;;  %v8210_v0 = vpop.f32.mrb[109].mxu1  ;;  %v2939_v47 = vpop.f32.mrb[110].mxu0  ;;  %v3541_v62 = vsel %vm3420_vm2, %v9757_v44, -inf }
 0x1cd   : > { %3851 = vadd.xlane.f32.xlu1 %v3850_v3  ;;  %v8205_v41 = vpop.f32.mrb[111].mxu0 }
 0x1ce   : > { %8691 = vpow2.f32 %v3713_v49  ;;  %3536 = vmax.xlane.f32.xlu0 %v3535_v61 }
 0x1cf   : > { %8693 = vpow2.f32 %v3715_v14  ;;  %v2985_v14 = vpop.f32.mrb[110].mxu1 }
 0x1d0   : > { %v9759_v52 = vpop.eup %8687  ;;  %v3486_v1 = vpop.xlane.xlu1 %3485 }
 0x1d1   : > { %10860 = vst [vmem:[#allocation6_spill] sm:$0xff] %v9759_v52  ;;  %v3483_v9 = vpop.xlane.xlu0 %3482  ;;  %v9761_v63 = vpop.eup %8689  ;;  %v3634_v61 = vsub.f32 %v9500_v19, %v3486_v1  ;;  %3539 = vmax.xlane.f32.xlu1 %v3538_v35  ;;  %v3853_v3 = vsel %vm3420_vm2, %v9759_v52, 0.0  ;;  %v3544_v35 = vsel %vm3420_vm2, %v9768_v15, -inf }
 0x1d2   : > { %10861 = vst [vmem:[#allocation7_spill] sm:$0xff] %v9761_v63  ;;  %v3633_v49 = vsub.f32 %v9498_v18, %v3483_v9  ;;  %3854 = vadd.xlane.f32.xlu0 %v3853_v3  ;;  %v8211_v0 = vpop.f32.mrb[111].mxu1  ;;  %v3856_v19 = vsel %vm3420_vm2, %v9761_v63, 0.0  ;;  %v9774_v18 = vpop.f32.mrb[112].mxu0  ;;  %v9781_v9 = vmul.f32 0.25, %v9579_v54  ;;  %v9792_v54 = vmul.f32 0.25, %v9581_v57 }
 0x1d3   : > { %v3719_v47 = vmul.f32 1.442695, %v3634_v61  ;;  %v9778_v1 = vpop.f32.mrb[112].mxu1  ;;  %v8216_v16 = vpop.f32.mrb[113].mxu0  ;;  %v9803_v57 = vmul.f32 0.25, %v9601_v42 }
 0x1d4   : > { %v3717_v56 = vmul.f32 1.442695, %v3633_v49  ;;  %v8222_v61 = vpop.f32.mrb[113].mxu1  ;;  %v3031_v49 = vpop.f32.mrb[114].mxu0  ;;  %v3547_v52 = vsel %vm3420_vm2, %v9781_v9, -inf }
 0x1d5   : > { %3857 = vadd.xlane.f32.xlu1 %v3856_v19  ;;  %v8217_v16 = vpop.f32.mrb[115].mxu0  ;;  %10863 = vst [vmem:[#allocation9_spill] sm:$0xff] %v9803_v57 }
 0x1d6   : > { %8695 = vpow2.f32 %v3717_v56  ;;  %3542 = vmax.xlane.f32.xlu0 %v3541_v62 }
 0x1d7   : > { %8697 = vpow2.f32 %v3719_v47  ;;  %v3077_v47 = vpop.f32.mrb[114].mxu1 }
 0x1d8   : > { %v9783_v3 = vpop.eup %8691  ;;  %v3492_v14 = vpop.xlane.xlu1 %3491 }
 0x1d9   : > { %v3489_v41 = vpop.xlane.xlu0 %3488  ;;  %v9785_v0 = vpop.eup %8693  ;;  %v3636_v62 = vsub.f32 %v9508_v37, %v3492_v14  ;;  %3545 = vmax.xlane.f32.xlu1 %v3544_v35  ;;  %v3859_v19 = vsel %vm3420_vm2, %v9783_v3, 0.0  ;;  %v3550_v35 = vsel %vm3420_vm2, %v9792_v54, -inf }
 0x1da   : > { %10862 = vst [vmem:[#allocation8_spill] sm:$0xff] %v9785_v0  ;;  %v3635_v56 = vsub.f32 %v9506_v34, %v3489_v41  ;;  %3860 = vadd.xlane.f32.xlu0 %v3859_v19  ;;  %v8223_v61 = vpop.f32.mrb[115].mxu1  ;;  %v3862_v37 = vsel %vm3420_vm2, %v9785_v0, 0.0  ;;  %v9798_v34 = vpop.f32.mrb[116].mxu0 }
 0x1db   : > { %v3723_v49 = vmul.f32 1.442695, %v3636_v62  ;;  %v8228_v14 = vpop.f32.mrb[117].mxu0  ;;  %v9805_v41 = vpop.f32.mrb[116].mxu1  ;;  %v9814_v61 = vmul.f32 0.25, %v9603_v43 }
 0x1dc   : > { %v3721_v63 = vmul.f32 1.442695, %v3635_v56  ;;  %v3123_v62 = vpop.f32.mrb[118].mxu0  ;;  %v8234_v19 = vpop.f32.mrb[117].mxu1 }
 0x1dd   : > { %3863 = vadd.xlane.f32.xlu1 %v3862_v37  ;;  %v8229_v47 = vpop.f32.mrb[119].mxu0  ;;  %10866 = vst [vmem:[#allocation12_spill] sm:$0xff] %v9814_v61  ;;  %v9825_v19 = vmul.f32 0.25, %v9625_v29 }
 0x1de   : > { %8699 = vpow2.f32 %v3721_v63  ;;  %3548 = vmax.xlane.f32.xlu0 %v3547_v52  ;;  %v3169_v63 = vpop.f32.mrb[118].mxu1 }
 0x1df   : > { %8701 = vpow2.f32 %v3723_v49  ;;  %v8235_v42 = vpop.f32.mrb[119].mxu1  ;;  %v3553_v49 = vsel %vm3420_vm2, %v9803_v57, -inf  ;;  %v9820_v14 = vpop.f32.mrb[120].mxu0  ;;  %10867 = vst [vmem:[#allocation13_spill] sm:$0xff] %v9825_v19 }
 0x1e0   : > { %v9807_v56 = vpop.eup %8695  ;;  %v8240_v62 = vpop.f32.mrb[121].mxu0 }
 0x1e1   : > { %10864 = vst [vmem:[#allocation10_spill] sm:$0xff] %v9807_v56  ;;  %v9809_v16 = vpop.eup %8697  ;;  %3551 = vmax.xlane.f32.xlu1 %v3550_v35  ;;  %v3865_v52 = vsel %vm3420_vm2, %v9807_v56, 0.0  ;;  %v3556_v35 = vsel %vm3420_vm2, %v9814_v61, -inf  ;;  %v9827_v43 = vpop.f32.mrb[120].mxu1  ;;  %v9836_v62 = vmul.f32 0.25, %v9627_v31 }
 0x1e2   : > { %10865 = vst [vmem:[#allocation11_spill] sm:$0xff] %v9809_v16  ;;  %3866 = vadd.xlane.f32.xlu0 %v3865_v52  ;;  %v3868_v37 = vsel %vm3420_vm2, %v9809_v16, 0.0  ;;  %v3215_v47 = vpop.f32.mrb[122].mxu0  ;;  %v8246_v63 = vpop.f32.mrb[121].mxu1  ;;  %v3559_v16 = vsel %vm3420_vm2, %v9825_v19, -inf }
 0x1e3   : > { %v8241_v42 = vpop.f32.mrb[123].mxu0  ;;  %10870 = vst [vmem:[#allocation16_spill] sm:$0xff] %v9836_v62 }
 0x1e5   : > { %3869 = vadd.xlane.f32.xlu1 %v3868_v37  ;;  %v3261_v37 = vpop.f32.mrb[122].mxu1 }
 0x1e6   : > { %3554 = vmax.xlane.f32.xlu0 %v3553_v49  ;;  %v8247_v29 = vpop.f32.mrb[123].mxu1 }
 0x1e7   : > { %v9842_v63 = vpop.f32.mrb[124].mxu0 }
 0x1e8   : > { %v9829_v52 = vpop.eup %8699  ;;  %v8252_v42 = vpop.f32.mrb[125].mxu0 }
 0x1e9   : > { %10868 = vst [vmem:[#allocation14_spill] sm:$0xff] %v9829_v52  ;;  %v9831_v56 = vpop.eup %8701  ;;  %3557 = vmax.xlane.f32.xlu1 %v3556_v35  ;;  %v3871_v49 = vsel %vm3420_vm2, %v9829_v52, 0.0  ;;  %v3562_v35 = vsel %vm3420_vm2, %v9836_v62, -inf  ;;  %v9846_v37 = vpop.f32.mrb[124].mxu1 }
 0x1ea   : > { %10869 = vst [vmem:[#allocation15_spill] sm:$0xff] %v9831_v56  ;;  %3872 = vadd.xlane.f32.xlu0 %v3871_v49  ;;  %v3874_v47 = vsel %vm3420_vm2, %v9831_v56, 0.0  ;;  %v3307_v49 = vpop.f32.mrb[126].mxu0  ;;  %v8258_v31 = vpop.f32.mrb[125].mxu1 }
 0x1eb   : > { %v8253_v52 = vpop.f32.mrb[127].mxu0  ;;  %v3353_v29 = vpop.f32.mrb[126].mxu1 }
 0x1ec   : > { %v8259_v19 = vpop.f32.mrb[127].mxu1  ;;  %v349_v52 = vld [vmem:[%s9635_s24 + $0x8] sm:$0x7] }
 0x1ed   : > { %3875 = vadd.xlane.f32.xlu1 %v3874_v47 }
 0x1ee   : > { %3560 = vmax.xlane.f32.xlu0 %v3559_v16 }
 0x1f1   : > { %3563 = vmax.xlane.f32.xlu1 %v3562_v35 }
 0x21e   : > { %v3807_v61 = vpop.xlane.xlu0 %3806 }
 0x21f   : > { %8703 = vrcp.f32 %v3807_v61 }
 0x222   : > { %v3810_v56 = vpop.xlane.xlu1 %3809  ;;  %v3495_v47 = vpop.xlane.xlu0 %3494 }
 0x223   : > { %8705 = vrcp.f32 %v3810_v56  ;;  %v3637_v16 = vsub.f32 %v9551_v4, %v3495_v47  ;;  %v4290_v4 = vand.u32 %v9649_v7, %v349_v52  ;;  %v350_v47 = vld [vmem:[%s9635_s24 + $0xc] sm:$0x7] }
 0x225   : > { %v3725_v0 = vmul.f32 1.442695, %v3637_v16 }
 0x226   : > { %v3498_v57 = vpop.xlane.xlu1 %3497  ;;  %v3813_v62 = vpop.xlane.xlu0 %3812 }
 0x227   : > { %8707 = vpow2.f32 %v3725_v0  ;;  %v3638_v42 = vsub.f32 %v9564_v27, %v3498_v57 }
 0x228   : > { %8709 = vrcp.f32 %v3813_v62 }
 0x229   : > { %v8704_v49 = vpop.eup %8703  ;;  %v3727_v35 = vmul.f32 1.442695, %v3638_v42  ;;  %v4336_v42 = vand.u32 %v9649_v7, %v350_v47 }
 0x22a   : > { %v3816_v31 = vpop.xlane.xlu1 %3815  ;;  %v3501_v19 = vpop.xlane.xlu0 %3500  ;;  %v4061_v61 = vmul.f32 %v8704_v49, %v9553_v5 }
 0x22b   : > { %8711 = vpow2.f32 %v3727_v35  ;;  %v3639_v56 = vsub.f32 %v9575_v53, %v3501_v19  ;;  %v10871_v53 = vmov 0.0  }
 0x22c   : > { %8713 = vrcp.f32 %v3816_v31  ;;  %v4125_v29 = vpack.c.bf16 %v4061_v61, %v4061_v61  ;;  %v9865_v31 = vmul.f32 0.25, %v9678_v24  ;;  %v9874_v24 = vmul.f32 0.25, %v9680_v21 }
 0x22d   : > { %v8706_v0 = vpop.eup %8705  ;;  %v3729_v16 = vmul.f32 1.442695, %v3639_v56 }
 0x22e   : > { %v3504_v27 = vpop.xlane.xlu1 %3503  ;;  %8263 = vmatmul.mubr.msk.bf16.vlgmr.msra.gmra.mrb[128].mxu0 %vm4189_vm5, %v4125_v29  ;;  %v4062_v57 = vmul.f32 %v8706_v0, %v9568_v33  ;;  %v351_v33 = vld [vmem:[%s9635_s24 + $0x10] sm:$0x7] }
 0x22f   : > { %8715 = vpow2.f32 %v3729_v16  ;;  %v3640_v5 = vsub.f32 %v9588_v17, %v3504_v27  ;;  %v3819_v62 = vpop.xlane.xlu0 %3818  ;;  %8273 = vmatpush3.bf16.msra.mxu0 %v4290_v4  ;;  %8274 = vmatprep.mubr.msk.bf16.mxu0 %vm8920_vm0, %v10871_v53  ;;  %v4382_v47 = vand.u32 %v9649_v7, %v351_v33  ;;  %v352_v27 = vld [vmem:[%s9635_s24 + $0x14] sm:$0x7] }
 0x230   : > { %8717 = vrcp.f32 %v3819_v62  ;;  %v4126_v52 = vpack.c.bf16 %v4062_v57, %v4062_v57  ;;  %8284 = vmatprep.subr.bf16.mxu0 %v10871_v53  ;;  %v4428_v33 = vand.u32 %v9649_v7, %v352_v27 }
 0x231   : > { %v9862_v49 = vpop.eup %8707  ;;  %v3731_v35 = vmul.f32 1.442695, %v3640_v5 }
 0x232   : > { %v8710_v19 = vpop.eup %8709  ;;  %8269 = vmatmul.mubr.msk.bf16.vlgmr.msra.gmra.mrb[128].mxu1 %vm4189_vm5, %v4126_v52  ;;  %v3822_v17 = vpop.xlane.xlu1 %3821  ;;  %v3877_v61 = vsel %vm3420_vm2, %v9862_v49, 0.0 }
 0x233   : > { %8719 = vpow2.f32 %v3731_v35  ;;  %v3507_v56 = vpop.xlane.xlu0 %3506  ;;  %3878 = vadd.xlane.f32.xlu0 %v3877_v61  ;;  %v4063_v4 = vmul.f32 %v8710_v19, %v9577_v46  ;;  %8279 = vmatpush3.bf16.msra.mxu1 %v4336_v42  ;;  %v3565_v46 = vsel %vm3420_vm2, %v9865_v31, -inf  ;;  %v3568_v35 = vsel %vm3420_vm2, %v9874_v24, -inf }
 0x234   : > { %8721 = vrcp.f32 %v3822_v17  ;;  %v3641_v29 = vsub.f32 %v9599_v32, %v3507_v56  ;;  %8280 = vmatprep.mubr.msk.bf16.mxu1 %vm8920_vm0, %v10871_v53  ;;  %8290 = vmatprep.subr.bf16.mxu1 %v10871_v53  ;;  %v9896_v61 = vmul.f32 0.25, %v9702_v36 }
 0x235   : > { %v9880_v0 = vpop.eup %8711  ;;  %v4127_v16 = vpack.c.bf16 %v4063_v4, %v4063_v4 }
 0x236   : > { %v8714_v57 = vpop.eup %8713  ;;  %v3733_v5 = vmul.f32 1.442695, %v3641_v29  ;;  %v3510_v32 = vpop.xlane.xlu1 %3509  ;;  %v3880_v21 = vsel %vm3420_vm2, %v9880_v0, 0.0 }
 0x237   : > { %v3642_v62 = vsub.f32 %v9614_v10, %v3510_v32  ;;  %8275 = vmatmul.mubr.msk.bf16.vlgmr.msra.gmra.mrb[132].mxu0 %vm4189_vm5, %v4127_v16  ;;  %v3825_v42 = vpop.xlane.xlu0 %3824  ;;  %3881 = vadd.xlane.f32.xlu1 %v3880_v21  ;;  %v4064_v52 = vmul.f32 %v8714_v57, %v9592_v48  ;;  %v353_v48 = vld [vmem:[%s9635_s24 + $0x18] sm:$0x7]  ;;  %v354_v32 = vld [vmem:[%s9635_s24 + $0x1c] sm:$0x7] }
 0x238   : > { %8723 = vpow2.f32 %v3733_v5  ;;  %3566 = vmax.xlane.f32.xlu0 %v3565_v46  ;;  %8285 = vmatpush3.bf16.msra.mxu0 %v4382_v47  ;;  %v9908_v46 = vmul.f32 0.25, %v9706_v40  ;;  %v4474_v27 = vand.u32 %v9649_v7, %v353_v48 }
 0x239   : > { %v9893_v19 = vpop.eup %8715  ;;  %v3735_v17 = vmul.f32 1.442695, %v3642_v62  ;;  %8725 = vrcp.f32 %v3825_v42  ;;  %v4128_v10 = vpack.c.bf16 %v4064_v52, %v4064_v52  ;;  %8286 = vmatprep.mubr.msk.bf16.mxu0 %vm8920_vm0, %v10871_v53  ;;  %8296 = vmatprep.subr.bf16.mxu0 %v10871_v53 }
 0x23a   : > { %v8718_v56 = vpop.eup %8717  ;;  %v3828_v4 = vpop.xlane.xlu1 %3827  ;;  %v3883_v29 = vsel %vm3420_vm2, %v9893_v19, 0.0 }
 0x23b   : > { %v4065_v47 = vmul.f32 %v8718_v56, %v9605_v45  ;;  %8727 = vpow2.f32 %v3735_v17  ;;  %8281 = vmatmul.mubr.msk.bf16.vlgmr.msra.gmra.mrb[132].mxu1 %vm4189_vm5, %v4128_v10  ;;  %v3513_v16 = vpop.xlane.xlu0 %3512  ;;  %3569 = vmax.xlane.f32.xlu1 %v3568_v35  ;;  %v3571_v45 = vsel %vm3420_vm2, %v9896_v61, -inf  ;;  %v4520_v17 = vand.u32 %v9649_v7, %v354_v32 }
 0x23c   : > { %8729 = vrcp.f32 %v3828_v4  ;;  %v3643_v36 = vsub.f32 %v9623_v28, %v3513_v16  ;;  %3884 = vadd.xlane.f32.xlu0 %v3883_v29  ;;  %8291 = vmatpush3.bf16.msra.mxu1 %v4428_v33  ;;  %v3574_v33 = vsel %vm3420_vm2, %v9908_v46, -inf  ;;  %v355_v4 = vld [vmem:[%s9635_s24 + $0x20] sm:$0x7] }
 0x23d   : > { %v9911_v57 = vpop.eup %8719  ;;  %v4129_v5 = vpack.c.bf16 %v4065_v47, %v4065_v47  ;;  %8292 = vmatprep.mubr.msk.bf16.mxu1 %vm8920_vm0, %v10871_v53  ;;  %8302 = vmatprep.subr.bf16.mxu1 %v10871_v53  ;;  %v4566_v32 = vand.u32 %v9649_v7, %v355_v4 }
 0x23e   : > { %v8722_v28 = vpop.eup %8721  ;;  %v3737_v21 = vmul.f32 1.442695, %v3643_v36  ;;  %v3516_v62 = vpop.xlane.xlu1 %3515  ;;  %v3886_v40 = vsel %vm3420_vm2, %v9911_v57, 0.0 }
 0x23f   : > { %v4066_v42 = vmul.f32 %v8722_v28, %v9607_v13  ;;  %v3644_v52 = vsub.f32 %v9645_v20, %v3516_v62  ;;  %8287 = vmatmul.mubr.msk.bf16.vlgmr.msra.gmra.mrb[136].mxu0 %vm4189_vm5, %v4129_v5  ;;  %v3831_v35 = vpop.xlane.xlu0 %3830  ;;  %3887 = vadd.xlane.f32.xlu1 %v3886_v40  ;;  %v9928_v13 = vmul.f32 0.25, %v9726_v51 }
 0x240   : > { %8731 = vpow2.f32 %v3737_v21  ;;  %3572 = vmax.xlane.f32.xlu0 %v3571_v45  ;;  %8297 = vmatpush3.bf16.msra.mxu0 %v4474_v27  ;;  %v9942_v27 = vmul.f32 0.25, %v9730_v6 }
 0x241   : > { %v3739_v10 = vmul.f32 1.442695, %v3644_v52  ;;  %8733 = vrcp.f32 %v3831_v35  ;;  %v4130_v48 = vpack.c.bf16 %v4066_v42, %v4066_v42  ;;  %8298 = vmatprep.mubr.msk.bf16.mxu0 %vm8920_vm0, %v10871_v53  ;;  %8308 = vmatprep.subr.bf16.mxu0 %v10871_v53  ;;  %v3577_v45 = vsel %vm3420_vm2, %v9928_v13, -inf }
 0x242   : > { %v9933_v20 = vpop.eup %8723  ;;  %v3834_v56 = vpop.xlane.xlu1 %3833  ;;  %v3580_v35 = vsel %vm3420_vm2, %v9942_v27, -inf }
 0x243   : > { %v8726_v29 = vpop.eup %8725  ;;  %8735 = vpow2.f32 %v3739_v10  ;;  %8293 = vmatmul.mubr.msk.bf16.vlgmr.msra.gmra.mrb[136].mxu1 %vm4189_vm5, %v4130_v48  ;;  %v3519_v47 = vpop.xlane.xlu0 %3518  ;;  %3575 = vmax.xlane.f32.xlu1 %v3574_v33  ;;  %v3889_v51 = vsel %vm3420_vm2, %v9933_v20, 0.0 }
 0x244   : > { %v4067_v16 = vmul.f32 %v8726_v29, %v9629_v30  ;;  %8737 = vrcp.f32 %v3834_v56  ;;  %v3645_v36 = vsub.f32 %v9660_v25, %v3519_v47  ;;  %3890 = vadd.xlane.f32.xlu0 %v3889_v51  ;;  %8303 = vmatpush3.bf16.msra.mxu1 %v4520_v17  ;;  %v356_v30 = vld [vmem:[%s9635_s24 + $0x24] sm:$0x7]  ;;  %v357_v56 = vld [vmem:[%s9635_s24 + $0x28] sm:$0x7] }
 0x245   : > { %v9944_v5 = vpop.eup %8727  ;;  %8304 = vmatprep.mubr.msk.bf16.mxu1 %vm8920_vm0, %v10871_v53  ;;  %8314 = vmatprep.subr.bf16.mxu1 %v10871_v53  ;;  %v4612_v33 = vand.u32 %v9649_v7, %v356_v30 }
 0x246   : > { %v8730_v28 = vpop.eup %8729  ;;  %v3741_v25 = vmul.f32 1.442695, %v3645_v36  ;;  %v3522_v21 = vpop.xlane.xlu1 %3521  ;;  %v4131_v62 = vpack.c.bf16 %v4067_v16, %v4067_v16  ;;  %v3892_v6 = vsel %vm3420_vm2, %v9944_v5, 0.0  ;;  %v9976_v16 = vmul.f32 0.25, %v9754_v22 }
 0x247   : > { %v4068_v40 = vmul.f32 %v8730_v28, %v9637_v12  ;;  %v3646_v42 = vsub.f32 %v9672_v39, %v3522_v21  ;;  %v3837_v52 = vpop.xlane.xlu0 %3836  ;;  %3893 = vadd.xlane.f32.xlu1 %v3892_v6  ;;  %v9962_v12 = vmul.f32 0.25, %v9750_v2 }
 0x248   : > { %8739 = vpow2.f32 %v3741_v25  ;;  %8299 = vmatmul.mubr.msk.bf16.vlgmr.msra.gmra.mrb[140].mxu0 %vm4189_vm5, %v4131_v62  ;;  %3578 = vmax.xlane.f32.xlu0 %v3577_v45 }
 0x249   : > { %v3743_v17 = vmul.f32 1.442695, %v3646_v42  ;;  %8741 = vrcp.f32 %v3837_v52  ;;  %v4132_v10 = vpack.c.bf16 %v4068_v40, %v4068_v40  ;;  %8309 = vmatpush3.bf16.msra.mxu0 %v4566_v32  ;;  %8310 = vmatprep.mubr.msk.bf16.mxu0 %vm8920_vm0, %v10871_v53  ;;  %v3583_v45 = vsel %vm3420_vm2, %v9962_v12, -inf }
 0x24a   : > { %v9966_v39 = vpop.eup %8731  ;;  %v3840_v48 = vpop.xlane.xlu1 %3839  ;;  %8320 = vmatprep.subr.bf16.mxu0 %v10871_v53  ;;  %v4658_v32 = vand.u32 %v9649_v7, %v357_v56  ;;  %v3586_v40 = vsel %vm3420_vm2, %v9976_v16, -inf }
 0x24b   : > { %v8734_v4 = vpop.eup %8733  ;;  %8743 = vpow2.f32 %v3743_v17  ;;  %8305 = vmatmul.mubr.msk.bf16.vlgmr.msra.gmra.mrb[140].mxu1 %vm4189_vm5, %v4132_v10  ;;  %v3525_v29 = vpop.xlane.xlu0 %3524  ;;  %3581 = vmax.xlane.f32.xlu1 %v3580_v35  ;;  %v3895_v2 = vsel %vm3420_vm2, %v9966_v39, 0.0  ;;  %v359_v17 = vld [vmem:[%s9635_s24 + $0x30] sm:$0x7] }
 0x24c   : > { %v4069_v47 = vmul.f32 %v8734_v4, %v9662_v58  ;;  %8745 = vrcp.f32 %v3840_v48  ;;  %v3647_v51 = vsub.f32 %v9685_v26, %v3525_v29  ;;  %3896 = vadd.xlane.f32.xlu0 %v3895_v2  ;;  %8315 = vmatpush3.bf16.msra.mxu1 %v4612_v33  ;;  %v358_v58 = vld [vmem:[%s9635_s24 + $0x2c] sm:$0x7]  ;;  %v10010_v29 = vmul.f32 0.25, %v9778_v1 }
 0x24d   : > { %v9978_v36 = vpop.eup %8735  ;;  %8316 = vmatprep.mubr.msk.bf16.mxu1 %vm8920_vm0, %v10871_v53  ;;  %8326 = vmatprep.subr.bf16.mxu1 %v10871_v53  ;;  %v4704_v42 = vand.u32 %v9649_v7, %v358_v58 }
 0x24e   : > { %v8738_v30 = vpop.eup %8737  ;;  %v3745_v26 = vmul.f32 1.442695, %v3647_v51  ;;  %v3528_v28 = vpop.xlane.xlu1 %3527  ;;  %v4133_v25 = vpack.c.bf16 %v4069_v47, %v4069_v47  ;;  %v3898_v22 = vsel %vm3420_vm2, %v9978_v36, 0.0  ;;  %v4750_v51 = vand.u32 %v9649_v7, %v359_v17 }
 0x24f   : > { %v4070_v21 = vmul.f32 %v8738_v30, %v9664_v60  ;;  %v3648_v62 = vsub.f32 %v9696_v55, %v3528_v28  ;;  %v3843_v6 = vpop.xlane.xlu0 %3842  ;;  %3899 = vadd.xlane.f32.xlu1 %v3898_v22  ;;  %v9996_v60 = vmul.f32 0.25, %v9774_v18 }
 0x250   : > { %8747 = vpow2.f32 %v3745_v26  ;;  %8311 = vmatmul.mubr.msk.bf16.vlgmr.msra.gmra.mrb[144].mxu0 %vm4189_vm5, %v4133_v25  ;;  %3584 = vmax.xlane.f32.xlu0 %v3583_v45  ;;  %v3592_v25 = vsel %vm3420_vm2, %v10010_v29, -inf }
 0x251   : > { %v3747_v52 = vmul.f32 1.442695, %v3648_v62  ;;  %8749 = vrcp.f32 %v3843_v6  ;;  %v4134_v35 = vpack.c.bf16 %v4070_v21, %v4070_v21  ;;  %8321 = vmatpush3.bf16.msra.mxu0 %v4658_v32  ;;  %8322 = vmatprep.mubr.msk.bf16.mxu0 %vm8920_vm0, %v10871_v53  ;;  %v3589_v47 = vsel %vm3420_vm2, %v9996_v60, -inf }
 0x252   : > { %v10000_v55 = vpop.eup %8739  ;;  %v3846_v33 = vpop.xlane.xlu1 %3845  ;;  %8332 = vmatprep.subr.bf16.mxu0 %v10871_v53 }
 0x253   : > { %v8742_v10 = vpop.eup %8741  ;;  %8751 = vpow2.f32 %v3747_v52  ;;  %8317 = vmatmul.mubr.msk.bf16.vlgmr.msra.gmra.mrb[144].mxu1 %vm4189_vm5, %v4134_v35  ;;  %v3531_v48 = vpop.xlane.xlu0 %3530  ;;  %3587 = vmax.xlane.f32.xlu1 %v3586_v40  ;;  %v3901_v18 = vsel %vm3420_vm2, %v10000_v55, 0.0  ;;  %v361_v40 = vld [vmem:[%s9635_s24 + $0x38] sm:$0x7]  ;;  %v10872_v35 = vld [vmem:[#allocation2_spill] sm:$0xff] }
 0x254   : > { %v4071_v56 = vmul.f32 %v8742_v10, %v9687_v11  ;;  %8753 = vrcp.f32 %v3846_v33  ;;  %v3649_v4 = vsub.f32 %v9709_v59, %v3531_v48  ;;  %3902 = vadd.xlane.f32.xlu0 %v3901_v18  ;;  %8327 = vmatpush3.bf16.msra.mxu1 %v4704_v42  ;;  %v360_v11 = vld [vmem:[%s9635_s24 + $0x34] sm:$0x7]  ;;  %v10044_v10 = vmul.f32 0.25, %v9805_v41 }
 0x255   : > { %v10012_v2 = vpop.eup %8743  ;;  %8328 = vmatprep.mubr.msk.bf16.mxu1 %vm8920_vm0, %v10871_v53  ;;  %8338 = vmatprep.subr.bf16.mxu1 %v10871_v53  ;;  %v4796_v22 = vand.u32 %v9649_v7, %v360_v11 }
 0x256   : > { %v8746_v45 = vpop.eup %8745  ;;  %v3749_v59 = vmul.f32 1.442695, %v3649_v4  ;;  %v3534_v32 = vpop.xlane.xlu1 %3533  ;;  %v4135_v58 = vpack.c.bf16 %v4071_v56, %v4071_v56  ;;  %v3904_v1 = vsel %vm3420_vm2, %v10012_v2, 0.0  ;;  %v4842_v56 = vand.u32 %v9649_v7, %v361_v40  ;;  %v362_v4 = vld [vmem:[%s9635_s24 + $0x3c] sm:$0x7]  ;;  %v10874_v40 = vld [vmem:[#allocation4_spill] sm:$0xff] }
 0x257   : > { %v4072_v30 = vmul.f32 %v8746_v45, %v9689_v23  ;;  %v3650_v26 = vsub.f32 %v9720_v8, %v3534_v32  ;;  %v3849_v28 = vpop.xlane.xlu0 %3848  ;;  %3905 = vadd.xlane.f32.xlu1 %v3904_v1  ;;  %v10030_v23 = vmul.f32 0.25, %v9798_v34  ;;  %v10873_v45 = vld [vmem:[#allocation3_spill] sm:$0xff]  ;;  %v3598_v1 = vsel %vm3420_vm2, %v10044_v10, -inf }
 0x258   : > { %8755 = vpow2.f32 %v3749_v59  ;;  %8323 = vmatmul.mubr.msk.bf16.vlgmr.msra.gmra.mrb[148].mxu0 %vm4189_vm5, %v4135_v58  ;;  %3590 = vmax.xlane.f32.xlu0 %v3589_v47 }
 0x259   : > { %v3751_v21 = vmul.f32 1.442695, %v3650_v26  ;;  %8757 = vrcp.f32 %v3849_v28  ;;  %v4136_v62 = vpack.c.bf16 %v4072_v30, %v4072_v30  ;;  %8333 = vmatpush3.bf16.msra.mxu0 %v4750_v51  ;;  %8334 = vmatprep.mubr.msk.bf16.mxu0 %vm8920_vm0, %v10871_v53  ;;  %v3595_v18 = vsel %vm3420_vm2, %v10030_v23, -inf }
 0x25a   : > { %v10034_v8 = vpop.eup %8747  ;;  %v3852_v6 = vpop.xlane.xlu1 %3851  ;;  %8344 = vmatprep.subr.bf16.mxu0 %v10871_v53  ;;  %v4888_v30 = vand.u32 %v9649_v7, %v362_v4 }
 0x25b   : > { %v8750_v42 = vpop.eup %8749  ;;  %8759 = vpow2.f32 %v3751_v21  ;;  %8329 = vmatmul.mubr.msk.bf16.vlgmr.msra.gmra.mrb[148].mxu1 %vm4189_vm5, %v4136_v62  ;;  %v3537_v52 = vpop.xlane.xlu0 %3536  ;;  %3593 = vmax.xlane.f32.xlu1 %v3592_v25  ;;  %v3907_v34 = vsel %vm3420_vm2, %v10034_v8, 0.0  ;;  %v10064_v25 = vmul.f32 0.25, %v9820_v14  ;;  %v363_v21 = vld [vmem:[%s9635_s24 + $0x40] sm:$0x7] }
 0x25c   : > { %v4073_v33 = vmul.f32 %v8750_v42, %v10872_v35  ;;  %8761 = vrcp.f32 %v3852_v6  ;;  %v3651_v17 = vsub.f32 %v9733_v50, %v3537_v52  ;;  %3908 = vadd.xlane.f32.xlu0 %v3907_v34  ;;  %8339 = vmatpush3.bf16.msra.mxu1 %v4796_v22  ;;  %v10078_v34 = vmul.f32 0.25, %v9827_v43 }
 0x25d   : > { %v10046_v48 = vpop.eup %8751  ;;  %8340 = vmatprep.mubr.msk.bf16.mxu1 %vm8920_vm0, %v10871_v53  ;;  %8350 = vmatprep.subr.bf16.mxu1 %v10871_v53 }
 0x25e   : > { %v8754_v47 = vpop.eup %8753  ;;  %v3753_v50 = vmul.f32 1.442695, %v3651_v17  ;;  %v3540_v51 = vpop.xlane.xlu1 %3539  ;;  %v4137_v11 = vpack.c.bf16 %v4073_v33, %v4073_v33  ;;  %v3910_v41 = vsel %vm3420_vm2, %v10046_v48, 0.0  ;;  %v3601_v33 = vsel %vm3420_vm2, %v10064_v25, -inf }
 0x25f   : > { %v4074_v59 = vmul.f32 %v8754_v47, %v10873_v45  ;;  %v3652_v32 = vsub.f32 %v9744_v38, %v3540_v51  ;;  %v3855_v58 = vpop.xlane.xlu0 %3854  ;;  %3911 = vadd.xlane.f32.xlu1 %v3910_v41  ;;  %v4934_v17 = vand.u32 %v9649_v7, %v363_v21  ;;  %v3604_v45 = vsel %vm3420_vm2, %v10078_v34, -inf  ;;  %v10876_v21 = vld [vmem:[#allocation6_spill] sm:$0xff] }
 0x260   : > { %8763 = vpow2.f32 %v3753_v50  ;;  %8335 = vmatmul.mubr.msk.bf16.vlgmr.msra.gmra.mrb[152].mxu0 %vm4189_vm5, %v4137_v11  ;;  %3596 = vmax.xlane.f32.xlu0 %v3595_v18  ;;  %v364_v18 = vld [vmem:[%s9635_s24 + $0x44] sm:$0x7]  ;;  %v10875_v50 = vld [vmem:[#allocation5_spill] sm:$0xff] }
 0x261   : > { %v3755_v26 = vmul.f32 1.442695, %v3652_v32  ;;  %8765 = vrcp.f32 %v3855_v58  ;;  %v4138_v28 = vpack.c.bf16 %v4074_v59, %v4074_v59  ;;  %8345 = vmatpush3.bf16.msra.mxu0 %v4842_v56  ;;  %8346 = vmatprep.mubr.msk.bf16.mxu0 %vm8920_vm0, %v10871_v53  ;;  %v4980_v59 = vand.u32 %v9649_v7, %v364_v18 }
 0x262   : > { %v10068_v38 = vpop.eup %8755  ;;  %v3858_v22 = vpop.xlane.xlu1 %3857  ;;  %8356 = vmatprep.subr.bf16.mxu0 %v10871_v53 }
 0x263   : > { %v8758_v62 = vpop.eup %8757  ;;  %8767 = vpow2.f32 %v3755_v26  ;;  %8341 = vmatmul.mubr.msk.bf16.vlgmr.msra.gmra.mrb[152].mxu1 %vm4189_vm5, %v4138_v28  ;;  %v3543_v6 = vpop.xlane.xlu0 %3542  ;;  %3599 = vmax.xlane.f32.xlu1 %v3598_v1  ;;  %v3913_v14 = vsel %vm3420_vm2, %v10068_v38, 0.0  ;;  %v10098_v1 = vmul.f32 0.25, %v9842_v63  ;;  %v365_v26 = vld [vmem:[%s9635_s24 + $0x48] sm:$0x7] }
 0x264   : > { %v4075_v42 = vmul.f32 %v8758_v62, %v10874_v40  ;;  %8769 = vrcp.f32 %v3858_v22  ;;  %v3653_v52 = vsub.f32 %v9757_v44, %v3543_v6  ;;  %3914 = vadd.xlane.f32.xlu0 %v3913_v14  ;;  %8351 = vmatpush3.bf16.msra.mxu1 %v4888_v30  ;;  %v10112_v14 = vmul.f32 0.25, %v9846_v37 }
 0x265   : > { %v10080_v35 = vpop.eup %8759  ;;  %8352 = vmatprep.mubr.msk.bf16.mxu1 %vm8920_vm0, %v10871_v53  ;;  %8362 = vmatprep.subr.bf16.mxu1 %v10871_v53 }
 0x266   : > { %v8762_v56 = vpop.eup %8761  ;;  %v3757_v44 = vmul.f32 1.442695, %v3653_v52  ;;  %v3546_v4 = vpop.xlane.xlu1 %3545  ;;  %v4139_v47 = vpack.c.bf16 %v4075_v42, %v4075_v42  ;;  %v3916_v43 = vsel %vm3420_vm2, %v10080_v35, 0.0  ;;  %v3607_v42 = vsel %vm3420_vm2, %v10098_v1, -inf }
 0x267   : > { %v4076_v51 = vmul.f32 %v8762_v56, %v10875_v50  ;;  %v3654_v11 = vsub.f32 %v9768_v15, %v3546_v4  ;;  %v3861_v41 = vpop.xlane.xlu0 %3860  ;;  %3917 = vadd.xlane.f32.xlu1 %v3916_v43  ;;  %v5026_v52 = vand.u32 %v9649_v7, %v365_v26  ;;  %v3610_v50 = vsel %vm3420_vm2, %v10112_v14, -inf }
 0x268   : > { %8771 = vpow2.f32 %v3757_v44  ;;  %8347 = vmatmul.mubr.msk.bf16.vlgmr.msra.gmra.mrb[156].mxu0 %vm4189_vm5, %v4139_v47  ;;  %3602 = vmax.xlane.f32.xlu0 %v3601_v33  ;;  %v366_v33 = vld [vmem:[%s9635_s24 + $0x4c] sm:$0x7] }
 0x269   : > { %v3759_v32 = vmul.f32 1.442695, %v3654_v11  ;;  %8773 = vrcp.f32 %v3861_v41  ;;  %v4140_v58 = vpack.c.bf16 %v4076_v51, %v4076_v51  ;;  %8357 = vmatpush3.bf16.msra.mxu0 %v4934_v17  ;;  %8358 = vmatprep.mubr.msk.bf16.mxu0 %vm8920_vm0, %v10871_v53  ;;  %v10877_v44 = vld [vmem:[#allocation7_spill] sm:$0xff]  ;;  %v5072_v51 = vand.u32 %v9649_v7, %v366_v33 }
 0x26a   : > { %v10102_v15 = vpop.eup %8763  ;;  %v3864_v30 = vpop.xlane.xlu1 %3863  ;;  %8368 = vmatprep.subr.bf16.mxu0 %v10871_v53 }
 0x26b   : > { %v8766_v28 = vpop.eup %8765  ;;  %8775 = vpow2.f32 %v3759_v32  ;;  %8353 = vmatmul.mubr.msk.bf16.vlgmr.msra.gmra.mrb[156].mxu1 %vm4189_vm5, %v4140_v58  ;;  %v3549_v22 = vpop.xlane.xlu0 %3548  ;;  %3605 = vmax.xlane.f32.xlu1 %v3604_v45  ;;  %v3919_v63 = vsel %vm3420_vm2, %v10102_v15, 0.0 }
 0x26c   : > { %v4077_v62 = vmul.f32 %v8766_v28, %v10876_v21  ;;  %8777 = vrcp.f32 %v3864_v30  ;;  %v3655_v6 = vsub.f32 %v9781_v9, %v3549_v22  ;;  %3920 = vadd.xlane.f32.xlu0 %v3919_v63  ;;  %8363 = vmatpush3.bf16.msra.mxu1 %v4980_v59  ;;  %v367_v59 = vld [vmem:[%s9635_s24 + $0x50] sm:$0x7]  ;;  %v10878_v28 = vld [vmem:[#allocation9_spill] sm:$0xff] }
 0x26d   : > { %v10114_v40 = vpop.eup %8767  ;;  %8364 = vmatprep.mubr.msk.bf16.mxu1 %vm8920_vm0, %v10871_v53  ;;  %8374 = vmatprep.subr.bf16.mxu1 %v10871_v53  ;;  %v5118_v21 = vand.u32 %v9649_v7, %v367_v59  ;;  %v10881_v59 = vld [vmem:[#allocation10_spill] sm:$0xff] }
 0x26e   : > { %v8770_v17 = vpop.eup %8769  ;;  %v3761_v9 = vmul.f32 1.442695, %v3655_v6  ;;  %v3552_v18 = vpop.xlane.xlu1 %3551  ;;  %v4141_v56 = vpack.c.bf16 %v4077_v62, %v4077_v62  ;;  %v3922_v37 = vsel %vm3420_vm2, %v10114_v40, 0.0  ;;  %v368_v62 = vld [vmem:[%s9635_s24 + $0x54] sm:$0x7] }
 0x26f   : > { %v4078_v4 = vmul.f32 %v8770_v17, %v10877_v44  ;;  %v3656_v47 = vsub.f32 %v9792_v54, %v3552_v18  ;;  %v3867_v43 = vpop.xlane.xlu0 %3866  ;;  %3923 = vadd.xlane.f32.xlu1 %v3922_v37  ;;  %v10879_v17 = vld [vmem:[#allocation8_spill] sm:$0xff]  ;;  %v5164_v44 = vand.u32 %v9649_v7, %v368_v62 }
 0x270   : > { %8779 = vpow2.f32 %v3761_v9  ;;  %8359 = vmatmul.mubr.msk.bf16.vlgmr.msra.gmra.mrb[160].mxu0 %vm4189_vm5, %v4141_v56  ;;  %3608 = vmax.xlane.f32.xlu0 %v3607_v42  ;;  %v10880_v18 = vld [vmem:[#allocation12_spill] sm:$0xff] }
 0x271   : > { %v3763_v11 = vmul.f32 1.442695, %v3656_v47  ;;  %8781 = vrcp.f32 %v3867_v43  ;;  %v4142_v41 = vpack.c.bf16 %v4078_v4, %v4078_v4  ;;  %8369 = vmatpush3.bf16.msra.mxu0 %v5026_v52  ;;  %8370 = vmatprep.mubr.msk.bf16.mxu0 %vm8920_vm0, %v10871_v53 }
 0x272   : > { %v10133_v54 = vpop.eup %8771  ;;  %v3870_v45 = vpop.xlane.xlu1 %3869  ;;  %8380 = vmatprep.subr.bf16.mxu0 %v10871_v53 }
 0x273   : > { %v8774_v32 = vpop.eup %8773  ;;  %8783 = vpow2.f32 %v3763_v11  ;;  %8365 = vmatmul.mubr.msk.bf16.vlgmr.msra.gmra.mrb[160].mxu1 %vm4189_vm5, %v4142_v41  ;;  %v3555_v58 = vpop.xlane.xlu0 %3554  ;;  %3611 = vmax.xlane.f32.xlu1 %v3610_v50  ;;  %v3925_v30 = vsel %vm3420_vm2, %v10133_v54, 0.0 }
 0x274   : > { %v4079_v26 = vmul.f32 %v8774_v32, %v9783_v3  ;;  %8785 = vrcp.f32 %v3870_v45  ;;  %v3657_v22 = vsub.f32 %v10878_v28, %v3555_v58  ;;  %3926 = vadd.xlane.f32.xlu0 %v3925_v30  ;;  %8375 = vmatpush3.bf16.msra.mxu1 %v5072_v51  ;;  %v369_v51 = vld [vmem:[%s9635_s24 + $0x58] sm:$0x7] }
 0x275   : > { %v10142_v63 = vpop.eup %8775  ;;  %8376 = vmatprep.mubr.msk.bf16.mxu1 %vm8920_vm0, %v10871_v53  ;;  %8386 = vmatprep.subr.bf16.mxu1 %v10871_v53  ;;  %v10882_v58 = vld [vmem:[#allocation13_spill] sm:$0xff]  ;;  %v5210_v28 = vand.u32 %v9649_v7, %v369_v51  ;;  %v10885_v51 = vld [vmem:[#allocation14_spill] sm:$0xff] }
 0x276   : > { %v8778_v6 = vpop.eup %8777  ;;  %v3765_v42 = vmul.f32 1.442695, %v3657_v22  ;;  %v3558_v52 = vpop.xlane.xlu1 %3557  ;;  %v4143_v33 = vpack.c.bf16 %v4079_v26, %v4079_v26  ;;  %v3928_v3 = vsel %vm3420_vm2, %v10142_v63, 0.0  ;;  %v370_v22 = vld [vmem:[%s9635_s24 + $0x5c] sm:$0x7] }
 0x277   : > { %v4080_v9 = vmul.f32 %v8778_v6, %v10879_v17  ;;  %v3658_v56 = vsub.f32 %v10880_v18, %v3558_v52  ;;  %v3873_v37 = vpop.xlane.xlu0 %3872  ;;  %3929 = vadd.xlane.f32.xlu1 %v3928_v3  ;;  %v10884_v17 = vld [vmem:[#allocation16_spill] sm:$0xff]  ;;  %v5256_v18 = vand.u32 %v9649_v7, %v370_v22 }
 0x278   : > { %8787 = vpow2.f32 %v3765_v42  ;;  %8371 = vmatmul.mubr.msk.bf16.vlgmr.msra.gmra.mrb[164].mxu0 %vm4189_vm5, %v4143_v33  ;;  %v10883_v33 = vld [vmem:[#allocation11_spill] sm:$0xff] }
 0x279   : > { %v3767_v4 = vmul.f32 1.442695, %v3658_v56  ;;  %8789 = vrcp.f32 %v3873_v37  ;;  %v4144_v47 = vpack.c.bf16 %v4080_v9, %v4080_v9  ;;  %8381 = vmatpush3.bf16.msra.mxu0 %v5118_v21  ;;  %8382 = vmatprep.mubr.msk.bf16.mxu0 %vm8920_vm0, %v10871_v53 }
 0x27a   : > { %v10157_v43 = vpop.eup %8779  ;;  %v3876_v50 = vpop.xlane.xlu1 %3875  ;;  %8392 = vmatprep.subr.bf16.mxu0 %v10871_v53 }
 0x27b   : > { %v8782_v11 = vpop.eup %8781  ;;  %8791 = vpow2.f32 %v3767_v4  ;;  %8377 = vmatmul.mubr.msk.bf16.vlgmr.msra.gmra.mrb[164].mxu1 %vm4189_vm5, %v4144_v47  ;;  %v3561_v41 = vpop.xlane.xlu0 %3560  ;;  %v3931_v45 = vsel %vm3420_vm2, %v10157_v43, 0.0  ;;  %v371_v4 = vld [vmem:[%s9635_s24 + $0x60] sm:$0x7] }
 0x27c   : > { %v4081_v32 = vmul.f32 %v8782_v11, %v10881_v59  ;;  %8793 = vrcp.f32 %v3876_v50  ;;  %v3659_v30 = vsub.f32 %v10882_v58, %v3561_v41  ;;  %3932 = vadd.xlane.f32.xlu0 %v3931_v45  ;;  %8387 = vmatpush3.bf16.msra.mxu1 %v5164_v44  ;;  %v5302_v45 = vand.u32 %v9649_v7, %v371_v4  ;;  %v372_v59 = vld [vmem:[%s9635_s24 + $0x64] sm:$0x7] }
 0x27d   : > { %v10166_v26 = vpop.eup %8783  ;;  %8388 = vmatprep.mubr.msk.bf16.mxu1 %vm8920_vm0, %v10871_v53  ;;  %8398 = vmatprep.subr.bf16.mxu1 %v10871_v53 }
 0x27e   : > { %v8786_v21 = vpop.eup %8785  ;;  %v3769_v62 = vmul.f32 1.442695, %v3659_v30  ;;  %v3564_v6 = vpop.xlane.xlu1 %3563  ;;  %v4145_v42 = vpack.c.bf16 %v4081_v32, %v4081_v32  ;;  %v3934_v52 = vsel %vm3420_vm2, %v10166_v26, 0.0 }
 0x27f   : > { %v4082_v3 = vmul.f32 %v8786_v21, %v10883_v33  ;;  %v3660_v9 = vsub.f32 %v10884_v17, %v3564_v6  ;;  %3935 = vadd.xlane.f32.xlu1 %v3934_v52  ;;  %v5348_v21 = vand.u32 %v9649_v7, %v372_v59 }
 0x280   : > { %8795 = vpow2.f32 %v3769_v62  ;;  %8383 = vmatmul.mubr.msk.bf16.vlgmr.msra.gmra.mrb[168].mxu0 %vm4189_vm5, %v4145_v42 }
 0x281   : > { %v3771_v56 = vmul.f32 1.442695, %v3660_v9  ;;  %v4146_v37 = vpack.c.bf16 %v4082_v3, %v4082_v3  ;;  %8393 = vmatpush3.bf16.msra.mxu0 %v5210_v28  ;;  %8394 = vmatprep.mubr.msk.bf16.mxu0 %vm8920_vm0, %v10871_v53  ;;  %v10886_v28 = vld [vmem:[#allocation15_spill] sm:$0xff] }
 0x282   : > { %v10181_v44 = vpop.eup %8787  ;;  %8404 = vmatprep.subr.bf16.mxu0 %v10871_v53 }
 0x283   : > { %v8790_v47 = vpop.eup %8789  ;;  %8797 = vpow2.f32 %v3771_v56  ;;  %8389 = vmatmul.mubr.msk.bf16.vlgmr.msra.gmra.mrb[168].mxu1 %vm4189_vm5, %v4146_v37  ;;  %v3937_v50 = vsel %vm3420_vm2, %v10181_v44, 0.0 }
 0x284   : > { %v4083_v11 = vmul.f32 %v8790_v47, %v10885_v51  ;;  %3938 = vadd.xlane.f32.xlu0 %v3937_v50  ;;  %8399 = vmatpush3.bf16.msra.mxu1 %v5256_v18  ;;  %v373_v50 = vld [vmem:[%s9635_s24 + $0x68] sm:$0x7] }
 0x285   : > { %v10189_v41 = vpop.eup %8791  ;;  %8400 = vmatprep.mubr.msk.bf16.mxu1 %vm8920_vm0, %v10871_v53  ;;  %8410 = vmatprep.subr.bf16.mxu1 %v10871_v53 }
 0x286   : > { %v8794_v32 = vpop.eup %8793  ;;  %v4147_v58 = vpack.c.bf16 %v4083_v11, %v4083_v11  ;;  %v3940_v30 = vsel %vm3420_vm2, %v10189_v41, 0.0 }
 0x287   : > { %v4084_v22 = vmul.f32 %v8794_v32, %v10886_v28  ;;  %3941 = vadd.xlane.f32.xlu1 %v3940_v30  ;;  %v374_v28 = vld [vmem:[%s9635_s24 + $0x6c] sm:$0x7] }
 0x288   : > { %8395 = vmatmul.mubr.msk.bf16.vlgmr.msra.gmra.mrb[172].mxu0 %vm4189_vm5, %v4147_v58  ;;  %v5394_v58 = vand.u32 %v9649_v7, %v373_v50 }
 0x289   : > { %v4148_v62 = vpack.c.bf16 %v4084_v22, %v4084_v22  ;;  %8405 = vmatpush3.bf16.msra.mxu0 %v5302_v45  ;;  %8406 = vmatprep.mubr.msk.bf16.mxu0 %vm8920_vm0, %v10871_v53 }
 0x28a   : > { %v10203_v6 = vpop.eup %8795  ;;  %8416 = vmatprep.subr.bf16.mxu0 %v10871_v53 }
 0x28b   : > { %8401 = vmatmul.mubr.msk.bf16.vlgmr.msra.gmra.mrb[172].mxu1 %vm4189_vm5, %v4148_v62  ;;  %v3943_v42 = vsel %vm3420_vm2, %v10203_v6, 0.0 }
 0x28c   : > { %3944 = vadd.xlane.f32.xlu0 %v3943_v42  ;;  %8411 = vmatpush3.bf16.msra.mxu1 %v5348_v21 }
 0x28d   : > { %v10209_v52 = vpop.eup %8797  ;;  %8412 = vmatprep.mubr.msk.bf16.mxu1 %vm8920_vm0, %v10871_v53  ;;  %8422 = vmatprep.subr.bf16.mxu1 %v10871_v53 }
 0x28e   : > { %v3946_v33 = vsel %vm3420_vm2, %v10209_v52, 0.0 }
 0x28f   : > { %3947 = vadd.xlane.f32.xlu1 %v3946_v33  ;;  %v5440_v33 = vand.u32 %v9649_v7, %v374_v28 }
 0x2c0   : > { %v3879_v3 = vpop.xlane.xlu0 %3878 }
 0x2c1   : > { %8799 = vrcp.f32 %v3879_v3 }
 0x2c4   : > { %v3882_v17 = vpop.xlane.xlu1 %3881 }
 0x2c5   : > { %8801 = vrcp.f32 %v3882_v17  ;;  %v3567_v9 = vpop.xlane.xlu0 %3566 }
 0x2c6   : > { %v3661_v18 = vsub.f32 %v9865_v31, %v3567_v9 }
 0x2c8   : > { %v3773_v56 = vmul.f32 1.442695, %v3661_v18  ;;  %v3570_v37 = vpop.xlane.xlu1 %3569 }
 0x2c9   : > { %v3662_v4 = vsub.f32 %v9874_v24, %v3570_v37  ;;  %v3885_v47 = vpop.xlane.xlu0 %3884 }
 0x2ca   : > { %8803 = vpow2.f32 %v3773_v56 }
 0x2cb   : > { %v8800_v51 = vpop.eup %8799  ;;  %v3775_v11 = vmul.f32 1.442695, %v3662_v4  ;;  %8805 = vrcp.f32 %v3885_v47 }
 0x2cc   : > { %v4085_v45 = vmul.f32 %v8800_v51, %v9862_v49  ;;  %v3888_v59 = vpop.xlane.xlu1 %3887  ;;  %v376_v51 = vld [vmem:[%s9635_s24 + $0x74] sm:$0x7] }
 0x2cd   : > { %8807 = vpow2.f32 %v3775_v11  ;;  %v3573_v32 = vpop.xlane.xlu0 %3572 }
 0x2ce   : > { %8809 = vrcp.f32 %v3888_v59  ;;  %v3663_v31 = vsub.f32 %v9896_v61, %v3573_v32  ;;  %v4149_v30 = vpack.c.bf16 %v4085_v45, %v4085_v45 }
 0x2cf   : > { %v8802_v22 = vpop.eup %8801 }
 0x2d0   : > { %v4086_v24 = vmul.f32 %v8802_v22, %v9880_v0  ;;  %v3777_v21 = vmul.f32 1.442695, %v3663_v31  ;;  %v3576_v62 = vpop.xlane.xlu1 %3575  ;;  %8407 = vmatmul.mubr.msk.bf16.vlgmr.msra.gmra.mrb[176].mxu0 %vm4189_vm5, %v4149_v30  ;;  %v5532_v30 = vand.u32 %v9649_v7, %v376_v51 }
 0x2d1   : > { %v3664_v49 = vsub.f32 %v9908_v46, %v3576_v62  ;;  %v3891_v42 = vpop.xlane.xlu0 %3890  ;;  %8417 = vmatpush3.bf16.msra.mxu0 %v5394_v58  ;;  %8418 = vmatprep.mubr.msk.bf16.mxu0 %vm8920_vm0, %v10871_v53  ;;  %v375_v46 = vld [vmem:[%s9635_s24 + $0x70] sm:$0x7] }
 0x2d2   : > { %8811 = vpow2.f32 %v3777_v21  ;;  %v4150_v61 = vpack.c.bf16 %v4086_v24, %v4086_v24  ;;  %8428 = vmatprep.subr.bf16.mxu0 %v10871_v53  ;;  %v5486_v50 = vand.u32 %v9649_v7, %v375_v46 }
 0x2d3   : > { %v3779_v3 = vmul.f32 1.442695, %v3664_v49  ;;  %8813 = vrcp.f32 %v3891_v42 }
 0x2d4   : > { %v10230_v0 = vpop.eup %8803  ;;  %8413 = vmatmul.mubr.msk.bf16.vlgmr.msra.gmra.mrb[176].mxu1 %vm4189_vm5, %v4150_v61  ;;  %v3894_v17 = vpop.xlane.xlu1 %3893 }
 0x2d5   : > { %v8806_v9 = vpop.eup %8805  ;;  %8815 = vpow2.f32 %v3779_v3  ;;  %v3579_v18 = vpop.xlane.xlu0 %3578  ;;  %v3949_v56 = vsel %vm3420_vm2, %v10230_v0, 0.0  ;;  %8423 = vmatpush3.bf16.msra.mxu1 %v5440_v33  ;;  %8424 = vmatprep.mubr.msk.bf16.mxu1 %vm8920_vm0, %v10871_v53 }
 0x2d6   : > { %v4087_v37 = vmul.f32 %v8806_v9, %v9893_v19  ;;  %8817 = vrcp.f32 %v3894_v17  ;;  %v3665_v4 = vsub.f32 %v9928_v13, %v3579_v18  ;;  %3950 = vadd.xlane.f32.xlu0 %v3949_v56  ;;  %8434 = vmatprep.subr.bf16.mxu1 %v10871_v53  ;;  %v378_v17 = vld [vmem:[%s9635_s24 + $0x7c] sm:$0x7] }
 0x2d7   : > { %v10241_v47 = vpop.eup %8807 }
 0x2d8   : > { %v8810_v11 = vpop.eup %8809  ;;  %v3781_v45 = vmul.f32 1.442695, %v3665_v4  ;;  %v3582_v59 = vpop.xlane.xlu1 %3581  ;;  %v4151_v32 = vpack.c.bf16 %v4087_v37, %v4087_v37  ;;  %v3952_v58 = vsel %vm3420_vm2, %v10241_v47, 0.0 }
 0x2d9   : > { %v4088_v19 = vmul.f32 %v8810_v11, %v9911_v57  ;;  %v3666_v13 = vsub.f32 %v9942_v27, %v3582_v59  ;;  %v3897_v31 = vpop.xlane.xlu0 %3896  ;;  %3953 = vadd.xlane.f32.xlu1 %v3952_v58  ;;  %v377_v57 = vld [vmem:[%s9635_s24 + $0x78] sm:$0x7] }
 0x2da   : > { %8819 = vpow2.f32 %v3781_v45  ;;  %8419 = vmatmul.mubr.msk.bf16.vlgmr.msra.gmra.mrb[180].mxu0 %vm4189_vm5, %v4151_v32  ;;  %v5578_v3 = vand.u32 %v9649_v7, %v377_v57 }
 0x2db   : > { %v3783_v28 = vmul.f32 1.442695, %v3666_v13  ;;  %8821 = vrcp.f32 %v3897_v31  ;;  %v4152_v22 = vpack.c.bf16 %v4088_v19, %v4088_v19  ;;  %8429 = vmatpush3.bf16.msra.mxu0 %v5486_v50  ;;  %8430 = vmatprep.mubr.msk.bf16.mxu0 %vm8920_vm0, %v10871_v53  ;;  %v5624_v50 = vand.u32 %v9649_v7, %v378_v17 }
 0x2dc   : > { %v10253_v24 = vpop.eup %8811  ;;  %v3900_v21 = vpop.xlane.xlu1 %3899  ;;  %8440 = vmatprep.subr.bf16.mxu0 %v10871_v53 }
 0x2dd   : > { %v8814_v27 = vpop.eup %8813  ;;  %8823 = vpow2.f32 %v3783_v28  ;;  %8425 = vmatmul.mubr.msk.bf16.vlgmr.msra.gmra.mrb[180].mxu1 %vm4189_vm5, %v4152_v22  ;;  %v3585_v62 = vpop.xlane.xlu0 %3584  ;;  %v3955_v49 = vsel %vm3420_vm2, %v10253_v24, 0.0  ;;  %v380_v28 = vld [vmem:[%s9635_s24 + $0x84] sm:$0x7] }
 0x2de   : > { %v4089_v42 = vmul.f32 %v8814_v27, %v9933_v20  ;;  %8825 = vrcp.f32 %v3900_v21  ;;  %v3667_v33 = vsub.f32 %v9962_v12, %v3585_v62  ;;  %3956 = vadd.xlane.f32.xlu0 %v3955_v49  ;;  %8435 = vmatpush3.bf16.msra.mxu1 %v5532_v30 }
 0x2df   : > { %v10262_v61 = vpop.eup %8815  ;;  %8436 = vmatprep.mubr.msk.bf16.mxu1 %vm8920_vm0, %v10871_v53  ;;  %8446 = vmatprep.subr.bf16.mxu1 %v10871_v53 }
 0x2e0   : > { %v8818_v46 = vpop.eup %8817  ;;  %v3785_v9 = vmul.f32 1.442695, %v3667_v33  ;;  %v3588_v18 = vpop.xlane.xlu1 %3587  ;;  %v4153_v56 = vpack.c.bf16 %v4089_v42, %v4089_v42  ;;  %v3958_v20 = vsel %vm3420_vm2, %v10262_v61, 0.0  ;;  %v5716_v42 = vand.u32 %v9649_v7, %v380_v28 }
 0x2e1   : > { %v4090_v12 = vmul.f32 %v8818_v46, %v9944_v5  ;;  %v3668_v37 = vsub.f32 %v9976_v16, %v3588_v18  ;;  %v3903_v4 = vpop.xlane.xlu0 %3902  ;;  %3959 = vadd.xlane.f32.xlu1 %v3958_v20  ;;  %v379_v5 = vld [vmem:[%s9635_s24 + $0x80] sm:$0x7] }
 0x2e2   : > { %8827 = vpow2.f32 %v3785_v9  ;;  %8431 = vmatmul.mubr.msk.bf16.vlgmr.msra.gmra.mrb[184].mxu0 %vm4189_vm5, %v4153_v56  ;;  %v5670_v30 = vand.u32 %v9649_v7, %v379_v5 }
 0x2e3   : > { %v3787_v51 = vmul.f32 1.442695, %v3668_v37  ;;  %8829 = vrcp.f32 %v3903_v4  ;;  %v4154_v11 = vpack.c.bf16 %v4090_v12, %v4090_v12  ;;  %8441 = vmatpush3.bf16.msra.mxu0 %v5578_v3  ;;  %8442 = vmatprep.mubr.msk.bf16.mxu0 %vm8920_vm0, %v10871_v53  ;;  %v382_v4 = vld [vmem:[%s9635_s24 + $0x8c] sm:$0x7] }
 0x2e4   : > { %v10277_v45 = vpop.eup %8819  ;;  %v3906_v59 = vpop.xlane.xlu1 %3905  ;;  %8452 = vmatprep.subr.bf16.mxu0 %v10871_v53 }
 0x2e5   : > { %v8822_v16 = vpop.eup %8821  ;;  %8831 = vpow2.f32 %v3787_v51  ;;  %8437 = vmatmul.mubr.msk.bf16.vlgmr.msra.gmra.mrb[184].mxu1 %vm4189_vm5, %v4154_v11  ;;  %v3591_v32 = vpop.xlane.xlu0 %3590  ;;  %v3961_v58 = vsel %vm3420_vm2, %v10277_v45, 0.0 }
 0x2e6   : > { %v4091_v19 = vmul.f32 %v8822_v16, %v9966_v39  ;;  %8833 = vrcp.f32 %v3906_v59  ;;  %v3669_v13 = vsub.f32 %v9996_v60, %v3591_v32  ;;  %3962 = vadd.xlane.f32.xlu0 %v3961_v58  ;;  %8447 = vmatpush3.bf16.msra.mxu1 %v5624_v50  ;;  %v5808_v32 = vand.u32 %v9649_v7, %v382_v4 }
 0x2e7   : > { %v10286_v31 = vpop.eup %8823  ;;  %8448 = vmatprep.mubr.msk.bf16.mxu1 %vm8920_vm0, %v10871_v53  ;;  %8458 = vmatprep.subr.bf16.mxu1 %v10871_v53 }
 0x2e8   : > { %v8826_v22 = vpop.eup %8825  ;;  %v3789_v21 = vmul.f32 1.442695, %v3669_v13  ;;  %v3594_v57 = vpop.xlane.xlu1 %3593  ;;  %v4155_v27 = vpack.c.bf16 %v4091_v19, %v4091_v19  ;;  %v3964_v39 = vsel %vm3420_vm2, %v10286_v31, 0.0 }
 0x2e9   : > { %v4092_v60 = vmul.f32 %v8826_v22, %v9978_v36  ;;  %v3670_v62 = vsub.f32 %v10010_v29, %v3594_v57  ;;  %v3909_v49 = vpop.xlane.xlu0 %3908  ;;  %3965 = vadd.xlane.f32.xlu1 %v3964_v39  ;;  %v381_v36 = vld [vmem:[%s9635_s24 + $0x88] sm:$0x7] }
 0x2ea   : > { %8835 = vpow2.f32 %v3789_v21  ;;  %8443 = vmatmul.mubr.msk.bf16.vlgmr.msra.gmra.mrb[188].mxu0 %vm4189_vm5, %v4155_v27  ;;  %v5762_v37 = vand.u32 %v9649_v7, %v381_v36 }
 0x2eb   : > { %v3791_v33 = vmul.f32 1.442695, %v3670_v62  ;;  %8837 = vrcp.f32 %v3909_v49  ;;  %v4156_v3 = vpack.c.bf16 %v4092_v60, %v4092_v60  ;;  %8453 = vmatpush3.bf16.msra.mxu0 %v5670_v30  ;;  %8454 = vmatprep.mubr.msk.bf16.mxu0 %vm8920_vm0, %v10871_v53  ;;  %v384_v60 = vld [vmem:[%s9635_s24 + $0x94] sm:$0x7] }
 0x2ec   : > { %v10301_v17 = vpop.eup %8827  ;;  %v3912_v46 = vpop.xlane.xlu1 %3911  ;;  %8464 = vmatprep.subr.bf16.mxu0 %v10871_v53  ;;  %v5900_v36 = vand.u32 %v9649_v7, %v384_v60 }
 0x2ed   : > { %v8830_v29 = vpop.eup %8829  ;;  %8839 = vpow2.f32 %v3791_v33  ;;  %8449 = vmatmul.mubr.msk.bf16.vlgmr.msra.gmra.mrb[188].mxu1 %vm4189_vm5, %v4156_v3  ;;  %v3597_v9 = vpop.xlane.xlu0 %3596  ;;  %v3967_v18 = vsel %vm3420_vm2, %v10301_v17, 0.0 }
 0x2ee   : > { %v4093_v56 = vmul.f32 %v8830_v29, %v10000_v55  ;;  %8841 = vrcp.f32 %v3912_v46  ;;  %v3671_v20 = vsub.f32 %v10030_v23, %v3597_v9  ;;  %3968 = vadd.xlane.f32.xlu0 %v3967_v18  ;;  %8459 = vmatpush3.bf16.msra.mxu1 %v5716_v42 }
 0x2ef   : > { %v10310_v12 = vpop.eup %8831  ;;  %8460 = vmatprep.mubr.msk.bf16.mxu1 %vm8920_vm0, %v10871_v53  ;;  %8470 = vmatprep.subr.bf16.mxu1 %v10871_v53 }
 0x2f0   : > { %v8834_v50 = vpop.eup %8833  ;;  %v3793_v51 = vmul.f32 1.442695, %v3671_v20  ;;  %v3600_v11 = vpop.xlane.xlu1 %3599  ;;  %v4157_v59 = vpack.c.bf16 %v4093_v56, %v4093_v56  ;;  %v3970_v55 = vsel %vm3420_vm2, %v10310_v12, 0.0 }
 0x2f1   : > { %v4094_v23 = vmul.f32 %v8834_v50, %v10012_v2  ;;  %v3672_v5 = vsub.f32 %v10044_v10, %v3600_v11  ;;  %v3915_v16 = vpop.xlane.xlu0 %3914  ;;  %3971 = vadd.xlane.f32.xlu1 %v3970_v55  ;;  %v383_v2 = vld [vmem:[%s9635_s24 + $0x90] sm:$0x7] }
 0x2f2   : > { %8843 = vpow2.f32 %v3793_v51  ;;  %8455 = vmatmul.mubr.msk.bf16.vlgmr.msra.gmra.mrb[192].mxu0 %vm4189_vm5, %v4157_v59  ;;  %v5854_v39 = vand.u32 %v9649_v7, %v383_v2  ;;  %v7205_v2 = vld [vmem:[%s10362_s27] sm:$0x7] }
 0x2f3   : > { %v3795_v58 = vmul.f32 1.442695, %v3672_v5  ;;  %8845 = vrcp.f32 %v3915_v16  ;;  %v4158_v19 = vpack.c.bf16 %v4094_v23, %v4094_v23  ;;  %8465 = vmatpush3.bf16.msra.mxu0 %v5762_v37  ;;  %8466 = vmatprep.mubr.msk.bf16.mxu0 %vm8920_vm0, %v10871_v53 }
 0x2f4   : > { %v10325_v13 = vpop.eup %8835  ;;  %v3918_v30 = vpop.xlane.xlu1 %3917  ;;  %8476 = vmatprep.subr.bf16.mxu0 %v10871_v53 }
 0x2f5   : > { %v8838_v10 = vpop.eup %8837  ;;  %8847 = vpow2.f32 %v3795_v58  ;;  %8461 = vmatmul.mubr.msk.bf16.vlgmr.msra.gmra.mrb[192].mxu1 %vm4189_vm5, %v4158_v19  ;;  %v3603_v28 = vpop.xlane.xlu0 %3602  ;;  %v3973_v22 = vsel %vm3420_vm2, %v10325_v13, 0.0 }
 0x2f6   : > { %v4095_v21 = vmul.f32 %v8838_v10, %v10034_v8  ;;  %8849 = vrcp.f32 %v3918_v30  ;;  %v3673_v57 = vsub.f32 %v10064_v25, %v3603_v28  ;;  %3974 = vadd.xlane.f32.xlu0 %v3973_v22  ;;  %8471 = vmatpush3.bf16.msra.mxu1 %v5808_v32 }
 0x2f7   : > { %v10334_v27 = vpop.eup %8839  ;;  %8472 = vmatprep.mubr.msk.bf16.mxu1 %vm8920_vm0, %v10871_v53  ;;  %8482 = vmatprep.subr.bf16.mxu1 %v10871_v53 }
 0x2f8   : > { %v8842_v62 = vpop.eup %8841  ;;  %v3797_v49 = vmul.f32 1.442695, %v3673_v57  ;;  %v3606_v42 = vpop.xlane.xlu1 %3605  ;;  %v4159_v33 = vpack.c.bf16 %v4095_v21, %v4095_v21  ;;  %v3976_v8 = vsel %vm3420_vm2, %v10334_v27, 0.0 }
 0x2f9   : > { %v4096_v25 = vmul.f32 %v8842_v62, %v10046_v48  ;;  %v3674_v3 = vsub.f32 %v10078_v34, %v3606_v42  ;;  %v3921_v46 = vpop.xlane.xlu0 %3920  ;;  %3977 = vadd.xlane.f32.xlu1 %v3976_v8  ;;  %v385_v34 = vld [vmem:[%s9635_s24 + $0x98] sm:$0x7]  ;;  %v7208_v8 = vld [vmem:[%s10362_s27 + $0x4] sm:$0x7] }
 0x2fa   : > { %8851 = vpow2.f32 %v3797_v49  ;;  %8467 = vmatmul.mubr.msk.bf16.vlgmr.msra.gmra.mrb[196].mxu0 %vm4189_vm5, %v4159_v33  ;;  %v5946_v11 = vand.u32 %v9649_v7, %v385_v34  ;;  %v387_v49 = vld [vmem:[%s9635_s24 + $0xa0] sm:$0x7]  ;;  %v388_v34 = vld [vmem:[%s9635_s24 + $0xa4] sm:$0x7] }
 0x2fb   : > { %v3799_v29 = vmul.f32 1.442695, %v3674_v3  ;;  %8853 = vrcp.f32 %v3921_v46  ;;  %v4160_v9 = vpack.c.bf16 %v4096_v25, %v4096_v25  ;;  %8477 = vmatpush3.bf16.msra.mxu0 %v5854_v39  ;;  %8478 = vmatprep.mubr.msk.bf16.mxu0 %vm8920_vm0, %v10871_v53 }
 0x2fc   : > { %v10349_v18 = vpop.eup %8843  ;;  %v3924_v48 = vpop.xlane.xlu1 %3923  ;;  %8488 = vmatprep.subr.bf16.mxu0 %v10871_v53 }
 0x2fd   : > { %v8846_v56 = vpop.eup %8845  ;;  %8855 = vpow2.f32 %v3799_v29  ;;  %8473 = vmatmul.mubr.msk.bf16.vlgmr.msra.gmra.mrb[196].mxu1 %vm4189_vm5, %v4160_v9  ;;  %v3609_v20 = vpop.xlane.xlu0 %3608  ;;  %v3979_v37 = vsel %vm3420_vm2, %v10349_v18, 0.0 }
 0x2fe   : > { %v4097_v4 = vmul.f32 %v8846_v56, %v10068_v38  ;;  %8857 = vrcp.f32 %v3924_v48  ;;  %v3675_v50 = vsub.f32 %v10098_v1, %v3609_v20  ;;  %3980 = vadd.xlane.f32.xlu0 %v3979_v37  ;;  %8483 = vmatpush3.bf16.msra.mxu1 %v5900_v36  ;;  %v386_v38 = vld [vmem:[%s9635_s24 + $0x9c] sm:$0x7]  ;;  %v6038_v48 = vand.u32 %v9649_v7, %v387_v49  ;;  %v390_v49 = vld [vmem:[%s9635_s24 + $0xac] sm:$0x7] }
 0x2ff   : > { %v10364_v51 = vpop.eup %8847  ;;  %8484 = vmatprep.mubr.msk.bf16.mxu1 %vm8920_vm0, %v10871_v53  ;;  %8494 = vmatprep.subr.bf16.mxu1 %v10871_v53 }
 0x300   : > { %v8850_v1 = vpop.eup %8849  ;;  %v3801_v59 = vmul.f32 1.442695, %v3675_v50  ;;  %v3612_v55 = vpop.xlane.xlu1 %3611  ;;  %v4161_v23 = vpack.c.bf16 %v4097_v4, %v4097_v4  ;;  %v3982_v5 = vsel %vm3420_vm2, %v10364_v51, 0.0 }
 0x301   : > { %v4098_v16 = vmul.f32 %v8850_v1, %v10080_v35  ;;  %v3676_v32 = vsub.f32 %v10112_v14, %v3612_v55  ;;  %v3927_v58 = vpop.xlane.xlu0 %3926  ;;  %3983 = vadd.xlane.f32.xlu1 %v3982_v5  ;;  %v4234_v19 = vpop.f32.mrb[128].mxu0  ;;  %v5992_v35 = vand.u32 %v9649_v7, %v386_v38  ;;  %v7211_v1 = vld [vmem:[%s10362_s27 + $0x8] sm:$0x7] }
 0x302   : > { %8859 = vpow2.f32 %v3801_v59  ;;  %8479 = vmatmul.mubr.msk.bf16.vlgmr.msra.gmra.mrb[200].mxu0 %vm4189_vm5, %v4161_v23  ;;  %v7138_v10 = vpack.c.bf16 %v4234_v19, %v4234_v19  ;;  %v8264_v28 = vpop.f32.mrb[129].mxu0  ;;  %v6084_v59 = vand.u32 %v9649_v7, %v388_v34  ;;  %v6176_v34 = vand.u32 %v9649_v7, %v390_v49 }
 0x303   : > { %v3803_v14 = vmul.f32 1.442695, %v3676_v32  ;;  %8861 = vrcp.f32 %v3927_v58  ;;  %v4237_v22 = vpop.f32.mrb[130].mxu0  ;;  %v4162_v21 = vpack.c.bf16 %v4098_v16, %v4098_v16  ;;  %8489 = vmatpush3.bf16.msra.mxu0 %v5946_v11  ;;  %8490 = vmatprep.mubr.msk.bf16.mxu0 %vm8920_vm0, %v10871_v53  ;;  %v389_v58 = vld [vmem:[%s9635_s24 + $0xa8] sm:$0x7] }
 0x304   : > { %v10386_v57 = vpop.eup %8851  ;;  %v7206_v39 = vsel %vm10377_vm8, %v7138_v10, %v7205_v2  ;;  %v3930_v60 = vpop.xlane.xlu1 %3929  ;;  %8500 = vmatprep.subr.bf16.mxu0 %v10871_v53  ;;  %v7214_v22 = vld [vmem:[%s10362_s27 + $0xc] sm:$0x7] }
 0x305   : > { %v8265_v62 = vpop.f32.mrb[131].mxu0  ;;  %v8854_v42 = vpop.eup %8853  ;;  %8863 = vpow2.f32 %v3803_v14  ;;  %7207 = vst [vmem:[%s10362_s27] sm:$0x7] %v7206_v39  ;;  %8485 = vmatmul.mubr.msk.bf16.vlgmr.msra.gmra.mrb[200].mxu1 %vm4189_vm5, %v4162_v21  ;;  %v3985_v25 = vsel %vm3420_vm2, %v10386_v57, 0.0 }
 0x306   : > { %v4280_v33 = vpop.f32.mrb[128].mxu1  ;;  %v4099_v3 = vmul.f32 %v8854_v42, %v10102_v15  ;;  %8865 = vrcp.f32 %v3930_v60  ;;  %3986 = vadd.xlane.f32.xlu0 %v3985_v25  ;;  %8495 = vmatpush3.bf16.msra.mxu1 %v5992_v35  ;;  %v6130_v62 = vand.u32 %v9649_v7, %v389_v58  ;;  %v392_v58 = vld [vmem:[%s9635_s24 + $0xb4] sm:$0x7] }
 0x307   : > { %v7139_v46 = vpack.c.bf16 %v4280_v33, %v4280_v33  ;;  %v8270_v36 = vpop.f32.mrb[129].mxu1  ;;  %v10398_v29 = vpop.eup %8855  ;;  %8496 = vmatprep.mubr.msk.bf16.mxu1 %vm8920_vm0, %v10871_v53  ;;  %8506 = vmatprep.subr.bf16.mxu1 %v10871_v53 }
 0x308   : > { %v4283_v9 = vpop.f32.mrb[130].mxu1  ;;  %v8858_v56 = vpop.eup %8857  ;;  %v4163_v37 = vpack.c.bf16 %v4099_v3, %v4099_v3  ;;  %v3988_v4 = vsel %vm3420_vm2, %v10398_v29, 0.0 }
 0x309   : > { %v7209_v15 = vsel %vm10377_vm8, %v7139_v46, %v7208_v8  ;;  %v8271_v20 = vpop.f32.mrb[131].mxu1  ;;  %v4100_v50 = vmul.f32 %v8858_v56, %v10114_v40  ;;  %v3933_v11 = vpop.xlane.xlu0 %3932  ;;  %3989 = vadd.xlane.f32.xlu1 %v3988_v4 }
 0x30a   : > { %7210 = vst [vmem:[%s10362_s27 + $0x4] sm:$0x7] %v7209_v15  ;;  %8491 = vmatmul.mubr.msk.bf16.vlgmr.msra.gmra.mrb[204].mxu0 %vm4189_vm5, %v4163_v37  ;;  %8867 = vrcp.f32 %v3933_v11  ;;  %v4326_v38 = vpop.f32.mrb[132].mxu0 }
 0x30b   : > { %v7140_v55 = vpack.c.bf16 %v4326_v38, %v4326_v38  ;;  %v8276_v23 = vpop.f32.mrb[133].mxu0  ;;  %v4164_v5 = vpack.c.bf16 %v4100_v50, %v4100_v50  ;;  %8501 = vmatpush3.bf16.msra.mxu0 %v6038_v48  ;;  %8502 = vmatprep.mubr.msk.bf16.mxu0 %vm8920_vm0, %v10871_v53  ;;  %v7217_v48 = vld [vmem:[%s10362_s27 + $0x10] sm:$0x7] }
 0x30c   : > { %v10416_v40 = vpop.eup %8859  ;;  %v4329_v16 = vpop.f32.mrb[134].mxu0  ;;  %8512 = vmatprep.subr.bf16.mxu0 %v10871_v53  ;;  %v391_v50 = vld [vmem:[%s9635_s24 + $0xb0] sm:$0x7] }
 0x30d   : > { %v3936_v32 = vpop.xlane.xlu1 %3935  ;;  %v8862_v19 = vpop.eup %8861  ;;  %v7212_v2 = vsel %vm10377_vm8, %v7140_v55, %v7211_v1  ;;  %8497 = vmatmul.mubr.msk.bf16.vlgmr.msra.gmra.mrb[204].mxu1 %vm4189_vm5, %v4164_v5  ;;  %v3991_v28 = vsel %vm3420_vm2, %v10416_v40, 0.0  ;;  %v7220_v55 = vld [vmem:[%s10362_s27 + $0x14] sm:$0x7] }
 0x30e   : > { %8869 = vrcp.f32 %v3936_v32  ;;  %v8277_v10 = vpop.f32.mrb[135].mxu0  ;;  %v4101_v35 = vmul.f32 %v8862_v19, %v10133_v54  ;;  %7213 = vst [vmem:[%s10362_s27 + $0x8] sm:$0x7] %v7212_v2  ;;  %v4372_v14 = vpop.f32.mrb[132].mxu1  ;;  %3992 = vadd.xlane.f32.xlu0 %v3991_v28  ;;  %8507 = vmatpush3.bf16.msra.mxu1 %v6084_v59  ;;  %v6222_v32 = vand.u32 %v9649_v7, %v391_v50 }
 0x30f   : > { %v10428_v21 = vpop.eup %8863  ;;  %v7141_v39 = vpack.c.bf16 %v4372_v14, %v4372_v14  ;;  %v8282_v60 = vpop.f32.mrb[133].mxu1  ;;  %8508 = vmatprep.mubr.msk.bf16.mxu1 %vm8920_vm0, %v10871_v53  ;;  %8518 = vmatprep.subr.bf16.mxu1 %v10871_v53 }
 0x310   : > { %v8866_v54 = vpop.eup %8865  ;;  %v4375_v42 = vpop.f32.mrb[134].mxu1  ;;  %v4165_v33 = vpack.c.bf16 %v4101_v35, %v4101_v35  ;;  %v3994_v8 = vsel %vm3420_vm2, %v10428_v21, 0.0  ;;  %v7223_v60 = vld [vmem:[%s10362_s27 + $0x18] sm:$0x7] }
 0x311   : > { %v4102_v25 = vmul.f32 %v8866_v54, %v10142_v63  ;;  %v7215_v3 = vsel %vm10377_vm8, %v7141_v39, %v7214_v22  ;;  %v8283_v46 = vpop.f32.mrb[135].mxu1  ;;  %v3939_v36 = vpop.xlane.xlu0 %3938  ;;  %3995 = vadd.xlane.f32.xlu1 %v3994_v8  ;;  %v6268_v22 = vand.u32 %v9649_v7, %v392_v58  ;;  %v393_v42 = vld [vmem:[%s9635_s24 + $0xb8] sm:$0x7] }
 0x312   : > { %7216 = vst [vmem:[%s10362_s27 + $0xc] sm:$0x7] %v7215_v3  ;;  %8503 = vmatmul.mubr.msk.bf16.vlgmr.msra.gmra.mrb[208].mxu0 %vm4189_vm5, %v4165_v33  ;;  %8871 = vrcp.f32 %v3939_v36  ;;  %v4418_v9 = vpop.f32.mrb[136].mxu0  ;;  %v7226_v36 = vld [vmem:[%s10362_s27 + $0x1c] sm:$0x7] }
 0x313   : > { %v7142_v56 = vpack.c.bf16 %v4418_v9, %v4418_v9  ;;  %v8288_v15 = vpop.f32.mrb[137].mxu0  ;;  %v4166_v63 = vpack.c.bf16 %v4102_v25, %v4102_v25  ;;  %8513 = vmatpush3.bf16.msra.mxu0 %v6130_v62  ;;  %8514 = vmatprep.mubr.msk.bf16.mxu0 %vm8920_vm0, %v10871_v53 }
 0x314   : > { %v8868_v20 = vpop.eup %8867  ;;  %v4421_v37 = vpop.f32.mrb[138].mxu0  ;;  %8524 = vmatprep.subr.bf16.mxu0 %v10871_v53  ;;  %v394_v15 = vld [vmem:[%s9635_s24 + $0xbc] sm:$0x7] }
 0x315   : > { %v3942_v4 = vpop.xlane.xlu1 %3941  ;;  %v4103_v11 = vmul.f32 %v8868_v20, %v10157_v43  ;;  %v7218_v38 = vsel %vm10377_vm8, %v7142_v56, %v7217_v48  ;;  %8509 = vmatmul.mubr.msk.bf16.vlgmr.msra.gmra.mrb[208].mxu1 %vm4189_vm5, %v4166_v63  ;;  %v8289_v1 = vpop.f32.mrb[139].mxu0  ;;  %v6314_v56 = vand.u32 %v9649_v7, %v393_v42  ;;  %v7235_v42 = vld [vmem:[%s10362_s27 + $0x28] sm:$0x7] }
 0x316   : > { %8873 = vrcp.f32 %v3942_v4  ;;  %7219 = vst [vmem:[%s10362_s27 + $0x10] sm:$0x7] %v7218_v38  ;;  %v4464_v59 = vpop.f32.mrb[136].mxu1  ;;  %8519 = vmatpush3.bf16.msra.mxu1 %v6176_v34  ;;  %8520 = vmatprep.mubr.msk.bf16.mxu1 %vm8920_vm0, %v10871_v53  ;;  %v7229_v1 = vld [vmem:[%s10362_s27 + $0x20] sm:$0x7] }
 0x317   : > { %v7143_v5 = vpack.c.bf16 %v4464_v59, %v4464_v59  ;;  %v8294_v16 = vpop.f32.mrb[137].mxu1  ;;  %v4167_v43 = vpack.c.bf16 %v4103_v11, %v4103_v11  ;;  %8530 = vmatprep.subr.bf16.mxu1 %v10871_v53  ;;  %v6360_v11 = vand.u32 %v9649_v7, %v394_v15 }
 0x318   : > { %v8870_v23 = vpop.eup %8869  ;;  %v4467_v2 = vpop.f32.mrb[138].mxu1 }
 0x319   : > { %v4104_v19 = vmul.f32 %v8870_v23, %v10166_v26  ;;  %v7221_v10 = vsel %vm10377_vm8, %v7143_v5, %v7220_v55  ;;  %v8295_v28 = vpop.f32.mrb[139].mxu1  ;;  %v3945_v35 = vpop.xlane.xlu0 %3944  ;;  %v395_v23 = vld [vmem:[%s9635_s24 + $0xc0] sm:$0x7] }
 0x31a   : > { %7222 = vst [vmem:[%s10362_s27 + $0x14] sm:$0x7] %v7221_v10  ;;  %8515 = vmatmul.mubr.msk.bf16.vlgmr.msra.gmra.mrb[212].mxu0 %vm4189_vm5, %v4167_v43  ;;  %8875 = vrcp.f32 %v3945_v35  ;;  %v6406_v35 = vand.u32 %v9649_v7, %v395_v23 }
 0x31b   : > { %v4168_v14 = vpack.c.bf16 %v4104_v19, %v4104_v19  ;;  %v4510_v39 = vpop.f32.mrb[140].mxu0  ;;  %8525 = vmatpush3.bf16.msra.mxu0 %v6222_v32  ;;  %8526 = vmatprep.mubr.msk.bf16.mxu0 %vm8920_vm0, %v10871_v53  ;;  %v7232_v19 = vld [vmem:[%s10362_s27 + $0x24] sm:$0x7] }
 0x31c   : > { %v8872_v26 = vpop.eup %8871  ;;  %v7144_v62 = vpack.c.bf16 %v4510_v39, %v4510_v39  ;;  %v8300_v49 = vpop.f32.mrb[141].mxu0  ;;  %8536 = vmatprep.subr.bf16.mxu0 %v10871_v53 }
 0x31d   : > { %v3948_v54 = vpop.xlane.xlu1 %3947  ;;  %v4105_v33 = vmul.f32 %v8872_v26, %v10181_v44  ;;  %v4513_v8 = vpop.f32.mrb[142].mxu0  ;;  %8521 = vmatmul.mubr.msk.bf16.vlgmr.msra.gmra.mrb[212].mxu1 %vm4189_vm5, %v4168_v14  ;;  %v396_v14 = vld [vmem:[%s9635_s24 + $0xc4] sm:$0x7] }
 0x31e   : > { %8877 = vrcp.f32 %v3948_v54  ;;  %v7224_v25 = vsel %vm10377_vm8, %v7144_v62, %v7223_v60  ;;  %v8301_v3 = vpop.f32.mrb[143].mxu0  ;;  %v4556_v46 = vpop.f32.mrb[140].mxu1  ;;  %8531 = vmatpush3.bf16.msra.mxu1 %v6268_v22  ;;  %8532 = vmatprep.mubr.msk.bf16.mxu1 %vm8920_vm0, %v10871_v53  ;;  %v6452_v49 = vand.u32 %v9649_v7, %v396_v14 }
 0x31f   : > { %7225 = vst [vmem:[%s10362_s27 + $0x18] sm:$0x7] %v7224_v25  ;;  %v7145_v44 = vpack.c.bf16 %v4556_v46, %v4556_v46  ;;  %v8306_v48 = vpop.f32.mrb[141].mxu1  ;;  %v4169_v34 = vpack.c.bf16 %v4105_v33, %v4105_v33  ;;  %8542 = vmatprep.subr.bf16.mxu1 %v10871_v53 }
 0x320   : > { %v8874_v9 = vpop.eup %8873  ;;  %v4559_v20 = vpop.f32.mrb[142].mxu1 }
 0x321   : > { %v4106_v63 = vmul.f32 %v8874_v9, %v10189_v41  ;;  %v7227_v37 = vsel %vm10377_vm8, %v7145_v44, %v7226_v36  ;;  %v8307_v4 = vpop.f32.mrb[143].mxu1  ;;  %v7238_v36 = vld [vmem:[%s10362_s27 + $0x2c] sm:$0x7] }
 0x322   : > { %7228 = vst [vmem:[%s10362_s27 + $0x1c] sm:$0x7] %v7227_v37  ;;  %8527 = vmatmul.mubr.msk.bf16.vlgmr.msra.gmra.mrb[216].mxu0 %vm4189_vm5, %v4169_v34 }
 0x323   : > { %v4170_v50 = vpack.c.bf16 %v4106_v63, %v4106_v63  ;;  %v4602_v38 = vpop.f32.mrb[144].mxu0  ;;  %8537 = vmatpush3.bf16.msra.mxu0 %v6314_v56  ;;  %8538 = vmatprep.mubr.msk.bf16.mxu0 %vm8920_vm0, %v10871_v53  ;;  %v7241_v63 = vld [vmem:[%s10362_s27 + $0x30] sm:$0x7] }
 0x324   : > { %v8876_v41 = vpop.eup %8875  ;;  %v7146_v59 = vpack.c.bf16 %v4602_v38, %v4602_v38  ;;  %v8312_v55 = vpop.f32.mrb[145].mxu0  ;;  %8548 = vmatprep.subr.bf16.mxu0 %v10871_v53 }
 0x325   : > { %v4107_v5 = vmul.f32 %v8876_v41, %v10203_v6  ;;  %v4605_v16 = vpop.f32.mrb[146].mxu0  ;;  %8533 = vmatmul.mubr.msk.bf16.vlgmr.msra.gmra.mrb[216].mxu1 %vm4189_vm5, %v4170_v50 }
 0x326   : > { %v7230_v43 = vsel %vm10377_vm8, %v7146_v59, %v7229_v1  ;;  %v8313_v32 = vpop.f32.mrb[147].mxu0  ;;  %v4648_v58 = vpop.f32.mrb[144].mxu1  ;;  %8543 = vmatpush3.bf16.msra.mxu1 %v6360_v11  ;;  %8544 = vmatprep.mubr.msk.bf16.mxu1 %vm8920_vm0, %v10871_v53  ;;  %v7244_v1 = vld [vmem:[%s10362_s27 + $0x34] sm:$0x7] }
 0x327   : > { %7231 = vst [vmem:[%s10362_s27 + $0x20] sm:$0x7] %v7230_v43  ;;  %v7147_v10 = vpack.c.bf16 %v4648_v58, %v4648_v58  ;;  %v8318_v6 = vpop.f32.mrb[145].mxu1  ;;  %v4171_v28 = vpack.c.bf16 %v4107_v5, %v4107_v5  ;;  %8554 = vmatprep.subr.bf16.mxu1 %v10871_v53  ;;  %v7247_v43 = vld [vmem:[%s10362_s27 + $0x38] sm:$0x7] }
 0x328   : > { %v8878_v2 = vpop.eup %8877  ;;  %v4651_v39 = vpop.f32.mrb[146].mxu1 }
 0x329   : > { %v4108_v22 = vmul.f32 %v8878_v2, %v10209_v52  ;;  %v7233_v60 = vsel %vm10377_vm8, %v7147_v10, %v7232_v19  ;;  %v8319_v26 = vpop.f32.mrb[147].mxu1 }
 0x32a   : > { %7234 = vst [vmem:[%s10362_s27 + $0x24] sm:$0x7] %v7233_v60  ;;  %8539 = vmatmul.mubr.msk.bf16.vlgmr.msra.gmra.mrb[220].mxu0 %vm4189_vm5, %v4171_v28  ;;  %v7250_v28 = vld [vmem:[%s10362_s27 + $0x3c] sm:$0x7] }
 0x32b   : > { %v4172_v62 = vpack.c.bf16 %v4108_v22, %v4108_v22  ;;  %v4694_v54 = vpop.f32.mrb[148].mxu0  ;;  %8549 = vmatpush3.bf16.msra.mxu0 %v6406_v35  ;;  %8550 = vmatprep.mubr.msk.bf16.mxu0 %vm8920_vm0, %v10871_v53 }
 0x32c   : > { %v7148_v52 = vpack.c.bf16 %v4694_v54, %v4694_v54  ;;  %v8324_v33 = vpop.f32.mrb[149].mxu0  ;;  %8560 = vmatprep.subr.bf16.mxu0 %v10871_v53 }
 0x32d   : > { %v4697_v8 = vpop.f32.mrb[150].mxu0  ;;  %8545 = vmatmul.mubr.msk.bf16.vlgmr.msra.gmra.mrb[220].mxu1 %vm4189_vm5, %v4172_v62  ;;  %v7253_v62 = vld [vmem:[%s10362_s27 + $0x40] sm:$0x7] }
 0x32e   : > { %v7236_v25 = vsel %vm10377_vm8, %v7148_v52, %v7235_v42  ;;  %v8325_v3 = vpop.f32.mrb[151].mxu0  ;;  %v4740_v46 = vpop.f32.mrb[148].mxu1  ;;  %8555 = vmatpush3.bf16.msra.mxu1 %v6452_v49  ;;  %8556 = vmatprep.mubr.msk.bf16.mxu1 %vm8920_vm0, %v10871_v53 }
 0x32f   : > { %7237 = vst [vmem:[%s10362_s27 + $0x28] sm:$0x7] %v7236_v25  ;;  %v7149_v9 = vpack.c.bf16 %v4740_v46, %v4740_v46  ;;  %v8330_v44 = vpop.f32.mrb[149].mxu1  ;;  %8566 = vmatprep.subr.bf16.mxu1 %v10871_v53  ;;  %v7256_v25 = vld [vmem:[%s10362_s27 + $0x44] sm:$0x7] }
 0x330   : > { %v4743_v48 = vpop.f32.mrb[150].mxu1 }
 0x331   : > { %v7239_v34 = vsel %vm10377_vm8, %v7149_v9, %v7238_v36  ;;  %v8331_v56 = vpop.f32.mrb[151].mxu1 }
 0x332   : > { %7240 = vst [vmem:[%s10362_s27 + $0x2c] sm:$0x7] %v7239_v34  ;;  %v7259_v34 = vld [vmem:[%s10362_s27 + $0x48] sm:$0x7] }
 0x333   : > { %v4786_v15 = vpop.f32.mrb[152].mxu0 }
 0x334   : > { %v7150_v20 = vpack.c.bf16 %v4786_v15, %v4786_v15  ;;  %v8336_v37 = vpop.f32.mrb[153].mxu0 }
 0x335   : > { %v4789_v4 = vpop.f32.mrb[154].mxu0 }
 0x336   : > { %v7242_v50 = vsel %vm10377_vm8, %v7150_v20, %v7241_v63  ;;  %v8337_v11 = vpop.f32.mrb[155].mxu0  ;;  %v4832_v38 = vpop.f32.mrb[152].mxu1 }
 0x337   : > { %7243 = vst [vmem:[%s10362_s27 + $0x30] sm:$0x7] %v7242_v50  ;;  %v7151_v41 = vpack.c.bf16 %v4832_v38, %v4832_v38  ;;  %v8342_v59 = vpop.f32.mrb[153].mxu1  ;;  %v7262_v50 = vld [vmem:[%s10362_s27 + $0x4c] sm:$0x7] }
 0x338   : > { %v4835_v55 = vpop.f32.mrb[154].mxu1 }
 0x339   : > { %v7245_v23 = vsel %vm10377_vm8, %v7151_v41, %v7244_v1  ;;  %v8343_v5 = vpop.f32.mrb[155].mxu1 }
 0x33a   : > { %7246 = vst [vmem:[%s10362_s27 + $0x34] sm:$0x7] %v7245_v23  ;;  %v7265_v23 = vld [vmem:[%s10362_s27 + $0x50] sm:$0x7] }
 0x33b   : > { %v4878_v16 = vpop.f32.mrb[156].mxu0 }
 0x33c   : > { %v7152_v32 = vpack.c.bf16 %v4878_v16, %v4878_v16  ;;  %v8348_v58 = vpop.f32.mrb[157].mxu0 }
 0x33d   : > { %v4881_v19 = vpop.f32.mrb[158].mxu0 }
 0x33e   : > { %v7248_v2 = vsel %vm10377_vm8, %v7152_v32, %v7247_v43  ;;  %v8349_v10 = vpop.f32.mrb[159].mxu0  ;;  %v4924_v6 = vpop.f32.mrb[156].mxu1 }
 0x33f   : > { %7249 = vst [vmem:[%s10362_s27 + $0x38] sm:$0x7] %v7248_v2  ;;  %v7153_v35 = vpack.c.bf16 %v4924_v6, %v4924_v6  ;;  %v8354_v14 = vpop.f32.mrb[157].mxu1  ;;  %v7268_v2 = vld [vmem:[%s10362_s27 + $0x54] sm:$0x7] }
 0x340   : > { %v4927_v22 = vpop.f32.mrb[158].mxu1 }
 0x341   : > { %v7251_v39 = vsel %vm10377_vm8, %v7153_v35, %v7250_v28  ;;  %v8355_v60 = vpop.f32.mrb[159].mxu1 }
 0x342   : > { %7252 = vst [vmem:[%s10362_s27 + $0x3c] sm:$0x7] %v7251_v39  ;;  %v7271_v39 = vld [vmem:[%s10362_s27 + $0x58] sm:$0x7] }
 0x343   : > { %v4970_v26 = vpop.f32.mrb[160].mxu0 }
 0x344   : > { %v7154_v49 = vpack.c.bf16 %v4970_v26, %v4970_v26  ;;  %v8360_v54 = vpop.f32.mrb[161].mxu0 }
 0x345   : > { %v4973_v42 = vpop.f32.mrb[162].mxu0 }
 0x346   : > { %v7254_v52 = vsel %vm10377_vm8, %v7154_v49, %v7253_v62  ;;  %v8361_v33 = vpop.f32.mrb[163].mxu0  ;;  %v5016_v8 = vpop.f32.mrb[160].mxu1 }
 0x347   : > { %7255 = vst [vmem:[%s10362_s27 + $0x40] sm:$0x7] %v7254_v52  ;;  %v7155_v3 = vpack.c.bf16 %v5016_v8, %v5016_v8  ;;  %v8366_v46 = vpop.f32.mrb[161].mxu1  ;;  %v7274_v52 = vld [vmem:[%s10362_s27 + $0x5c] sm:$0x7] }
 0x348   : > { %v5019_v36 = vpop.f32.mrb[162].mxu1 }
 0x349   : > { %v7257_v9 = vsel %vm10377_vm8, %v7155_v3, %v7256_v25  ;;  %v8367_v44 = vpop.f32.mrb[163].mxu1 }
 0x34a   : > { %7258 = vst [vmem:[%s10362_s27 + $0x44] sm:$0x7] %v7257_v9 }
 0x34b   : > { %v5062_v48 = vpop.f32.mrb[164].mxu0 }
 0x34c   : > { %v7156_v56 = vpack.c.bf16 %v5062_v48, %v5062_v48  ;;  %v8372_v15 = vpop.f32.mrb[165].mxu0  ;;  %v397_v48 = vld [vmem:[%s9635_s24 + $0xc8] sm:$0x7] }
 0x34d   : > { %v5065_v63 = vpop.f32.mrb[166].mxu0 }
 0x34e   : > { %v7260_v20 = vsel %vm10377_vm8, %v7156_v56, %v7259_v34  ;;  %v8373_v37 = vpop.f32.mrb[167].mxu0  ;;  %v5108_v4 = vpop.f32.mrb[164].mxu1  ;;  %v6498_v63 = vand.u32 %v9649_v7, %v397_v48  ;;  %v406_v48 = vld [vmem:[%s9635_s24 + $0xec] sm:$0x7] }
 0x34f   : > { %7261 = vst [vmem:[%s10362_s27 + $0x48] sm:$0x7] %v7260_v20  ;;  %v7157_v11 = vpack.c.bf16 %v5108_v4, %v5108_v4  ;;  %v8378_v38 = vpop.f32.mrb[165].mxu1  ;;  %v398_v20 = vld [vmem:[%s9635_s24 + $0xcc] sm:$0x7] }
 0x350   : > { %v5111_v1 = vpop.f32.mrb[166].mxu1  ;;  %v6544_v38 = vand.u32 %v9649_v7, %v398_v20 }
 0x351   : > { %v7263_v41 = vsel %vm10377_vm8, %v7157_v11, %v7262_v50  ;;  %v8379_v59 = vpop.f32.mrb[167].mxu1 }
 0x352   : > { %7264 = vst [vmem:[%s10362_s27 + $0x4c] sm:$0x7] %v7263_v41 }
 0x353   : > { %v5154_v55 = vpop.f32.mrb[168].mxu0 }
 0x354   : > { %v7158_v5 = vpack.c.bf16 %v5154_v55, %v5154_v55  ;;  %v8384_v16 = vpop.f32.mrb[169].mxu0 }
 0x355   : > { %v5157_v43 = vpop.f32.mrb[170].mxu0 }
 0x356   : > { %v7266_v32 = vsel %vm10377_vm8, %v7158_v5, %v7265_v23  ;;  %v8385_v58 = vpop.f32.mrb[171].mxu0  ;;  %v5200_v19 = vpop.f32.mrb[168].mxu1  ;;  %v400_v23 = vld [vmem:[%s9635_s24 + $0xd4] sm:$0x7] }
 0x357   : > { %7267 = vst [vmem:[%s10362_s27 + $0x50] sm:$0x7] %v7266_v32  ;;  %v7159_v10 = vpack.c.bf16 %v5200_v19, %v5200_v19  ;;  %v8390_v6 = vpop.f32.mrb[169].mxu1  ;;  %v401_v19 = vld [vmem:[%s9635_s24 + $0xd8] sm:$0x7] }
 0x358   : > { %v5203_v28 = vpop.f32.mrb[170].mxu1  ;;  %v6682_v6 = vand.u32 %v9649_v7, %v401_v19 }
 0x359   : > { %v7269_v35 = vsel %vm10377_vm8, %v7159_v10, %v7268_v2  ;;  %v8391_v14 = vpop.f32.mrb[171].mxu1  ;;  %v402_v28 = vld [vmem:[%s9635_s24 + $0xdc] sm:$0x7] }
 0x35a   : > { %7270 = vst [vmem:[%s10362_s27 + $0x54] sm:$0x7] %v7269_v35 }
 0x35b   : > { %v5246_v22 = vpop.f32.mrb[172].mxu0 }
 0x35c   : > { %v7160_v60 = vpack.c.bf16 %v5246_v22, %v5246_v22  ;;  %v8396_v26 = vpop.f32.mrb[173].mxu0 }
 0x35d   : > { %v5249_v62 = vpop.f32.mrb[174].mxu0  ;;  %v403_v26 = vld [vmem:[%s9635_s24 + $0xe0] sm:$0x7] }
 0x35e   : > { %v7272_v49 = vsel %vm10377_vm8, %v7160_v60, %v7271_v39  ;;  %v8397_v54 = vpop.f32.mrb[175].mxu0  ;;  %v5292_v42 = vpop.f32.mrb[172].mxu1 }
 0x35f   : > { %7273 = vst [vmem:[%s10362_s27 + $0x58] sm:$0x7] %v7272_v49  ;;  %v7161_v33 = vpack.c.bf16 %v5292_v42, %v5292_v42  ;;  %v8402_v8 = vpop.f32.mrb[173].mxu1  ;;  %v6774_v54 = vand.u32 %v9649_v7, %v403_v26  ;;  %v404_v42 = vld [vmem:[%s9635_s24 + $0xe4] sm:$0x7] }
 0x360   : > { %v5295_v25 = vpop.f32.mrb[174].mxu1 }
 0x361   : > { %v7275_v3 = vsel %vm10377_vm8, %v7161_v33, %v7274_v52  ;;  %v8403_v46 = vpop.f32.mrb[175].mxu1 }
 0x362   : > { %7276 = vst [vmem:[%s10362_s27 + $0x5c] sm:$0x7] %v7275_v3  ;;  %v405_v46 = vld [vmem:[%s9635_s24 + $0xe8] sm:$0x7] }
 0x363   : > { %v3951_v36 = vpop.xlane.xlu0 %3950 }
 0x364   : > { %8879 = vrcp.f32 %v3951_v36 }
 0x366   : > { %v3954_v9 = vpop.xlane.xlu1 %3953 }
 0x367   : > { %8881 = vrcp.f32 %v3954_v9 }
 0x36b   : > { %v3957_v44 = vpop.xlane.xlu0 %3956 }
 0x36c   : > { %8883 = vrcp.f32 %v3957_v44  ;;  %v6866_v44 = vand.u32 %v9649_v7, %v405_v46  ;;  %v7286_v46 = vld [vmem:[%s10362_s27 + $0x6c] sm:$0x7] }
 0x36e   : > { %v8880_v34 = vpop.eup %8879  ;;  %v3960_v56 = vpop.xlane.xlu1 %3959 }
 0x36f   : > { %v4109_v15 = vmul.f32 %v8880_v34, %v10230_v0  ;;  %8885 = vrcp.f32 %v3960_v56  ;;  %v399_v0 = vld [vmem:[%s9635_s24 + $0xd0] sm:$0x7] }
 0x370   : > { %v6590_v55 = vand.u32 %v9649_v7, %v399_v0 }
 0x371   : > { %v8882_v37 = vpop.eup %8881  ;;  %v4173_v4 = vpack.c.bf16 %v4109_v15, %v4109_v15 }
 0x372   : > { %v4110_v50 = vmul.f32 %v8882_v37, %v10241_v47  ;;  %v407_v37 = vld [vmem:[%s9635_s24 + $0xf0] sm:$0x7] }
 0x373   : > { %8551 = vmatmul.mubr.msk.bf16.vlgmr.msra.gmra.mrb[224].mxu0 %vm4189_vm5, %v4173_v4  ;;  %v3963_v11 = vpop.xlane.xlu0 %3962 }
 0x374   : > { %8887 = vrcp.f32 %v3963_v11  ;;  %v4174_v1 = vpack.c.bf16 %v4110_v50, %v4110_v50  ;;  %8561 = vmatpush3.bf16.msra.mxu0 %v6498_v63  ;;  %8562 = vmatprep.mubr.msk.bf16.mxu0 %vm8920_vm0, %v10871_v53  ;;  %v6958_v11 = vand.u32 %v9649_v7, %v407_v37 }
 0x375   : > { %8572 = vmatprep.subr.bf16.mxu0 %v10871_v53 }
 0x376   : > { %v8884_v41 = vpop.eup %8883  ;;  %8557 = vmatmul.mubr.msk.bf16.vlgmr.msra.gmra.mrb[224].mxu1 %vm4189_vm5, %v4174_v1  ;;  %v3966_v59 = vpop.xlane.xlu1 %3965 }
 0x377   : > { %v4111_v47 = vmul.f32 %v8884_v41, %v10253_v24  ;;  %8889 = vrcp.f32 %v3966_v59  ;;  %8567 = vmatpush3.bf16.msra.mxu1 %v6544_v38  ;;  %8568 = vmatprep.mubr.msk.bf16.mxu1 %vm8920_vm0, %v10871_v53  ;;  %v6636_v24 = vand.u32 %v9649_v7, %v400_v23  ;;  %v408_v38 = vld [vmem:[%s9635_s24 + $0xf4] sm:$0x7] }
 0x378   : > { %8578 = vmatprep.subr.bf16.mxu1 %v10871_v53 }
 0x379   : > { %v8886_v5 = vpop.eup %8885  ;;  %v4175_v16 = vpack.c.bf16 %v4111_v47, %v4111_v47 }
 0x37a   : > { %v4112_v43 = vmul.f32 %v8886_v5, %v10262_v61 }
 0x37b   : > { %8563 = vmatmul.mubr.msk.bf16.vlgmr.msra.gmra.mrb[228].mxu0 %vm4189_vm5, %v4175_v16  ;;  %v3969_v32 = vpop.xlane.xlu0 %3968 }
 0x37c   : > { %8891 = vrcp.f32 %v3969_v32  ;;  %v4176_v58 = vpack.c.bf16 %v4112_v43, %v4112_v43  ;;  %8573 = vmatpush3.bf16.msra.mxu0 %v6590_v55  ;;  %8574 = vmatprep.mubr.msk.bf16.mxu0 %vm8920_vm0, %v10871_v53  ;;  %v409_v55 = vld [vmem:[%s9635_s24 + $0xf8] sm:$0x7]  ;;  %v410_v43 = vld [vmem:[%s9635_s24 + $0xfc] sm:$0x7] }
 0x37d   : > { %8584 = vmatprep.subr.bf16.mxu0 %v10871_v53  ;;  %v7050_v16 = vand.u32 %v9649_v7, %v409_v55 }
 0x37e   : > { %v8888_v2 = vpop.eup %8887  ;;  %8569 = vmatmul.mubr.msk.bf16.vlgmr.msra.gmra.mrb[228].mxu1 %vm4189_vm5, %v4176_v58  ;;  %v3972_v10 = vpop.xlane.xlu1 %3971 }
 0x37f   : > { %v4113_v61 = vmul.f32 %v8888_v2, %v10277_v45  ;;  %8893 = vrcp.f32 %v3972_v10  ;;  %8579 = vmatpush3.bf16.msra.mxu1 %v6636_v24  ;;  %8580 = vmatprep.mubr.msk.bf16.mxu1 %vm8920_vm0, %v10871_v53  ;;  %v6728_v45 = vand.u32 %v9649_v7, %v402_v28  ;;  %v7096_v2 = vand.u32 %v9649_v7, %v410_v43 }
 0x380   : > { %8590 = vmatprep.subr.bf16.mxu1 %v10871_v53 }
 0x381   : > { %v8890_v35 = vpop.eup %8889  ;;  %v4177_v14 = vpack.c.bf16 %v4113_v61, %v4113_v61 }
 0x382   : > { %v4114_v22 = vmul.f32 %v8890_v35, %v10286_v31 }
 0x383   : > { %8575 = vmatmul.mubr.msk.bf16.vlgmr.msra.gmra.mrb[232].mxu0 %vm4189_vm5, %v4177_v14  ;;  %v3975_v39 = vpop.xlane.xlu0 %3974 }
 0x384   : > { %8895 = vrcp.f32 %v3975_v39  ;;  %v4178_v60 = vpack.c.bf16 %v4114_v22, %v4114_v22  ;;  %8585 = vmatpush3.bf16.msra.mxu0 %v6682_v6  ;;  %8586 = vmatprep.mubr.msk.bf16.mxu0 %vm8920_vm0, %v10871_v53  ;;  %v7280_v39 = vld [vmem:[%s10362_s27 + $0x64] sm:$0x7] }
 0x385   : > { %8596 = vmatprep.subr.bf16.mxu0 %v10871_v53 }
 0x386   : > { %v8892_v62 = vpop.eup %8891  ;;  %8581 = vmatmul.mubr.msk.bf16.vlgmr.msra.gmra.mrb[232].mxu1 %vm4189_vm5, %v4178_v60  ;;  %v3978_v49 = vpop.xlane.xlu1 %3977 }
 0x387   : > { %v4115_v31 = vmul.f32 %v8892_v62, %v10301_v17  ;;  %8897 = vrcp.f32 %v3978_v49  ;;  %8591 = vmatpush3.bf16.msra.mxu1 %v6728_v45  ;;  %8592 = vmatprep.mubr.msk.bf16.mxu1 %vm8920_vm0, %v10871_v53  ;;  %v6820_v17 = vand.u32 %v9649_v7, %v404_v42 }
 0x388   : > { %8602 = vmatprep.subr.bf16.mxu1 %v10871_v53 }
 0x389   : > { %v8894_v52 = vpop.eup %8893  ;;  %v4179_v33 = vpack.c.bf16 %v4115_v31, %v4115_v31 }
 0x38a   : > { %v4116_v8 = vmul.f32 %v8894_v52, %v10310_v12 }
 0x38b   : > { %8587 = vmatmul.mubr.msk.bf16.vlgmr.msra.gmra.mrb[236].mxu0 %vm4189_vm5, %v4179_v33  ;;  %v3981_v25 = vpop.xlane.xlu0 %3980 }
 0x38c   : > { %8899 = vrcp.f32 %v3981_v25  ;;  %v4180_v3 = vpack.c.bf16 %v4116_v8, %v4116_v8  ;;  %8597 = vmatpush3.bf16.msra.mxu0 %v6774_v54  ;;  %8598 = vmatprep.mubr.msk.bf16.mxu0 %vm8920_vm0, %v10871_v53 }
 0x38d   : > { %8608 = vmatprep.subr.bf16.mxu0 %v10871_v53 }
 0x38e   : > { %v8896_v36 = vpop.eup %8895  ;;  %8593 = vmatmul.mubr.msk.bf16.vlgmr.msra.gmra.mrb[236].mxu1 %vm4189_vm5, %v4180_v3  ;;  %v3984_v9 = vpop.xlane.xlu1 %3983 }
 0x38f   : > { %v4117_v12 = vmul.f32 %v8896_v36, %v10325_v13  ;;  %8901 = vrcp.f32 %v3984_v9  ;;  %8603 = vmatpush3.bf16.msra.mxu1 %v6820_v17  ;;  %8604 = vmatprep.mubr.msk.bf16.mxu1 %vm8920_vm0, %v10871_v53  ;;  %v6912_v13 = vand.u32 %v9649_v7, %v406_v48 }
 0x390   : > { %8614 = vmatprep.subr.bf16.mxu1 %v10871_v53 }
 0x391   : > { %v8898_v34 = vpop.eup %8897  ;;  %v4181_v56 = vpack.c.bf16 %v4117_v12, %v4117_v12 }
 0x392   : > { %v4118_v15 = vmul.f32 %v8898_v34, %v10334_v27 }
 0x393   : > { %8599 = vmatmul.mubr.msk.bf16.vlgmr.msra.gmra.mrb[240].mxu0 %vm4189_vm5, %v4181_v56  ;;  %v3987_v63 = vpop.xlane.xlu0 %3986  ;;  %v7289_v56 = vld [vmem:[%s10362_s27 + $0x70] sm:$0x7] }
 0x394   : > { %8903 = vrcp.f32 %v3987_v63  ;;  %v4182_v20 = vpack.c.bf16 %v4118_v15, %v4118_v15  ;;  %8609 = vmatpush3.bf16.msra.mxu0 %v6866_v44  ;;  %8610 = vmatprep.mubr.msk.bf16.mxu0 %vm8920_vm0, %v10871_v53 }
 0x395   : > { %8620 = vmatprep.subr.bf16.mxu0 %v10871_v53 }
 0x396   : > { %v8900_v4 = vpop.eup %8899  ;;  %8605 = vmatmul.mubr.msk.bf16.vlgmr.msra.gmra.mrb[240].mxu1 %vm4189_vm5, %v4182_v20  ;;  %v3990_v50 = vpop.xlane.xlu1 %3989 }
 0x397   : > { %v4119_v27 = vmul.f32 %v8900_v4, %v10349_v18  ;;  %8905 = vrcp.f32 %v3990_v50  ;;  %8615 = vmatpush3.bf16.msra.mxu1 %v6912_v13  ;;  %8616 = vmatprep.mubr.msk.bf16.mxu1 %vm8920_vm0, %v10871_v53  ;;  %v7004_v18 = vand.u32 %v9649_v7, %v408_v38  ;;  %v7292_v50 = vld [vmem:[%s10362_s27 + $0x74] sm:$0x7] }
 0x398   : > { %8626 = vmatprep.subr.bf16.mxu1 %v10871_v53 }
 0x399   : > { %v8902_v1 = vpop.eup %8901  ;;  %v4183_v0 = vpack.c.bf16 %v4119_v27, %v4119_v27 }
 0x39a   : > { %v4120_v41 = vmul.f32 %v8902_v1, %v10364_v51 }
 0x39b   : > { %8611 = vmatmul.mubr.msk.bf16.vlgmr.msra.gmra.mrb[244].mxu0 %vm4189_vm5, %v4183_v0  ;;  %v3993_v59 = vpop.xlane.xlu0 %3992 }
 0x39c   : > { %8907 = vrcp.f32 %v3993_v59  ;;  %v4184_v47 = vpack.c.bf16 %v4120_v41, %v4120_v41  ;;  %8621 = vmatpush3.bf16.msra.mxu0 %v6958_v11  ;;  %8622 = vmatprep.mubr.msk.bf16.mxu0 %vm8920_vm0, %v10871_v53  ;;  %v7295_v59 = vld [vmem:[%s10362_s27 + $0x78] sm:$0x7] }
 0x39d   : > { %8632 = vmatprep.subr.bf16.mxu0 %v10871_v53 }
 0x39e   : > { %v8904_v23 = vpop.eup %8903  ;;  %8617 = vmatmul.mubr.msk.bf16.vlgmr.msra.gmra.mrb[244].mxu1 %vm4189_vm5, %v4184_v47  ;;  %v3996_v51 = vpop.xlane.xlu1 %3995 }
 0x39f   : > { %v4121_v5 = vmul.f32 %v8904_v23, %v10386_v57  ;;  %8909 = vrcp.f32 %v3996_v51  ;;  %8627 = vmatpush3.bf16.msra.mxu1 %v7004_v18  ;;  %8628 = vmatprep.mubr.msk.bf16.mxu1 %vm8920_vm0, %v10871_v53  ;;  %v7277_v57 = vld [vmem:[%s10362_s27 + $0x60] sm:$0x7] }
 0x3a0   : > { %8638 = vmatprep.subr.bf16.mxu1 %v10871_v53 }
 0x3a1   : > { %v8906_v32 = vpop.eup %8905  ;;  %v4185_v24 = vpack.c.bf16 %v4121_v5, %v4121_v5 }
 0x3a2   : > { %v4122_v58 = vmul.f32 %v8906_v32, %v10398_v29 }
 0x3a3   : > { %8623 = vmatmul.mubr.msk.bf16.vlgmr.msra.gmra.mrb[248].mxu0 %vm4189_vm5, %v4185_v24  ;;  %v5338_v19 = vpop.f32.mrb[176].mxu0 }
 0x3a4   : > { %v7162_v10 = vpack.c.bf16 %v5338_v19, %v5338_v19  ;;  %v8408_v61 = vpop.f32.mrb[177].mxu0  ;;  %v4186_v6 = vpack.c.bf16 %v4122_v58, %v4122_v58  ;;  %8633 = vmatpush3.bf16.msra.mxu0 %v7050_v16  ;;  %8634 = vmatprep.mubr.msk.bf16.mxu0 %vm8920_vm0, %v10871_v53  ;;  %v7298_v16 = vld [vmem:[%s10362_s27 + $0x7c] sm:$0x7] }
 0x3a5   : > { %v5341_v28 = vpop.f32.mrb[178].mxu0 }
 0x3a6   : > { %v8908_v35 = vpop.eup %8907  ;;  %v7278_v29 = vsel %vm10377_vm8, %v7162_v10, %v7277_v57  ;;  %v8409_v14 = vpop.f32.mrb[179].mxu0  ;;  %8629 = vmatmul.mubr.msk.bf16.vlgmr.msra.gmra.mrb[248].mxu1 %vm4189_vm5, %v4186_v6 }
 0x3a7   : > { %v4123_v22 = vmul.f32 %v8908_v35, %v10416_v40  ;;  %7279 = vst [vmem:[%s10362_s27 + $0x60] sm:$0x7] %v7278_v29  ;;  %v5384_v7 = vpop.f32.mrb[176].mxu1  ;;  %8639 = vmatpush3.bf16.msra.mxu1 %v7096_v2  ;;  %8640 = vmatprep.mubr.msk.bf16.mxu1 %vm8920_vm0, %v10871_v53  ;;  %v7283_v53 = vld [vmem:[%s10362_s27 + $0x68] sm:$0x7] }
 0x3a8   : > { %v7163_v45 = vpack.c.bf16 %v5384_v7, %v5384_v7  ;;  %v8414_v60 = vpop.f32.mrb[177].mxu1  ;;  %v7301_v2 = vld [vmem:[%s10362_s27 + $0x80] sm:$0x7]  ;;  %v7304_v14 = vld [vmem:[%s10362_s27 + $0x84] sm:$0x7] }
 0x3a9   : > { %v8910_v26 = vpop.eup %8909  ;;  %v4187_v62 = vpack.c.bf16 %v4123_v22, %v4123_v22  ;;  %v5387_v49 = vpop.f32.mrb[178].mxu1 }
 0x3aa   : > { %v4124_v31 = vmul.f32 %v8910_v26, %v10428_v21  ;;  %v7281_v40 = vsel %vm10377_vm8, %v7163_v45, %v7280_v39  ;;  %v8415_v54 = vpop.f32.mrb[179].mxu1 }
 0x3ab   : > { %7282 = vst [vmem:[%s10362_s27 + $0x64] sm:$0x7] %v7281_v40  ;;  %8635 = vmatmul.mubr.msk.bf16.vlgmr.msra.gmra.mrb[252].mxu0 %vm4189_vm5, %v4187_v62  ;;  %v7307_v62 = vld [vmem:[%s10362_s27 + $0x88] sm:$0x7] }
 0x3ac   : > { %v4188_v42 = vpack.c.bf16 %v4124_v31, %v4124_v31 }
 0x3ad   : > { %v5430_v52 = vpop.f32.mrb[180].mxu0 }
 0x3ae   : > { %v7164_v33 = vpack.c.bf16 %v5430_v52, %v5430_v52  ;;  %v8420_v8 = vpop.f32.mrb[181].mxu0  ;;  %8641 = vmatmul.mubr.msk.bf16.vlgmr.msra.gmra.mrb[252].mxu1 %vm4189_vm5, %v4188_v42 }
 0x3af   : > { %v5433_v25 = vpop.f32.mrb[182].mxu0 }
 0x3b0   : > { %v7284_v21 = vsel %vm10377_vm8, %v7164_v33, %v7283_v53  ;;  %v8421_v17 = vpop.f32.mrb[183].mxu0  ;;  %v5476_v3 = vpop.f32.mrb[180].mxu1  ;;  %v7310_v53 = vld [vmem:[%s10362_s27 + $0x8c] sm:$0x7] }
 0x3b1   : > { %7285 = vst [vmem:[%s10362_s27 + $0x68] sm:$0x7] %v7284_v21  ;;  %v7165_v36 = vpack.c.bf16 %v5476_v3, %v5476_v3  ;;  %v8426_v9 = vpop.f32.mrb[181].mxu1 }
 0x3b2   : > { %v5479_v12 = vpop.f32.mrb[182].mxu1 }
 0x3b3   : > { %v7287_v44 = vsel %vm10377_vm8, %v7165_v36, %v7286_v46  ;;  %v8427_v48 = vpop.f32.mrb[183].mxu1  ;;  %v7313_v46 = vld [vmem:[%s10362_s27 + $0x90] sm:$0x7] }
 0x3b4   : > { %7288 = vst [vmem:[%s10362_s27 + $0x6c] sm:$0x7] %v7287_v44 }
 0x3b5   : > { %v5522_v34 = vpop.f32.mrb[184].mxu0 }
 0x3b6   : > { %v7166_v15 = vpack.c.bf16 %v5522_v34, %v5522_v34  ;;  %v8432_v63 = vpop.f32.mrb[185].mxu0 }
 0x3b7   : > { %v5525_v13 = vpop.f32.mrb[186].mxu0 }
 0x3b8   : > { %v7290_v20 = vsel %vm10377_vm8, %v7166_v15, %v7289_v56  ;;  %v8433_v37 = vpop.f32.mrb[187].mxu0  ;;  %v5568_v4 = vpop.f32.mrb[184].mxu1  ;;  %v7316_v56 = vld [vmem:[%s10362_s27 + $0x94] sm:$0x7] }
 0x3b9   : > { %7291 = vst [vmem:[%s10362_s27 + $0x70] sm:$0x7] %v7290_v20  ;;  %v7167_v27 = vpack.c.bf16 %v5568_v4, %v5568_v4  ;;  %v8438_v11 = vpop.f32.mrb[185].mxu1 }
 0x3ba   : > { %v5571_v38 = vpop.f32.mrb[186].mxu1 }
 0x3bb   : > { %v7293_v1 = vsel %vm10377_vm8, %v7167_v27, %v7292_v50  ;;  %v8439_v0 = vpop.f32.mrb[187].mxu1  ;;  %v7319_v50 = vld [vmem:[%s10362_s27 + $0x98] sm:$0x7] }
 0x3bc   : > { %7294 = vst [vmem:[%s10362_s27 + $0x74] sm:$0x7] %v7293_v1 }
 0x3bd   : > { %v5614_v41 = vpop.f32.mrb[188].mxu0 }
 0x3be   : > { %v7168_v18 = vpack.c.bf16 %v5614_v41, %v5614_v41  ;;  %v8444_v47 = vpop.f32.mrb[189].mxu0 }
 0x3bf   : > { %v5617_v55 = vpop.f32.mrb[190].mxu0 }
 0x3c0   : > { %v7296_v23 = vsel %vm10377_vm8, %v7168_v18, %v7295_v59  ;;  %v8445_v51 = vpop.f32.mrb[191].mxu0  ;;  %v5660_v5 = vpop.f32.mrb[188].mxu1  ;;  %v7322_v59 = vld [vmem:[%s10362_s27 + $0x9c] sm:$0x7] }
 0x3c1   : > { %7297 = vst [vmem:[%s10362_s27 + $0x78] sm:$0x7] %v7296_v23  ;;  %v7169_v43 = vpack.c.bf16 %v5660_v5, %v5660_v5  ;;  %v8450_v32 = vpop.f32.mrb[189].mxu1 }
 0x3c2   : > { %v5663_v24 = vpop.f32.mrb[190].mxu1 }
 0x3c3   : > { %v7299_v58 = vsel %vm10377_vm8, %v7169_v43, %v7298_v16  ;;  %v8451_v19 = vpop.f32.mrb[191].mxu1  ;;  %v7325_v16 = vld [vmem:[%s10362_s27 + $0xa0] sm:$0x7] }
 0x3c4   : > { %7300 = vst [vmem:[%s10362_s27 + $0x7c] sm:$0x7] %v7299_v58 }
 0x3c5   : > { %v5706_v57 = vpop.f32.mrb[192].mxu0 }
 0x3c6   : > { %v7170_v10 = vpack.c.bf16 %v5706_v57, %v5706_v57  ;;  %v8456_v61 = vpop.f32.mrb[193].mxu0 }
 0x3c7   : > { %v5709_v6 = vpop.f32.mrb[194].mxu0 }
 0x3c8   : > { %v7302_v28 = vsel %vm10377_vm8, %v7170_v10, %v7301_v2  ;;  %v8457_v35 = vpop.f32.mrb[195].mxu0  ;;  %v5752_v29 = vpop.f32.mrb[192].mxu1  ;;  %v7328_v2 = vld [vmem:[%s10362_s27 + $0xa4] sm:$0x7] }
 0x3c9   : > { %7303 = vst [vmem:[%s10362_s27 + $0x80] sm:$0x7] %v7302_v28  ;;  %v7171_v22 = vpack.c.bf16 %v5752_v29, %v5752_v29  ;;  %v8462_v7 = vpop.f32.mrb[193].mxu1 }
 0x3ca   : > { %v5755_v39 = vpop.f32.mrb[194].mxu1 }
 0x3cb   : > { %v7305_v45 = vsel %vm10377_vm8, %v7171_v22, %v7304_v14  ;;  %v8463_v60 = vpop.f32.mrb[195].mxu1  ;;  %v7331_v14 = vld [vmem:[%s10362_s27 + $0xa8] sm:$0x7] }
 0x3cc   : > { %7306 = vst [vmem:[%s10362_s27 + $0x84] sm:$0x7] %v7305_v45 }
 0x3cd   : > { %v5798_v26 = vpop.f32.mrb[196].mxu0 }
 0x3ce   : > { %v7172_v49 = vpack.c.bf16 %v5798_v26, %v5798_v26  ;;  %v8468_v31 = vpop.f32.mrb[197].mxu0 }
 0x3cf   : > { %v5801_v40 = vpop.f32.mrb[198].mxu0 }
 0x3d0   : > { %v7308_v54 = vsel %vm10377_vm8, %v7172_v49, %v7307_v62  ;;  %v8469_v42 = vpop.f32.mrb[199].mxu0  ;;  %v5844_v52 = vpop.f32.mrb[196].mxu1  ;;  %v7334_v62 = vld [vmem:[%s10362_s27 + $0xac] sm:$0x7] }
 0x3d1   : > { %7309 = vst [vmem:[%s10362_s27 + $0x88] sm:$0x7] %v7308_v54  ;;  %v7173_v33 = vpack.c.bf16 %v5844_v52, %v5844_v52  ;;  %v8474_v8 = vpop.f32.mrb[197].mxu1 }
 0x3d2   : > { %v5847_v25 = vpop.f32.mrb[198].mxu1 }
 0x3d3   : > { %v7311_v21 = vsel %vm10377_vm8, %v7173_v33, %v7310_v53  ;;  %v8475_v17 = vpop.f32.mrb[199].mxu1  ;;  %v7337_v53 = vld [vmem:[%s10362_s27 + $0xb0] sm:$0x7] }
 0x3d4   : > { %7312 = vst [vmem:[%s10362_s27 + $0x8c] sm:$0x7] %v7311_v21 }
 0x3d5   : > { %v5890_v3 = vpop.f32.mrb[200].mxu0 }
 0x3d6   : > { %v7174_v36 = vpack.c.bf16 %v5890_v3, %v5890_v3  ;;  %v8480_v9 = vpop.f32.mrb[201].mxu0 }
 0x3d7   : > { %v5893_v12 = vpop.f32.mrb[202].mxu0 }
 0x3d8   : > { %v7314_v44 = vsel %vm10377_vm8, %v7174_v36, %v7313_v46  ;;  %v8481_v48 = vpop.f32.mrb[203].mxu0  ;;  %v5936_v34 = vpop.f32.mrb[200].mxu1  ;;  %v7340_v46 = vld [vmem:[%s10362_s27 + $0xb4] sm:$0x7] }
 0x3d9   : > { %7315 = vst [vmem:[%s10362_s27 + $0x90] sm:$0x7] %v7314_v44  ;;  %v7175_v15 = vpack.c.bf16 %v5936_v34, %v5936_v34  ;;  %v8486_v63 = vpop.f32.mrb[201].mxu1 }
 0x3da   : > { %v5939_v13 = vpop.f32.mrb[202].mxu1 }
 0x3db   : > { %v7317_v20 = vsel %vm10377_vm8, %v7175_v15, %v7316_v56  ;;  %v8487_v37 = vpop.f32.mrb[203].mxu1  ;;  %v7343_v56 = vld [vmem:[%s10362_s27 + $0xb8] sm:$0x7] }
 0x3dc   : > { %7318 = vst [vmem:[%s10362_s27 + $0x94] sm:$0x7] %v7317_v20 }
 0x3dd   : > { %v5982_v4 = vpop.f32.mrb[204].mxu0 }
 0x3de   : > { %v7176_v27 = vpack.c.bf16 %v5982_v4, %v5982_v4  ;;  %v8492_v11 = vpop.f32.mrb[205].mxu0 }
 0x3df   : > { %v5985_v38 = vpop.f32.mrb[206].mxu0 }
 0x3e0   : > { %v7320_v1 = vsel %vm10377_vm8, %v7176_v27, %v7319_v50  ;;  %v8493_v0 = vpop.f32.mrb[207].mxu0  ;;  %v6028_v41 = vpop.f32.mrb[204].mxu1  ;;  %v7346_v50 = vld [vmem:[%s10362_s27 + $0xbc] sm:$0x7] }
 0x3e1   : > { %7321 = vst [vmem:[%s10362_s27 + $0x98] sm:$0x7] %v7320_v1  ;;  %v7177_v18 = vpack.c.bf16 %v6028_v41, %v6028_v41  ;;  %v8498_v47 = vpop.f32.mrb[205].mxu1 }
 0x3e2   : > { %v6031_v55 = vpop.f32.mrb[206].mxu1 }
 0x3e3   : > { %v7323_v23 = vsel %vm10377_vm8, %v7177_v18, %v7322_v59  ;;  %v8499_v51 = vpop.f32.mrb[207].mxu1  ;;  %v7349_v59 = vld [vmem:[%s10362_s27 + $0xc0] sm:$0x7] }
 0x3e4   : > { %7324 = vst [vmem:[%s10362_s27 + $0x9c] sm:$0x7] %v7323_v23 }
 0x3e5   : > { %v6074_v5 = vpop.f32.mrb[208].mxu0 }
 0x3e6   : > { %v7178_v43 = vpack.c.bf16 %v6074_v5, %v6074_v5  ;;  %v8504_v32 = vpop.f32.mrb[209].mxu0 }
 0x3e7   : > { %v6077_v24 = vpop.f32.mrb[210].mxu0 }
 0x3e8   : > { %v7326_v58 = vsel %vm10377_vm8, %v7178_v43, %v7325_v16  ;;  %v8505_v19 = vpop.f32.mrb[211].mxu0  ;;  %v6120_v57 = vpop.f32.mrb[208].mxu1  ;;  %v7352_v16 = vld [vmem:[%s10362_s27 + $0xc4] sm:$0x7] }
 0x3e9   : > { %7327 = vst [vmem:[%s10362_s27 + $0xa0] sm:$0x7] %v7326_v58  ;;  %v7179_v10 = vpack.c.bf16 %v6120_v57, %v6120_v57  ;;  %v8510_v61 = vpop.f32.mrb[209].mxu1 }
 0x3ea   : > { %v6123_v6 = vpop.f32.mrb[210].mxu1 }
 0x3eb   : > { %v7329_v28 = vsel %vm10377_vm8, %v7179_v10, %v7328_v2  ;;  %v8511_v35 = vpop.f32.mrb[211].mxu1  ;;  %v7355_v2 = vld [vmem:[%s10362_s27 + $0xc8] sm:$0x7] }
 0x3ec   : > { %7330 = vst [vmem:[%s10362_s27 + $0xa4] sm:$0x7] %v7329_v28 }
 0x3ed   : > { %v6166_v29 = vpop.f32.mrb[212].mxu0 }
 0x3ee   : > { %v7180_v22 = vpack.c.bf16 %v6166_v29, %v6166_v29  ;;  %v8516_v7 = vpop.f32.mrb[213].mxu0 }
 0x3ef   : > { %v6169_v39 = vpop.f32.mrb[214].mxu0 }
 0x3f0   : > { %v7332_v45 = vsel %vm10377_vm8, %v7180_v22, %v7331_v14  ;;  %v8517_v60 = vpop.f32.mrb[215].mxu0  ;;  %v6212_v26 = vpop.f32.mrb[212].mxu1  ;;  %v7358_v14 = vld [vmem:[%s10362_s27 + $0xcc] sm:$0x7] }
 0x3f1   : > { %7333 = vst [vmem:[%s10362_s27 + $0xa8] sm:$0x7] %v7332_v45  ;;  %v7181_v49 = vpack.c.bf16 %v6212_v26, %v6212_v26  ;;  %v8522_v31 = vpop.f32.mrb[213].mxu1 }
 0x3f2   : > { %v6215_v40 = vpop.f32.mrb[214].mxu1 }
 0x3f3   : > { %v7335_v54 = vsel %vm10377_vm8, %v7181_v49, %v7334_v62  ;;  %v8523_v42 = vpop.f32.mrb[215].mxu1  ;;  %v7361_v62 = vld [vmem:[%s10362_s27 + $0xd0] sm:$0x7] }
 0x3f4   : > { %7336 = vst [vmem:[%s10362_s27 + $0xac] sm:$0x7] %v7335_v54 }
 0x3f5   : > { %v6258_v52 = vpop.f32.mrb[216].mxu0 }
 0x3f6   : > { %v7182_v33 = vpack.c.bf16 %v6258_v52, %v6258_v52  ;;  %v8528_v8 = vpop.f32.mrb[217].mxu0 }
 0x3f7   : > { %v6261_v25 = vpop.f32.mrb[218].mxu0 }
 0x3f8   : > { %v7338_v21 = vsel %vm10377_vm8, %v7182_v33, %v7337_v53  ;;  %v8529_v17 = vpop.f32.mrb[219].mxu0  ;;  %v6304_v3 = vpop.f32.mrb[216].mxu1  ;;  %v7364_v53 = vld [vmem:[%s10362_s27 + $0xd4] sm:$0x7] }
 0x3f9   : > { %7339 = vst [vmem:[%s10362_s27 + $0xb0] sm:$0x7] %v7338_v21  ;;  %v7183_v36 = vpack.c.bf16 %v6304_v3, %v6304_v3  ;;  %v8534_v9 = vpop.f32.mrb[217].mxu1 }
 0x3fa   : > { %v6307_v12 = vpop.f32.mrb[218].mxu1 }
 0x3fb   : > { %v7341_v44 = vsel %vm10377_vm8, %v7183_v36, %v7340_v46  ;;  %v8535_v48 = vpop.f32.mrb[219].mxu1  ;;  %v7367_v46 = vld [vmem:[%s10362_s27 + $0xd8] sm:$0x7] }
 0x3fc   : > { %7342 = vst [vmem:[%s10362_s27 + $0xb4] sm:$0x7] %v7341_v44 }
 0x3fd   : > { %v6350_v34 = vpop.f32.mrb[220].mxu0 }
 0x3fe   : > { %v7184_v15 = vpack.c.bf16 %v6350_v34, %v6350_v34  ;;  %v8540_v63 = vpop.f32.mrb[221].mxu0 }
 0x3ff   : > { %v6353_v13 = vpop.f32.mrb[222].mxu0 }
 0x400   : > { %v7344_v20 = vsel %vm10377_vm8, %v7184_v15, %v7343_v56  ;;  %v8541_v37 = vpop.f32.mrb[223].mxu0  ;;  %v6396_v4 = vpop.f32.mrb[220].mxu1  ;;  %v7370_v56 = vld [vmem:[%s10362_s27 + $0xdc] sm:$0x7] }
 0x401   : > { %7345 = vst [vmem:[%s10362_s27 + $0xb8] sm:$0x7] %v7344_v20  ;;  %v7185_v27 = vpack.c.bf16 %v6396_v4, %v6396_v4  ;;  %v8546_v11 = vpop.f32.mrb[221].mxu1 }
 0x402   : > { %v6399_v38 = vpop.f32.mrb[222].mxu1 }
 0x403   : > { %v7347_v1 = vsel %vm10377_vm8, %v7185_v27, %v7346_v50  ;;  %v8547_v0 = vpop.f32.mrb[223].mxu1  ;;  %v7373_v50 = vld [vmem:[%s10362_s27 + $0xe0] sm:$0x7] }
 0x404   : > { %7348 = vst [vmem:[%s10362_s27 + $0xbc] sm:$0x7] %v7347_v1 }
 0x446   : > { %v6442_v41 = vpop.f32.mrb[224].mxu0 }
 0x447   : > { %v7186_v18 = vpack.c.bf16 %v6442_v41, %v6442_v41  ;;  %v8552_v47 = vpop.f32.mrb[225].mxu0 }
 0x448   : > { %v6445_v55 = vpop.f32.mrb[226].mxu0 }
 0x449   : > { %v7350_v23 = vsel %vm10377_vm8, %v7186_v18, %v7349_v59  ;;  %v8553_v51 = vpop.f32.mrb[227].mxu0  ;;  %v6488_v5 = vpop.f32.mrb[224].mxu1  ;;  %v7376_v59 = vld [vmem:[%s10362_s27 + $0xe4] sm:$0x7] }
 0x44a   : > { %7351 = vst [vmem:[%s10362_s27 + $0xc0] sm:$0x7] %v7350_v23  ;;  %v7187_v43 = vpack.c.bf16 %v6488_v5, %v6488_v5  ;;  %v8558_v32 = vpop.f32.mrb[225].mxu1 }
 0x44b   : > { %v6491_v24 = vpop.f32.mrb[226].mxu1 }
 0x44c   : > { %v7353_v58 = vsel %vm10377_vm8, %v7187_v43, %v7352_v16  ;;  %v8559_v19 = vpop.f32.mrb[227].mxu1  ;;  %v7379_v16 = vld [vmem:[%s10362_s27 + $0xe8] sm:$0x7] }
 0x44d   : > { %7354 = vst [vmem:[%s10362_s27 + $0xc4] sm:$0x7] %v7353_v58 }
 0x44e   : > { %v6534_v57 = vpop.f32.mrb[228].mxu0 }
 0x44f   : > { %v7188_v10 = vpack.c.bf16 %v6534_v57, %v6534_v57  ;;  %v8564_v61 = vpop.f32.mrb[229].mxu0 }
 0x450   : > { %v6537_v6 = vpop.f32.mrb[230].mxu0 }
 0x451   : > { %v7356_v28 = vsel %vm10377_vm8, %v7188_v10, %v7355_v2  ;;  %v8565_v35 = vpop.f32.mrb[231].mxu0  ;;  %v6580_v29 = vpop.f32.mrb[228].mxu1  ;;  %v7382_v2 = vld [vmem:[%s10362_s27 + $0xec] sm:$0x7] }
 0x452   : > { %7357 = vst [vmem:[%s10362_s27 + $0xc8] sm:$0x7] %v7356_v28  ;;  %v7189_v22 = vpack.c.bf16 %v6580_v29, %v6580_v29  ;;  %v8570_v7 = vpop.f32.mrb[229].mxu1 }
 0x453   : > { %v6583_v39 = vpop.f32.mrb[230].mxu1 }
 0x454   : > { %v7359_v45 = vsel %vm10377_vm8, %v7189_v22, %v7358_v14  ;;  %v8571_v60 = vpop.f32.mrb[231].mxu1  ;;  %v7385_v14 = vld [vmem:[%s10362_s27 + $0xf0] sm:$0x7] }
 0x455   : > { %7360 = vst [vmem:[%s10362_s27 + $0xcc] sm:$0x7] %v7359_v45 }
 0x456   : > { %v6626_v26 = vpop.f32.mrb[232].mxu0 }
 0x457   : > { %v7190_v49 = vpack.c.bf16 %v6626_v26, %v6626_v26  ;;  %v8576_v31 = vpop.f32.mrb[233].mxu0 }
 0x458   : > { %v6629_v40 = vpop.f32.mrb[234].mxu0 }
 0x459   : > { %v7362_v54 = vsel %vm10377_vm8, %v7190_v49, %v7361_v62  ;;  %v8577_v42 = vpop.f32.mrb[235].mxu0  ;;  %v6672_v52 = vpop.f32.mrb[232].mxu1  ;;  %v7388_v62 = vld [vmem:[%s10362_s27 + $0xf4] sm:$0x7] }
 0x45a   : > { %7363 = vst [vmem:[%s10362_s27 + $0xd0] sm:$0x7] %v7362_v54  ;;  %v7191_v33 = vpack.c.bf16 %v6672_v52, %v6672_v52  ;;  %v8582_v8 = vpop.f32.mrb[233].mxu1 }
 0x45b   : > { %v6675_v25 = vpop.f32.mrb[234].mxu1 }
 0x45c   : > { %v7365_v21 = vsel %vm10377_vm8, %v7191_v33, %v7364_v53  ;;  %v8583_v17 = vpop.f32.mrb[235].mxu1  ;;  %v7391_v53 = vld [vmem:[%s10362_s27 + $0xf8] sm:$0x7] }
 0x45d   : > { %7366 = vst [vmem:[%s10362_s27 + $0xd4] sm:$0x7] %v7365_v21 }
 0x45e   : > { %v6718_v3 = vpop.f32.mrb[236].mxu0 }
 0x45f   : > { %v7192_v36 = vpack.c.bf16 %v6718_v3, %v6718_v3  ;;  %v8588_v9 = vpop.f32.mrb[237].mxu0 }
 0x460   : > { %v6721_v12 = vpop.f32.mrb[238].mxu0 }
 0x461   : > { %v7368_v44 = vsel %vm10377_vm8, %v7192_v36, %v7367_v46  ;;  %v8589_v48 = vpop.f32.mrb[239].mxu0  ;;  %v6764_v34 = vpop.f32.mrb[236].mxu1  ;;  %v7394_v46 = vld [vmem:[%s10362_s27 + $0xfc] sm:$0x7] }
 0x462   : > { %7369 = vst [vmem:[%s10362_s27 + $0xd8] sm:$0x7] %v7368_v44  ;;  %v7193_v15 = vpack.c.bf16 %v6764_v34, %v6764_v34  ;;  %v8594_v63 = vpop.f32.mrb[237].mxu1 }
 0x463   : > { %v6767_v13 = vpop.f32.mrb[238].mxu1 }
 0x464   : > { %v7371_v20 = vsel %vm10377_vm8, %v7193_v15, %v7370_v56  ;;  %v8595_v37 = vpop.f32.mrb[239].mxu1 }
 0x465   : > { %7372 = vst [vmem:[%s10362_s27 + $0xdc] sm:$0x7] %v7371_v20 }
 0x466   : > { %v6810_v4 = vpop.f32.mrb[240].mxu0 }
 0x467   : > { %v7194_v27 = vpack.c.bf16 %v6810_v4, %v6810_v4  ;;  %v8600_v11 = vpop.f32.mrb[241].mxu0 }
 0x468   : > { %v6813_v38 = vpop.f32.mrb[242].mxu0 }
 0x469   : > { %v7374_v1 = vsel %vm10377_vm8, %v7194_v27, %v7373_v50  ;;  %v8601_v0 = vpop.f32.mrb[243].mxu0  ;;  %v6856_v41 = vpop.f32.mrb[240].mxu1 }
 0x46a   : > { %7375 = vst [vmem:[%s10362_s27 + $0xe0] sm:$0x7] %v7374_v1  ;;  %v7195_v18 = vpack.c.bf16 %v6856_v41, %v6856_v41  ;;  %v8606_v47 = vpop.f32.mrb[241].mxu1 }
 0x46b   : > { %v6859_v55 = vpop.f32.mrb[242].mxu1 }
 0x46c   : > { %v7377_v23 = vsel %vm10377_vm8, %v7195_v18, %v7376_v59  ;;  %v8607_v51 = vpop.f32.mrb[243].mxu1 }
 0x46d   : > { %7378 = vst [vmem:[%s10362_s27 + $0xe4] sm:$0x7] %v7377_v23 }
 0x46e   : > { %v6902_v5 = vpop.f32.mrb[244].mxu0 }
 0x46f   : > { %v7196_v43 = vpack.c.bf16 %v6902_v5, %v6902_v5  ;;  %v8612_v32 = vpop.f32.mrb[245].mxu0 }
 0x470   : > { %v6905_v24 = vpop.f32.mrb[246].mxu0 }
 0x471   : > { %v7380_v58 = vsel %vm10377_vm8, %v7196_v43, %v7379_v16  ;;  %v8613_v19 = vpop.f32.mrb[247].mxu0  ;;  %v6948_v57 = vpop.f32.mrb[244].mxu1 }
 0x472   : > { %7381 = vst [vmem:[%s10362_s27 + $0xe8] sm:$0x7] %v7380_v58  ;;  %v7197_v10 = vpack.c.bf16 %v6948_v57, %v6948_v57  ;;  %v8618_v61 = vpop.f32.mrb[245].mxu1 }
 0x473   : > { %v6951_v6 = vpop.f32.mrb[246].mxu1 }
 0x474   : > { %v7383_v28 = vsel %vm10377_vm8, %v7197_v10, %v7382_v2  ;;  %v8619_v35 = vpop.f32.mrb[247].mxu1 }
 0x475   : > { %7384 = vst [vmem:[%s10362_s27 + $0xec] sm:$0x7] %v7383_v28 }
 0x476   : > { %v6994_v29 = vpop.f32.mrb[248].mxu0 }
 0x477   : > { %v7198_v22 = vpack.c.bf16 %v6994_v29, %v6994_v29  ;;  %v8624_v7 = vpop.f32.mrb[249].mxu0 }
 0x478   : > { %v6997_v39 = vpop.f32.mrb[250].mxu0 }
 0x479   : > { %v7386_v45 = vsel %vm10377_vm8, %v7198_v22, %v7385_v14  ;;  %v8625_v60 = vpop.f32.mrb[251].mxu0  ;;  %v7040_v26 = vpop.f32.mrb[248].mxu1 }
 0x47a   : > { %7387 = vst [vmem:[%s10362_s27 + $0xf0] sm:$0x7] %v7386_v45  ;;  %v7199_v49 = vpack.c.bf16 %v7040_v26, %v7040_v26  ;;  %v8630_v31 = vpop.f32.mrb[249].mxu1 }
 0x47b   : > { %v7043_v40 = vpop.f32.mrb[250].mxu1 }
 0x47c   : > { %v7389_v54 = vsel %vm10377_vm8, %v7199_v49, %v7388_v62  ;;  %v8631_v42 = vpop.f32.mrb[251].mxu1 }
 0x47d   : > { %7390 = vst [vmem:[%s10362_s27 + $0xf4] sm:$0x7] %v7389_v54 }
 0x47e   : > { %v7086_v52 = vpop.f32.mrb[252].mxu0 }
 0x47f   : > { %v7200_v33 = vpack.c.bf16 %v7086_v52, %v7086_v52  ;;  %v8636_v8 = vpop.f32.mrb[253].mxu0 }
 0x480   : > { %v7089_v25 = vpop.f32.mrb[254].mxu0 }
 0x481   : > { %v7392_v21 = vsel %vm10377_vm8, %v7200_v33, %v7391_v53  ;;  %v8637_v17 = vpop.f32.mrb[255].mxu0  ;;  %v7132_v3 = vpop.f32.mrb[252].mxu1 }
 0x482   : > { %7393 = vst [vmem:[%s10362_s27 + $0xf8] sm:$0x7] %v7392_v21  ;;  %v7201_v36 = vpack.c.bf16 %v7132_v3, %v7132_v3  ;;  %v8642_v9 = vpop.f32.mrb[253].mxu1 }
 0x483   : > { %v7135_v12 = vpop.f32.mrb[254].mxu1 }
 0x484   : > { %v7395_v44 = vsel %vm10377_vm8, %v7201_v36, %v7394_v46  ;;  %v8643_v48 = vpop.f32.mrb[255].mxu1 }
 0x485   : > { %7396 = vst [vmem:[%s10362_s27 + $0xfc] sm:$0x7] %v7395_v44 }
 0x486 PF: > { %s13_s12 = sadd.s32 1, %s8917_s12  }
 0x487   : > { %p10_p4 = scmp.ge.s32.totalorder %s13_s12, 4  }
 0x489   :  { %12 = sbr.rel (!%p10_p4) target bundleno = 1 (0x1), region = 68 }

// kernel: timesformer_block.13
= control target key start
LH: loop header
LB: loop body
LE: loop exit
PB: predicated region body
PF: predicated region fallthrough
CT: control target
= control target key end

     0   :  { %s1706_s24 = smov 0   ;;  %s2461_s0 = inlined_call_operand.vmem [shape: f32[256,64], index: 0, kind: input, shape index: {}, may-alias: {0,7}]   ;;  %s2462_s1 = inlined_call_operand.vmem [shape: f32[1,64], index: 1, kind: input, shape index: {}]   ;;  %s2463_s2 = inlined_call_operand.vmem [shape: f32[1,64], index: 2, kind: input, shape index: {}]   ;;  %s2464_s3 = inlined_call_operand.vmem [shape: bf16[64,128], index: 3, kind: input, shape index: {}]   ;;  %s2465_s4 = inlined_call_operand.vmem [shape: f32[1,128], index: 4, kind: input, shape index: {}]   ;;  %s2466_s5 = inlined_call_operand.vmem [shape: bf16[128,64], index: 5, kind: input, shape index: {}]   ;;  %s2467_s6 = inlined_call_operand.vmem [shape: f32[1,64], index: 6, kind: input, shape index: {}]   ;;  %s2468_s7 = inlined_call_operand.vmem [shape: f32[256,64], index: 7, kind: output, shape index: {}, may-alias: {0,7}]  }
   0x1 LB: > { %s1403_s25 = sadd.s32 4294967295, %s1663_s24   ;;  %p1407_p0 = scmp.ge.s32.totalorder %s1663_s24, 1  ;;  %s1663_s24 = sphi %s1706_s24, %s17_s24  }
   0x2   : > { %p238_p1 = scmp.lt.s32.totalorder %s1663_s24, 3 }
   0x4   : > { %p239_p2 = pnand %p1407_p0, %p238_p1 }
   0x6   : > { %242 = sbr.rel (%p239_p2) target bundleno = 906 (0x38a), region = 48 }
   0xd   : > { %s1408_s26 = sshll.u32 %s1403_s25, 4  ;;  %vm301_vm0 = vcmask 523264  }
   0xe   : > { %p271_p3 = scmp.lt.s32.totalorder %s1408_s26, 31 }
  0x10   : > { %s2506_s26 = smov (!%p271_p3, %s1408_s26), 31 }
  0x11   : > { %s1409_s27 = sshll.u32 %s2506_s26, 3 }
  0x12   : > { %s1722_s30 = scalar_lea.vmem %s2461_s0, %s1409_s27  ;;  %s2408_s23 = scalar_lea.vmem %s2468_s7, %s1409_s27 }
  0x13   : > { %v283_v0 = vld [vmem:[%s1722_s30] sm:$0xff]  ;;  %v285_v1 = vld [vmem:[%s1722_s30 + $0x10] sm:$0xff]  ;;  %v1727_v2 = vld [vmem:[%s1722_s30 + $0x8] sm:$0xff] }
  0x14   : > { %v302_v3 = vsel %vm301_vm0, %v283_v0, 0.0  ;;  %v308_v4 = vsel %vm301_vm0, %v285_v1, 0.0  ;;  %v1732_v5 = vld [vmem:[%s1722_s30 + $0x18] sm:$0xff]  ;;  %v305_v6 = vsel %vm301_vm0, %v1727_v2, 0.0  ;;  %v1739_v8 = vld [vmem:[%s1722_s30 + $0x20] sm:$0xff]  ;;  %v1742_v9 = vld [vmem:[%s1722_s30 + $0x28] sm:$0xff] }
  0x15   : > { %303 = vadd.xlane.f32.xlu0 %v302_v3  ;;  %309 = vadd.xlane.f32.xlu1 %v308_v4  ;;  %v311_v7 = vsel %vm301_vm0, %v1732_v5, 0.0  ;;  %2482 = vst [vmem:[#allocation2_spill] sm:$0xff] %v1739_v8  ;;  %2483 = vst [vmem:[#allocation3_spill] sm:$0xff] %v1742_v9  ;;  %v314_v10 = vsel %vm301_vm0, %v1739_v8, 0.0  ;;  %v317_v11 = vsel %vm301_vm0, %v1742_v9, 0.0  ;;  %v1749_v12 = vld [vmem:[%s1722_s30 + $0x30] sm:$0xff] }
  0x16   : > { %v1752_v13 = vld [vmem:[%s1722_s30 + $0x38] sm:$0xff]  ;;  %v320_v14 = vsel %vm301_vm0, %v1749_v12, 0.0  ;;  %v1759_v16 = vld [vmem:[%s1722_s30 + $0x40] sm:$0xff]  ;;  %v1762_v17 = vld [vmem:[%s1722_s30 + $0x48] sm:$0xff] }
  0x17   : > { %2484 = vst [vmem:[#allocation4_spill] sm:$0xff] %v1752_v13  ;;  %v323_v15 = vsel %vm301_vm0, %v1752_v13, 0.0  ;;  %2485 = vst [vmem:[#allocation5_spill] sm:$0xff] %v1759_v16  ;;  %v326_v18 = vsel %vm301_vm0, %v1759_v16, 0.0  ;;  %v329_v19 = vsel %vm301_vm0, %v1762_v17, 0.0  ;;  %v1769_v20 = vld [vmem:[%s1722_s30 + $0x50] sm:$0xff] }
  0x18   : > { %2486 = vst [vmem:[#allocation6_spill] sm:$0xff] %v1762_v17  ;;  %2487 = vst [vmem:[#allocation7_spill] sm:$0xff] %v1769_v20  ;;  %v1772_v21 = vld [vmem:[%s1722_s30 + $0x58] sm:$0xff]  ;;  %v332_v22 = vsel %vm301_vm0, %v1769_v20, 0.0  ;;  %v1779_v24 = vld [vmem:[%s1722_s30 + $0x60] sm:$0xff] }
  0x19   : > { %306 = vadd.xlane.f32.xlu0 %v305_v6  ;;  %312 = vadd.xlane.f32.xlu1 %v311_v7  ;;  %2488 = vst [vmem:[#allocation8_spill] sm:$0xff] %v1772_v21  ;;  %v335_v23 = vsel %vm301_vm0, %v1772_v21, 0.0  ;;  %2489 = vst [vmem:[#allocation9_spill] sm:$0xff] %v1779_v24  ;;  %v1782_v25 = vld [vmem:[%s1722_s30 + $0x68] sm:$0xff]  ;;  %v338_v26 = vsel %vm301_vm0, %v1779_v24, 0.0  ;;  %v1789_v28 = vld [vmem:[%s1722_s30 + $0x70] sm:$0xff] }
  0x1a   : > { %2490 = vst [vmem:[#allocation10_spill] sm:$0xff] %v1782_v25  ;;  %v341_v27 = vsel %vm301_vm0, %v1782_v25, 0.0  ;;  %2491 = vst [vmem:[#allocation11_spill] sm:$0xff] %v1789_v28  ;;  %v1792_v29 = vld [vmem:[%s1722_s30 + $0x78] sm:$0xff]  ;;  %v344_v30 = vsel %vm301_vm0, %v1789_v28, 0.0 }
  0x1b   : > { %2492 = vst [vmem:[#allocation12_spill] sm:$0xff] %v1792_v29  ;;  %v347_v31 = vsel %vm301_vm0, %v1792_v29, 0.0 }
  0x1d   : > { %315 = vadd.xlane.f32.xlu0 %v314_v10  ;;  %318 = vadd.xlane.f32.xlu1 %v317_v11 }
  0x21   : > { %321 = vadd.xlane.f32.xlu0 %v320_v14  ;;  %324 = vadd.xlane.f32.xlu1 %v323_v15 }
  0x25   : > { %327 = vadd.xlane.f32.xlu0 %v326_v18  ;;  %330 = vadd.xlane.f32.xlu1 %v329_v19 }
  0x29   : > { %333 = vadd.xlane.f32.xlu0 %v332_v22  ;;  %336 = vadd.xlane.f32.xlu1 %v335_v23 }
  0x2d   : > { %339 = vadd.xlane.f32.xlu0 %v338_v26  ;;  %342 = vadd.xlane.f32.xlu1 %v341_v27 }
  0x31   : > { %345 = vadd.xlane.f32.xlu0 %v344_v30  ;;  %348 = vadd.xlane.f32.xlu1 %v347_v31 }
  0xa2   : > { %v304_v32 = vpop.xlane.xlu0 %303  ;;  %v310_v33 = vpop.xlane.xlu1 %309 }
  0xa3   : > { %v351_v34 = vmul.f32 0.015625, %v304_v32  ;;  %v353_v35 = vmul.f32 0.015625, %v310_v33 }
  0xa5   : > { %v1798_v36 = vsub.f32 %v283_v0, %v351_v34  ;;  %v1800_v37 = vsub.f32 %v285_v1, %v353_v35 }
  0xa6   : > { %v307_v38 = vpop.xlane.xlu0 %306  ;;  %v313_v39 = vpop.xlane.xlu1 %312 }
  0xa7   : > { %v352_v40 = vmul.f32 0.015625, %v307_v38  ;;  %v354_v41 = vmul.f32 0.015625, %v313_v39  ;;  %v383_v42 = vmul.f32 %v1798_v36, %v1798_v36  ;;  %v385_v43 = vmul.f32 %v1800_v37, %v1800_v37 }
  0xa9   : > { %v1807_v44 = vsub.f32 %v1727_v2, %v352_v40  ;;  %v1810_v45 = vsub.f32 %v1732_v5, %v354_v41  ;;  %v399_v46 = vsel %vm301_vm0, %v383_v42, 0.0  ;;  %v405_v49 = vsel %vm301_vm0, %v385_v43, 0.0 }
  0xaa   : > { %400 = vadd.xlane.f32.xlu0 %v399_v46  ;;  %v316_v47 = vpop.xlane.xlu0 %315  ;;  %v319_v48 = vpop.xlane.xlu1 %318 }
  0xab   : > { %v355_v50 = vmul.f32 0.015625, %v316_v47  ;;  %v356_v51 = vmul.f32 0.015625, %v319_v48  ;;  %v384_v52 = vmul.f32 %v1807_v44, %v1807_v44  ;;  %v386_v53 = vmul.f32 %v1810_v45, %v1810_v45 }
  0xad   : > { %v1819_v54 = vsub.f32 %v1739_v8, %v355_v50  ;;  %v1822_v55 = vsub.f32 %v1742_v9, %v356_v51  ;;  %v402_v56 = vsel %vm301_vm0, %v384_v52, 0.0  ;;  %v408_v59 = vsel %vm301_vm0, %v386_v53, 0.0 }
  0xae   : > { %406 = vadd.xlane.f32.xlu0 %v405_v49  ;;  %403 = vadd.xlane.f32.xlu1 %v402_v56  ;;  %v322_v57 = vpop.xlane.xlu0 %321  ;;  %v325_v58 = vpop.xlane.xlu1 %324 }
  0xaf   : > { %v357_v60 = vmul.f32 0.015625, %v322_v57  ;;  %v358_v61 = vmul.f32 0.015625, %v325_v58  ;;  %v387_v62 = vmul.f32 %v1819_v54, %v1819_v54  ;;  %v388_v63 = vmul.f32 %v1822_v55, %v1822_v55 }
  0xb1   : > { %v1831_v0 = vsub.f32 %v1749_v12, %v357_v60  ;;  %v1834_v1 = vsub.f32 %v1752_v13, %v358_v61  ;;  %v411_v3 = vsel %vm301_vm0, %v387_v62, 0.0  ;;  %v414_v7 = vsel %vm301_vm0, %v388_v63, 0.0 }
  0xb2   : > { %409 = vadd.xlane.f32.xlu1 %v408_v59  ;;  %412 = vadd.xlane.f32.xlu0 %v411_v3  ;;  %v328_v4 = vpop.xlane.xlu0 %327  ;;  %v331_v6 = vpop.xlane.xlu1 %330 }
  0xb3   : > { %v359_v10 = vmul.f32 0.015625, %v328_v4  ;;  %v360_v11 = vmul.f32 0.015625, %v331_v6  ;;  %v389_v14 = vmul.f32 %v1831_v0, %v1831_v0  ;;  %v390_v15 = vmul.f32 %v1834_v1, %v1834_v1 }
  0xb5   : > { %v1843_v18 = vsub.f32 %v1759_v16, %v359_v10  ;;  %v1846_v19 = vsub.f32 %v1762_v17, %v360_v11  ;;  %v417_v22 = vsel %vm301_vm0, %v389_v14, 0.0  ;;  %v420_v27 = vsel %vm301_vm0, %v390_v15, 0.0  ;;  %v1548_v11 = vld [vmem:[%s2464_s3 + $0x8] sm:$0xff]   ;;  %v1549_v14 = vld [vmem:[%s2464_s3 + $0x10] sm:$0xff]   ;;  %v1550_v15 = vld [vmem:[%s2464_s3 + $0x18] sm:$0xff]  }
  0xb6   : > { %415 = vadd.xlane.f32.xlu1 %v414_v7  ;;  %418 = vadd.xlane.f32.xlu0 %v417_v22  ;;  %v334_v23 = vpop.xlane.xlu0 %333  ;;  %v337_v26 = vpop.xlane.xlu1 %336  ;;  %v1547_v7 = vld [vmem:[%s2464_s3] sm:$0xff]  }
  0xb7   : > { %v361_v30 = vmul.f32 0.015625, %v334_v23  ;;  %v362_v31 = vmul.f32 0.015625, %v337_v26  ;;  %v391_v32 = vmul.f32 %v1843_v18, %v1843_v18  ;;  %v392_v33 = vmul.f32 %v1846_v19, %v1846_v19  ;;  %1466 = vmatprep.subr.bf16.mxu0 %v1547_v7 }
  0xb8   : > { %1467 = vmatpush3.bf16.msra.mxu0 %v1547_v7 }
  0xb9   : > { %v1855_v34 = vsub.f32 %v1769_v20, %v361_v30  ;;  %v1858_v35 = vsub.f32 %v1772_v21, %v362_v31  ;;  %v423_v38 = vsel %vm301_vm0, %v391_v32, 0.0  ;;  %v426_v41 = vsel %vm301_vm0, %v392_v33, 0.0  ;;  %1468 = vmatprep.subr.bf16.mxu0 %v1548_v11 }
  0xba   : > { %421 = vadd.xlane.f32.xlu1 %v420_v27  ;;  %424 = vadd.xlane.f32.xlu0 %v423_v38  ;;  %v340_v39 = vpop.xlane.xlu0 %339  ;;  %v343_v40 = vpop.xlane.xlu1 %342 }
  0xbb   : > { %v363_v42 = vmul.f32 0.015625, %v340_v39  ;;  %v364_v43 = vmul.f32 0.015625, %v343_v40  ;;  %v393_v46 = vmul.f32 %v1855_v34, %v1855_v34  ;;  %v394_v47 = vmul.f32 %v1858_v35, %v1858_v35 }
  0xbc   : > { %1469 = vmatpush3.bf16.msra.mxu0 %v1548_v11 }
  0xbd   : > { %v1867_v48 = vsub.f32 %v1779_v24, %v363_v42  ;;  %v1870_v49 = vsub.f32 %v1782_v25, %v364_v43  ;;  %v429_v50 = vsel %vm301_vm0, %v393_v46, 0.0  ;;  %v432_v53 = vsel %vm301_vm0, %v394_v47, 0.0  ;;  %1470 = vmatprep.subr.bf16.mxu0 %v1549_v14 }
  0xbe   : > { %427 = vadd.xlane.f32.xlu1 %v426_v41  ;;  %430 = vadd.xlane.f32.xlu0 %v429_v50  ;;  %v346_v51 = vpop.xlane.xlu0 %345  ;;  %v349_v52 = vpop.xlane.xlu1 %348 }
  0xbf   : > { %v365_v56 = vmul.f32 0.015625, %v346_v51  ;;  %v366_v57 = vmul.f32 0.015625, %v349_v52  ;;  %v395_v58 = vmul.f32 %v1867_v48, %v1867_v48  ;;  %v396_v59 = vmul.f32 %v1870_v49, %v1870_v49 }
  0xc0   : > { %1471 = vmatpush3.bf16.msra.mxu0 %v1549_v14 }
  0xc1   : > { %v1879_v60 = vsub.f32 %v1789_v28, %v365_v56  ;;  %v1882_v61 = vsub.f32 %v1792_v29, %v366_v57  ;;  %v435_v62 = vsel %vm301_vm0, %v395_v58, 0.0  ;;  %v438_v63 = vsel %vm301_vm0, %v396_v59, 0.0  ;;  %1472 = vmatprep.subr.bf16.mxu0 %v1550_v15 }
  0xc2   : > { %433 = vadd.xlane.f32.xlu1 %v432_v53  ;;  %436 = vadd.xlane.f32.xlu0 %v435_v62 }
  0xc3   : > { %v397_v3 = vmul.f32 %v1879_v60, %v1879_v60  ;;  %v398_v4 = vmul.f32 %v1882_v61, %v1882_v61 }
  0xc4   : > { %1473 = vmatpush3.bf16.msra.mxu0 %v1550_v15 }
  0xc5   : > { %v441_v6 = vsel %vm301_vm0, %v397_v3, 0.0  ;;  %v444_v10 = vsel %vm301_vm0, %v398_v4, 0.0  ;;  %v1908_v4 = vld [vmem:[%s2462_s1] ss:$0 sm:$0xff] }
  0xc6   : > { %439 = vadd.xlane.f32.xlu1 %v438_v63  ;;  %442 = vadd.xlane.f32.xlu0 %v441_v6 }
  0xca   : > { %445 = vadd.xlane.f32.xlu1 %v444_v10 }
 0x137   : > { %v401_v22 = vpop.xlane.xlu0 %400 }
 0x138   : > { %v447_v23 = vmul.f32 0.015625, %v401_v22 }
 0x13a   : > { %v463_v26 = vadd.f32 1e-05, %v447_v23 }
 0x13b   : > { %v404_v27 = vpop.xlane.xlu1 %403  ;;  %v407_v30 = vpop.xlane.xlu0 %406 }
 0x13c   : > { %1559 = vrsqrt.f32 %v463_v26  ;;  %v448_v31 = vmul.f32 0.015625, %v404_v27  ;;  %v449_v32 = vmul.f32 0.015625, %v407_v30  ;;  %v1916_v30 = vld [vmem:[%s2463_s2] ss:$0 sm:$0xff] }
 0x13e   : > { %v464_v33 = vadd.f32 1e-05, %v448_v31  ;;  %v465_v38 = vadd.f32 1e-05, %v449_v32 }
 0x13f   : > { %v410_v39 = vpop.xlane.xlu1 %409  ;;  %v413_v40 = vpop.xlane.xlu0 %412 }
 0x140   : > { %1561 = vrsqrt.f32 %v464_v33  ;;  %v450_v41 = vmul.f32 0.015625, %v410_v39  ;;  %v451_v42 = vmul.f32 0.015625, %v413_v40 }
 0x141   : > { %1563 = vrsqrt.f32 %v465_v38 }
 0x142   : > { %v466_v43 = vadd.f32 1e-05, %v450_v41  ;;  %v467_v46 = vadd.f32 1e-05, %v451_v42 }
 0x143   : > { %v416_v47 = vpop.xlane.xlu1 %415  ;;  %v419_v50 = vpop.xlane.xlu0 %418 }
 0x144   : > { %1565 = vrsqrt.f32 %v466_v43  ;;  %v452_v51 = vmul.f32 0.015625, %v416_v47  ;;  %v453_v52 = vmul.f32 0.015625, %v419_v50 }
 0x145   : > { %1567 = vrsqrt.f32 %v467_v46 }
 0x146   : > { %v1560_v53 = vpop.eup %1559  ;;  %v468_v56 = vadd.f32 1e-05, %v452_v51  ;;  %v469_v57 = vadd.f32 1e-05, %v453_v52 }
 0x147   : > { %v422_v58 = vpop.xlane.xlu1 %421  ;;  %v425_v59 = vpop.xlane.xlu0 %424  ;;  %v495_v62 = vmul.f32 %v1560_v53, %v1798_v36 }
 0x148   : > { %1569 = vrsqrt.f32 %v468_v56  ;;  %v454_v63 = vmul.f32 0.015625, %v422_v58  ;;  %v455_v3 = vmul.f32 0.015625, %v425_v59 }
 0x149   : > { %1571 = vrsqrt.f32 %v469_v57  ;;  %v517_v23 = vmul.f32 %v1908_v4, %v495_v62 }
 0x14a   : > { %v1562_v6 = vpop.eup %1561  ;;  %v470_v7 = vadd.f32 1e-05, %v454_v63  ;;  %v471_v10 = vadd.f32 1e-05, %v455_v3 }
 0x14b   : > { %v1564_v11 = vpop.eup %1563  ;;  %v428_v14 = vpop.xlane.xlu1 %427  ;;  %v496_v22 = vmul.f32 %v1562_v6, %v1807_v44 }
 0x14c   : > { %v431_v15 = vpop.xlane.xlu0 %430  ;;  %v497_v36 = vmul.f32 %v1564_v11, %v1800_v37  ;;  %1573 = vrsqrt.f32 %v470_v7  ;;  %v456_v26 = vmul.f32 0.015625, %v428_v14  ;;  %v539_v37 = vadd.f32 %v1916_v30, %v517_v23 }
 0x14d   : > { %v457_v27 = vmul.f32 0.015625, %v431_v15  ;;  %1575 = vrsqrt.f32 %v471_v10  ;;  %v518_v31 = vmul.f32 %v1908_v4, %v496_v22 }
 0x14e   : > { %v1566_v32 = vpop.eup %1565  ;;  %v472_v33 = vadd.f32 1e-05, %v456_v26  ;;  %v519_v43 = vmul.f32 %v1908_v4, %v497_v36 }
 0x14f   : > { %v473_v38 = vadd.f32 1e-05, %v457_v27  ;;  %v1568_v39 = vpop.eup %1567  ;;  %v498_v44 = vmul.f32 %v1566_v32, %v1810_v45  ;;  %v434_v40 = vpop.xlane.xlu1 %433  ;;  %v540_v42 = vadd.f32 %v1916_v30, %v518_v31 }
 0x150   : > { %v437_v41 = vpop.xlane.xlu0 %436  ;;  %v499_v46 = vmul.f32 %v1568_v39, %v1819_v54  ;;  %1577 = vrsqrt.f32 %v472_v33  ;;  %v458_v47 = vmul.f32 0.015625, %v434_v40  ;;  %v541_v63 = vadd.f32 %v1916_v30, %v519_v43 }
 0x151   : > { %v459_v50 = vmul.f32 0.015625, %v437_v41  ;;  %1579 = vrsqrt.f32 %v473_v38  ;;  %v555_v51 = vpack.c.bf16 %v540_v42, %v539_v37  ;;  %v520_v52 = vmul.f32 %v1908_v4, %v498_v44 }
 0x152   : > { %v1570_v53 = vpop.eup %1569  ;;  %v474_v56 = vadd.f32 1e-05, %v458_v47  ;;  %v521_v3 = vmul.f32 %v1908_v4, %v499_v46 }
 0x153   : > { %v475_v45 = vadd.f32 1e-05, %v459_v50  ;;  %v1572_v57 = vpop.eup %1571  ;;  %v500_v58 = vmul.f32 %v1570_v53, %v1822_v55  ;;  %v440_v59 = vpop.xlane.xlu1 %439  ;;  %1474 = vmatprep.mubr.msk.bf16.mxu0 %vm301_vm0, %v555_v51  ;;  %v542_v54 = vadd.f32 %v1916_v30, %v520_v52 }
 0x154   : > { %v443_v62 = vpop.xlane.xlu0 %442  ;;  %v501_v6 = vmul.f32 %v1572_v57, %v1831_v0  ;;  %1581 = vrsqrt.f32 %v474_v56  ;;  %v460_v7 = vmul.f32 0.015625, %v440_v59  ;;  %v543_v27 = vadd.f32 %v1916_v30, %v521_v3 }
 0x155   : > { %v461_v10 = vmul.f32 0.015625, %v443_v62  ;;  %1583 = vrsqrt.f32 %v475_v45  ;;  %v556_v11 = vpack.c.bf16 %v542_v54, %v541_v63  ;;  %v522_v14 = vmul.f32 %v1908_v4, %v500_v58 }
 0x156   : > { %v1574_v55 = vpop.eup %1573  ;;  %v476_v15 = vadd.f32 1e-05, %v460_v7  ;;  %v523_v31 = vmul.f32 %v1908_v4, %v501_v6 }
 0x157   : > { %v477_v22 = vadd.f32 1e-05, %v461_v10  ;;  %v1576_v23 = vpop.eup %1575  ;;  %v502_v36 = vmul.f32 %v1574_v55, %v1834_v1  ;;  %v446_v26 = vpop.xlane.xlu1 %445  ;;  %1475 = vmatmul.mubr.msk.bf16.vlgmr.msra.gmra.mrb[0].mxu0 %vm301_vm0, %v556_v11  ;;  %v544_v0 = vadd.f32 %v1916_v30, %v522_v14 }
 0x158   : > { %v503_v32 = vmul.f32 %v1576_v23, %v1843_v18  ;;  %1585 = vrsqrt.f32 %v476_v15  ;;  %v462_v33 = vmul.f32 0.015625, %v446_v26  ;;  %v545_v37 = vadd.f32 %v1916_v30, %v523_v31  ;;  %v1555_v26 = vld [vmem:[%s2466_s5 + $0x20] sm:$0xff]   ;;  %v1558_v31 = vld [vmem:[%s2466_s5 + $0x38] sm:$0xff]  }
 0x159   : > { %1587 = vrsqrt.f32 %v477_v22  ;;  %v557_v38 = vpack.c.bf16 %v544_v0, %v543_v27  ;;  %v524_v39 = vmul.f32 %v1908_v4, %v502_v36  ;;  %v1554_v36 = vld [vmem:[%s2466_s5 + $0x18] sm:$0xff]   ;;  %v1556_v27 = vld [vmem:[%s2466_s5 + $0x28] sm:$0xff]   ;;  %v1557_v0 = vld [vmem:[%s2466_s5 + $0x30] sm:$0xff]  }
 0x15a   : > { %v1578_v44 = vpop.eup %1577  ;;  %v478_v40 = vadd.f32 1e-05, %v462_v33  ;;  %v525_v43 = vmul.f32 %v1908_v4, %v503_v32  ;;  %v1997_v32 = vld [vmem:[%s2465_s4] ss:$0 sm:$0xff] }
 0x15b   : > { %v1580_v1 = vpop.eup %1579  ;;  %v504_v41 = vmul.f32 %v1578_v44, %v1846_v19  ;;  %1478 = vmatprep.mubr.msk.bf16.mxu0 %vm301_vm0, %v557_v38  ;;  %v546_v42 = vadd.f32 %v1916_v30, %v524_v39 }
 0x15c   : > { %v505_v18 = vmul.f32 %v1580_v1, %v1855_v34  ;;  %1589 = vrsqrt.f32 %v478_v40  ;;  %v547_v19 = vadd.f32 %v1916_v30, %v525_v43 }
 0x15d   : > { %v558_v46 = vpack.c.bf16 %v546_v42, %v545_v37  ;;  %v526_v47 = vmul.f32 %v1908_v4, %v504_v41 }
 0x15e   : > { %v1582_v50 = vpop.eup %1581  ;;  %v527_v56 = vmul.f32 %v1908_v4, %v505_v18 }
 0x15f   : > { %v1584_v51 = vpop.eup %1583  ;;  %v506_v52 = vmul.f32 %v1582_v50, %v1858_v35  ;;  %1479 = vmatmul.mubr.msk.bf16.gmra.mrb[4].mxu0 %vm301_vm0, %v558_v46  ;;  %v548_v53 = vadd.f32 %v1916_v30, %v526_v47 }
 0x160   : > { %v507_v45 = vmul.f32 %v1584_v51, %v1867_v48  ;;  %v549_v35 = vadd.f32 %v1916_v30, %v527_v56 }
 0x161   : > { %v559_v57 = vpack.c.bf16 %v548_v53, %v547_v19  ;;  %v528_v34 = vmul.f32 %v1908_v4, %v506_v52 }
 0x162   : > { %v1586_v58 = vpop.eup %1585  ;;  %v529_v54 = vmul.f32 %v1908_v4, %v507_v45 }
 0x163   : > { %v1588_v59 = vpop.eup %1587  ;;  %v508_v62 = vmul.f32 %v1586_v58, %v1870_v49  ;;  %1482 = vmatprep.mubr.msk.bf16.mxu0 %vm301_vm0, %v559_v57  ;;  %v550_v63 = vadd.f32 %v1916_v30, %v528_v34 }
 0x164   : > { %v509_v3 = vmul.f32 %v1588_v59, %v1879_v60  ;;  %v551_v49 = vadd.f32 %v1916_v30, %v529_v54 }
 0x165   : > { %v560_v6 = vpack.c.bf16 %v550_v63, %v549_v35  ;;  %v530_v48 = vmul.f32 %v1908_v4, %v508_v62 }
 0x166   : > { %v1590_v7 = vpop.eup %1589  ;;  %v531_v14 = vmul.f32 %v1908_v4, %v509_v3 }
 0x167   : > { %v510_v10 = vmul.f32 %v1590_v7, %v1882_v61  ;;  %1483 = vmatmul.mubr.msk.bf16.gmra.mrb[8].mxu0 %vm301_vm0, %v560_v6  ;;  %v552_v11 = vadd.f32 %v1916_v30, %v530_v48  ;;  %v1551_v61 = vld [vmem:[%s2466_s5] sm:$0xff]  }
 0x168   : > { %v553_v60 = vadd.f32 %v1916_v30, %v531_v14  ;;  %1490 = vmatprep.subr.bf16.mxu0 %v1551_v61  ;;  %1522 = vmatprep.subr.bf16.mxu1 %v1551_v61 }
 0x169   : > { %v561_v55 = vpack.c.bf16 %v552_v11, %v551_v49  ;;  %v532_v15 = vmul.f32 %v1908_v4, %v510_v10  ;;  %1491 = vmatpush3.bf16.msra.mxu0 %v1551_v61  ;;  %1530 = vmatpush3.bf16.msra.mxu1 %v1551_v61  ;;  %v1552_v4 = vld [vmem:[%s2466_s5 + $0x8] sm:$0xff]  }
 0x16a   : > { %1492 = vmatprep.subr.bf16.mxu0 %v1552_v4  ;;  %1523 = vmatprep.subr.bf16.mxu1 %v1552_v4 }
 0x16b   : > { %1486 = vmatprep.mubr.msk.bf16.mxu0 %vm301_vm0, %v561_v55  ;;  %v554_v22 = vadd.f32 %v1916_v30, %v532_v15  ;;  %v1553_v30 = vld [vmem:[%s2466_s5 + $0x10] sm:$0xff]  }
 0x16d   : > { %v562_v23 = vpack.c.bf16 %v554_v22, %v553_v60  ;;  %1493 = vmatpush3.bf16.msra.mxu0 %v1552_v4  ;;  %1531 = vmatpush3.bf16.msra.mxu1 %v1552_v4 }
 0x16e   : > { %1494 = vmatprep.subr.bf16.mxu0 %v1553_v30  ;;  %1524 = vmatprep.subr.bf16.mxu1 %v1553_v30 }
 0x16f   : > { %1487 = vmatmul.mubr.msk.bf16.gmra.mrb[12].mxu0 %vm301_vm0, %v562_v23 }
 0x171   : > { %1495 = vmatpush3.bf16.msra.mxu0 %v1553_v30  ;;  %1532 = vmatpush3.bf16.msra.mxu1 %v1553_v30 }
 0x172   : > { %1496 = vmatprep.subr.bf16.mxu0 %v1554_v36  ;;  %1525 = vmatprep.subr.bf16.mxu1 %v1554_v36 }
 0x175   : > { %1497 = vmatpush3.bf16.msra.mxu0 %v1554_v36  ;;  %1533 = vmatpush3.bf16.msra.mxu1 %v1554_v36 }
 0x176   : > { %1498 = vmatprep.subr.bf16.mxu0 %v1555_v26  ;;  %1526 = vmatprep.subr.bf16.mxu1 %v1555_v26 }
 0x179   : > { %1499 = vmatpush3.bf16.msra.mxu0 %v1555_v26  ;;  %1534 = vmatpush3.bf16.msra.mxu1 %v1555_v26 }
 0x17a   : > { %1500 = vmatprep.subr.bf16.mxu0 %v1556_v27  ;;  %1527 = vmatprep.subr.bf16.mxu1 %v1556_v27 }
 0x17d   : > { %1501 = vmatpush3.bf16.msra.mxu0 %v1556_v27  ;;  %1535 = vmatpush3.bf16.msra.mxu1 %v1556_v27 }
 0x17e   : > { %1502 = vmatprep.subr.bf16.mxu0 %v1557_v0  ;;  %1528 = vmatprep.subr.bf16.mxu1 %v1557_v0 }
 0x181   : > { %1503 = vmatpush3.bf16.msra.mxu0 %v1557_v0  ;;  %1536 = vmatpush3.bf16.msra.mxu1 %v1557_v0 }
 0x182   : > { %1504 = vmatprep.subr.bf16.mxu0 %v1558_v31  ;;  %1529 = vmatprep.subr.bf16.mxu1 %v1558_v31 }
 0x185   : > { %1505 = vmatpush3.bf16.msra.mxu0 %v1558_v31  ;;  %1537 = vmatpush3.bf16.msra.mxu1 %v1558_v31 }
 0x22a   : > { %v1476_v33 = vpop.f32.mrb[0].mxu0 }
 0x22b   : > { %v669_v38 = vadd.f32 %v1476_v33, %v1997_v32  ;;  %v660_v39 = vpop.f32.mrb[1].mxu0 }
 0x22c   : > { %v661_v44 = vadd.f32 %v1997_v32, %v660_v39  ;;  %v1477_v40 = vpop.f32.mrb[2].mxu0 }
 0x22d   : > { %v741_v1 = vmul.f32 0.70710677, %v669_v38  ;;  %v672_v41 = vadd.f32 %v1477_v40, %v1997_v32  ;;  %v663_v37 = vpop.f32.mrb[3].mxu0  ;;  %v2018_v14 = vmul.f32 0.5, %v669_v38  ;;  %v2469_v38 = vmov -1.0  }
 0x22e   : > { %v2002_v42 = vmul.f32 0.70710677, %v661_v44  ;;  %v664_v46 = vadd.f32 %v1997_v32, %v663_v37  ;;  %v2032_v26 = vmul.f32 0.5, %v661_v44 }
 0x22f   : > { %v789_v43 = vand.u32 2147483647, %v741_v1  ;;  %v2004_v18 = vmul.f32 0.70710677, %v672_v41  ;;  %vm757_vm1 = vcmp.ge.f32.partialorder %v741_v1, 0.0  ;;  %v2034_v0 = vmul.f32 0.5, %v672_v41 }
 0x230   : > { %v787_v47 = vand.u32 2147483647, %v2002_v42  ;;  %v2009_v56 = vmul.f32 0.70710677, %v664_v46  ;;  %v2042_v39 = vsel %vm757_vm1, 1.0, %v2469_v38  ;;  %vm755_vm2 = vcmp.ge.f32.partialorder %v2002_v42, 0.0 }
 0x231   : > { %v805_v50 = vmul.f32 0.3275911, %v789_v43  ;;  %v790_v52 = vand.u32 2147483647, %v2004_v18  ;;  %v997_v53 = vsub.f32 0.0, %v789_v43  ;;  %vm758_vm3 = vcmp.ge.f32.partialorder %v2004_v18, 0.0 }
 0x232   : > { %v803_v51 = vmul.f32 0.3275911, %v787_v47  ;;  %v1480_v45 = vpop.f32.mrb[4].mxu0  ;;  %v995_v59 = vsub.f32 0.0, %v787_v47  ;;  %v788_v62 = vand.u32 2147483647, %v2009_v56 }
 0x233   : > { %v821_v19 = vadd.f32 1.0, %v805_v50  ;;  %v806_v34 = vmul.f32 0.3275911, %v790_v52  ;;  %v676_v58 = vpop.f32.mrb[5].mxu0  ;;  %v1013_v3 = vmul.f32 %v997_v53, %v789_v43  ;;  %v998_v6 = vsub.f32 0.0, %v790_v52 }
 0x234   : > { %v819_v57 = vadd.f32 1.0, %v803_v51  ;;  %v1481_v35 = vpop.f32.mrb[6].mxu0  ;;  %v804_v48 = vmul.f32 0.3275911, %v788_v62  ;;  %v685_v7 = vadd.f32 %v1480_v45, %v1997_v32  ;;  %v1011_v10 = vmul.f32 %v995_v59, %v787_v47 }
 0x235   : > { %1591 = vrcp.f32 %v821_v19  ;;  %v822_v63 = vadd.f32 1.0, %v806_v34  ;;  %v2012_v54 = vpop.f32.mrb[7].mxu0  ;;  %v2016_v11 = vadd.f32 %v1481_v35, %v1997_v32  ;;  %v1031_v60 = vmul.f32 1.442695, %v1013_v3 }
 0x236   : > { %1593 = vrcp.f32 %v819_v57  ;;  %v820_v49 = vadd.f32 1.0, %v804_v48  ;;  %v2020_v55 = vmul.f32 0.70710677, %v685_v7  ;;  %v1014_v22 = vmul.f32 %v998_v6, %v790_v52 }
 0x237   : > { %1595 = vrcp.f32 %v822_v63  ;;  %v996_v61 = vsub.f32 0.0, %v788_v62  ;;  %v2028_v30 = vmul.f32 0.70710677, %v2016_v11  ;;  %v1027_v27 = vmul.f32 1.442695, %v1011_v10 }
 0x238   : > { %1597 = vrcp.f32 %v820_v49  ;;  %v2025_v4 = vand.u32 2147483647, %v2020_v55  ;;  %v2037_v31 = vadd.f32 %v1997_v32, %v676_v58  ;;  %v1033_v41 = vmul.f32 1.442695, %v1014_v22 }
 0x239   : > { %v2047_v1 = vand.u32 2147483647, %v2028_v30  ;;  %1599 = vpow2.f32 %v1031_v60  ;;  %vm756_vm4 = vcmp.ge.f32.partialorder %v2009_v56, 0.0  ;;  %v1012_v47 = vmul.f32 %v996_v61, %v788_v62 }
 0x23a   : > { %v1484_v15 = vpop.f32.mrb[8].mxu0  ;;  %v809_v40 = vmul.f32 0.3275911, %v2025_v4  ;;  %1601 = vpow2.f32 %v1027_v27  ;;  %v2058_v19 = vmul.f32 0.5, %v664_v46  ;;  %v2061_v53 = vmul.f32 0.70710677, %v2037_v31 }
 0x23b   : > { %v2022_v23 = vpop.f32.mrb[9].mxu0  ;;  %v810_v51 = vmul.f32 0.3275911, %v2047_v1  ;;  %v2066_v57 = vsel %vm755_vm2, 1.0, %v2469_v38  ;;  %v2075_v46 = vsel %vm758_vm3, 1.0, %v2469_v38  ;;  %v2080_v35 = vsel %vm756_vm4, 1.0, %v2469_v38 }
 0x23c   : > { %v2030_v36 = vpop.f32.mrb[10].mxu0  ;;  %v825_v50 = vadd.f32 1.0, %v809_v40  ;;  %v1029_v6 = vmul.f32 1.442695, %v1012_v47  ;;  %v2086_v48 = vmul.f32 0.5, %v685_v7  ;;  %vm761_vm5 = vcmp.ge.f32.partialorder %v2020_v55, 0.0 }
 0x23d   : > { %v2039_v33 = vpop.f32.mrb[11].mxu0  ;;  %v826_v34 = vadd.f32 1.0, %v810_v51  ;;  %v791_v56 = vand.u32 2147483647, %v2061_v53  ;;  %v2096_v60 = vadd.f32 %v1484_v15, %v1997_v32  ;;  %v2107_v47 = vadd.f32 %v1997_v32, %v2012_v54 }
 0x23e   : > { %1603 = vrcp.f32 %v825_v50  ;;  %vm762_vm6 = vcmp.ge.f32.partialorder %v2028_v30, 0.0  ;;  %vm759_vm11 = vcmp.ge.f32.partialorder %v2061_v53, 0.0 }
 0x23f   : > { %v2049_v44 = vpop.eup %1591  ;;  %1605 = vpow2.f32 %v1033_v41  ;;  %v1001_v41 = vsub.f32 0.0, %v2025_v4 }
 0x240   : > { %v2053_v37 = vpop.eup %1593  ;;  %v853_v43 = vmul.f32 1.0614054, %v2049_v44  ;;  %1607 = vrcp.f32 %v826_v34  ;;  %v2115_v34 = vsel %vm761_vm5, 1.0, %v2469_v38 }
 0x241   : > { %v851_v52 = vmul.f32 1.0614054, %v2053_v37  ;;  %v2070_v59 = vpop.eup %1595  ;;  %1609 = vpow2.f32 %v1029_v6  ;;  %v1017_v6 = vmul.f32 %v1001_v41, %v2025_v4 }
 0x242   : > { %v869_v45 = vadd.f32 -1.4531521, %v853_v43  ;;  %v2068_v58 = vpop.f32.mrb[12].mxu0  ;;  %v854_v3 = vmul.f32 1.0614054, %v2070_v59  ;;  %v2090_v18 = vpop.eup %1597  ;;  %v2103_v43 = vmul.f32 0.5, %v2016_v11 }
 0x243   : > { %v867_v62 = vadd.f32 -1.4531521, %v851_v52  ;;  %v2082_v42 = vpop.f32.mrb[13].mxu0  ;;  %v852_v7 = vmul.f32 1.0614054, %v2090_v18  ;;  %v1600_v52 = vpop.eup %1599 }
 0x244   : > { %v885_v63 = vmul.f32 %v2049_v44, %v869_v45  ;;  %v2088_v10 = vpop.f32.mrb[14].mxu0  ;;  %v870_v27 = vadd.f32 -1.4531521, %v854_v3  ;;  %v807_v11 = vmul.f32 0.3275911, %v791_v56 }
 0x245   : > { %v883_v49 = vmul.f32 %v2053_v37, %v867_v62  ;;  %v2098_v22 = vpop.f32.mrb[15].mxu0  ;;  %v868_v51 = vadd.f32 -1.4531521, %v852_v7  ;;  %v999_v62 = vsub.f32 0.0, %v791_v56  ;;  %v1002_v7 = vsub.f32 0.0, %v2047_v1 }
 0x246   : > { %v901_v61 = vadd.f32 1.4214138, %v885_v63  ;;  %v886_v50 = vmul.f32 %v2070_v59, %v870_v27  ;;  %v823_v4 = vadd.f32 1.0, %v807_v11  ;;  %v1039_v21 = vmul.f32 1.442695, %v1017_v6 }
 0x247   : > { %v899_v40 = vadd.f32 1.4214138, %v883_v49  ;;  %v884_v54 = vmul.f32 %v2090_v18, %v868_v51  ;;  %v2119_v49 = vmul.f32 0.70710677, %v2096_v60  ;;  %v1015_v41 = vmul.f32 %v999_v62, %v791_v56 }
 0x248   : > { %v917_v15 = vmul.f32 %v2049_v44, %v901_v61  ;;  %v902_v3 = vadd.f32 1.4214138, %v886_v50  ;;  %v1602_v61 = vpop.eup %1601  ;;  %v2148_v6 = vadd.f32 %v1997_v32, %v2022_v23  ;;  %1611 = vpow2.f32 %v1039_v21 }
 0x249   : > { %v915_v45 = vmul.f32 %v2053_v37, %v899_v40  ;;  %v2124_v40 = vmul.f32 0.70710677, %v2107_v47  ;;  %v2126_v55 = vpop.eup %1603  ;;  %v900_v50 = vadd.f32 1.4214138, %v884_v54  ;;  %v2135_v17 = vand.u32 2147483647, %v2119_v49 }
 0x24a   : > { %v933_v63 = vadd.f32 -0.28449672, %v917_v15  ;;  %v918_v15 = vmul.f32 %v2070_v59, %v902_v3  ;;  %v1606_v51 = vpop.eup %1605  ;;  %v1018_v3 = vmul.f32 %v1002_v7, %v2047_v1  ;;  %v2157_v21 = vmul.f32 0.70710677, %v2148_v6 }
 0x24b   : > { %v931_v27 = vadd.f32 -0.28449672, %v915_v45  ;;  %v857_v45 = vmul.f32 1.0614054, %v2126_v55  ;;  %v916_v28 = vmul.f32 %v2090_v18, %v900_v50  ;;  %v792_v54 = vand.u32 2147483647, %v2124_v40  ;;  %v2139_v16 = vpop.eup %1607 }
 0x24c   : > { %v949_v38 = vmul.f32 %v2049_v44, %v933_v63  ;;  %v934_v24 = vadd.f32 -0.28449672, %v918_v15  ;;  %v858_v50 = vmul.f32 1.0614054, %v2139_v16  ;;  %v1610_v1 = vpop.eup %1609  ;;  %v795_v30 = vand.u32 2147483647, %v2157_v21 }
 0x24d   : > { %v947_v25 = vmul.f32 %v2053_v37, %v931_v27  ;;  %v873_v63 = vadd.f32 -1.4531521, %v857_v45  ;;  %v932_v56 = vadd.f32 -0.28449672, %v916_v28  ;;  %vm765_vm7 = vcmp.ge.f32.partialorder %v2119_v49, 0.0 }
 0x24e   : > { %v965_v29 = vadd.f32 0.2548296, %v949_v38  ;;  %v950_v11 = vmul.f32 %v2070_v59, %v934_v24  ;;  %v813_v38 = vmul.f32 0.3275911, %v2135_v17  ;;  %v1035_v24 = vmul.f32 1.442695, %v1015_v41 }
 0x24f   : > { %v963_v62 = vadd.f32 0.2548296, %v947_v25  ;;  %v889_v15 = vmul.f32 %v2126_v55, %v873_v63  ;;  %v948_v20 = vmul.f32 %v2090_v18, %v932_v56  ;;  %v874_v28 = vadd.f32 -1.4531521, %v858_v50 }
 0x250   : > { %v981_v27 = vmul.f32 %v2049_v44, %v965_v29  ;;  %v966_v45 = vadd.f32 0.2548296, %v950_v11  ;;  %v829_v29 = vadd.f32 1.0, %v813_v38  ;;  %v1000_v56 = vsub.f32 0.0, %v792_v54 }
 0x251   : > { %v905_v44 = vadd.f32 1.4214138, %v889_v15  ;;  %v964_v63 = vadd.f32 0.2548296, %v948_v20  ;;  %v979_v13 = vmul.f32 %v2053_v37, %v963_v62  ;;  %v890_v8 = vmul.f32 %v2139_v16, %v874_v28 }
 0x252   : > { %v1061_v7 = vmul.f32 %v1600_v52, %v981_v27  ;;  %v982_v25 = vmul.f32 %v2070_v59, %v966_v45  ;;  %1613 = vrcp.f32 %v829_v29  ;;  %v1041_v52 = vmul.f32 1.442695, %v1018_v3 }
 0x253   : > { %v921_v23 = vmul.f32 %v2126_v55, %v905_v44  ;;  %1615 = vrcp.f32 %v823_v4  ;;  %v2493_v38 = vmov -1.0   ;;  %v906_v37 = vadd.f32 1.4214138, %v890_v8 }
 0x254   : > { %v1077_v9 = vsub.f32 1.0, %v1061_v7  ;;  %v1062_v11 = vmul.f32 %v1606_v51, %v982_v25  ;;  %v2162_v20 = vsel %vm762_vm6, 1.0, %v2493_v38  ;;  %v980_v62 = vmul.f32 %v2090_v18, %v964_v63 }
 0x255   : > { %v937_v41 = vadd.f32 -0.28449672, %v921_v23  ;;  %1617 = vpow2.f32 %v1035_v24  ;;  %v808_v3 = vmul.f32 0.3275911, %v792_v54  ;;  %v1059_v15 = vmul.f32 %v1602_v61, %v979_v13  ;;  %v1612_v24 = vpop.eup %1611 }
 0x256   : > { %v1093_v27 = vmul.f32 %v1077_v9, %v2042_v39  ;;  %v1078_v59 = vsub.f32 1.0, %v1062_v11  ;;  %v922_v39 = vmul.f32 %v2139_v16, %v906_v37  ;;  %1619 = vpow2.f32 %v1041_v52 }
 0x257   : > { %v953_v9 = vmul.f32 %v2126_v55, %v937_v41  ;;  %v1016_v50 = vmul.f32 %v1000_v56, %v792_v54  ;;  %v1005_v8 = vsub.f32 0.0, %v2135_v17  ;;  %v2172_v18 = vadd.f32 %v2030_v36, %v1997_v32 }
 0x258   : > { %v1109_v51 = vadd.f32 1.0, %v1093_v27  ;;  %v1094_v4 = vmul.f32 %v1078_v59, %v2075_v46  ;;  %v938_v45 = vadd.f32 -0.28449672, %v922_v39  ;;  %v1060_v61 = vmul.f32 %v1610_v1, %v980_v62 }
 0x259   : > { %v969_v7 = vadd.f32 0.2548296, %v953_v9  ;;  %v824_v29 = vadd.f32 1.0, %v808_v3  ;;  %v811_v44 = vmul.f32 0.3275911, %v795_v30  ;;  %v1075_v28 = vsub.f32 1.0, %v1059_v15 }
 0x25a   : > { %v1110_v13 = vadd.f32 1.0, %v1094_v4  ;;  %v954_v46 = vmul.f32 %v2139_v16, %v938_v45  ;;  %v2180_v63 = vmul.f32 %v1109_v51, %v2018_v14  ;;  %v2186_v1 = vmul.f32 0.70710677, %v2172_v18 }
 0x25b   : > { %v985_v25 = vmul.f32 %v2126_v55, %v969_v7  ;;  %v827_v23 = vadd.f32 1.0, %v811_v44  ;;  %v1037_v52 = vmul.f32 1.442695, %v1016_v50  ;;  %v2189_v27 = vmul.f32 0.5, %v2096_v60 }
 0x25c   : > { %v2177_v54 = vpop.eup %1613  ;;  %v2183_v36 = vmul.f32 %v1110_v13, %v2034_v0  ;;  %v1021_v11 = vmul.f32 %v1005_v8, %v2135_v17  ;;  %v1076_v14 = vsub.f32 1.0, %v1060_v61  ;;  %v1091_v37 = vmul.f32 %v1075_v28, %v2066_v57 }
 0x25d   : > { %v861_v55 = vmul.f32 1.0614054, %v2177_v54  ;;  %v1065_v41 = vmul.f32 %v1612_v24, %v985_v25  ;;  %1621 = vrcp.f32 %v827_v23  ;;  %v2195_v0 = vpop.eup %1615  ;;  %v970_v59 = vadd.f32 0.2548296, %v954_v46 }
 0x25e   : > { %v1140_v56 = vpack.c.bf16 %v2183_v36, %v2180_v63  ;;  %v2201_v60 = vsel %vm765_vm7, 1.0, %v2493_v38  ;;  %1623 = vrcp.f32 %v824_v29  ;;  %v1003_v17 = vsub.f32 0.0, %v795_v30 }
 0x25f   : > { %v877_v62 = vadd.f32 -1.4531521, %v861_v55  ;;  %v2203_v3 = vpop.eup %1617  ;;  %v798_v15 = vand.u32 2147483647, %v2186_v1  ;;  %v2208_v9 = vadd.f32 %v1997_v32, %v2039_v33  ;;  %1625 = vpow2.f32 %v1037_v52 }
 0x260   : > { %v1620_v39 = vpop.eup %1619  ;;  %v1047_v51 = vmul.f32 1.442695, %v1021_v11  ;;  %vm763_vm8 = vcmp.ge.f32.partialorder %v2157_v21, 0.0  ;;  %v1092_v49 = vmul.f32 %v1076_v14, %v2080_v35  ;;  %v1081_v4 = vsub.f32 1.0, %v1065_v41 }
 0x261   : > { %v893_v57 = vmul.f32 %v2177_v54, %v877_v62  ;;  %v814_v50 = vmul.f32 0.3275911, %v798_v15  ;;  %v2214_v7 = vmul.f32 0.70710677, %v2208_v9  ;;  %v1107_v45 = vadd.f32 1.0, %v1091_v37 }
 0x262   : > { %v986_v8 = vmul.f32 %v2139_v16, %v970_v59  ;;  %v2219_v33 = vadd.f32 %v2068_v58, %v1997_v32  ;;  %v2222_v61 = vmul.f32 0.5, %v2148_v6  ;;  %v1019_v29 = vmul.f32 %v1003_v17, %v795_v30 }
 0x263   : > { %v909_v13 = vadd.f32 1.4214138, %v893_v57  ;;  %v830_v21 = vadd.f32 1.0, %v814_v50  ;;  %v796_v35 = vand.u32 2147483647, %v2214_v7  ;;  %1627 = vpow2.f32 %v1047_v51 }
 0x264   : > { %v2227_v24 = vsel %vm763_vm8, 1.0, %v2493_v38  ;;  %v2231_v16 = vadd.f32 %v1997_v32, %v2082_v42  ;;  %v1108_v28 = vadd.f32 1.0, %v1092_v49  ;;  %v1097_v58 = vmul.f32 %v1081_v4, %v2115_v34 }
 0x265   : > { %v925_v44 = vmul.f32 %v2177_v54, %v909_v13  ;;  %1629 = vrcp.f32 %v830_v21  ;;  %v812_v6 = vmul.f32 0.3275911, %v796_v35  ;;  %v2235_v30 = vmul.f32 %v1107_v45, %v2032_v26 }
 0x266   : > { %v1066_v25 = vmul.f32 %v1620_v39, %v986_v8  ;;  %v2238_v23 = vmul.f32 0.70710677, %v2219_v33  ;;  %v1043_v55 = vmul.f32 1.442695, %v1019_v29  ;;  %v2243_v11 = vmul.f32 0.5, %v2172_v18 }
 0x267   : > { %v941_v46 = vadd.f32 -0.28449672, %v925_v44  ;;  %v2240_v52 = vpop.eup %1621  ;;  %v1006_v42 = vsub.f32 0.0, %v798_v15  ;;  %v828_v14 = vadd.f32 1.0, %v812_v6  ;;  %vm766_vm9 = vcmp.ge.f32.partialorder %v2186_v1, 0.0 }
 0x268   : > { %v859_v41 = vmul.f32 1.0614054, %v2240_v52  ;;  %v2249_v26 = vmul.f32 0.70710677, %v2231_v16  ;;  %v2251_v37 = vpop.eup %1623  ;;  %v2254_v59 = vmul.f32 %v1108_v28, %v2058_v19  ;;  %v1113_v62 = vadd.f32 1.0, %v1097_v58 }
 0x269   : > { %v957_v34 = vmul.f32 %v2177_v54, %v941_v46  ;;  %1631 = vrcp.f32 %v828_v14  ;;  %v801_v18 = vand.u32 2147483647, %v2238_v23  ;;  %v2257_v17 = vpop.eup %1625  ;;  %v1082_v39 = vsub.f32 1.0, %v1066_v25 }
 0x26a   : > { %v875_v51 = vadd.f32 -1.4531521, %v859_v41  ;;  %v2261_v1 = vadd.f32 %v2088_v10, %v1997_v32  ;;  %1633 = vpow2.f32 %v1043_v55  ;;  %v2264_v49 = vsel %vm766_vm9, 1.0, %v2493_v38 }
 0x26b   : > { %v973_v57 = vadd.f32 0.2548296, %v957_v34  ;;  %v1022_v4 = vmul.f32 %v1006_v42, %v798_v15  ;;  %v817_v19 = vmul.f32 0.3275911, %v801_v18  ;;  %v1004_v8 = vsub.f32 0.0, %v796_v35 }
 0x26c   : > { %v891_v45 = vmul.f32 %v2240_v52, %v875_v51  ;;  %v799_v13 = vand.u32 2147483647, %v2249_v26  ;;  %vm764_vm10 = vcmp.ge.f32.partialorder %v2214_v7, 0.0  ;;  %v1009_v21 = vsub.f32 0.0, %v801_v18 }
 0x26d   : > { %v989_v50 = vmul.f32 %v2177_v54, %v973_v57  ;;  %v833_v29 = vadd.f32 1.0, %v817_v19  ;;  %v2271_v10 = vmul.f32 0.70710677, %v2261_v1  ;;  %v1628_v44 = vpop.eup %1627  ;;  %v2274_v28 = vmul.f32 %v1113_v62, %v2086_v48 }
 0x26e   : > { %v1098_v15 = vmul.f32 %v1082_v39, %v2162_v20  ;;  %v907_v58 = vadd.f32 1.4214138, %v891_v45  ;;  %v815_v54 = vmul.f32 0.3275911, %v799_v13  ;;  %v1007_v46 = vsub.f32 0.0, %v799_v13 }
 0x26f   : > { %v2277_v6 = vpop.eup %1629  ;;  %v1069_v25 = vmul.f32 %v1628_v44, %v989_v50  ;;  %1635 = vrcp.f32 %v833_v29  ;;  %v802_v55 = vand.u32 2147483647, %v2271_v10  ;;  %v1020_v34 = vmul.f32 %v1004_v8, %v796_v35 }
 0x270   : > { %v923_v42 = vmul.f32 %v2240_v52, %v907_v58  ;;  %v862_v14 = vmul.f32 1.0614054, %v2277_v6  ;;  %v831_v41 = vadd.f32 1.0, %v815_v54  ;;  %v2285_v48 = vsel %vm764_vm10, 1.0, %v2493_v38 }
 0x271   : > { %v1025_v20 = vmul.f32 %v1009_v21, %v801_v18  ;;  %v818_v62 = vmul.f32 0.3275911, %v802_v55  ;;  %v2289_v39 = vadd.f32 %v1997_v32, %v2098_v22  ;;  %v1049_v19 = vmul.f32 1.442695, %v1022_v4 }
 0x272   : > { %v939_v57 = vadd.f32 -0.28449672, %v923_v42  ;;  %v878_v51 = vadd.f32 -1.4531521, %v862_v14  ;;  %1637 = vrcp.f32 %v831_v41  ;;  %v1114_v45 = vadd.f32 1.0, %v1098_v15 }
 0x273   : > { %v2291_v50 = vpop.eup %1631  ;;  %v1085_v35 = vsub.f32 1.0, %v1069_v25  ;;  %v1023_v8 = vmul.f32 %v1007_v46, %v799_v13  ;;  %v834_v29 = vadd.f32 1.0, %v818_v62  ;;  %v1045_v21 = vmul.f32 1.442695, %v1020_v34 }
 0x274   : > { %v955_v7 = vmul.f32 %v2240_v52, %v939_v57  ;;  %v894_v44 = vmul.f32 %v2277_v6, %v878_v51  ;;  %v860_v18 = vmul.f32 1.0614054, %v2291_v50  ;;  %v1634_v58 = vpop.eup %1633  ;;  %v1055_v32 = vmul.f32 1.442695, %v1025_v20 }
 0x275   : > { %v1010_v22 = vsub.f32 0.0, %v802_v55  ;;  %v2297_v54 = vmul.f32 0.70710677, %v2289_v39  ;;  %v1139_v4 = vpack.c.bf16 %v2254_v59, %v2235_v30  ;;  %1639 = vpow2.f32 %v1049_v19 }
 0x276   : > { %v971_v15 = vadd.f32 0.2548296, %v955_v7  ;;  %v910_v25 = vadd.f32 1.4214138, %v894_v44  ;;  %v876_v13 = vadd.f32 -1.4531521, %v860_v18  ;;  %v1101_v46 = vmul.f32 %v1085_v35, %v2201_v60 }
 0x277   : > { %v1051_v42 = vmul.f32 1.442695, %v1023_v8  ;;  %1641 = vrcp.f32 %v834_v29  ;;  %v800_v14 = vand.u32 2147483647, %v2297_v54  ;;  %1506 = vmatprep.mubr.bf16.mxu0 %v1139_v4  ;;  %v2312_v60 = vmul.f32 %v1114_v45, %v2103_v43 }
 0x278   : > { %v987_v34 = vmul.f32 %v2240_v52, %v971_v15  ;;  %v926_v41 = vmul.f32 %v2277_v6, %v910_v25  ;;  %v892_v20 = vmul.f32 %v2291_v50, %v876_v13  ;;  %1643 = vpow2.f32 %v1045_v21  ;;  %1507 = vmatmul.mubr.bf16.vlgmr.msra.gmra.mrb[16].mxu0 %v1140_v56 }
 0x279   : > { %v2309_v30 = vpop.eup %1635  ;;  %1645 = vpow2.f32 %v1055_v32  ;;  %v1026_v59 = vmul.f32 %v1010_v22, %v802_v55  ;;  %v816_v62 = vmul.f32 0.3275911, %v800_v14  ;;  %v1117_v35 = vadd.f32 1.0, %v1101_v46 }
 0x27a   : > { %v1067_v57 = vmul.f32 %v1634_v58, %v987_v34  ;;  %v942_v51 = vadd.f32 -0.28449672, %v926_v41  ;;  %v908_v52 = vadd.f32 1.4214138, %v892_v20  ;;  %v865_v19 = vmul.f32 1.0614054, %v2309_v30 }
 0x27b   : > { %1647 = vpow2.f32 %v1051_v42  ;;  %v832_v8 = vadd.f32 1.0, %v816_v62  ;;  %v855_v29 = vmul.f32 1.0614054, %v2195_v0  ;;  %v1008_v45 = vsub.f32 0.0, %v800_v14 }
 0x27c   : > { %v2316_v63 = vpop.eup %1637  ;;  %v958_v36 = vmul.f32 %v2277_v6, %v942_v51  ;;  %v924_v43 = vmul.f32 %v2291_v50, %v908_v52  ;;  %v881_v56 = vadd.f32 -1.4531521, %v865_v19  ;;  %v1057_v7 = vmul.f32 1.442695, %v1026_v59 }
 0x27d   : > { %v863_v55 = vmul.f32 1.0614054, %v2316_v63  ;;  %1649 = vrcp.f32 %v832_v8  ;;  %v856_v44 = vmul.f32 1.0614054, %v2251_v37  ;;  %v1083_v18 = vsub.f32 1.0, %v1067_v57 }
 0x27e   : > { %v974_v21 = vadd.f32 0.2548296, %v958_v36  ;;  %v940_v58 = vadd.f32 -0.28449672, %v924_v43  ;;  %v897_v32 = vmul.f32 %v2309_v30, %v881_v56  ;;  %v2324_v22 = vmul.f32 %v1117_v35, %v2189_v27 }
 0x27f   : > { %v879_v4 = vadd.f32 -1.4531521, %v863_v55  ;;  %v871_v15 = vadd.f32 -1.4531521, %v855_v29  ;;  %v872_v25 = vadd.f32 -1.4531521, %v856_v44  ;;  %v1640_v13 = vpop.eup %1639  ;;  %v1024_v41 = vmul.f32 %v1008_v45, %v800_v14 }
 0x280   : > { %v990_v46 = vmul.f32 %v2277_v6, %v974_v21  ;;  %v956_v42 = vmul.f32 %v2291_v50, %v940_v58  ;;  %v913_v34 = vadd.f32 1.4214138, %v897_v32  ;;  %v1142_v27 = vpack.c.bf16 %v2312_v60, %v2274_v28  ;;  %v1427_v28 = vld [vmem:[%s2467_s6] ss:$0 sm:$0xff] }
 0x281   : > { %v2328_v20 = vpop.eup %1641  ;;  %v895_v59 = vmul.f32 %v2316_v63, %v879_v4  ;;  %v887_v62 = vmul.f32 %v2195_v0, %v871_v15  ;;  %v888_v57 = vmul.f32 %v2251_v37, %v872_v25  ;;  %1651 = vpow2.f32 %v1057_v7 }
 0x282   : > { %v1644_v51 = vpop.eup %1643  ;;  %v1070_v52 = vmul.f32 %v1640_v13, %v990_v46  ;;  %v972_v19 = vadd.f32 0.2548296, %v956_v42  ;;  %v929_v6 = vmul.f32 %v2309_v30, %v913_v34  ;;  %v1099_v14 = vmul.f32 %v1083_v18, %v2227_v24 }
 0x283   : > { %v1646_v35 = vpop.eup %1645  ;;  %v911_v8 = vadd.f32 1.4214138, %v895_v59  ;;  %v866_v29 = vmul.f32 1.0614054, %v2328_v20  ;;  %v903_v36 = vadd.f32 1.4214138, %v887_v62 }
 0x284   : > { %v1086_v43 = vsub.f32 1.0, %v1070_v52  ;;  %v988_v56 = vmul.f32 %v2291_v50, %v972_v19  ;;  %v945_v45 = vadd.f32 -0.28449672, %v929_v6  ;;  %v904_v55 = vadd.f32 1.4214138, %v888_v57 }
 0x285   : > { %v1648_v44 = vpop.eup %1647  ;;  %v927_v21 = vmul.f32 %v2316_v63, %v911_v8  ;;  %v882_v58 = vadd.f32 -1.4531521, %v866_v29  ;;  %v1053_v32 = vmul.f32 1.442695, %v1024_v41  ;;  %v919_v4 = vmul.f32 %v2195_v0, %v903_v36 }
 0x286   : > { %v1102_v7 = vmul.f32 %v1086_v43, %v2264_v49  ;;  %v1068_v15 = vmul.f32 %v1644_v51, %v988_v56  ;;  %v961_v24 = vmul.f32 %v2309_v30, %v945_v45  ;;  %v920_v18 = vmul.f32 %v2251_v37, %v904_v55 }
 0x287   : > { %v2344_v25 = vpop.eup %1649  ;;  %v1115_v50 = vadd.f32 1.0, %v1099_v14  ;;  %v943_v13 = vadd.f32 -0.28449672, %v927_v21  ;;  %v898_v46 = vmul.f32 %v2328_v20, %v882_v58  ;;  %v935_v42 = vadd.f32 -0.28449672, %v919_v4 }
 0x288   : > { %v1118_v34 = vadd.f32 1.0, %v1102_v7  ;;  %v1084_v41 = vsub.f32 1.0, %v1068_v15  ;;  %v977_v59 = vadd.f32 0.2548296, %v961_v24  ;;  %v864_v62 = vmul.f32 1.0614054, %v2344_v25 }
 0x289   : > { %v959_v49 = vmul.f32 %v2316_v63, %v943_v13  ;;  %v914_v57 = vadd.f32 1.4214138, %v898_v46  ;;  %v936_v51 = vadd.f32 -0.28449672, %v920_v18  ;;  %v951_v52 = vmul.f32 %v2195_v0, %v935_v42 }
 0x28a   : > { %v2352_v19 = vmul.f32 %v1118_v34, %v2243_v11  ;;  %v1100_v6 = vmul.f32 %v1084_v41, %v2285_v48  ;;  %v993_v14 = vmul.f32 %v2309_v30, %v977_v59  ;;  %v880_v8 = vadd.f32 -1.4531521, %v864_v62 }
 0x28b   : > { %v975_v29 = vadd.f32 0.2548296, %v959_v49  ;;  %v930_v36 = vmul.f32 %v2328_v20, %v914_v57  ;;  %v952_v43 = vmul.f32 %v2251_v37, %v936_v51  ;;  %v967_v56 = vadd.f32 0.2548296, %v951_v52  ;;  %v1652_v45 = vpop.eup %1651 }
 0x28c   : > { %v732_v55 = vmul.f32 0.5, %v2208_v9  ;;  %v1116_v21 = vadd.f32 1.0, %v1100_v6  ;;  %v896_v58 = vmul.f32 %v2344_v25, %v880_v8  ;;  %v1144_v11 = vpack.c.bf16 %v2352_v19, %v2324_v22  ;;  %v1655_v19 = vld [vmem:[%s1722_s30 + $0x10] sm:$0xff] }
 0x28d   : > { %v1073_v4 = vmul.f32 %v1646_v35, %v993_v14  ;;  %v946_v48 = vadd.f32 -0.28449672, %v930_v36  ;;  %v968_v7 = vadd.f32 0.2548296, %v952_v43  ;;  %v983_v30 = vmul.f32 %v2195_v0, %v967_v56 }
 0x28e   : > { %v1131_v15 = vmul.f32 %v1115_v50, %v2222_v61  ;;  %v1132_v24 = vmul.f32 %v1116_v21, %v732_v55  ;;  %v991_v18 = vmul.f32 %v2316_v63, %v975_v29  ;;  %v912_v13 = vadd.f32 1.4214138, %v896_v58 }
 0x28f   : > { %v962_v46 = vmul.f32 %v2328_v20, %v946_v48  ;;  %1653 = vpow2.f32 %v1053_v32  ;;  %v984_v9 = vmul.f32 %v2251_v37, %v968_v7  ;;  %v1063_v42 = vmul.f32 %v2203_v3, %v983_v30 }
 0x290   : > { %vm760_vm12 = vcmp.ge.f32.partialorder %v2124_v40, 0.0  ;;  %vm769_vm13 = vcmp.ge.f32.partialorder %v2238_v23, 0.0  ;;  %v928_v35 = vmul.f32 %v2344_v25, %v912_v13  ;;  %v1143_v0 = vpack.c.bf16 %v1132_v24, %v1131_v15 }
 0x291   : > { %v1089_v34 = vsub.f32 1.0, %v1073_v4  ;;  %v978_v61 = vadd.f32 0.2548296, %v962_v46  ;;  %v1064_v50 = vmul.f32 %v2257_v17, %v984_v9  ;;  %v1079_v63 = vsub.f32 1.0, %v1063_v42 }
 0x292   : > { %v1071_v41 = vmul.f32 %v1648_v44, %v991_v18  ;;  %v944_v59 = vadd.f32 -0.28449672, %v928_v35  ;;  %v775_v37 = vsel %vm759_vm11, 1.0, %v2493_v38  ;;  %v785_v3 = vsel %vm769_vm13, 1.0, %v2493_v38 }
 0x293   : > { %v994_v32 = vmul.f32 %v2328_v20, %v978_v61  ;;  %v1080_v62 = vsub.f32 1.0, %v1064_v50  ;;  %v1095_v23 = vmul.f32 %v1079_v63, %v775_v37  ;;  %vm767_vm14 = vcmp.ge.f32.partialorder %v2249_v26, 0.0 }
 0x294   : > { %vm770_vm15 = vcmp.ge.f32.partialorder %v2271_v10, 0.0  ;;  %v960_v49 = vmul.f32 %v2344_v25, %v944_v59  ;;  %v776_v17 = vsel %vm760_vm12, 1.0, %v2493_v38  ;;  %v1105_v44 = vmul.f32 %v1089_v34, %v785_v3 }
 0x295   : > { %v1074_v57 = vmul.f32 %v1652_v45, %v994_v32  ;;  %v1096_v53 = vmul.f32 %v1080_v62, %v776_v17  ;;  %v1111_v51 = vadd.f32 1.0, %v1095_v23  ;;  %v1087_v52 = vsub.f32 1.0, %v1071_v41 }
 0x296   : > { %v976_v6 = vadd.f32 0.2548296, %v960_v49  ;;  %v727_v20 = vmul.f32 0.5, %v2037_v31  ;;  %v728_v14 = vmul.f32 0.5, %v2107_v47  ;;  %v783_v10 = vsel %vm767_vm14, 1.0, %v2493_v38  ;;  %v2494_v49 = vld [vmem:[#allocation2_spill] sm:$0xff] }
 0x297   : > { %v1090_v8 = vsub.f32 1.0, %v1074_v57  ;;  %v1112_v26 = vadd.f32 1.0, %v1096_v53  ;;  %v786_v29 = vsel %vm770_vm15, 1.0, %v2493_v38  ;;  %v1121_v43 = vadd.f32 1.0, %v1105_v44  ;;  %v2496_v53 = vld [vmem:[#allocation3_spill] sm:$0xff] }
 0x298   : > { %v992_v36 = vmul.f32 %v2344_v25, %v976_v6  ;;  %v1127_v45 = vmul.f32 %v1111_v51, %v727_v20  ;;  %v1103_v21 = vmul.f32 %v1087_v52, %v783_v10  ;;  %vm768_vm1 = vcmp.ge.f32.partialorder %v2297_v54, 0.0 }
 0x299   : > { %v1654_v40 = vpop.eup %1653  ;;  %v1106_v56 = vmul.f32 %v1090_v8, %v786_v29  ;;  %v1128_v55 = vmul.f32 %v1112_v26, %v728_v14  ;;  %v737_v31 = vmul.f32 0.5, %v2219_v33  ;;  %v738_v47 = vmul.f32 0.5, %v2261_v1  ;;  %v2497_v8 = vld [vmem:[#allocation7_spill] sm:$0xff] }
 0x29a   : > { %v1072_v58 = vmul.f32 %v1654_v40, %v992_v36  ;;  %v784_v25 = vsel %vm768_vm1, 1.0, %v2493_v38  ;;  %v1119_v24 = vadd.f32 1.0, %v1103_v21  ;;  %v735_v33 = vmul.f32 0.5, %v2231_v16  ;;  %v2498_v36 = vld [vmem:[#allocation5_spill] sm:$0xff] }
 0x29b   : > { %v1122_v4 = vadd.f32 1.0, %v1106_v56  ;;  %v1141_v48 = vpack.c.bf16 %v1128_v55, %v1127_v45  ;;  %v1137_v30 = vmul.f32 %v1121_v43, %v737_v31  ;;  %v736_v1 = vmul.f32 0.5, %v2289_v39  ;;  %v2499_v56 = vld [vmem:[#allocation8_spill] sm:$0xff]  ;;  %v2500_v55 = vld [vmem:[#allocation6_spill] sm:$0xff] }
 0x29c   : > { %v1088_v7 = vsub.f32 1.0, %v1072_v58  ;;  %v1135_v46 = vmul.f32 %v1119_v24, %v735_v33  ;;  %v2502_v24 = vld [vmem:[#allocation9_spill] sm:$0xff]  ;;  %v2503_v33 = vld [vmem:[#allocation12_spill] sm:$0xff] }
 0x29d   : > { %v1138_v15 = vmul.f32 %v1122_v4, %v738_v47  ;;  %1510 = vmatprep.mubr.bf16.mxu1 %v1141_v48 }
 0x29e   : > { %v1104_v18 = vmul.f32 %v1088_v7, %v784_v25  ;;  %1511 = vmatmul.mubr.bf16.vlgmr.msra.gmra.mrb[0].mxu1 %v1142_v27  ;;  %v2501_v7 = vld [vmem:[#allocation11_spill] sm:$0xff] }
 0x29f   : > { %1514 = vmatprep.mubr.bf16.mxu1 %v1143_v0  ;;  %v1146_v54 = vpack.c.bf16 %v1138_v15, %v1137_v30  ;;  %v1656_v0 = vld [vmem:[%s1722_s30] sm:$0xff] }
 0x2a0   : > { %v1120_v13 = vadd.f32 1.0, %v1104_v18 }
 0x2a2   : > { %v1136_v9 = vmul.f32 %v1120_v13, %v736_v1  ;;  %v2504_v13 = vld [vmem:[#allocation10_spill] sm:$0xff] }
 0x2a4   : > { %v1145_v38 = vpack.c.bf16 %v1136_v9, %v1135_v46 }
 0x2a6   : > { %1515 = vmatmul.mubr.bf16.gmra.mrb[4].mxu1 %v1144_v11 }
 0x2a7   : > { %1518 = vmatprep.mubr.bf16.mxu1 %v1145_v38 }
 0x2ae   : > { %1519 = vmatmul.mubr.bf16.gmra.mrb[8].mxu1 %v1146_v54 }
 0x34b   : > { %v1508_v60 = vpop.f32.mrb[16].mxu0 }
 0x34c   : > { %v1261_v16 = vadd.f32 %v1508_v60, %v1427_v28  ;;  %v1252_v27 = vpop.f32.mrb[17].mxu0 }
 0x34d   : > { %v1253_v39 = vadd.f32 %v1427_v28, %v1252_v27  ;;  %v1509_v22 = vpop.f32.mrb[18].mxu0 }
 0x34e   : > { %v1317_v11 = vadd.f32 %v1655_v19, %v1261_v16  ;;  %v1264_v42 = vadd.f32 %v1509_v22, %v1427_v28  ;;  %v1255_v35 = vpop.f32.mrb[19].mxu0 }
 0x34f   : > { %v1315_v34 = vadd.f32 %v1656_v0, %v1253_v39  ;;  %v1256_v61 = vadd.f32 %v1427_v28, %v1255_v35 }
 0x350   : > { %1333 = vst.msk [vmem:[%s2408_s23 + $0x10] sm:$0xff] %vm301_vm0, %v1317_v11  ;;  %v1318_v50 = vadd.f32 %v1264_v42, %v1732_v5 }
 0x351   : > { %1331 = vst.msk [vmem:[%s2408_s23] sm:$0xff] %vm301_vm0, %v1315_v34  ;;  %v1316_v63 = vadd.f32 %v1256_v61, %v1727_v2  ;;  %v2495_v2 = vld [vmem:[#allocation4_spill] sm:$0xff] }
 0x352   : > { %1334 = vst.msk [vmem:[%s2408_s23 + $0x18] sm:$0xff] %vm301_vm0, %v1318_v50 }
 0x353   : > { %1332 = vst.msk [vmem:[%s2408_s23 + $0x8] sm:$0xff] %vm301_vm0, %v1316_v63 }
 0x371   : > { %v1512_v41 = vpop.f32.mrb[0].mxu1 }
 0x372   : > { %v1277_v59 = vadd.f32 %v1512_v41, %v1427_v28  ;;  %v1268_v37 = vpop.f32.mrb[1].mxu1 }
 0x373   : > { %v1269_v3 = vadd.f32 %v1427_v28, %v1268_v37  ;;  %v1513_v32 = vpop.f32.mrb[2].mxu1 }
 0x374   : > { %v1321_v62 = vadd.f32 %v1277_v59, %v1749_v12  ;;  %v1280_v23 = vadd.f32 %v1513_v32, %v1427_v28  ;;  %v1271_v5 = vpop.f32.mrb[3].mxu1 }
 0x375   : > { %v1319_v17 = vadd.f32 %v1269_v3, %v2494_v49  ;;  %v1272_v44 = vadd.f32 %v1427_v28, %v1271_v5 }
 0x376   : > { %1337 = vst.msk [vmem:[%s2408_s23 + $0x30] sm:$0xff] %vm301_vm0, %v1321_v62  ;;  %v1322_v57 = vadd.f32 %v1280_v23, %v2495_v2 }
 0x377   : > { %1335 = vst.msk [vmem:[%s2408_s23 + $0x20] sm:$0xff] %vm301_vm0, %v1319_v17  ;;  %v1320_v51 = vadd.f32 %v1272_v44, %v2496_v53 }
 0x378   : > { %1338 = vst.msk [vmem:[%s2408_s23 + $0x38] sm:$0xff] %vm301_vm0, %v1322_v57 }
 0x379   : > { %1336 = vst.msk [vmem:[%s2408_s23 + $0x28] sm:$0xff] %vm301_vm0, %v1320_v51  ;;  %v1516_v12 = vpop.f32.mrb[4].mxu1 }
 0x37a   : > { %v1293_v52 = vadd.f32 %v1516_v12, %v1427_v28  ;;  %v1284_v6 = vpop.f32.mrb[5].mxu1 }
 0x37b   : > { %v1285_v20 = vadd.f32 %v1427_v28, %v1284_v6  ;;  %v1517_v14 = vpop.f32.mrb[6].mxu1 }
 0x37c   : > { %v1325_v26 = vadd.f32 %v1293_v52, %v2497_v8  ;;  %v1296_v10 = vadd.f32 %v1517_v14, %v1427_v28  ;;  %v1287_v29 = vpop.f32.mrb[7].mxu1 }
 0x37d   : > { %v1323_v40 = vadd.f32 %v1285_v20, %v2498_v36  ;;  %v1288_v43 = vadd.f32 %v1427_v28, %v1287_v29 }
 0x37e   : > { %1341 = vst.msk [vmem:[%s2408_s23 + $0x50] sm:$0xff] %vm301_vm0, %v1325_v26  ;;  %v1326_v45 = vadd.f32 %v1296_v10, %v2499_v56 }
 0x37f   : > { %1339 = vst.msk [vmem:[%s2408_s23 + $0x40] sm:$0xff] %vm301_vm0, %v1323_v40  ;;  %v1324_v21 = vadd.f32 %v1288_v43, %v2500_v55 }
 0x380   : > { %1342 = vst.msk [vmem:[%s2408_s23 + $0x58] sm:$0xff] %vm301_vm0, %v1326_v45 }
 0x381   : > { %1340 = vst.msk [vmem:[%s2408_s23 + $0x48] sm:$0xff] %vm301_vm0, %v1324_v21  ;;  %v1520_v58 = vpop.f32.mrb[8].mxu1 }
 0x382   : > { %v1309_v31 = vadd.f32 %v1520_v58, %v1427_v28  ;;  %v1300_v47 = vpop.f32.mrb[9].mxu1 }
 0x383   : > { %v1301_v4 = vadd.f32 %v1427_v28, %v1300_v47  ;;  %v1521_v48 = vpop.f32.mrb[10].mxu1 }
 0x384   : > { %v1329_v30 = vadd.f32 %v1309_v31, %v2501_v7  ;;  %v1312_v15 = vadd.f32 %v1521_v48, %v1427_v28  ;;  %v1303_v25 = vpop.f32.mrb[11].mxu1 }
 0x385   : > { %v1327_v18 = vadd.f32 %v1301_v4, %v2502_v24  ;;  %v1304_v54 = vadd.f32 %v1427_v28, %v1303_v25 }
 0x386   : > { %1345 = vst.msk [vmem:[%s2408_s23 + $0x70] sm:$0xff] %vm301_vm0, %v1329_v30  ;;  %v1330_v1 = vadd.f32 %v1312_v15, %v2503_v33 }
 0x387   : > { %1343 = vst.msk [vmem:[%s2408_s23 + $0x60] sm:$0xff] %vm301_vm0, %v1327_v18  ;;  %v1328_v46 = vadd.f32 %v1304_v54, %v2504_v13 }
 0x388   : > { %1346 = vst.msk [vmem:[%s2408_s23 + $0x78] sm:$0xff] %vm301_vm0, %v1330_v1 }
 0x389   : > { %1344 = vst.msk [vmem:[%s2408_s23 + $0x68] sm:$0xff] %vm301_vm0, %v1328_v46 }
 0x38a PF: > { %s17_s24 = sadd.s32 1, %s1663_s24  }
 0x38b   : > { %p14_p4 = scmp.ge.s32.totalorder %s17_s24, 4  }
 0x38d   :  { %16 = sbr.rel (!%p14_p4) target bundleno = 1 (0x1), region = 78 }

// kernel: timesformer_block.11
= control target key start
LH: loop header
LB: loop body
LE: loop exit
PB: predicated region body
PF: predicated region fallthrough
CT: control target
= control target key end

     0   :  { %vm319_vm0 = vcmask 130048   ;;  %vm2839_vm1 = vcmask 131072   ;;  %vm2832_vm2 = vcmask 138240   ;;  %vm3969_vm3 = vcmask 1040384   ;;  %s11216_s1 = inlined_call_operand.vmem [shape: bf16[32,17,16], index: 1, kind: input, shape index: {}]   ;;  %s11217_s0 = inlined_call_operand.vmem [shape: bf16[32,17,16], index: 0, kind: input, shape index: {}]   ;;  %s11218_s2 = inlined_call_operand.vmem [shape: bf16[32,17,16], index: 2, kind: input, shape index: {}]   ;;  %s11219_s3 = inlined_call_operand.vmem [shape: bf16[32,17,16], index: 3, kind: output, shape index: {}]  }
   0x1   :  { %v7998_v0 = vld [vmem:[%s11216_s1] sm:$0xff]   ;;  %v7999_v1 = vld [vmem:[%s11216_s1 + $0xc] sm:$0xff]   ;;  %v8000_v3 = vld [vmem:[%s11216_s1 + $0x8] ss:$0 sps:$4 sm:$0x11]   ;;  %vm6488_vm4 = vcmask 122880  }
   0x2   :  { %7933 = vmatprep.subr.msk.bf16.mxu0 %vm319_vm0, %v7998_v0  ;;  %v327_v2 = vsel %vm319_vm0, %v7998_v0, 0  ;;  %7935 = vmatprep.subr.msk.bf16.mxu1 %vm319_vm0, %v7999_v1  ;;  %v403_v4 = vsel %vm319_vm0, %v7999_v1, 0  ;;  %v8001_v5 = vld [vmem:[%s11216_s1 + $0x14] ss:$0 sps:$4 sm:$0x11]   ;;  %v8002_v6 = vld [vmem:[%s11217_s0] sm:$0xff]  }
   0x3   :  { %7422 = vmatpush3.bf16.xpose.msra.mxu0 %v327_v2  ;;  %7430 = vmatpush3.bf16.xpose.msra.mxu1 %v403_v4  ;;  %v8003_v7 = vld [vmem:[%s11217_s0 + $0xc] sm:$0xff]   ;;  %v330_v8 = vsel %vm319_vm0, %v8000_v3, 0  ;;  %v8006_v9 = vld [vmem:[%s11216_s1 + $0x18] sm:$0xff]   ;;  %v406_v10 = vsel %vm319_vm0, %v8001_v5, 0  ;;  %v8007_v11 = vld [vmem:[%s11216_s1 + $0x24] sm:$0xff]   ;;  %vm6485_vm7 = vcmask 125952  }
   0x4   :  { %7934 = vmatprep.subr.msk.bf16.mxu0 %vm319_vm0, %v8000_v3  ;;  %7936 = vmatprep.subr.msk.bf16.mxu1 %vm319_vm0, %v8001_v5  ;;  %v8004_v12 = vld [vmem:[%s11217_s0 + $0x8] ss:$0 sps:$4 sm:$0x11]   ;;  %v8005_v13 = vld [vmem:[%s11217_s0 + $0x14] ss:$0 sps:$4 sm:$0x11]  }
   0x5   :  { %7425 = vmatprep.mubr.msk.bf16.mxu0 %vm319_vm0, %v8002_v6  ;;  %7433 = vmatprep.mubr.msk.bf16.mxu1 %vm319_vm0, %v8003_v7  ;;  %v479_v14 = vsel %vm319_vm0, %v8006_v9, 0  ;;  %v555_v15 = vsel %vm319_vm0, %v8007_v11, 0  ;;  %v8008_v16 = vld [vmem:[%s11216_s1 + $0x20] ss:$0 sps:$4 sm:$0x11]   ;;  %v8010_v18 = vld [vmem:[%s11217_s0 + $0x18] sm:$0xff]  }
   0x6   :  { %v8009_v17 = vld [vmem:[%s11216_s1 + $0x2c] ss:$0 sps:$4 sm:$0x11]   ;;  %v8011_v19 = vld [vmem:[%s11217_s0 + $0x24] sm:$0xff]   ;;  %v482_v20 = vsel %vm319_vm0, %v8008_v16, 0  ;;  %v8014_v21 = vld [vmem:[%s11216_s1 + $0x30] sm:$0xff]  }
   0x7   :  { %v558_v22 = vsel %vm319_vm0, %v8009_v17, 0  ;;  %v8015_v23 = vld [vmem:[%s11216_s1 + $0x3c] sm:$0xff]   ;;  %v8013_v25 = vld [vmem:[%s11217_s0 + $0x2c] ss:$0 sps:$4 sm:$0x11]   ;;  %v631_v26 = vsel %vm319_vm0, %v8014_v21, 0 }
   0x8   :  { %v8012_v24 = vld [vmem:[%s11217_s0 + $0x20] ss:$0 sps:$4 sm:$0x11]   ;;  %v707_v27 = vsel %vm319_vm0, %v8015_v23, 0  ;;  %v8018_v30 = vld [vmem:[%s11217_s0 + $0x30] sm:$0xff]   ;;  %v8022_v33 = vld [vmem:[%s11216_s1 + $0x48] sm:$0xff]  }
   0x9   :  { %v8016_v28 = vld [vmem:[%s11216_s1 + $0x38] ss:$0 sps:$4 sm:$0x11]   ;;  %v8017_v29 = vld [vmem:[%s11216_s1 + $0x44] ss:$0 sps:$4 sm:$0x11]  }
   0xa   :  { %v8019_v31 = vld [vmem:[%s11217_s0 + $0x3c] sm:$0xff]   ;;  %v634_v32 = vsel %vm319_vm0, %v8016_v28, 0  ;;  %v710_v34 = vsel %vm319_vm0, %v8017_v29, 0  ;;  %v8023_v35 = vld [vmem:[%s11216_s1 + $0x54] sm:$0xff]   ;;  %v783_v39 = vsel %vm319_vm0, %v8022_v33, 0  ;;  %v8026_v42 = vld [vmem:[%s11217_s0 + $0x48] sm:$0xff]  }
   0xb   :  { %7424 = vmatpush3.bf16.xpose.msra.mxu0 %v330_v8  ;;  %7432 = vmatpush3.bf16.xpose.msra.mxu1 %v406_v10  ;;  %v8020_v36 = vld [vmem:[%s11217_s0 + $0x38] ss:$0 sps:$4 sm:$0x11]   ;;  %v8021_v37 = vld [vmem:[%s11217_s0 + $0x44] ss:$0 sps:$4 sm:$0x11]  }
   0xc   :  { %7937 = vmatprep.subr.msk.bf16.mxu0 %vm319_vm0, %v8006_v9  ;;  %7939 = vmatprep.subr.msk.bf16.mxu1 %vm319_vm0, %v8007_v11  ;;  %v8024_v38 = vld [vmem:[%s11216_s1 + $0x50] ss:$0 sps:$4 sm:$0x11]   ;;  %v8025_v40 = vld [vmem:[%s11216_s1 + $0x5c] ss:$0 sps:$4 sm:$0x11]  }
   0xd   :  { %v859_v41 = vsel %vm319_vm0, %v8023_v35, 0  ;;  %v8027_v43 = vld [vmem:[%s11217_s0 + $0x54] sm:$0xff]   ;;  %v786_v44 = vsel %vm319_vm0, %v8024_v38, 0  ;;  %v8030_v45 = vld [vmem:[%s11216_s1 + $0x60] sm:$0xff]   ;;  %v862_v46 = vsel %vm319_vm0, %v8025_v40, 0  ;;  %v8031_v47 = vld [vmem:[%s11216_s1 + $0x6c] sm:$0xff]  }
   0xe   :  { %v8028_v48 = vld [vmem:[%s11217_s0 + $0x50] ss:$0 sps:$4 sm:$0x11]   ;;  %v8029_v49 = vld [vmem:[%s11217_s0 + $0x5c] ss:$0 sps:$4 sm:$0x11]  }
   0xf   :  { %v935_v50 = vsel %vm319_vm0, %v8030_v45, 0  ;;  %v8032_v51 = vld [vmem:[%s11216_s1 + $0x68] ss:$0 sps:$4 sm:$0x11]   ;;  %v8034_v52 = vld [vmem:[%s11217_s0 + $0x60] sm:$0xff]   ;;  %v1011_v53 = vsel %vm319_vm0, %v8031_v47, 0 }
  0x10   :  { %v8033_v54 = vld [vmem:[%s11216_s1 + $0x74] ss:$0 sps:$4 sm:$0x11]   ;;  %v8035_v55 = vld [vmem:[%s11217_s0 + $0x6c] sm:$0xff]   ;;  %v938_v56 = vsel %vm319_vm0, %v8032_v51, 0  ;;  %v8038_v57 = vld [vmem:[%s11216_s1 + $0x78] sm:$0xff]  }
  0x11   :  { %v1014_v58 = vsel %vm319_vm0, %v8033_v54, 0  ;;  %v8039_v59 = vld [vmem:[%s11216_s1 + $0x84] sm:$0xff]   ;;  %v8037_v61 = vld [vmem:[%s11217_s0 + $0x74] ss:$0 sps:$4 sm:$0x11]   ;;  %v1087_v63 = vsel %vm319_vm0, %v8038_v57, 0 }
  0x12   :  { %7426 = vmatmul.mubr.msk.bf16.vlgmr.msra.gmra.mrb[0].mxu0 %vm319_vm0, %v8004_v12  ;;  %7434 = vmatmul.mubr.msk.bf16.vlgmr.msra.gmra.mrb[0].mxu1 %vm319_vm0, %v8005_v13  ;;  %v8036_v60 = vld [vmem:[%s11217_s0 + $0x68] ss:$0 sps:$4 sm:$0x11]   ;;  %v8040_v62 = vld [vmem:[%s11216_s1 + $0x80] ss:$0 sps:$4 sm:$0x11]  }
  0x13   :  { %7438 = vmatpush3.bf16.xpose.msra.mxu0 %v479_v14  ;;  %7446 = vmatpush3.bf16.xpose.msra.mxu1 %v555_v15  ;;  %v8041_v0 = vld [vmem:[%s11216_s1 + $0x8c] ss:$0 sps:$4 sm:$0x11]   ;;  %v1163_v1 = vsel %vm319_vm0, %v8039_v59, 0  ;;  %v8042_v2 = vld [vmem:[%s11217_s0 + $0x78] sm:$0xff]   ;;  %v8043_v3 = vld [vmem:[%s11217_s0 + $0x84] sm:$0xff]  }
  0x14   :  { %7938 = vmatprep.subr.msk.bf16.mxu0 %vm319_vm0, %v8008_v16  ;;  %7940 = vmatprep.subr.msk.bf16.mxu1 %vm319_vm0, %v8009_v17  ;;  %v1090_v4 = vsel %vm319_vm0, %v8040_v62, 0  ;;  %v8046_v5 = vld [vmem:[%s11216_s1 + $0x90] sm:$0xff]   ;;  %v1166_v6 = vsel %vm319_vm0, %v8041_v0, 0  ;;  %v8047_v7 = vld [vmem:[%s11216_s1 + $0x9c] sm:$0xff]   ;;  %v8054_v17 = vld [vmem:[%s11216_s1 + $0xa8] sm:$0xff]  }
  0x15   :  { %7441 = vmatprep.mubr.msk.bf16.mxu0 %vm319_vm0, %v8010_v18  ;;  %7449 = vmatprep.mubr.msk.bf16.mxu1 %vm319_vm0, %v8011_v19  ;;  %v8044_v8 = vld [vmem:[%s11217_s0 + $0x80] ss:$0 sps:$4 sm:$0x11]   ;;  %v8045_v9 = vld [vmem:[%s11217_s0 + $0x8c] ss:$0 sps:$4 sm:$0x11]  }
  0x16   :  { %v1239_v10 = vsel %vm319_vm0, %v8046_v5, 0  ;;  %v8048_v11 = vld [vmem:[%s11216_s1 + $0x98] ss:$0 sps:$4 sm:$0x11]   ;;  %v1315_v12 = vsel %vm319_vm0, %v8047_v7, 0  ;;  %v8050_v14 = vld [vmem:[%s11217_s0 + $0x90] sm:$0xff]  }
  0x17   :  { %v8049_v13 = vld [vmem:[%s11216_s1 + $0xa4] ss:$0 sps:$4 sm:$0x11]   ;;  %v8051_v15 = vld [vmem:[%s11217_s0 + $0x9c] sm:$0xff]   ;;  %v1242_v16 = vsel %vm319_vm0, %v8048_v11, 0  ;;  %v8055_v19 = vld [vmem:[%s11216_s1 + $0xb4] sm:$0xff]  }
  0x18   :  { %v1318_v18 = vsel %vm319_vm0, %v8049_v13, 0  ;;  %vm6489_vm5 = vsmask.f32 256 }
  0x19   :  { %vm10627_vm6 = vmand %vm6488_vm4, %vm6489_vm5 }
  0x1b   :  { %7440 = vmatpush3.bf16.xpose.msra.mxu0 %v482_v20  ;;  %7448 = vmatpush3.bf16.xpose.msra.mxu1 %v558_v22  ;;  %v8052_v20 = vld [vmem:[%s11217_s0 + $0x98] ss:$0 sps:$4 sm:$0x11]   ;;  %v1391_v22 = vsel %vm319_vm0, %v8054_v17, 0 }
  0x1c   :  { %7941 = vmatprep.subr.msk.bf16.mxu0 %vm319_vm0, %v8014_v21  ;;  %7943 = vmatprep.subr.msk.bf16.mxu1 %vm319_vm0, %v8015_v23  ;;  %v8053_v21 = vld [vmem:[%s11217_s0 + $0xa4] ss:$0 sps:$4 sm:$0x11]   ;;  %v8056_v23 = vld [vmem:[%s11216_s1 + $0xb0] ss:$0 sps:$4 sm:$0x11]  }
  0x22   :  { %7442 = vmatmul.mubr.msk.bf16.vlgmr.msra.gmra.mrb[4].mxu0 %vm319_vm0, %v8012_v24  ;;  %7450 = vmatmul.mubr.msk.bf16.vlgmr.msra.gmra.mrb[4].mxu1 %vm319_vm0, %v8013_v25  ;;  %v1467_v24 = vsel %vm319_vm0, %v8055_v19, 0  ;;  %v8057_v25 = vld [vmem:[%s11216_s1 + $0xbc] ss:$0 sps:$4 sm:$0x11]  }
  0x23   :  { %7454 = vmatpush3.bf16.xpose.msra.mxu0 %v631_v26  ;;  %7462 = vmatpush3.bf16.xpose.msra.mxu1 %v707_v27  ;;  %v8058_v26 = vld [vmem:[%s11217_s0 + $0xa8] sm:$0xff]   ;;  %v8059_v27 = vld [vmem:[%s11217_s0 + $0xb4] sm:$0xff]  }
  0x24   :  { %7942 = vmatprep.subr.msk.bf16.mxu0 %vm319_vm0, %v8016_v28  ;;  %7944 = vmatprep.subr.msk.bf16.mxu1 %vm319_vm0, %v8017_v29  ;;  %v1394_v28 = vsel %vm319_vm0, %v8056_v23, 0  ;;  %v8062_v29 = vld [vmem:[%s11216_s1 + $0xc0] sm:$0xff]  }
  0x25   :  { %7457 = vmatprep.mubr.msk.bf16.mxu0 %vm319_vm0, %v8018_v30  ;;  %7465 = vmatprep.mubr.msk.bf16.mxu1 %vm319_vm0, %v8019_v31  ;;  %v1470_v30 = vsel %vm319_vm0, %v8057_v25, 0  ;;  %v8063_v31 = vld [vmem:[%s11216_s1 + $0xcc] sm:$0xff]  }
  0x2b   :  { %7456 = vmatpush3.bf16.xpose.msra.mxu0 %v634_v32  ;;  %7464 = vmatpush3.bf16.xpose.msra.mxu1 %v710_v34  ;;  %v8060_v32 = vld [vmem:[%s11217_s0 + $0xb0] ss:$0 sps:$4 sm:$0x11]   ;;  %v1543_v34 = vsel %vm319_vm0, %v8062_v29, 0 }
  0x2c   :  { %7945 = vmatprep.subr.msk.bf16.mxu0 %vm319_vm0, %v8022_v33  ;;  %7947 = vmatprep.subr.msk.bf16.mxu1 %vm319_vm0, %v8023_v35  ;;  %v8061_v33 = vld [vmem:[%s11217_s0 + $0xbc] ss:$0 sps:$4 sm:$0x11]   ;;  %v8064_v35 = vld [vmem:[%s11216_s1 + $0xc8] ss:$0 sps:$4 sm:$0x11]  }
  0x32   :  { %7458 = vmatmul.mubr.msk.bf16.vlgmr.msra.gmra.mrb[8].mxu0 %vm319_vm0, %v8020_v36  ;;  %7466 = vmatmul.mubr.msk.bf16.vlgmr.msra.gmra.mrb[8].mxu1 %vm319_vm0, %v8021_v37  ;;  %v1619_v36 = vsel %vm319_vm0, %v8063_v31, 0  ;;  %v8065_v37 = vld [vmem:[%s11216_s1 + $0xd4] ss:$0 sps:$4 sm:$0x11]  }
  0x33   :  { %7470 = vmatpush3.bf16.xpose.msra.mxu0 %v783_v39  ;;  %7478 = vmatpush3.bf16.xpose.msra.mxu1 %v859_v41  ;;  %v8067_v39 = vld [vmem:[%s11217_s0 + $0xcc] sm:$0xff]   ;;  %v8070_v41 = vld [vmem:[%s11216_s1 + $0xd8] sm:$0xff]  }
  0x34   :  { %7946 = vmatprep.subr.msk.bf16.mxu0 %vm319_vm0, %v8024_v38  ;;  %7948 = vmatprep.subr.msk.bf16.mxu1 %vm319_vm0, %v8025_v40  ;;  %v8066_v38 = vld [vmem:[%s11217_s0 + $0xc0] sm:$0xff]   ;;  %v1546_v40 = vsel %vm319_vm0, %v8064_v35, 0 }
  0x35   :  { %7473 = vmatprep.mubr.msk.bf16.mxu0 %vm319_vm0, %v8026_v42  ;;  %7481 = vmatprep.mubr.msk.bf16.mxu1 %vm319_vm0, %v8027_v43  ;;  %v1622_v42 = vsel %vm319_vm0, %v8065_v37, 0  ;;  %v8071_v43 = vld [vmem:[%s11216_s1 + $0xe4] sm:$0xff]  }
  0x3b   :  { %7472 = vmatpush3.bf16.xpose.msra.mxu0 %v786_v44  ;;  %7480 = vmatpush3.bf16.xpose.msra.mxu1 %v862_v46  ;;  %v8068_v44 = vld [vmem:[%s11217_s0 + $0xc8] ss:$0 sps:$4 sm:$0x11]   ;;  %v1695_v46 = vsel %vm319_vm0, %v8070_v41, 0 }
  0x3c   :  { %7949 = vmatprep.subr.msk.bf16.mxu0 %vm319_vm0, %v8030_v45  ;;  %7951 = vmatprep.subr.msk.bf16.mxu1 %vm319_vm0, %v8031_v47  ;;  %v8069_v45 = vld [vmem:[%s11217_s0 + $0xd4] ss:$0 sps:$4 sm:$0x11]   ;;  %v8072_v47 = vld [vmem:[%s11216_s1 + $0xe0] ss:$0 sps:$4 sm:$0x11]  }
  0x42   :  { %7474 = vmatmul.mubr.msk.bf16.vlgmr.msra.gmra.mrb[12].mxu0 %vm319_vm0, %v8028_v48  ;;  %7482 = vmatmul.mubr.msk.bf16.vlgmr.msra.gmra.mrb[12].mxu1 %vm319_vm0, %v8029_v49  ;;  %v1771_v48 = vsel %vm319_vm0, %v8071_v43, 0  ;;  %v8073_v49 = vld [vmem:[%s11216_s1 + $0xec] ss:$0 sps:$4 sm:$0x11]  }
  0x43   :  { %7486 = vmatpush3.bf16.xpose.msra.mxu0 %v935_v50  ;;  %7494 = vmatpush3.bf16.xpose.msra.mxu1 %v1011_v53  ;;  %v8074_v50 = vld [vmem:[%s11217_s0 + $0xd8] sm:$0xff]   ;;  %v8079_v53 = vld [vmem:[%s11216_s1 + $0xf0] sm:$0xff]  }
  0x44   :  { %7950 = vmatprep.subr.msk.bf16.mxu0 %vm319_vm0, %v8032_v51  ;;  %7952 = vmatprep.subr.msk.bf16.mxu1 %vm319_vm0, %v8033_v54  ;;  %v8075_v51 = vld [vmem:[%s11217_s0 + $0xe4] sm:$0xff]   ;;  %v1774_v54 = vsel %vm319_vm0, %v8073_v49, 0 }
  0x45   :  { %7489 = vmatprep.mubr.msk.bf16.mxu0 %vm319_vm0, %v8034_v52  ;;  %7497 = vmatprep.mubr.msk.bf16.mxu1 %vm319_vm0, %v8035_v55  ;;  %v1698_v52 = vsel %vm319_vm0, %v8072_v47, 0  ;;  %v8078_v55 = vld [vmem:[%s11216_s1 + $0xfc] sm:$0xff]  }
  0x4b   :  { %7488 = vmatpush3.bf16.xpose.msra.mxu0 %v938_v56  ;;  %7496 = vmatpush3.bf16.xpose.msra.mxu1 %v1014_v58  ;;  %v8076_v56 = vld [vmem:[%s11217_s0 + $0xe0] ss:$0 sps:$4 sm:$0x11]   ;;  %v1847_v58 = vsel %vm319_vm0, %v8079_v53, 0 }
  0x4c   :  { %7953 = vmatprep.subr.msk.bf16.mxu0 %vm319_vm0, %v8038_v57  ;;  %7955 = vmatprep.subr.msk.bf16.mxu1 %vm319_vm0, %v8039_v59  ;;  %v8077_v57 = vld [vmem:[%s11217_s0 + $0xec] ss:$0 sps:$4 sm:$0x11]   ;;  %v8081_v59 = vld [vmem:[%s11216_s1 + $0xf8] ss:$0 sps:$4 sm:$0x11]  }
  0x52   :  { %7490 = vmatmul.mubr.msk.bf16.vlgmr.msra.gmra.mrb[16].mxu0 %vm319_vm0, %v8036_v60  ;;  %7498 = vmatmul.mubr.msk.bf16.vlgmr.msra.gmra.mrb[16].mxu1 %vm319_vm0, %v8037_v61  ;;  %v1923_v60 = vsel %vm319_vm0, %v8078_v55, 0  ;;  %v8080_v61 = vld [vmem:[%s11216_s1 + $0x104] ss:$0 sps:$4 sm:$0x11]  }
  0x53   :  { %7502 = vmatpush3.bf16.xpose.msra.mxu0 %v1087_v63  ;;  %7510 = vmatpush3.bf16.xpose.msra.mxu1 %v1163_v1  ;;  %v8084_v63 = vld [vmem:[%s11217_s0 + $0xf0] sm:$0xff]   ;;  %v8087_v1 = vld [vmem:[%s11216_s1 + $0x108] sm:$0xff]  }
  0x54   :  { %7954 = vmatprep.subr.msk.bf16.mxu0 %vm319_vm0, %v8040_v62  ;;  %7956 = vmatprep.subr.msk.bf16.mxu1 %vm319_vm0, %v8041_v0  ;;  %v8082_v62 = vld [vmem:[%s11217_s0 + $0xfc] sm:$0xff]   ;;  %v1850_v0 = vsel %vm319_vm0, %v8081_v59, 0 }
  0x55   :  { %7505 = vmatprep.mubr.msk.bf16.mxu0 %vm319_vm0, %v8042_v2  ;;  %7513 = vmatprep.mubr.msk.bf16.mxu1 %vm319_vm0, %v8043_v3  ;;  %v1926_v2 = vsel %vm319_vm0, %v8080_v61, 0  ;;  %v8086_v3 = vld [vmem:[%s11216_s1 + $0x114] sm:$0xff]  }
  0x5b   :  { %7504 = vmatpush3.bf16.xpose.msra.mxu0 %v1090_v4  ;;  %7512 = vmatpush3.bf16.xpose.msra.mxu1 %v1166_v6  ;;  %v8085_v4 = vld [vmem:[%s11217_s0 + $0xf8] ss:$0 sps:$4 sm:$0x11]   ;;  %v2075_v6 = vsel %vm319_vm0, %v8086_v3, 0 }
  0x5c   :  { %7957 = vmatprep.subr.msk.bf16.mxu0 %vm319_vm0, %v8046_v5  ;;  %7959 = vmatprep.subr.msk.bf16.mxu1 %vm319_vm0, %v8047_v7  ;;  %v8083_v5 = vld [vmem:[%s11217_s0 + $0x104] ss:$0 sps:$4 sm:$0x11]   ;;  %v1999_v7 = vsel %vm319_vm0, %v8087_v1, 0 }
  0x62   :  { %7506 = vmatmul.mubr.msk.bf16.vlgmr.msra.gmra.mrb[20].mxu0 %vm319_vm0, %v8044_v8  ;;  %7514 = vmatmul.mubr.msk.bf16.vlgmr.msra.gmra.mrb[20].mxu1 %vm319_vm0, %v8045_v9  ;;  %v8089_v8 = vld [vmem:[%s11217_s0 + $0x114] sm:$0xff]   ;;  %v8088_v9 = vld [vmem:[%s11216_s1 + $0x11c] ss:$0 sps:$4 sm:$0x11]  }
  0x63   :  { %7518 = vmatpush3.bf16.xpose.msra.mxu0 %v1239_v10  ;;  %7526 = vmatpush3.bf16.xpose.msra.mxu1 %v1315_v12  ;;  %v8090_v10 = vld [vmem:[%s11216_s1 + $0x110] ss:$0 sps:$4 sm:$0x11]  }
  0x64   :  { %7958 = vmatprep.subr.msk.bf16.mxu0 %vm319_vm0, %v8048_v11  ;;  %7960 = vmatprep.subr.msk.bf16.mxu1 %vm319_vm0, %v8049_v13  ;;  %v8092_v11 = vld [vmem:[%s11217_s0 + $0x108] sm:$0xff]   ;;  %v2002_v12 = vsel %vm319_vm0, %v8090_v10, 0  ;;  %v8095_v13 = vld [vmem:[%s11216_s1 + $0x120] sm:$0xff]  }
  0x65   :  { %7521 = vmatprep.mubr.msk.bf16.mxu0 %vm319_vm0, %v8050_v14  ;;  %7529 = vmatprep.mubr.msk.bf16.mxu1 %vm319_vm0, %v8051_v15  ;;  %v2078_v14 = vsel %vm319_vm0, %v8088_v9, 0  ;;  %v8094_v15 = vld [vmem:[%s11216_s1 + $0x12c] sm:$0xff]  }
  0x6b   :  { %7520 = vmatpush3.bf16.xpose.msra.mxu0 %v1242_v16  ;;  %7528 = vmatpush3.bf16.xpose.msra.mxu1 %v1318_v18  ;;  %v8093_v16 = vld [vmem:[%s11217_s0 + $0x110] ss:$0 sps:$4 sm:$0x11]   ;;  %v2227_v18 = vsel %vm319_vm0, %v8094_v15, 0 }
  0x6c   :  { %7961 = vmatprep.subr.msk.bf16.mxu0 %vm319_vm0, %v8054_v17  ;;  %7963 = vmatprep.subr.msk.bf16.mxu1 %vm319_vm0, %v8055_v19  ;;  %v8091_v17 = vld [vmem:[%s11217_s0 + $0x11c] ss:$0 sps:$4 sm:$0x11]   ;;  %v2151_v19 = vsel %vm319_vm0, %v8095_v13, 0 }
  0x72   :  { %7522 = vmatmul.mubr.msk.bf16.vlgmr.msra.gmra.mrb[24].mxu0 %vm319_vm0, %v8052_v20  ;;  %7530 = vmatmul.mubr.msk.bf16.vlgmr.msra.gmra.mrb[24].mxu1 %vm319_vm0, %v8053_v21  ;;  %v8097_v20 = vld [vmem:[%s11217_s0 + $0x12c] sm:$0xff]   ;;  %v8096_v21 = vld [vmem:[%s11216_s1 + $0x134] ss:$0 sps:$4 sm:$0x11]  }
  0x73   :  { %7534 = vmatpush3.bf16.xpose.msra.mxu0 %v1391_v22  ;;  %7542 = vmatpush3.bf16.xpose.msra.mxu1 %v1467_v24  ;;  %v8098_v22 = vld [vmem:[%s11216_s1 + $0x128] ss:$0 sps:$4 sm:$0x11]  }
  0x74   :  { %7962 = vmatprep.subr.msk.bf16.mxu0 %vm319_vm0, %v8056_v23  ;;  %7964 = vmatprep.subr.msk.bf16.mxu1 %vm319_vm0, %v8057_v25  ;;  %v8100_v23 = vld [vmem:[%s11217_s0 + $0x120] sm:$0xff]   ;;  %v2154_v24 = vsel %vm319_vm0, %v8098_v22, 0  ;;  %v8104_v25 = vld [vmem:[%s11216_s1 + $0x138] sm:$0xff]  }
  0x75   :  { %7537 = vmatprep.mubr.msk.bf16.mxu0 %vm319_vm0, %v8058_v26  ;;  %7545 = vmatprep.mubr.msk.bf16.mxu1 %vm319_vm0, %v8059_v27  ;;  %v2230_v26 = vsel %vm319_vm0, %v8096_v21, 0  ;;  %v8101_v27 = vld [vmem:[%s11216_s1 + $0x144] sm:$0xff]  }
  0x7b   :  { %7536 = vmatpush3.bf16.xpose.msra.mxu0 %v1394_v28  ;;  %7544 = vmatpush3.bf16.xpose.msra.mxu1 %v1470_v30  ;;  %v8102_v28 = vld [vmem:[%s11217_s0 + $0x128] ss:$0 sps:$4 sm:$0x11]   ;;  %v2379_v30 = vsel %vm319_vm0, %v8101_v27, 0 }
  0x7c   :  { %7965 = vmatprep.subr.msk.bf16.mxu0 %vm319_vm0, %v8062_v29  ;;  %7967 = vmatprep.subr.msk.bf16.mxu1 %vm319_vm0, %v8063_v31  ;;  %v8099_v29 = vld [vmem:[%s11217_s0 + $0x134] ss:$0 sps:$4 sm:$0x11]   ;;  %v2303_v31 = vsel %vm319_vm0, %v8104_v25, 0 }
  0x82   :  { %7538 = vmatmul.mubr.msk.bf16.vlgmr.msra.gmra.mrb[28].mxu0 %vm319_vm0, %v8060_v32  ;;  %7546 = vmatmul.mubr.msk.bf16.vlgmr.msra.gmra.mrb[28].mxu1 %vm319_vm0, %v8061_v33  ;;  %v8105_v32 = vld [vmem:[%s11217_s0 + $0x144] sm:$0xff]   ;;  %v8103_v33 = vld [vmem:[%s11216_s1 + $0x14c] ss:$0 sps:$4 sm:$0x11]  }
  0x83   :  { %7550 = vmatpush3.bf16.xpose.msra.mxu0 %v1543_v34  ;;  %7558 = vmatpush3.bf16.xpose.msra.mxu1 %v1619_v36  ;;  %v8107_v34 = vld [vmem:[%s11216_s1 + $0x140] ss:$0 sps:$4 sm:$0x11]  }
  0x84   :  { %7966 = vmatprep.subr.msk.bf16.mxu0 %vm319_vm0, %v8064_v35  ;;  %7968 = vmatprep.subr.msk.bf16.mxu1 %vm319_vm0, %v8065_v37  ;;  %v8108_v35 = vld [vmem:[%s11217_s0 + $0x138] sm:$0xff]   ;;  %v2306_v36 = vsel %vm319_vm0, %v8107_v34, 0  ;;  %v8111_v37 = vld [vmem:[%s11216_s1 + $0x150] sm:$0xff]  }
  0x85   :  { %7553 = vmatprep.mubr.msk.bf16.mxu0 %vm319_vm0, %v8066_v38  ;;  %7561 = vmatprep.mubr.msk.bf16.mxu1 %vm319_vm0, %v8067_v39  ;;  %v2382_v38 = vsel %vm319_vm0, %v8103_v33, 0  ;;  %v8110_v39 = vld [vmem:[%s11216_s1 + $0x15c] sm:$0xff]  }
  0x8b   :  { %7552 = vmatpush3.bf16.xpose.msra.mxu0 %v1546_v40  ;;  %7560 = vmatpush3.bf16.xpose.msra.mxu1 %v1622_v42  ;;  %v8109_v40 = vld [vmem:[%s11217_s0 + $0x140] ss:$0 sps:$4 sm:$0x11]   ;;  %v2531_v42 = vsel %vm319_vm0, %v8110_v39, 0 }
  0x8c   :  { %7969 = vmatprep.subr.msk.bf16.mxu0 %vm319_vm0, %v8070_v41  ;;  %7971 = vmatprep.subr.msk.bf16.mxu1 %vm319_vm0, %v8071_v43  ;;  %v8106_v41 = vld [vmem:[%s11217_s0 + $0x14c] ss:$0 sps:$4 sm:$0x11]   ;;  %v2455_v43 = vsel %vm319_vm0, %v8111_v37, 0 }
  0x92   :  { %7554 = vmatmul.mubr.msk.bf16.vlgmr.msra.gmra.mrb[32].mxu0 %vm319_vm0, %v8068_v44  ;;  %7562 = vmatmul.mubr.msk.bf16.vlgmr.msra.gmra.mrb[32].mxu1 %vm319_vm0, %v8069_v45  ;;  %v8113_v44 = vld [vmem:[%s11217_s0 + $0x15c] sm:$0xff]   ;;  %v8112_v45 = vld [vmem:[%s11216_s1 + $0x164] ss:$0 sps:$4 sm:$0x11]  }
  0x93   :  { %7566 = vmatpush3.bf16.xpose.msra.mxu0 %v1695_v46  ;;  %7574 = vmatpush3.bf16.xpose.msra.mxu1 %v1771_v48  ;;  %v8114_v46 = vld [vmem:[%s11216_s1 + $0x158] ss:$0 sps:$4 sm:$0x11]  }
  0x94   :  { %7970 = vmatprep.subr.msk.bf16.mxu0 %vm319_vm0, %v8072_v47  ;;  %7972 = vmatprep.subr.msk.bf16.mxu1 %vm319_vm0, %v8073_v49  ;;  %v8116_v47 = vld [vmem:[%s11217_s0 + $0x150] sm:$0xff]  }
  0x95   :  { %7569 = vmatprep.mubr.msk.bf16.mxu0 %vm319_vm0, %v8074_v50  ;;  %7577 = vmatprep.mubr.msk.bf16.mxu1 %vm319_vm0, %v8075_v51 }
  0x9b   :  { %7568 = vmatpush3.bf16.xpose.msra.mxu0 %v1698_v52  ;;  %7576 = vmatpush3.bf16.xpose.msra.mxu1 %v1774_v54 }
  0x9c   :  { %7973 = vmatprep.subr.msk.bf16.mxu0 %vm319_vm0, %v8079_v53  ;;  %7975 = vmatprep.subr.msk.bf16.mxu1 %vm319_vm0, %v8078_v55 }
  0xa2   :  { %7570 = vmatmul.mubr.msk.bf16.vlgmr.msra.gmra.mrb[36].mxu0 %vm319_vm0, %v8076_v56  ;;  %7578 = vmatmul.mubr.msk.bf16.vlgmr.msra.gmra.mrb[36].mxu1 %vm319_vm0, %v8077_v57 }
  0xa3   :  { %7582 = vmatpush3.bf16.xpose.msra.mxu0 %v1847_v58  ;;  %7590 = vmatpush3.bf16.xpose.msra.mxu1 %v1923_v60  ;;  %v8119_v60 = vld [vmem:[%s11216_s1 + $0x168] sm:$0xff]  }
  0xa4   :  { %7974 = vmatprep.subr.msk.bf16.mxu0 %vm319_vm0, %v8081_v59  ;;  %7976 = vmatprep.subr.msk.bf16.mxu1 %vm319_vm0, %v8080_v61  ;;  %v2458_v59 = vsel %vm319_vm0, %v8114_v46, 0 }
  0xa5   :  { %7593 = vmatprep.mubr.msk.bf16.mxu1 %vm319_vm0, %v8082_v62  ;;  %7585 = vmatprep.mubr.msk.bf16.mxu0 %vm319_vm0, %v8084_v63 }
  0xab   :  { %7584 = vmatpush3.bf16.xpose.msra.mxu0 %v1850_v0  ;;  %7592 = vmatpush3.bf16.xpose.msra.mxu1 %v1926_v2  ;;  %v2534_v0 = vsel %vm319_vm0, %v8112_v45, 0 }
  0xac   :  { %7977 = vmatprep.subr.msk.bf16.mxu0 %vm319_vm0, %v8087_v1  ;;  %7979 = vmatprep.subr.msk.bf16.mxu1 %vm319_vm0, %v8086_v3  ;;  %v8118_v1 = vld [vmem:[%s11216_s1 + $0x174] sm:$0xff]  }
  0xb2   :  { %7586 = vmatmul.mubr.msk.bf16.vlgmr.msra.gmra.mrb[40].mxu0 %vm319_vm0, %v8085_v4  ;;  %7594 = vmatmul.mubr.msk.bf16.vlgmr.msra.gmra.mrb[40].mxu1 %vm319_vm0, %v8083_v5 }
  0xb3   :  { %7598 = vmatpush3.bf16.xpose.msra.mxu0 %v1999_v7  ;;  %7606 = vmatpush3.bf16.xpose.msra.mxu1 %v2075_v6  ;;  %v8117_v6 = vld [vmem:[%s11217_s0 + $0x158] ss:$0 sps:$4 sm:$0x11]   ;;  %v8115_v7 = vld [vmem:[%s11217_s0 + $0x164] ss:$0 sps:$4 sm:$0x11]  }
  0xb4   :  { %7609 = vmatprep.mubr.msk.bf16.mxu1 %vm319_vm0, %v8089_v8  ;;  %7980 = vmatprep.subr.msk.bf16.mxu1 %vm319_vm0, %v8088_v9  ;;  %v8120_v9 = vld [vmem:[%s11216_s1 + $0x17c] ss:$0 sps:$4 sm:$0x11]  }
  0xb5   :  { %7978 = vmatprep.subr.msk.bf16.mxu0 %vm319_vm0, %v8090_v10  ;;  %7601 = vmatprep.mubr.msk.bf16.mxu0 %vm319_vm0, %v8092_v11  ;;  %v2607_v10 = vsel %vm319_vm0, %v8119_v60, 0  ;;  %v8121_v11 = vld [vmem:[%s11217_s0 + $0x174] sm:$0xff]  }
  0xbb   :  { %7600 = vmatpush3.bf16.xpose.msra.mxu0 %v2002_v12  ;;  %7608 = vmatpush3.bf16.xpose.msra.mxu1 %v2078_v14  ;;  %v8122_v14 = vld [vmem:[%s11216_s1 + $0x170] ss:$0 sps:$4 sm:$0x11]  }
  0xbc   :  { %7981 = vmatprep.subr.msk.bf16.mxu0 %vm319_vm0, %v8095_v13  ;;  %7983 = vmatprep.subr.msk.bf16.mxu1 %vm319_vm0, %v8094_v15  ;;  %v2683_v13 = vsel %vm319_vm0, %v8118_v1, 0  ;;  %v8124_v15 = vld [vmem:[%s11217_s0 + $0x168] sm:$0xff]  }
  0xc2   :  { %7602 = vmatmul.mubr.msk.bf16.vlgmr.msra.gmra.mrb[44].mxu0 %vm319_vm0, %v8093_v16  ;;  %7610 = vmatmul.mubr.msk.bf16.vlgmr.msra.gmra.mrb[44].mxu1 %vm319_vm0, %v8091_v17 }
  0xc3   :  { %7614 = vmatpush3.bf16.xpose.msra.mxu0 %v2151_v19  ;;  %7622 = vmatpush3.bf16.xpose.msra.mxu1 %v2227_v18 }
  0xc4   :  { %7625 = vmatprep.mubr.msk.bf16.mxu1 %vm319_vm0, %v8097_v20  ;;  %7984 = vmatprep.subr.msk.bf16.mxu1 %vm319_vm0, %v8096_v21 }
  0xc5   :  { %7982 = vmatprep.subr.msk.bf16.mxu0 %vm319_vm0, %v8098_v22  ;;  %7617 = vmatprep.mubr.msk.bf16.mxu0 %vm319_vm0, %v8100_v23 }
  0xcb   :  { %7616 = vmatpush3.bf16.xpose.msra.mxu0 %v2154_v24  ;;  %7624 = vmatpush3.bf16.xpose.msra.mxu1 %v2230_v26 }
  0xcc   :  { %7985 = vmatprep.subr.msk.bf16.mxu0 %vm319_vm0, %v8104_v25  ;;  %7987 = vmatprep.subr.msk.bf16.mxu1 %vm319_vm0, %v8101_v27  ;;  %v2610_v27 = vsel %vm319_vm0, %v8122_v14, 0 }
  0xd2   :  { %7618 = vmatmul.mubr.msk.bf16.vlgmr.msra.gmra.mrb[48].mxu0 %vm319_vm0, %v8102_v28  ;;  %7626 = vmatmul.mubr.msk.bf16.vlgmr.msra.gmra.mrb[48].mxu1 %vm319_vm0, %v8099_v29 }
  0xd3   :  { %7630 = vmatpush3.bf16.xpose.msra.mxu0 %v2303_v31  ;;  %7638 = vmatpush3.bf16.xpose.msra.mxu1 %v2379_v30  ;;  %v2686_v31 = vsel %vm319_vm0, %v8120_v9, 0 }
  0xd4   :  { %7641 = vmatprep.mubr.msk.bf16.mxu1 %vm319_vm0, %v8105_v32  ;;  %7988 = vmatprep.subr.msk.bf16.mxu1 %vm319_vm0, %v8103_v33 }
  0xd5   :  { %7986 = vmatprep.subr.msk.bf16.mxu0 %vm319_vm0, %v8107_v34  ;;  %7633 = vmatprep.mubr.msk.bf16.mxu0 %vm319_vm0, %v8108_v35 }
  0xdb   :  { %7632 = vmatpush3.bf16.xpose.msra.mxu0 %v2306_v36  ;;  %7640 = vmatpush3.bf16.xpose.msra.mxu1 %v2382_v38  ;;  %v8125_v36 = vld [vmem:[%s11217_s0 + $0x170] ss:$0 sps:$4 sm:$0x11]  }
  0xdc   :  { %7989 = vmatprep.subr.msk.bf16.mxu0 %vm319_vm0, %v8111_v37  ;;  %7991 = vmatprep.subr.msk.bf16.mxu1 %vm319_vm0, %v8110_v39  ;;  %v8123_v37 = vld [vmem:[%s11217_s0 + $0x17c] ss:$0 sps:$4 sm:$0x11]  }
  0xe2   :  { %7634 = vmatmul.mubr.msk.bf16.vlgmr.msra.gmra.mrb[52].mxu0 %vm319_vm0, %v8109_v40  ;;  %7642 = vmatmul.mubr.msk.bf16.vlgmr.msra.gmra.mrb[52].mxu1 %vm319_vm0, %v8106_v41 }
  0xe3   :  { %7646 = vmatpush3.bf16.xpose.msra.mxu0 %v2455_v43  ;;  %7654 = vmatpush3.bf16.xpose.msra.mxu1 %v2531_v42 }
  0xe4   :  { %7657 = vmatprep.mubr.msk.bf16.mxu1 %vm319_vm0, %v8113_v44  ;;  %7992 = vmatprep.subr.msk.bf16.mxu1 %vm319_vm0, %v8112_v45 }
  0xe5   :  { %v7427_v48 = vpop.f32.mrb[0].mxu0  ;;  %7990 = vmatprep.subr.msk.bf16.mxu0 %vm319_vm0, %v8114_v46  ;;  %v7435_v50 = vpop.f32.mrb[0].mxu1  ;;  %7649 = vmatprep.mubr.msk.bf16.mxu0 %vm319_vm0, %v8116_v47 }
  0xe6   :  { %v9124_v49 = vmul.f32 0.25, %v7427_v48  ;;  %v366_v51 = vpop.f32.mrb[1].mxu0  ;;  %v9127_v52 = vmul.f32 0.25, %v7435_v50  ;;  %v442_v53 = vpop.f32.mrb[1].mxu1 }
  0xe7   :  { %v7428_v54 = vpop.f32.mrb[2].mxu0  ;;  %v9129_v55 = vmul.f32 0.25, %v366_v51  ;;  %v7436_v56 = vpop.f32.mrb[2].mxu1  ;;  %v9137_v61 = vmul.f32 0.25, %v442_v53 }
  0xe8   :  { %v369_v57 = vpop.f32.mrb[3].mxu0  ;;  %v2840_v58 = vsel %vm2839_vm1, %v9124_v49, -inf  ;;  %v445_v62 = vpop.f32.mrb[3].mxu1  ;;  %v2849_v63 = vsel %vm2839_vm1, %v9127_v52, -inf }
  0xe9   :  { %2841 = vmax.xlane.f32.xlu0 %v2840_v58  ;;  %2850 = vmax.xlane.f32.xlu1 %v2849_v63  ;;  %v9145_v2 = vmul.f32 0.25, %v369_v57  ;;  %v2833_v3 = vsel %vm2832_vm2, %v9129_v55, -inf  ;;  %v9150_v4 = vmul.f32 0.25, %v445_v62  ;;  %v2843_v5 = vsel %vm2832_vm2, %v9137_v61, -inf }
  0xeb   :  { %7648 = vmatpush3.bf16.xpose.msra.mxu0 %v2458_v59  ;;  %7656 = vmatpush3.bf16.xpose.msra.mxu1 %v2534_v0  ;;  %v2836_v8 = vsel %vm2832_vm2, %v9145_v2, -inf  ;;  %v2846_v12 = vsel %vm2832_vm2, %v9150_v4, -inf }
  0xec   :  { %7993 = vmatprep.subr.msk.bf16.mxu0 %vm319_vm0, %v8119_v60  ;;  %7995 = vmatprep.subr.msk.bf16.mxu1 %vm319_vm0, %v8118_v1 }
  0xed   :  { %2834 = vmax.xlane.f32.xlu0 %v2833_v3  ;;  %2844 = vmax.xlane.f32.xlu1 %v2843_v5 }
  0xf1   :  { %2837 = vmax.xlane.f32.xlu0 %v2836_v8  ;;  %2847 = vmax.xlane.f32.xlu1 %v2846_v12 }
  0xf2   :  { %7650 = vmatmul.mubr.msk.bf16.vlgmr.msra.gmra.mrb[56].mxu0 %vm319_vm0, %v8117_v6  ;;  %7658 = vmatmul.mubr.msk.bf16.vlgmr.msra.gmra.mrb[56].mxu1 %vm319_vm0, %v8115_v7 }
  0xf3   :  { %7662 = vmatpush3.bf16.xpose.msra.mxu0 %v2607_v10  ;;  %7670 = vmatpush3.bf16.xpose.msra.mxu1 %v2683_v13 }
  0xf4   :  { %7673 = vmatprep.mubr.msk.bf16.mxu1 %vm319_vm0, %v8121_v11  ;;  %7996 = vmatprep.subr.msk.bf16.mxu1 %vm319_vm0, %v8120_v9 }
  0xf5   :  { %v7443_v16 = vpop.f32.mrb[4].mxu0  ;;  %7994 = vmatprep.subr.msk.bf16.mxu0 %vm319_vm0, %v8122_v14  ;;  %v7451_v18 = vpop.f32.mrb[4].mxu1  ;;  %7665 = vmatprep.mubr.msk.bf16.mxu0 %vm319_vm0, %v8124_v15 }
  0xf6   :  { %v9184_v17 = vmul.f32 0.25, %v7443_v16  ;;  %v518_v19 = vpop.f32.mrb[5].mxu0  ;;  %v9187_v20 = vmul.f32 0.25, %v7451_v18  ;;  %v594_v22 = vpop.f32.mrb[5].mxu1 }
  0xf7   :  { %v9189_v21 = vmul.f32 0.25, %v518_v19  ;;  %v7444_v23 = vpop.f32.mrb[6].mxu0  ;;  %v7452_v24 = vpop.f32.mrb[6].mxu1  ;;  %v9203_v34 = vmul.f32 0.25, %v594_v22 }
  0xf8   :  { %v521_v25 = vpop.f32.mrb[7].mxu0  ;;  %v2858_v26 = vsel %vm2839_vm1, %v9184_v17, -inf  ;;  %v597_v29 = vpop.f32.mrb[7].mxu1  ;;  %v2867_v30 = vsel %vm2839_vm1, %v9187_v20, -inf }
  0xf9   :  { %v9194_v28 = vmul.f32 0.25, %v521_v25  ;;  %2859 = vmax.xlane.f32.xlu0 %v2858_v26  ;;  %2868 = vmax.xlane.f32.xlu1 %v2867_v30  ;;  %v2852_v32 = vsel %vm2832_vm2, %v9189_v21, -inf  ;;  %v9205_v35 = vmul.f32 0.25, %v597_v29  ;;  %v2861_v38 = vsel %vm2832_vm2, %v9203_v34, -inf }
  0xfb   :  { %v2855_v33 = vsel %vm2832_vm2, %v9194_v28, -inf  ;;  %7664 = vmatpush3.bf16.xpose.msra.mxu0 %v2610_v27  ;;  %7672 = vmatpush3.bf16.xpose.msra.mxu1 %v2686_v31  ;;  %v2864_v39 = vsel %vm2832_vm2, %v9205_v35, -inf }
  0xfd   :  { %2853 = vmax.xlane.f32.xlu0 %v2852_v32  ;;  %2856 = vmax.xlane.f32.xlu1 %v2855_v33 }
 0x101   :  { %2862 = vmax.xlane.f32.xlu0 %v2861_v38  ;;  %2865 = vmax.xlane.f32.xlu1 %v2864_v39 }
 0x102   :  { %7666 = vmatmul.mubr.msk.bf16.vlgmr.msra.gmra.mrb[60].mxu0 %vm319_vm0, %v8125_v36  ;;  %7674 = vmatmul.mubr.msk.bf16.vlgmr.msra.gmra.mrb[60].mxu1 %vm319_vm0, %v8123_v37 }
 0x105   :  { %v7459_v40 = vpop.f32.mrb[8].mxu0  ;;  %v7467_v42 = vpop.f32.mrb[8].mxu1 }
 0x106   :  { %v9219_v41 = vmul.f32 0.25, %v7459_v40  ;;  %v670_v43 = vpop.f32.mrb[9].mxu0  ;;  %v9221_v44 = vmul.f32 0.25, %v7467_v42  ;;  %v746_v46 = vpop.f32.mrb[9].mxu1 }
 0x107   :  { %v9223_v45 = vmul.f32 0.25, %v670_v43  ;;  %v7460_v47 = vpop.f32.mrb[10].mxu0  ;;  %v7468_v48 = vpop.f32.mrb[10].mxu1  ;;  %v9235_v59 = vmul.f32 0.25, %v746_v46 }
 0x108   :  { %v673_v50 = vpop.f32.mrb[11].mxu0  ;;  %v2876_v51 = vsel %vm2839_vm1, %v9219_v41, -inf  ;;  %v749_v54 = vpop.f32.mrb[11].mxu1  ;;  %v2885_v56 = vsel %vm2839_vm1, %v9221_v44, -inf }
 0x109   :  { %v9227_v53 = vmul.f32 0.25, %v673_v50  ;;  %2877 = vmax.xlane.f32.xlu0 %v2876_v51  ;;  %2886 = vmax.xlane.f32.xlu1 %v2885_v56  ;;  %v2870_v57 = vsel %vm2832_vm2, %v9223_v45, -inf  ;;  %v9237_v60 = vmul.f32 0.25, %v749_v54  ;;  %v2879_v62 = vsel %vm2832_vm2, %v9235_v59, -inf }
 0x10b   :  { %v2873_v58 = vsel %vm2832_vm2, %v9227_v53, -inf  ;;  %v2882_v63 = vsel %vm2832_vm2, %v9237_v60, -inf }
 0x10d   :  { %2871 = vmax.xlane.f32.xlu0 %v2870_v57  ;;  %2874 = vmax.xlane.f32.xlu1 %v2873_v58 }
 0x111   :  { %2880 = vmax.xlane.f32.xlu0 %v2879_v62  ;;  %2883 = vmax.xlane.f32.xlu1 %v2882_v63 }
 0x115   :  { %v7475_v0 = vpop.f32.mrb[12].mxu0  ;;  %v7483_v3 = vpop.f32.mrb[12].mxu1 }
 0x116   :  { %v9243_v1 = vmul.f32 0.25, %v7475_v0  ;;  %v822_v5 = vpop.f32.mrb[13].mxu0  ;;  %v9245_v6 = vmul.f32 0.25, %v7483_v3  ;;  %v898_v8 = vpop.f32.mrb[13].mxu1 }
 0x117   :  { %v9247_v7 = vmul.f32 0.25, %v822_v5  ;;  %v7476_v9 = vpop.f32.mrb[14].mxu0  ;;  %v7484_v10 = vpop.f32.mrb[14].mxu1  ;;  %v9259_v19 = vmul.f32 0.25, %v898_v8 }
 0x118   :  { %v825_v11 = vpop.f32.mrb[15].mxu0  ;;  %v2894_v12 = vsel %vm2839_vm1, %v9243_v1, -inf  ;;  %v901_v14 = vpop.f32.mrb[15].mxu1  ;;  %v2903_v15 = vsel %vm2839_vm1, %v9245_v6, -inf }
 0x119   :  { %v9251_v13 = vmul.f32 0.25, %v825_v11  ;;  %2895 = vmax.xlane.f32.xlu0 %v2894_v12  ;;  %2904 = vmax.xlane.f32.xlu1 %v2903_v15  ;;  %v2888_v16 = vsel %vm2832_vm2, %v9247_v7, -inf  ;;  %v9261_v22 = vmul.f32 0.25, %v901_v14  ;;  %v2897_v23 = vsel %vm2832_vm2, %v9259_v19, -inf }
 0x11b   :  { %v2891_v18 = vsel %vm2832_vm2, %v9251_v13, -inf  ;;  %v2900_v24 = vsel %vm2832_vm2, %v9261_v22, -inf }
 0x11d   :  { %2889 = vmax.xlane.f32.xlu0 %v2888_v16  ;;  %2892 = vmax.xlane.f32.xlu1 %v2891_v18 }
 0x121   :  { %2898 = vmax.xlane.f32.xlu0 %v2897_v23  ;;  %2901 = vmax.xlane.f32.xlu1 %v2900_v24 }
 0x125   :  { %v7491_v25 = vpop.f32.mrb[16].mxu0  ;;  %v7499_v27 = vpop.f32.mrb[16].mxu1 }
 0x126   :  { %v9267_v26 = vmul.f32 0.25, %v7491_v25  ;;  %v974_v29 = vpop.f32.mrb[17].mxu0  ;;  %v9269_v30 = vmul.f32 0.25, %v7499_v27  ;;  %v1050_v32 = vpop.f32.mrb[17].mxu1 }
 0x127   :  { %v9271_v31 = vmul.f32 0.25, %v974_v29  ;;  %v7492_v33 = vpop.f32.mrb[18].mxu0  ;;  %v7500_v36 = vpop.f32.mrb[18].mxu1  ;;  %v9283_v47 = vmul.f32 0.25, %v1050_v32 }
 0x128   :  { %v977_v37 = vpop.f32.mrb[19].mxu0  ;;  %v2912_v38 = vsel %vm2839_vm1, %v9267_v26, -inf  ;;  %v1053_v40 = vpop.f32.mrb[19].mxu1  ;;  %v2921_v42 = vsel %vm2839_vm1, %v9269_v30, -inf }
 0x129   :  { %v9275_v39 = vmul.f32 0.25, %v977_v37  ;;  %2913 = vmax.xlane.f32.xlu0 %v2912_v38  ;;  %2922 = vmax.xlane.f32.xlu1 %v2921_v42  ;;  %v2906_v43 = vsel %vm2832_vm2, %v9271_v31, -inf  ;;  %v9285_v48 = vmul.f32 0.25, %v1053_v40  ;;  %v2915_v50 = vsel %vm2832_vm2, %v9283_v47, -inf }
 0x12b   :  { %v2909_v46 = vsel %vm2832_vm2, %v9275_v39, -inf  ;;  %v2918_v51 = vsel %vm2832_vm2, %v9285_v48, -inf }
 0x12d   :  { %2907 = vmax.xlane.f32.xlu0 %v2906_v43  ;;  %2910 = vmax.xlane.f32.xlu1 %v2909_v46 }
 0x131   :  { %2916 = vmax.xlane.f32.xlu0 %v2915_v50  ;;  %2919 = vmax.xlane.f32.xlu1 %v2918_v51 }
 0x135   :  { %v7507_v54 = vpop.f32.mrb[20].mxu0  ;;  %v7515_v57 = vpop.f32.mrb[20].mxu1 }
 0x136   :  { %v9291_v56 = vmul.f32 0.25, %v7507_v54  ;;  %v1126_v58 = vpop.f32.mrb[21].mxu0  ;;  %v9293_v62 = vmul.f32 0.25, %v7515_v57  ;;  %v1202_v0 = vpop.f32.mrb[21].mxu1 }
 0x137   :  { %v9295_v63 = vmul.f32 0.25, %v1126_v58  ;;  %v7508_v3 = vpop.f32.mrb[22].mxu0  ;;  %v7516_v5 = vpop.f32.mrb[22].mxu1  ;;  %v9307_v16 = vmul.f32 0.25, %v1202_v0 }
 0x138   :  { %v1129_v8 = vpop.f32.mrb[23].mxu0  ;;  %v2930_v9 = vsel %vm2839_vm1, %v9291_v56, -inf  ;;  %v1205_v11 = vpop.f32.mrb[23].mxu1  ;;  %v2939_v12 = vsel %vm2839_vm1, %v9293_v62, -inf }
 0x139   :  { %v9299_v10 = vmul.f32 0.25, %v1129_v8  ;;  %2931 = vmax.xlane.f32.xlu0 %v2930_v9  ;;  %2940 = vmax.xlane.f32.xlu1 %v2939_v12  ;;  %v2924_v14 = vsel %vm2832_vm2, %v9295_v63, -inf  ;;  %v9309_v18 = vmul.f32 0.25, %v1205_v11  ;;  %v2933_v23 = vsel %vm2832_vm2, %v9307_v16, -inf }
 0x13b   :  { %v2927_v15 = vsel %vm2832_vm2, %v9299_v10, -inf  ;;  %v2936_v24 = vsel %vm2832_vm2, %v9309_v18, -inf }
 0x13d   :  { %2925 = vmax.xlane.f32.xlu0 %v2924_v14  ;;  %2928 = vmax.xlane.f32.xlu1 %v2927_v15 }
 0x141   :  { %2934 = vmax.xlane.f32.xlu0 %v2933_v23  ;;  %2937 = vmax.xlane.f32.xlu1 %v2936_v24 }
 0x145   :  { %v7523_v25 = vpop.f32.mrb[24].mxu0  ;;  %v7531_v29 = vpop.f32.mrb[24].mxu1 }
 0x146   :  { %v9315_v27 = vmul.f32 0.25, %v7523_v25  ;;  %v1278_v32 = vpop.f32.mrb[25].mxu0  ;;  %v9317_v33 = vmul.f32 0.25, %v7531_v29  ;;  %v1354_v37 = vpop.f32.mrb[25].mxu1 }
 0x147   :  { %v9319_v36 = vmul.f32 0.25, %v1278_v32  ;;  %v7524_v38 = vpop.f32.mrb[26].mxu0  ;;  %v7532_v40 = vpop.f32.mrb[26].mxu1  ;;  %v9331_v58 = vmul.f32 0.25, %v1354_v37 }
 0x148   :  { %v1281_v42 = vpop.f32.mrb[27].mxu0  ;;  %v2948_v43 = vsel %vm2839_vm1, %v9315_v27, -inf  ;;  %v1357_v50 = vpop.f32.mrb[27].mxu1  ;;  %v2957_v51 = vsel %vm2839_vm1, %v9317_v33, -inf }
 0x149   :  { %v9323_v46 = vmul.f32 0.25, %v1281_v42  ;;  %2949 = vmax.xlane.f32.xlu0 %v2948_v43  ;;  %2958 = vmax.xlane.f32.xlu1 %v2957_v51  ;;  %v2942_v54 = vsel %vm2832_vm2, %v9319_v36, -inf  ;;  %v9333_v0 = vmul.f32 0.25, %v1357_v50  ;;  %v2951_v3 = vsel %vm2832_vm2, %v9331_v58, -inf }
 0x14b   :  { %v2945_v57 = vsel %vm2832_vm2, %v9323_v46, -inf  ;;  %v2954_v5 = vsel %vm2832_vm2, %v9333_v0, -inf }
 0x14d   :  { %2943 = vmax.xlane.f32.xlu0 %v2942_v54  ;;  %2946 = vmax.xlane.f32.xlu1 %v2945_v57 }
 0x151   :  { %2952 = vmax.xlane.f32.xlu0 %v2951_v3  ;;  %2955 = vmax.xlane.f32.xlu1 %v2954_v5 }
 0x155   :  { %v7539_v8 = vpop.f32.mrb[28].mxu0  ;;  %v7547_v11 = vpop.f32.mrb[28].mxu1 }
 0x156   :  { %v9339_v9 = vmul.f32 0.25, %v7539_v8  ;;  %v1430_v12 = vpop.f32.mrb[29].mxu0  ;;  %v9341_v14 = vmul.f32 0.25, %v7547_v11  ;;  %v1506_v23 = vpop.f32.mrb[29].mxu1 }
 0x157   :  { %v9343_v15 = vmul.f32 0.25, %v1430_v12  ;;  %v7540_v24 = vpop.f32.mrb[30].mxu0  ;;  %v7548_v25 = vpop.f32.mrb[30].mxu1  ;;  %v9355_v50 = vmul.f32 0.25, %v1506_v23 }
 0x158   :  { %v1433_v29 = vpop.f32.mrb[31].mxu0  ;;  %v2966_v32 = vsel %vm2839_vm1, %v9339_v9, -inf  ;;  %v1509_v38 = vpop.f32.mrb[31].mxu1  ;;  %v2975_v40 = vsel %vm2839_vm1, %v9341_v14, -inf }
 0x159   :  { %v9347_v37 = vmul.f32 0.25, %v1433_v29  ;;  %2967 = vmax.xlane.f32.xlu0 %v2966_v32  ;;  %2976 = vmax.xlane.f32.xlu1 %v2975_v40  ;;  %v2960_v42 = vsel %vm2832_vm2, %v9343_v15, -inf  ;;  %v9357_v51 = vmul.f32 0.25, %v1509_v38  ;;  %v2969_v54 = vsel %vm2832_vm2, %v9355_v50, -inf }
 0x15b   :  { %v2963_v43 = vsel %vm2832_vm2, %v9347_v37, -inf  ;;  %11303 = vst [vmem:[#allocation2_spill] sm:$0xff] %v9357_v51  ;;  %v2972_v57 = vsel %vm2832_vm2, %v9357_v51, -inf }
 0x15d   :  { %2961 = vmax.xlane.f32.xlu0 %v2960_v42  ;;  %2964 = vmax.xlane.f32.xlu1 %v2963_v43 }
 0x161   :  { %2970 = vmax.xlane.f32.xlu0 %v2969_v54  ;;  %2973 = vmax.xlane.f32.xlu1 %v2972_v57 }
 0x165   :  { %v7555_v3 = vpop.f32.mrb[32].mxu0  ;;  %v7563_v8 = vpop.f32.mrb[32].mxu1 }
 0x166   :  { %v9363_v5 = vmul.f32 0.25, %v7555_v3  ;;  %v1582_v11 = vpop.f32.mrb[33].mxu0  ;;  %v9365_v12 = vmul.f32 0.25, %v7563_v8  ;;  %v1658_v24 = vpop.f32.mrb[33].mxu1 }
 0x167   :  { %v9367_v23 = vmul.f32 0.25, %v1582_v11  ;;  %v7556_v25 = vpop.f32.mrb[34].mxu0  ;;  %v7564_v29 = vpop.f32.mrb[34].mxu1  ;;  %v9379_v3 = vmul.f32 0.25, %v1658_v24 }
 0x168   :  { %11304 = vst [vmem:[#allocation3_spill] sm:$0xff] %v9363_v5  ;;  %11305 = vst [vmem:[#allocation4_spill] sm:$0xff] %v9365_v12  ;;  %v1585_v32 = vpop.f32.mrb[35].mxu0  ;;  %v2984_v38 = vsel %vm2839_vm1, %v9363_v5, -inf  ;;  %v1661_v42 = vpop.f32.mrb[35].mxu1  ;;  %v2993_v43 = vsel %vm2839_vm1, %v9365_v12, -inf }
 0x169   :  { %11306 = vst [vmem:[#allocation5_spill] sm:$0xff] %v9367_v23  ;;  %v9371_v40 = vmul.f32 0.25, %v1585_v32  ;;  %2985 = vmax.xlane.f32.xlu0 %v2984_v38  ;;  %2994 = vmax.xlane.f32.xlu1 %v2993_v43  ;;  %v2978_v54 = vsel %vm2832_vm2, %v9367_v23, -inf  ;;  %11308 = vst [vmem:[#allocation7_spill] sm:$0xff] %v9379_v3  ;;  %v9381_v8 = vmul.f32 0.25, %v1661_v42  ;;  %v2987_v11 = vsel %vm2832_vm2, %v9379_v3, -inf }
 0x16b   :  { %11307 = vst [vmem:[#allocation6_spill] sm:$0xff] %v9371_v40  ;;  %v2981_v57 = vsel %vm2832_vm2, %v9371_v40, -inf  ;;  %11309 = vst [vmem:[#allocation8_spill] sm:$0xff] %v9381_v8  ;;  %v2990_v25 = vsel %vm2832_vm2, %v9381_v8, -inf }
 0x16d   :  { %2979 = vmax.xlane.f32.xlu0 %v2978_v54  ;;  %2982 = vmax.xlane.f32.xlu1 %v2981_v57 }
 0x171   :  { %2988 = vmax.xlane.f32.xlu0 %v2987_v11  ;;  %2991 = vmax.xlane.f32.xlu1 %v2990_v25 }
 0x175   :  { %v7571_v29 = vpop.f32.mrb[36].mxu0  ;;  %v7579_v38 = vpop.f32.mrb[36].mxu1 }
 0x176   :  { %v9387_v32 = vmul.f32 0.25, %v7571_v29  ;;  %v2842_v43 = vpop.xlane.xlu0 %2841  ;;  %v9389_v40 = vmul.f32 0.25, %v7579_v38  ;;  %v2851_v24 = vpop.xlane.xlu1 %2850 }
 0x177   :  { %v1810_v42 = vpop.f32.mrb[37].mxu1  ;;  %v3124_v54 = vsub.f32 %v9124_v49, %v2842_v43  ;;  %v3127_v57 = vsub.f32 %v9127_v52, %v2851_v24  ;;  %v1734_v23 = vpop.f32.mrb[37].mxu0 }
 0x178   :  { %v7580_v3 = vpop.f32.mrb[38].mxu1  ;;  %v3002_v11 = vsel %vm2839_vm1, %v9387_v32, -inf  ;;  %v9395_v25 = vmul.f32 0.25, %v1734_v23  ;;  %v7572_v29 = vpop.f32.mrb[38].mxu0  ;;  %v3011_v38 = vsel %vm2839_vm1, %v9389_v40, -inf  ;;  %v9402_v24 = vmul.f32 0.25, %v1810_v42 }
 0x179   :  { %v3222_v8 = vmul.f32 1.442695, %v3124_v54  ;;  %v1813_v12 = vpop.f32.mrb[39].mxu1  ;;  %3003 = vmax.xlane.f32.xlu0 %v3002_v11  ;;  %v3228_v5 = vmul.f32 1.442695, %v3127_v57  ;;  %v1737_v51 = vpop.f32.mrb[39].mxu0  ;;  %3012 = vmax.xlane.f32.xlu1 %v3011_v38 }
 0x17a   :  { %v2835_v49 = vpop.xlane.xlu0 %2834  ;;  %v9399_v52 = vmul.f32 0.25, %v1737_v51  ;;  %v2845_v3 = vpop.xlane.xlu1 %2844  ;;  %11311 = vst [vmem:[#allocation10_spill] sm:$0xff] %v9402_v24  ;;  %v2996_v54 = vsel %vm2832_vm2, %v9395_v25, -inf  ;;  %v9407_v29 = vmul.f32 0.25, %v1813_v12 }
 0x17b   :  { %8190 = vpow2.f32 %v3222_v8  ;;  %v3122_v43 = vsub.f32 %v9129_v55, %v2835_v49  ;;  %v3125_v23 = vsub.f32 %v9137_v61, %v2845_v3  ;;  %v3005_v61 = vsel %vm2832_vm2, %v9402_v24, -inf }
 0x17c   :  { %11310 = vst [vmem:[#allocation9_spill] sm:$0xff] %v9399_v52  ;;  %8192 = vpow2.f32 %v3228_v5  ;;  %11312 = vst [vmem:[#allocation11_spill] sm:$0xff] %v9407_v29  ;;  %v2999_v8 = vsel %vm2832_vm2, %v9399_v52, -inf  ;;  %v3008_v38 = vsel %vm2832_vm2, %v9407_v29, -inf }
 0x17d   :  { %v3218_v57 = vmul.f32 1.442695, %v3122_v43  ;;  %2997 = vmax.xlane.f32.xlu0 %v2996_v54  ;;  %v3224_v51 = vmul.f32 1.442695, %v3125_v23  ;;  %3000 = vmax.xlane.f32.xlu1 %v2999_v8 }
 0x17e   :  { %v2838_v11 = vpop.xlane.xlu0 %2837  ;;  %v2848_v55 = vpop.xlane.xlu1 %2847 }
 0x17f   :  { %8194 = vpow2.f32 %v3218_v57  ;;  %v3123_v5 = vsub.f32 %v9145_v2, %v2838_v11  ;;  %v3126_v42 = vsub.f32 %v9150_v4, %v2848_v55 }
 0x180   :  { %8196 = vpow2.f32 %v3224_v51 }
 0x181   :  { %v3220_v12 = vmul.f32 1.442695, %v3123_v5  ;;  %3006 = vmax.xlane.f32.xlu0 %v3005_v61  ;;  %v3226_v49 = vmul.f32 1.442695, %v3126_v42  ;;  %3009 = vmax.xlane.f32.xlu1 %v3008_v38 }
 0x183   :  { %8198 = vpow2.f32 %v3220_v12 }
 0x184   :  { %8200 = vpow2.f32 %v3226_v49 }
 0x185   :  { %v9417_v3 = vpop.eup %8190  ;;  %v7587_v43 = vpop.f32.mrb[40].mxu0 }
 0x186   :  { %11313 = vst [vmem:[#allocation12_spill] sm:$0xff] %v9417_v3  ;;  %v9419_v23 = vpop.eup %8192  ;;  %v7595_v2 = vpop.f32.mrb[40].mxu1  ;;  %v3416_v54 = vsel %vm2839_vm1, %v9417_v3, 0.0 }
 0x187   :  { %11314 = vst [vmem:[#allocation13_spill] sm:$0xff] %v9419_v23  ;;  %v2860_v4 = vpop.xlane.xlu0 %2859  ;;  %v9423_v57 = vmul.f32 0.25, %v7595_v2  ;;  %v2869_v8 = vpop.xlane.xlu1 %2868  ;;  %3417 = vadd.xlane.f32.xlu0 %v3416_v54  ;;  %v3425_v11 = vsel %vm2839_vm1, %v9419_v23, 0.0 }
 0x188   :  { %v1962_v51 = vpop.f32.mrb[41].mxu1  ;;  %3426 = vadd.xlane.f32.xlu1 %v3425_v11  ;;  %v1886_v5 = vpop.f32.mrb[41].mxu0  ;;  %v3130_v61 = vsub.f32 %v9184_v17, %v2860_v4  ;;  %v3133_v2 = vsub.f32 %v9187_v20, %v2869_v8  ;;  %v9437_v11 = vmul.f32 0.25, %v7587_v43 }
 0x189   :  { %11315 = vst [vmem:[#allocation14_spill] sm:$0xff] %v9423_v57  ;;  %v7596_v55 = vpop.f32.mrb[42].mxu1  ;;  %v9427_v42 = vpop.eup %8194  ;;  %v3029_v38 = vsel %vm2839_vm1, %v9423_v57, -inf }
 0x18a   :  { %11316 = vst [vmem:[#allocation15_spill] sm:$0xff] %v9427_v42  ;;  %v1965_v12 = vpop.f32.mrb[43].mxu1  ;;  %v7588_v49 = vpop.f32.mrb[42].mxu0  ;;  %v3410_v54 = vsel %vm2832_vm2, %v9427_v42, 0.0  ;;  %11318 = vst [vmem:[#allocation17_spill] sm:$0xff] %v9437_v11  ;;  %v3020_v43 = vsel %vm2839_vm1, %v9437_v11, -inf }
 0x18b   :  { %v2854_v29 = vpop.xlane.xlu0 %2853  ;;  %v1889_v3 = vpop.f32.mrb[43].mxu0  ;;  %3411 = vadd.xlane.f32.xlu0 %v3410_v54  ;;  %v3234_v17 = vmul.f32 1.442695, %v3130_v61  ;;  %v3240_v49 = vmul.f32 1.442695, %v3133_v2 }
 0x18c   :  { %v9435_v23 = vpop.eup %8196  ;;  %3030 = vmax.xlane.f32.xlu1 %v3029_v38  ;;  %v3128_v4 = vsub.f32 %v9189_v21, %v2854_v29  ;;  %v2857_v57 = vpop.xlane.xlu1 %2856  ;;  %v9452_v38 = vmul.f32 0.25, %v1886_v5  ;;  %v9454_v54 = vmul.f32 0.25, %v1889_v3  ;;  %v9463_v3 = vmul.f32 0.25, %v1965_v12 }
 0x18d   :  { %11317 = vst [vmem:[#allocation16_spill] sm:$0xff] %v9435_v23  ;;  %v9439_v55 = vpop.eup %8198  ;;  %v3419_v20 = vsel %vm2832_vm2, %v9435_v23, 0.0  ;;  %8202 = vpow2.f32 %v3234_v17  ;;  %v3129_v29 = vsub.f32 %v9194_v28, %v2857_v57  ;;  %v9458_v17 = vmul.f32 0.25, %v1962_v51 }
 0x18e   :  { %11319 = vst [vmem:[#allocation18_spill] sm:$0xff] %v9439_v55  ;;  %v3413_v8 = vsel %vm2832_vm2, %v9439_v55, 0.0  ;;  %v9446_v42 = vpop.eup %8200  ;;  %v3230_v61 = vmul.f32 1.442695, %v3128_v4  ;;  %8204 = vpow2.f32 %v3240_v49  ;;  %11321 = vst [vmem:[#allocation20_spill] sm:$0xff] %v9452_v38  ;;  %v3014_v28 = vsel %vm2832_vm2, %v9452_v38, -inf }
 0x18f   :  { %v2863_v24 = vpop.xlane.xlu0 %2862  ;;  %3420 = vadd.xlane.f32.xlu0 %v3419_v20  ;;  %11320 = vst [vmem:[#allocation19_spill] sm:$0xff] %v9446_v42  ;;  %11322 = vst [vmem:[#allocation21_spill] sm:$0xff] %v9454_v54  ;;  %v3422_v20 = vsel %vm2832_vm2, %v9446_v42, 0.0  ;;  %v3232_v4 = vmul.f32 1.442695, %v3129_v29  ;;  %v3017_v49 = vsel %vm2832_vm2, %v9454_v54, -inf }
 0x190   :  { %3414 = vadd.xlane.f32.xlu1 %v3413_v8  ;;  %v3131_v21 = vsub.f32 %v9203_v34, %v2863_v24  ;;  %v2866_v2 = vpop.xlane.xlu1 %2865  ;;  %8206 = vpow2.f32 %v3230_v61  ;;  %11323 = vst [vmem:[#allocation22_spill] sm:$0xff] %v9458_v17  ;;  %11324 = vst [vmem:[#allocation23_spill] sm:$0xff] %v9463_v3  ;;  %v3023_v12 = vsel %vm2832_vm2, %v9458_v17, -inf }
 0x191   :  { %v3132_v34 = vsub.f32 %v9205_v35, %v2866_v2 }
 0x192   :  { %v3236_v8 = vmul.f32 1.442695, %v3131_v21 }
 0x193   :  { %3021 = vmax.xlane.f32.xlu0 %v3020_v43  ;;  %v3238_v29 = vmul.f32 1.442695, %v3132_v34 }
 0x194   :  { %3423 = vadd.xlane.f32.xlu1 %v3422_v20  ;;  %8208 = vpow2.f32 %v3236_v8 }
 0x195   :  { %v7603_v11 = vpop.f32.mrb[44].mxu0  ;;  %v7611_v57 = vpop.f32.mrb[44].mxu1  ;;  %8210 = vpow2.f32 %v3232_v4 }
 0x196   :  { %v2878_v24 = vpop.xlane.xlu0 %2877  ;;  %v2887_v5 = vpop.xlane.xlu1 %2886  ;;  %8212 = vpow2.f32 %v3238_v29 }
 0x197   :  { %3015 = vmax.xlane.f32.xlu0 %v3014_v28  ;;  %v9467_v43 = vpop.f32.mrb[45].mxu1  ;;  %v2038_v61 = vpop.f32.mrb[45].mxu0  ;;  %v3026_v28 = vsel %vm2832_vm2, %v9463_v3, -inf }
 0x198   :  { %3018 = vmax.xlane.f32.xlu1 %v3017_v49  ;;  %v7612_v51 = vpop.f32.mrb[46].mxu1  ;;  %v7604_v35 = vpop.f32.mrb[46].mxu0  ;;  %v9525_v55 = vmul.f32 0.25, %v2038_v61 }
 0x199   :  { %v9469_v21 = vpop.f32.mrb[47].mxu1  ;;  %v2041_v2 = vpop.f32.mrb[47].mxu0  ;;  %v9479_v51 = vmul.f32 0.25, %v7611_v57 }
 0x19a   :  { %v9473_v20 = vpop.eup %8202  ;;  %v2872_v49 = vpop.xlane.xlu0 %2871  ;;  %11333 = vst [vmem:[#allocation32_spill] sm:$0xff] %v9525_v55 }
 0x19b   :  { %11325 = vst [vmem:[#allocation24_spill] sm:$0xff] %v9473_v20  ;;  %3024 = vmax.xlane.f32.xlu0 %v3023_v12  ;;  %v9477_v54 = vpop.eup %8204  ;;  %v2875_v8 = vpop.xlane.xlu1 %2874  ;;  %11327 = vst [vmem:[#allocation26_spill] sm:$0xff] %v9479_v51  ;;  %v3434_v4 = vsel %vm2839_vm1, %v9473_v20, 0.0  ;;  %v3136_v12 = vsub.f32 %v9219_v41, %v2878_v24  ;;  %v3047_v3 = vsel %vm2839_vm1, %v9479_v51, -inf  ;;  %v3134_v41 = vsub.f32 %v9223_v45, %v2872_v49 }
 0x19c   :  { %11326 = vst [vmem:[#allocation25_spill] sm:$0xff] %v9477_v54  ;;  %3027 = vmax.xlane.f32.xlu1 %v3026_v28  ;;  %v9483_v34 = vpop.eup %8206  ;;  %v3443_v35 = vsel %vm2839_vm1, %v9477_v54, 0.0  ;;  %v3139_v28 = vsub.f32 %v9221_v44, %v2887_v5  ;;  %v9497_v54 = vmul.f32 0.25, %v7603_v11  ;;  %v8126_v44 = vld [vmem:[%s11218_s2] sm:$0xff]   ;;  %v3135_v23 = vsub.f32 %v9227_v53, %v2875_v8 }
 0x19d   :  { %11328 = vst [vmem:[#allocation27_spill] sm:$0xff] %v9483_v34  ;;  %v3428_v29 = vsel %vm2832_vm2, %v9483_v34, 0.0  ;;  %v3246_v38 = vmul.f32 1.442695, %v3136_v12  ;;  %7677 = vmatprep.subr.bf16.mxu0 %v8126_v44  ;;  %v9540_v53 = vmul.f32 0.25, %v9469_v21 }
 0x19e   :  { %v2881_v57 = vpop.xlane.xlu0 %2880  ;;  %v9493_v17 = vpop.eup %8208  ;;  %11331 = vst [vmem:[#allocation30_spill] sm:$0xff] %v9497_v54  ;;  %v3252_v5 = vmul.f32 1.442695, %v3139_v28  ;;  %v3038_v49 = vsel %vm2839_vm1, %v9497_v54, -inf  ;;  %7678 = vmatpush3.bf16.msra.mxu0 %v8126_v44 }
 0x19f   :  { %3435 = vadd.xlane.f32.xlu0 %v3434_v4  ;;  %11329 = vst [vmem:[#allocation28_spill] sm:$0xff] %v9493_v17  ;;  %v2884_v20 = vpop.xlane.xlu1 %2883  ;;  %v9495_v4 = vpop.eup %8210  ;;  %8214 = vpow2.f32 %v3246_v38  ;;  %v8127_v44 = vld [vmem:[%s11218_s2 + $0x8] ss:$0 sps:$4 sm:$0x11]   ;;  %11336 = vst [vmem:[#allocation35_spill] sm:$0xff] %v9540_v53 }
 0x1a0   :  { %3444 = vadd.xlane.f32.xlu1 %v3443_v35  ;;  %11330 = vst [vmem:[#allocation29_spill] sm:$0xff] %v9495_v4  ;;  %v3431_v11 = vsel %vm2832_vm2, %v9495_v4, 0.0  ;;  %8216 = vpow2.f32 %v3252_v5  ;;  %v8574_v5 = vmov 0  }
 0x1a1   :  { %v9552_v21 = vsel %vm3969_vm3, 65535, %v8574_v5 }
 0x1a3   :  { %3429 = vadd.xlane.f32.xlu0 %v3428_v29  ;;  %v3437_v29 = vsel %vm2832_vm2, %v9493_v17, 0.0  ;;  %v3242_v17 = vmul.f32 1.442695, %v3134_v41  ;;  %v3244_v41 = vmul.f32 1.442695, %v3135_v23 }
 0x1a4   :  { %3048 = vmax.xlane.f32.xlu1 %v3047_v3  ;;  %v9515_v3 = vpop.eup %8212 }
 0x1a5   :  { %v9500_v24 = vpop.f32.mrb[48].mxu0  ;;  %v7627_v34 = vpop.f32.mrb[48].mxu1  ;;  %11332 = vst [vmem:[#allocation31_spill] sm:$0xff] %v9515_v3  ;;  %v3440_v38 = vsel %vm2832_vm2, %v9515_v3, 0.0  ;;  %8218 = vpow2.f32 %v3242_v17 }
 0x1a6   :  { %v9505_v35 = vpop.xlane.xlu0 %2895  ;;  %v9509_v51 = vpop.xlane.xlu1 %2904 }
 0x1a7   :  { %3438 = vadd.xlane.f32.xlu0 %v3437_v29  ;;  %v9513_v45 = vpop.f32.mrb[49].mxu1  ;;  %v9519_v28 = vpop.f32.mrb[49].mxu0  ;;  %v3137_v29 = vsub.f32 %v9235_v59, %v2881_v57  ;;  %v9537_v59 = vmul.f32 0.25, %v9467_v43  ;;  %v3138_v57 = vsub.f32 %v9237_v60, %v2884_v20  ;;  %v3032_v43 = vsel %vm2832_vm2, %v9525_v55, -inf }
 0x1a8   :  { %3432 = vadd.xlane.f32.xlu1 %v3431_v11  ;;  %v7628_v12 = vpop.f32.mrb[50].mxu1  ;;  %v7620_v4 = vpop.f32.mrb[50].mxu0  ;;  %v9527_v11 = vmul.f32 0.25, %v2041_v2  ;;  %v8128_v2 = vld [vmem:[%s11218_s2 + $0xc] sm:$0xff]  }
 0x1a9   :  { %v9522_v42 = vpop.f32.mrb[51].mxu1  ;;  %v9529_v52 = vpop.f32.mrb[51].mxu0  ;;  %11335 = vst [vmem:[#allocation34_spill] sm:$0xff] %v9537_v59  ;;  %v3248_v8 = vmul.f32 1.442695, %v3137_v29  ;;  %7685 = vmatprep.subr.bf16.mxu1 %v8128_v2  ;;  %v3973_v12 = vand.u32 %v8127_v44, %v9552_v21  ;;  %v3041_v29 = vsel %vm2832_vm2, %v9537_v59, -inf }
 0x1aa   :  { %11334 = vst [vmem:[#allocation33_spill] sm:$0xff] %v9527_v11  ;;  %v9542_v61 = vpop.xlane.xlu0 %2889  ;;  %v9548_v4 = vpop.xlane.xlu1 %2892  ;;  %7686 = vmatpush3.bf16.msra.mxu1 %v8128_v2  ;;  %v8129_v60 = vld [vmem:[%s11218_s2 + $0x14] ss:$0 sps:$4 sm:$0x11]   ;;  %v3250_v23 = vmul.f32 1.442695, %v3138_v57 }
 0x1ab   :  { %3039 = vmax.xlane.f32.xlu0 %v3038_v49  ;;  %v3035_v49 = vsel %vm2832_vm2, %v9527_v11, -inf  ;;  %8220 = vpow2.f32 %v3248_v8  ;;  %7679 = vmatprep.subr.bf16.mxu0 %v3973_v12  ;;  %v4039_v17 = vand.u32 %v8129_v60, %v9552_v21  ;;  %v9565_v44 = vpop.eup %8214  ;;  %v9571_v57 = vmul.f32 0.25, %v7627_v34 }
 0x1ac   :  { %3441 = vadd.xlane.f32.xlu1 %v3440_v38  ;;  %8222 = vpow2.f32 %v3244_v41  ;;  %v3044_v38 = vsel %vm2832_vm2, %v9540_v53, -inf  ;;  %7680 = vmatpush3.bf16.msra.mxu0 %v3973_v12  ;;  %11337 = vst [vmem:[#allocation36_spill] sm:$0xff] %v9565_v44  ;;  %v9569_v8 = vpop.eup %8216  ;;  %v3452_v5 = vsel %vm2839_vm1, %v9565_v44, 0.0  ;;  %v3142_v34 = vsub.f32 %v9243_v1, %v9505_v35 }
 0x1ad   :  { %7687 = vmatprep.subr.bf16.mxu1 %v4039_v17  ;;  %11338 = vst [vmem:[#allocation37_spill] sm:$0xff] %v9569_v8  ;;  %8224 = vpow2.f32 %v3250_v23  ;;  %11339 = vst [vmem:[#allocation38_spill] sm:$0xff] %v9571_v57  ;;  %v3145_v44 = vsub.f32 %v9245_v6, %v9509_v51  ;;  %v3065_v3 = vsel %vm2839_vm1, %v9571_v57, -inf  ;;  %v9606_v1 = vmul.f32 0.25, %v9500_v24  ;;  %v9621_v24 = vld [vmem:[%s11218_s2 + $0x18] sm:$0xff]  }
 0x1ae   :  { %v2899_v20 = vpop.xlane.xlu0 %2898  ;;  %v9567_v2 = vpop.xlane.xlu1 %2901  ;;  %7688 = vmatpush3.bf16.msra.mxu1 %v4039_v17  ;;  %v3461_v17 = vsel %vm2839_vm1, %v9569_v8, 0.0  ;;  %v3258_v6 = vmul.f32 1.442695, %v3142_v34  ;;  %7693 = vmatprep.subr.bf16.mxu0 %v9621_v24  ;;  %v3141_v34 = vsub.f32 %v9251_v13, %v9548_v4 }
 0x1af   :  { %3033 = vmax.xlane.f32.xlu0 %v3032_v43  ;;  %v9581_v12 = vpop.eup %8218  ;;  %11342 = vst [vmem:[#allocation41_spill] sm:$0xff] %v9606_v1 }
 0x1b0   :  { %3036 = vmax.xlane.f32.xlu1 %v3035_v49  ;;  %11340 = vst [vmem:[#allocation39_spill] sm:$0xff] %v9581_v12  ;;  %v3446_v8 = vsel %vm2832_vm2, %v9581_v12, 0.0  ;;  %8226 = vpow2.f32 %v3258_v6  ;;  %v9639_v6 = vmul.f32 0.25, %v9529_v52  ;;  %v3256_v4 = vmul.f32 1.442695, %v3141_v34 }
 0x1b2   :  { %11346 = vst [vmem:[#allocation45_spill] sm:$0xff] %v9639_v6 }
 0x1b3   :  { %3042 = vmax.xlane.f32.xlu0 %v3041_v29 }
 0x1b4   :  { %3045 = vmax.xlane.f32.xlu1 %v3044_v38 }
 0x1b5   :  { %v9573_v41 = vpop.f32.mrb[52].mxu0  ;;  %v9579_v49 = vpop.f32.mrb[52].mxu1 }
 0x1b6   :  { %v9575_v43 = vpop.xlane.xlu0 %2913  ;;  %v9583_v60 = vpop.xlane.xlu1 %2922 }
 0x1b7   :  { %3453 = vadd.xlane.f32.xlu0 %v3452_v5  ;;  %v9587_v23 = vpop.f32.mrb[53].mxu1  ;;  %v9591_v38 = vpop.f32.mrb[53].mxu0 }
 0x1b8   :  { %3462 = vadd.xlane.f32.xlu1 %v3461_v17  ;;  %v7644_v29 = vpop.f32.mrb[54].mxu1  ;;  %v7636_v5 = vpop.f32.mrb[54].mxu0  ;;  %v3264_v17 = vmul.f32 1.442695, %v3145_v44  ;;  %v3143_v44 = vsub.f32 %v9259_v19, %v2899_v20  ;;  %v9646_v20 = vld [vmem:[%s11218_s2 + $0x24] sm:$0xff]  }
 0x1b9   :  { %v9597_v53 = vpop.f32.mrb[55].mxu1  ;;  %v9601_v59 = vpop.f32.mrb[55].mxu0  ;;  %v3140_v29 = vsub.f32 %v9247_v7, %v9542_v61  ;;  %v3056_v7 = vsel %vm2839_vm1, %v9606_v1, -inf  ;;  %11347 = vst [vmem:[#allocation46_spill] sm:$0xff] %v9646_v20  ;;  %7701 = vmatprep.subr.bf16.mxu1 %v9646_v20 }
 0x1ba   :  { %v9603_v11 = vpop.eup %8220  ;;  %v9610_v51 = vpop.xlane.xlu0 %2907  ;;  %8228 = vpow2.f32 %v3264_v17  ;;  %v3260_v13 = vmul.f32 1.442695, %v3143_v44  ;;  %v9665_v44 = vmul.f32 0.25, %v9522_v42 }
 0x1bb   :  { %11341 = vst [vmem:[#allocation40_spill] sm:$0xff] %v9603_v11  ;;  %3447 = vadd.xlane.f32.xlu0 %v3446_v8  ;;  %v9608_v35 = vpop.eup %8222  ;;  %v9614_v5 = vpop.xlane.xlu1 %2910  ;;  %v3455_v12 = vsel %vm2832_vm2, %v9603_v11, 0.0  ;;  %v3254_v61 = vmul.f32 1.442695, %v3140_v29  ;;  %v9634_v11 = vmul.f32 0.25, %v9519_v28  ;;  %v9652_v28 = vmul.f32 0.25, %v9513_v45 }
 0x1bc   :  { %11343 = vst [vmem:[#allocation42_spill] sm:$0xff] %v9608_v35  ;;  %3066 = vmax.xlane.f32.xlu1 %v3065_v3  ;;  %v9623_v8 = vpop.eup %8224  ;;  %v3449_v3 = vsel %vm2832_vm2, %v9608_v35, 0.0  ;;  %v3144_v29 = vsub.f32 %v9261_v22, %v9567_v2  ;;  %11349 = vst [vmem:[#allocation48_spill] sm:$0xff] %v9665_v44  ;;  %v3053_v45 = vsel %vm2832_vm2, %v9639_v6, -inf }
 0x1bd   :  { %11344 = vst [vmem:[#allocation43_spill] sm:$0xff] %v9623_v8  ;;  %11345 = vst [vmem:[#allocation44_spill] sm:$0xff] %v9634_v11  ;;  %v3458_v19 = vsel %vm2832_vm2, %v9623_v8, 0.0  ;;  %8230 = vpow2.f32 %v3254_v61  ;;  %v3050_v8 = vsel %vm2832_vm2, %v9634_v11, -inf  ;;  %v9677_v11 = vpop.eup %8226 }
 0x1be   :  { %11348 = vst [vmem:[#allocation47_spill] sm:$0xff] %v9652_v28  ;;  %8232 = vpow2.f32 %v3260_v13  ;;  %11350 = vst [vmem:[#allocation49_spill] sm:$0xff] %v9677_v11  ;;  %v3262_v42 = vmul.f32 1.442695, %v3144_v29  ;;  %v3062_v13 = vsel %vm2832_vm2, %v9665_v44, -inf  ;;  %v3470_v29 = vsel %vm2839_vm1, %v9677_v11, 0.0 }
 0x1bf   :  { %3456 = vadd.xlane.f32.xlu0 %v3455_v12  ;;  %v9636_v12 = vpop.xlane.xlu0 %2916  ;;  %v9648_v17 = vpop.xlane.xlu1 %2919  ;;  %8234 = vpow2.f32 %v3256_v4  ;;  %v9694_v4 = vmul.f32 0.25, %v9579_v49  ;;  %v9711_v11 = vmul.f32 0.25, %v9573_v41 }
 0x1c0   :  { %3450 = vadd.xlane.f32.xlu1 %v3449_v3  ;;  %8236 = vpow2.f32 %v3262_v42  ;;  %v3149_v55 = vsub.f32 %v9283_v47, %v9636_v12 }
 0x1c1   :  { %11352 = vst [vmem:[#allocation51_spill] sm:$0xff] %v9694_v4 }
 0x1c3   :  { %3057 = vmax.xlane.f32.xlu0 %v3056_v7 }
 0x1c4   :  { %3459 = vadd.xlane.f32.xlu1 %v3458_v19  ;;  %v9683_v6 = vpop.eup %8228 }
 0x1c5   :  { %v9654_v52 = vpop.f32.mrb[56].mxu0  ;;  %v9662_v7 = vpop.f32.mrb[56].mxu1  ;;  %11351 = vst [vmem:[#allocation50_spill] sm:$0xff] %v9683_v6 }
 0x1c6   :  { %v9658_v3 = vpop.xlane.xlu0 %2931  ;;  %v9667_v61 = vpop.xlane.xlu1 %2940 }
 0x1c7   :  { %3051 = vmax.xlane.f32.xlu0 %v3050_v8  ;;  %v9671_v34 = vpop.f32.mrb[57].mxu1  ;;  %v9673_v2 = vpop.f32.mrb[57].mxu0  ;;  %v3059_v8 = vsel %vm2832_vm2, %v9652_v28, -inf  ;;  %v3479_v28 = vsel %vm2839_vm1, %v9683_v6, 0.0 }
 0x1c8   :  { %3054 = vmax.xlane.f32.xlu1 %v3053_v45  ;;  %v7660_v22 = vpop.f32.mrb[58].mxu1  ;;  %v7652_v35 = vpop.f32.mrb[58].mxu0  ;;  %v3148_v45 = vsub.f32 %v9267_v26, %v9575_v43 }
 0x1c9   :  { %v9675_v19 = vpop.f32.mrb[59].mxu1  ;;  %v9681_v1 = vpop.f32.mrb[59].mxu0 }
 0x1ca   :  { %v9689_v22 = vpop.xlane.xlu0 %2925  ;;  %v9691_v35 = vpop.xlane.xlu1 %2928  ;;  %v3270_v43 = vmul.f32 1.442695, %v3148_v45  ;;  %v3146_v45 = vsub.f32 %v9271_v31, %v9610_v51  ;;  %v3074_v31 = vsel %vm2839_vm1, %v9711_v11, -inf }
 0x1cb   :  { %3060 = vmax.xlane.f32.xlu0 %v3059_v8  ;;  %v9700_v26 = vpop.eup %8230  ;;  %v3083_v8 = vsel %vm2839_vm1, %v9694_v4, -inf }
 0x1cc   :  { %3063 = vmax.xlane.f32.xlu1 %v3062_v13  ;;  %11353 = vst [vmem:[#allocation52_spill] sm:$0xff] %v9700_v26  ;;  %v3151_v13 = vsub.f32 %v9269_v30, %v9583_v60  ;;  %v3464_v42 = vsel %vm2832_vm2, %v9700_v26, 0.0  ;;  %v9713_v6 = vpop.eup %8232  ;;  %8238 = vpow2.f32 %v3270_v43  ;;  %v9756_v43 = vmul.f32 0.25, %v9601_v59 }
 0x1cd   :  { %11354 = vst [vmem:[#allocation53_spill] sm:$0xff] %v9713_v6  ;;  %v3473_v41 = vsel %vm2832_vm2, %v9713_v6, 0.0  ;;  %v3266_v6 = vmul.f32 1.442695, %v3146_v45 }
 0x1ce   :  { %v9706_v49 = vpop.xlane.xlu0 %2934  ;;  %v9715_v44 = vpop.xlane.xlu1 %2937  ;;  %v3276_v60 = vmul.f32 1.442695, %v3151_v13  ;;  %v3071_v45 = vsel %vm2832_vm2, %v9756_v43, -inf }
 0x1cf   :  { %3471 = vadd.xlane.f32.xlu0 %v3470_v29 }
 0x1d0   :  { %3480 = vadd.xlane.f32.xlu1 %v3479_v28  ;;  %v9717_v28 = vpop.eup %8234  ;;  %8240 = vpow2.f32 %v3276_v60 }
 0x1d1   :  { %11355 = vst [vmem:[#allocation54_spill] sm:$0xff] %v9717_v28  ;;  %v9735_v57 = vpop.eup %8236  ;;  %8242 = vpow2.f32 %v3266_v6 }
 0x1d2   :  { %v3476_v47 = vsel %vm2832_vm2, %v9735_v57, 0.0 }
 0x1d3   :  { %3465 = vadd.xlane.f32.xlu0 %v3464_v42  ;;  %v3467_v42 = vsel %vm2832_vm2, %v9717_v28, 0.0  ;;  %v3147_v28 = vsub.f32 %v9275_v39, %v9614_v5  ;;  %v3272_v39 = vmul.f32 1.442695, %v3149_v55 }
 0x1d4   :  { %3084 = vmax.xlane.f32.xlu1 %v3083_v8 }
 0x1d5   :  { %v9721_v30 = vpop.f32.mrb[60].mxu0  ;;  %v9727_v26 = vpop.f32.mrb[60].mxu1  ;;  %v3268_v12 = vmul.f32 1.442695, %v3147_v28  ;;  %8244 = vpow2.f32 %v3272_v39 }
 0x1d6   :  { %v9723_v29 = vpop.xlane.xlu0 %2949  ;;  %v9729_v4 = vpop.xlane.xlu1 %2958 }
 0x1d7   :  { %3474 = vadd.xlane.f32.xlu0 %v3473_v41  ;;  %v9733_v8 = vpop.f32.mrb[61].mxu1  ;;  %v9739_v13 = vpop.f32.mrb[61].mxu0  ;;  %8246 = vpow2.f32 %v3268_v12 }
 0x1d8   :  { %3468 = vadd.xlane.f32.xlu1 %v3467_v42  ;;  %v7676_v51 = vpop.f32.mrb[62].mxu1  ;;  %v7668_v54 = vpop.f32.mrb[62].mxu0  ;;  %v9748_v42 = vmul.f32 0.25, %v9591_v38  ;;  %v3150_v38 = vsub.f32 %v9285_v48, %v9648_v17  ;;  %v9780_v17 = vmul.f32 0.25, %v9662_v7 }
 0x1d9   :  { %v9743_v41 = vpop.f32.mrb[63].mxu1  ;;  %v9750_v20 = vpop.f32.mrb[63].mxu0  ;;  %v9753_v51 = vmul.f32 0.25, %v9587_v23  ;;  %v9767_v23 = vmul.f32 0.25, %v9597_v53 }
 0x1da   :  { %v9760_v54 = vpop.xlane.xlu0 %2943  ;;  %v9764_v5 = vpop.xlane.xlu1 %2946  ;;  %v3068_v59 = vsel %vm2832_vm2, %v9748_v42, -inf  ;;  %v3274_v55 = vmul.f32 1.442695, %v3150_v38 }
 0x1db   :  { %3075 = vmax.xlane.f32.xlu0 %v3074_v31  ;;  %v3077_v6 = vsel %vm2832_vm2, %v9753_v51, -inf  ;;  %v3080_v53 = vsel %vm2832_vm2, %v9767_v23, -inf  ;;  %v9782_v28 = vpop.eup %8238 }
 0x1dc   :  { %3477 = vadd.xlane.f32.xlu1 %v3476_v47  ;;  %11356 = vst [vmem:[#allocation55_spill] sm:$0xff] %v9782_v28  ;;  %v9786_v31 = vpop.eup %8240  ;;  %8248 = vpow2.f32 %v3274_v55  ;;  %v3488_v39 = vsel %vm2839_vm1, %v9782_v28, 0.0 }
 0x1dd   :  { %11357 = vst [vmem:[#allocation56_spill] sm:$0xff] %v9786_v31  ;;  %v9792_v38 = vpop.eup %8242  ;;  %v3497_v7 = vsel %vm2839_vm1, %v9786_v31, 0.0 }
 0x1de   :  { %v9775_v48 = vpop.xlane.xlu0 %2952  ;;  %v9784_v60 = vpop.xlane.xlu1 %2955  ;;  %11358 = vst [vmem:[#allocation57_spill] sm:$0xff] %v9792_v38  ;;  %v3482_v55 = vsel %vm2832_vm2, %v9792_v38, 0.0 }
 0x1df   :  { %3069 = vmax.xlane.f32.xlu0 %v3068_v59  ;;  %v3154_v59 = vsub.f32 %v9291_v56, %v9658_v3  ;;  %v3152_v3 = vsub.f32 %v9295_v63, %v9689_v22  ;;  %v3155_v63 = vsub.f32 %v9307_v16, %v9706_v49  ;;  %v3153_v22 = vsub.f32 %v9299_v10, %v9691_v35 }
 0x1e0   :  { %3072 = vmax.xlane.f32.xlu1 %v3071_v45  ;;  %v3101_v45 = vsel %vm2839_vm1, %v9780_v17, -inf  ;;  %v3156_v10 = vsub.f32 %v9309_v18, %v9715_v44 }
 0x1e1   :  { %v3282_v56 = vmul.f32 1.442695, %v3154_v59  ;;  %v3278_v59 = vmul.f32 1.442695, %v3152_v3  ;;  %v3284_v16 = vmul.f32 1.442695, %v3155_v63 }
 0x1e2   :  { %v3280_v49 = vmul.f32 1.442695, %v3153_v22  ;;  %v9853_v3 = vmul.f32 0.25, %v9675_v19  ;;  %v3286_v18 = vmul.f32 1.442695, %v3156_v10 }
 0x1e3   :  { %3078 = vmax.xlane.f32.xlu0 %v3077_v6  ;;  %v3157_v6 = vsub.f32 %v9293_v62, %v9667_v61  ;;  %8250 = vpow2.f32 %v3282_v56 }
 0x1e4   :  { %3081 = vmax.xlane.f32.xlu1 %v3080_v53  ;;  %v9806_v53 = vpop.eup %8244  ;;  %v3098_v19 = vsel %vm2832_vm2, %v9853_v3, -inf }
 0x1e5   :  { %v3288_v62 = vmul.f32 1.442695, %v3157_v6  ;;  %v3491_v61 = vsel %vm2832_vm2, %v9806_v53, 0.0 }
 0x1e6   :  { %v9788_v47 = vpop.xlane.xlu0 %2967  ;;  %v9794_v12 = vpop.xlane.xlu1 %2976 }
 0x1e7   :  { %3489 = vadd.xlane.f32.xlu0 %v3488_v39  ;;  %v9808_v39 = vpop.eup %8246  ;;  %8252 = vpow2.f32 %v3288_v62 }
 0x1e8   :  { %3498 = vadd.xlane.f32.xlu1 %v3497_v7  ;;  %v9813_v7 = vmul.f32 0.25, %v9654_v52  ;;  %v9823_v38 = vpop.eup %8248  ;;  %8254 = vpow2.f32 %v3278_v59 }
 0x1e9   :  { %v3494_v56 = vsel %vm2832_vm2, %v9823_v38, 0.0  ;;  %8256 = vpow2.f32 %v3284_v16 }
 0x1ea   :  { %v9810_v28 = vpop.xlane.xlu0 %2961  ;;  %v9817_v31 = vpop.xlane.xlu1 %2964  ;;  %v3092_v52 = vsel %vm2839_vm1, %v9813_v7, -inf  ;;  %8258 = vpow2.f32 %v3280_v49 }
 0x1eb   :  { %3483 = vadd.xlane.f32.xlu0 %v3482_v55  ;;  %v3485_v55 = vsel %vm2832_vm2, %v9808_v39, 0.0  ;;  %8260 = vpow2.f32 %v3286_v18 }
 0x1ec   :  { %3102 = vmax.xlane.f32.xlu1 %v3101_v45  ;;  %v9832_v45 = vmul.f32 0.25, %v9673_v2  ;;  %v9846_v2 = vmul.f32 0.25, %v9671_v34 }
 0x1ed   :  { %v9861_v34 = vpop.eup %8250 }
 0x1ee   :  { %v9834_v6 = vpop.xlane.xlu0 %2970  ;;  %v3095_v44 = vsel %vm2832_vm2, %v9846_v2, -inf  ;;  %11359 = vst [vmem:[#allocation58_spill] sm:$0xff] %v9861_v34  ;;  %v3506_v16 = vsel %vm2839_vm1, %v9861_v34, 0.0 }
 0x1ef   :  { %3492 = vadd.xlane.f32.xlu0 %v3491_v61  ;;  %v9836_v61 = vpop.xlane.xlu1 %2973 }
 0x1f0   :  { %3486 = vadd.xlane.f32.xlu1 %v3485_v55  ;;  %v9839_v55 = vmul.f32 0.25, %v9681_v1  ;;  %v3086_v1 = vsel %vm2832_vm2, %v9832_v45, -inf }
 0x1f1   :  { %v9865_v59 = vpop.eup %8252 }
 0x1f2   :  { %11360 = vst [vmem:[#allocation59_spill] sm:$0xff] %v9865_v59  ;;  %v9876_v49 = vpop.eup %8254  ;;  %v3515_v10 = vsel %vm2839_vm1, %v9865_v59, 0.0  ;;  %v3159_v59 = vsub.f32 %v9323_v46, %v9764_v5  ;;  %v3161_v46 = vsub.f32 %v9331_v58, %v9775_v48 }
 0x1f3   :  { %3093 = vmax.xlane.f32.xlu0 %v3092_v52  ;;  %v3089_v52 = vsel %vm2832_vm2, %v9839_v55, -inf  ;;  %11361 = vst [vmem:[#allocation60_spill] sm:$0xff] %v9876_v49 }
 0x1f4   :  { %3495 = vadd.xlane.f32.xlu1 %v3494_v56  ;;  %v9872_v56 = vmul.f32 0.25, %v9727_v26  ;;  %v3163_v26 = vsub.f32 %v9317_v33, %v9729_v4  ;;  %v3158_v33 = vsub.f32 %v9319_v36, %v9760_v54  ;;  %v3292_v5 = vmul.f32 1.442695, %v3159_v59 }
 0x1f5   :  { %v3296_v58 = vmul.f32 1.442695, %v3161_v46  ;;  %v3164_v59 = vsub.f32 %v9343_v15, %v9810_v28 }
 0x1f6   :  { %v9848_v35 = vpop.xlane.xlu0 %2985  ;;  %v9855_v62 = vpop.xlane.xlu1 %2994  ;;  %v3300_v4 = vmul.f32 1.442695, %v3163_v26  ;;  %v3290_v54 = vmul.f32 1.442695, %v3158_v33  ;;  %v9943_v33 = vmul.f32 0.25, %v9743_v41  ;;  %v11363_v41 = vld [vmem:[#allocation2_spill] sm:$0xff] }
 0x1f7   :  { %3087 = vmax.xlane.f32.xlu0 %v3086_v1  ;;  %v3160_v1 = vsub.f32 %v9315_v27, %v9723_v29  ;;  %v9897_v27 = vmul.f32 0.25, %v9721_v30  ;;  %v3168_v28 = vsub.f32 %v11363_v41, %v9836_v61 }
 0x1f8   :  { %3090 = vmax.xlane.f32.xlu1 %v3089_v52  ;;  %v3119_v52 = vsel %vm2839_vm1, %v9872_v56, -inf }
 0x1f9   :  { %v3294_v29 = vmul.f32 1.442695, %v3160_v1  ;;  %v3110_v36 = vsel %vm2839_vm1, %v9897_v27, -inf  ;;  %v3162_v1 = vsub.f32 %v9333_v0, %v9784_v60  ;;  %v3166_v0 = vsub.f32 %v9339_v9, %v9788_v47 }
 0x1fa   :  { %v9867_v63 = vpop.xlane.xlu0 %2979  ;;  %v9869_v22 = vpop.xlane.xlu1 %2982 }
 0x1fb   :  { %3096 = vmax.xlane.f32.xlu0 %v3095_v44  ;;  %v3500_v44 = vsel %vm2832_vm2, %v9876_v49, 0.0  ;;  %8262 = vpow2.f32 %v3294_v29  ;;  %v3298_v48 = vmul.f32 1.442695, %v3162_v1 }
 0x1fc   :  { %3099 = vmax.xlane.f32.xlu1 %v3098_v19  ;;  %v9890_v19 = vpop.eup %8256  ;;  %8264 = vpow2.f32 %v3300_v4 }
 0x1fd   :  { %11362 = vst [vmem:[#allocation61_spill] sm:$0xff] %v9890_v19  ;;  %v3509_v34 = vsel %vm2832_vm2, %v9890_v19, 0.0  ;;  %8266 = vpow2.f32 %v3290_v54 }
 0x1fe   :  { %v9886_v18 = vpop.xlane.xlu0 %2988  ;;  %8268 = vpow2.f32 %v3292_v5 }
 0x1ff   :  { %3507 = vadd.xlane.f32.xlu0 %v3506_v16  ;;  %v9892_v16 = vpop.xlane.xlu1 %2991  ;;  %8270 = vpow2.f32 %v3296_v58  ;;  %v3310_v58 = vmul.f32 1.442695, %v3168_v28 }
 0x200   :  { %3516 = vadd.xlane.f32.xlu1 %v3515_v10  ;;  %v9894_v10 = vpop.eup %8258  ;;  %8272 = vpow2.f32 %v3298_v48 }
 0x201   :  { %v3503_v30 = vsel %vm2832_vm2, %v9894_v10, 0.0 }
 0x203   :  { %3501 = vadd.xlane.f32.xlu0 %v3500_v44 }
 0x204   :  { %3120 = vmax.xlane.f32.xlu1 %v3119_v52  ;;  %v9911_v52 = vpop.eup %8260 }
 0x205   :  { %v3512_v29 = vsel %vm2832_vm2, %v9911_v52, 0.0  ;;  %v9959_v54 = vpop.eup %8262 }
 0x206   :  { %v9903_v49 = vpop.xlane.xlu0 %3003  ;;  %v9907_v44 = vpop.xlane.xlu1 %3012 }
 0x207   :  { %3510 = vadd.xlane.f32.xlu0 %v3509_v34  ;;  %v9920_v34 = vmul.f32 0.25, %v9739_v13  ;;  %v9934_v13 = vmul.f32 0.25, %v9733_v8  ;;  %v3165_v8 = vsub.f32 %v9347_v37, %v9817_v31  ;;  %v3302_v37 = vmul.f32 1.442695, %v3164_v59  ;;  %v11364_v31 = vld [vmem:[#allocation3_spill] sm:$0xff] }
 0x208   :  { %3504 = vadd.xlane.f32.xlu1 %v3503_v30  ;;  %v9925_v30 = vmul.f32 0.25, %v9750_v20  ;;  %v3169_v20 = vsub.f32 %v9341_v14, %v9794_v12  ;;  %v3306_v14 = vmul.f32 1.442695, %v3166_v0  ;;  %v3167_v12 = vsub.f32 %v9355_v50, %v9834_v6  ;;  %v9965_v6 = vpop.eup %8264 }
 0x209   :  { %v3104_v60 = vsel %vm2832_vm2, %v9920_v34, -inf  ;;  %v3172_v46 = vsub.f32 %v11364_v31, %v9848_v35  ;;  %v3116_v50 = vsel %vm2832_vm2, %v9943_v33, -inf  ;;  %11365 = vst [vmem:[#allocation2_spill] sm:$0xff] %v9965_v6  ;;  %v3304_v5 = vmul.f32 1.442695, %v3165_v8  ;;  %v9969_v48 = vpop.eup %8266 }
 0x20a   :  { %v9922_v26 = vpop.xlane.xlu0 %2997  ;;  %v9927_v19 = vpop.xlane.xlu1 %3000  ;;  %v3107_v9 = vsel %vm2832_vm2, %v9925_v30, -inf  ;;  %v3312_v15 = vmul.f32 1.442695, %v3169_v20  ;;  %8274 = vpow2.f32 %v3306_v14  ;;  %v3308_v61 = vmul.f32 1.442695, %v3167_v12 }
 0x20b   :  { %3111 = vmax.xlane.f32.xlu0 %v3110_v36  ;;  %v3113_v36 = vsel %vm2832_vm2, %v9934_v13, -inf  ;;  %v3524_v0 = vsel %vm2839_vm1, %v9959_v54, 0.0  ;;  %v3318_v35 = vmul.f32 1.442695, %v3172_v46  ;;  %v3533_v20 = vsel %vm2839_vm1, %v9965_v6, 0.0  ;;  %v11388_v6 = vld [vmem:[#allocation19_spill] sm:$0xff] }
 0x20c   :  { %3513 = vadd.xlane.f32.xlu1 %v3512_v29  ;;  %8276 = vpow2.f32 %v3312_v15  ;;  %v3518_v12 = vsel %vm2832_vm2, %v9969_v48, 0.0 }
 0x20d   :  { %8278 = vpow2.f32 %v3302_v37 }
 0x20e   :  { %v9949_v47 = vpop.xlane.xlu0 %3006  ;;  %v9953_v4 = vpop.xlane.xlu1 %3009  ;;  %8280 = vpow2.f32 %v3304_v5 }
 0x20f   :  { %3105 = vmax.xlane.f32.xlu0 %v3104_v60  ;;  %v9973_v60 = vpop.eup %8268  ;;  %8282 = vpow2.f32 %v3308_v61 }
 0x210   :  { %3108 = vmax.xlane.f32.xlu1 %v3107_v9  ;;  %11366 = vst [vmem:[#allocation3_spill] sm:$0xff] %v9973_v60  ;;  %v11367_v9 = vld [vmem:[#allocation4_spill] sm:$0xff]  ;;  %8284 = vpow2.f32 %v3310_v58  ;;  %v9981_v15 = vpop.eup %8270  ;;  %v3521_v41 = vsel %vm2832_vm2, %v9973_v60, 0.0 }
 0x211   :  { %v3175_v8 = vsub.f32 %v11367_v9, %v9855_v62  ;;  %11368 = vst [vmem:[#allocation4_spill] sm:$0xff] %v9981_v15  ;;  %8286 = vpow2.f32 %v3318_v35  ;;  %v9985_v28 = vpop.eup %8272  ;;  %v11370_v62 = vld [vmem:[#allocation5_spill] sm:$0xff]  ;;  %v3527_v61 = vsel %vm2832_vm2, %v9981_v15, 0.0 }
 0x212   :  { %11369 = vst [vmem:[#allocation62_spill] sm:$0xff] %v9985_v28  ;;  %v3170_v31 = vsub.f32 %v11370_v62, %v9867_v63  ;;  %v11374_v63 = vld [vmem:[#allocation7_spill] sm:$0xff] }
 0x213   :  { %3114 = vmax.xlane.f32.xlu0 %v3113_v36  ;;  %v3324_v37 = vmul.f32 1.442695, %v3175_v8  ;;  %v3173_v35 = vsub.f32 %v11374_v63, %v9886_v18 }
 0x214   :  { %3117 = vmax.xlane.f32.xlu1 %v3116_v50  ;;  %v3418_v1 = vpop.xlane.xlu0 %3417  ;;  %v11371_v50 = vld [vmem:[#allocation6_spill] sm:$0xff]  ;;  %v9993_v58 = vpop.eup %8274 }
 0x215   :  { %v3427_v29 = vpop.xlane.xlu1 %3426  ;;  %8288 = vrcp.f32 %v3418_v1  ;;  %v3171_v5 = vsub.f32 %v11371_v50, %v9869_v22  ;;  %11372 = vst [vmem:[#allocation5_spill] sm:$0xff] %v9993_v58  ;;  %v3530_v1 = vsel %vm2832_vm2, %v9985_v28, 0.0  ;;  %v3542_v62 = vsel %vm2839_vm1, %v9993_v58, 0.0  ;;  %v11384_v58 = vld [vmem:[#allocation18_spill] sm:$0xff] }
 0x217   :  { %3525 = vadd.xlane.f32.xlu0 %v3524_v0  ;;  %v9997_v0 = vpop.eup %8276 }
 0x218   :  { %3534 = vadd.xlane.f32.xlu1 %v3533_v20  ;;  %v3412_v59 = vpop.xlane.xlu0 %3411  ;;  %11373 = vst [vmem:[#allocation6_spill] sm:$0xff] %v9997_v0  ;;  %v10003_v22 = vpop.eup %8278 }
 0x219   :  { %v9977_v14 = vpop.xlane.xlu1 %3030  ;;  %8290 = vrcp.f32 %v3412_v59  ;;  %11375 = vst [vmem:[#allocation7_spill] sm:$0xff] %v10003_v22  ;;  %v11376_v59 = vld [vmem:[#allocation8_spill] sm:$0xff] }
 0x21a   :  { %8292 = vrcp.f32 %v3427_v29  ;;  %v3314_v29 = vmul.f32 1.442695, %v3170_v31  ;;  %v3174_v9 = vsub.f32 %v11376_v59, %v9892_v16  ;;  %v3320_v16 = vmul.f32 1.442695, %v3173_v35 }
 0x21b   :  { %3519 = vadd.xlane.f32.xlu0 %v3518_v12  ;;  %v10007_v12 = vpop.eup %8280  ;;  %v3176_v35 = vsub.f32 %v9395_v25, %v9922_v26  ;;  %v11380_v25 = vld [vmem:[#allocation10_spill] sm:$0xff] }
 0x21c   :  { %3522 = vadd.xlane.f32.xlu1 %v3521_v41  ;;  %v3421_v36 = vpop.xlane.xlu0 %3420  ;;  %11377 = vst [vmem:[#allocation8_spill] sm:$0xff] %v10007_v12  ;;  %v3316_v41 = vmul.f32 1.442695, %v3171_v5  ;;  %v10011_v18 = vpop.eup %8282  ;;  %v3322_v5 = vmul.f32 1.442695, %v3174_v9  ;;  %v3179_v26 = vsub.f32 %v11380_v25, %v9949_v47 }
 0x21d   :  { %v3415_v46 = vpop.xlane.xlu1 %3414  ;;  %11378 = vst [vmem:[#allocation63_spill] sm:$0xff] %v10011_v18  ;;  %v10017_v31 = vpop.eup %8284  ;;  %v8131_v9 = vld [vmem:[%s11218_s2 + $0x20] ss:$0 sps:$4 sm:$0x11]   ;;  %v3326_v47 = vmul.f32 1.442695, %v3176_v35 }
 0x21e   :  { %8294 = vrcp.f32 %v3415_v46  ;;  %v10021_v50 = vpop.eup %8286  ;;  %v3548_v25 = vsel %vm2832_vm2, %v10017_v31, 0.0  ;;  %v11387_v35 = vld [vmem:[#allocation16_spill] sm:$0xff] }
 0x21f   :  { %3528 = vadd.xlane.f32.xlu0 %v3527_v61  ;;  %8296 = vrcp.f32 %v3421_v36  ;;  %v3178_v36 = vsub.f32 %v9387_v32, %v9903_v49  ;;  %v3181_v32 = vsub.f32 %v9389_v40, %v9907_v44  ;;  %v3536_v49 = vsel %vm2832_vm2, %v10003_v22, 0.0  ;;  %v11379_v40 = vld [vmem:[#allocation9_spill] sm:$0xff]  ;;  %v11382_v22 = vld [vmem:[#allocation11_spill] sm:$0xff] }
 0x220   :  { %3531 = vadd.xlane.f32.xlu1 %v3530_v1  ;;  %v10001_v20 = vpop.xlane.xlu0 %3021  ;;  %8298 = vpow2.f32 %v3324_v37  ;;  %v3551_v37 = vsel %vm2839_vm1, %v9997_v0, 0.0  ;;  %v8289_v1 = vpop.eup %8288  ;;  %v3177_v44 = vsub.f32 %v11379_v40, %v9927_v19  ;;  %v3180_v19 = vsub.f32 %v11382_v22, %v9953_v4 }
 0x221   :  { %v3424_v8 = vpop.xlane.xlu1 %3423  ;;  %v3330_v59 = vmul.f32 1.442695, %v3178_v36 }
 0x222   :  { %8300 = vrcp.f32 %v3424_v8 }
 0x223   :  { %3543 = vadd.xlane.f32.xlu0 %v3542_v62  ;;  %8302 = vpow2.f32 %v3314_v29  ;;  %v8291_v63 = vpop.eup %8290  ;;  %v3539_v29 = vsel %vm2832_vm2, %v10007_v12, 0.0 }
 0x224   :  { %3552 = vadd.xlane.f32.xlu1 %v3551_v37  ;;  %v10019_v46 = vpop.xlane.xlu0 %3015  ;;  %8304 = vpow2.f32 %v3316_v41  ;;  %v8293_v8 = vpop.eup %8292  ;;  %v3545_v37 = vsel %vm2832_vm2, %v10011_v18, 0.0  ;;  %v4105_v18 = vand.u32 %v8131_v9, %v9552_v21  ;;  %v8133_v9 = vld [vmem:[%s11218_s2 + $0x2c] ss:$0 sps:$4 sm:$0x11]  }
 0x225   :  { %v10023_v61 = vpop.xlane.xlu1 %3018  ;;  %8306 = vpow2.f32 %v3320_v16  ;;  %v3336_v16 = vmul.f32 1.442695, %v3181_v32  ;;  %v11385_v32 = vld [vmem:[#allocation14_spill] sm:$0xff] }
 0x226   :  { %8308 = vpow2.f32 %v3322_v5  ;;  %v3187_v15 = vsub.f32 %v11385_v32, %v9977_v14  ;;  %v3560_v14 = vsel %vm2839_vm1, %v10021_v50, 0.0 }
 0x227   :  { %3537 = vadd.xlane.f32.xlu0 %v3536_v49  ;;  %v11381_v49 = vld [vmem:[#allocation12_spill] sm:$0xff]  ;;  %8310 = vpow2.f32 %v3330_v59 }
 0x228   :  { %3540 = vadd.xlane.f32.xlu1 %v3539_v29  ;;  %v10038_v41 = vpop.xlane.xlu0 %3024  ;;  %v8295_v62 = vpop.eup %8294  ;;  %v3796_v0 = vmul.f32 %v8289_v1, %v11381_v49  ;;  %v11383_v29 = vld [vmem:[#allocation15_spill] sm:$0xff]  ;;  %v3328_v49 = vmul.f32 1.442695, %v3177_v44  ;;  %8312 = vpow2.f32 %v3336_v16  ;;  %v3334_v44 = vmul.f32 1.442695, %v3180_v19  ;;  %v11389_v19 = vld [vmem:[#allocation17_spill] sm:$0xff] }
 0x229   :  { %v10042_v36 = vpop.xlane.xlu1 %3027  ;;  %v8297_v12 = vpop.eup %8296  ;;  %v3794_v40 = vmul.f32 %v8291_v63, %v11383_v29  ;;  %v3795_v28 = vmul.f32 %v8295_v62, %v11384_v58  ;;  %v11386_v63 = vld [vmem:[#allocation13_spill] sm:$0xff]  ;;  %v3332_v62 = vmul.f32 1.442695, %v3179_v26  ;;  %8314 = vpow2.f32 %v3326_v47 }
 0x22a   :  { %v10051_v5 = vpop.eup %8298  ;;  %v3799_v58 = vmul.f32 %v8293_v8, %v11386_v63  ;;  %v3891_v59 = vpack.c.bf16 %v3796_v0, %v3796_v0  ;;  %8316 = vpow2.f32 %v3328_v49  ;;  %v3348_v8 = vmul.f32 1.442695, %v3187_v15  ;;  %v10084_v15 = vld [vmem:[%s11218_s2 + $0x30] sm:$0xff]   ;;  %v11392_v49 = vld [vmem:[#allocation46_spill] sm:$0xff] }
 0x22b   :  { %3546 = vadd.xlane.f32.xlu0 %v3545_v37  ;;  %v3890_v4 = vpack.c.bf16 %v3795_v28, %v3794_v40  ;;  %v3797_v37 = vmul.f32 %v8297_v12, %v11387_v35  ;;  %8318 = vpow2.f32 %v3332_v62  ;;  %v3184_v40 = vsub.f32 %v11389_v19, %v10001_v20  ;;  %v11395_v35 = vld [vmem:[#allocation21_spill] sm:$0xff] }
 0x22c   :  { %v8301_v1 = vpop.eup %8300  ;;  %3549 = vadd.xlane.f32.xlu1 %v3548_v25  ;;  %v3436_v22 = vpop.xlane.xlu0 %3435  ;;  %v3893_v16 = vpack.c.bf16 %v3799_v58, %v3799_v58  ;;  %8320 = vpow2.f32 %v3334_v44 }
 0x22d   :  { %v3445_v29 = vpop.xlane.xlu1 %3444  ;;  %v3798_v60 = vmul.f32 %v8301_v1, %v11388_v6  ;;  %7681 = vmatprep.mubr.msk.bf16.mxu0 %vm2832_vm2, %v3890_v4  ;;  %v10067_v28 = vpop.eup %8302  ;;  %v3569_v6 = vsel %vm2839_vm1, %v10051_v5, 0.0  ;;  %8322 = vrcp.f32 %v3436_v22  ;;  %v10099_v4 = vld [vmem:[%s11218_s2 + $0x3c] sm:$0xff]   ;;  %v3342_v58 = vmul.f32 1.442695, %v3184_v40  ;;  %v11394_v22 = vld [vmem:[#allocation20_spill] sm:$0xff] }
 0x22e   :  { %7682 = vmatmul.mubr.msk.bf16.vlgmr.msra.gmra.mrb[64].mxu0 %vm2832_vm2, %v3891_v59  ;;  %v10072_v12 = vpop.eup %8304  ;;  %8324 = vpow2.f32 %v3348_v8  ;;  %v3182_v62 = vsub.f32 %v11394_v22, %v10019_v46  ;;  %v11397_v46 = vld [vmem:[#allocation22_spill] sm:$0xff] }
 0x22f   :  { %3561 = vadd.xlane.f32.xlu0 %v3560_v14  ;;  %v3892_v0 = vpack.c.bf16 %v3798_v60, %v3797_v37  ;;  %7694 = vmatpush3.bf16.msra.mxu0 %v9621_v24  ;;  %v4171_v60 = vand.u32 %v8133_v9, %v9552_v21  ;;  %v10086_v25 = vpop.eup %8306  ;;  %v3554_v24 = vsel %vm2832_vm2, %v10067_v28, 0.0  ;;  %v3557_v1 = vsel %vm2832_vm2, %v10072_v12, 0.0 }
 0x230   :  { %3570 = vadd.xlane.f32.xlu1 %v3569_v6  ;;  %v3430_v26 = vpop.xlane.xlu0 %3429  ;;  %7695 = vmatprep.subr.bf16.mxu0 %v4105_v18  ;;  %11390 = vst [vmem:[#allocation9_spill] sm:$0xff] %v10086_v25  ;;  %v10091_v20 = vpop.eup %8308  ;;  %v3183_v37 = vsub.f32 %v11395_v35, %v10023_v61  ;;  %v3185_v14 = vsub.f32 %v11397_v46, %v10038_v41  ;;  %v11403_v35 = vld [vmem:[#allocation26_spill] sm:$0xff] }
 0x231   :  { %7689 = vmatprep.mubr.msk.bf16.mxu1 %vm2832_vm2, %v3892_v0  ;;  %v10078_v47 = vpop.xlane.xlu1 %3048  ;;  %11391 = vst [vmem:[#allocation10_spill] sm:$0xff] %v10091_v20  ;;  %v10101_v63 = vpop.eup %8310  ;;  %8326 = vrcp.f32 %v3430_v26  ;;  %v3566_v9 = vsel %vm2832_vm2, %v10091_v20, 0.0  ;;  %v11399_v0 = vld [vmem:[#allocation23_spill] sm:$0xff] }
 0x232   :  { %7690 = vmatmul.mubr.msk.bf16.vlgmr.msra.gmra.mrb[64].mxu1 %vm2832_vm2, %v3893_v16  ;;  %11393 = vst [vmem:[#allocation12_spill] sm:$0xff] %v10101_v63  ;;  %8328 = vrcp.f32 %v3445_v29  ;;  %v10112_v44 = vpop.eup %8312  ;;  %v3338_v29 = vmul.f32 1.442695, %v3182_v62  ;;  %v3186_v8 = vsub.f32 %v11399_v0, %v10042_v36  ;;  %v3340_v19 = vmul.f32 1.442695, %v3183_v37 }
 0x233   :  { %3555 = vadd.xlane.f32.xlu0 %v3554_v24  ;;  %7702 = vmatpush3.bf16.msra.mxu1 %v11392_v49  ;;  %11396 = vst [vmem:[#allocation11_spill] sm:$0xff] %v10112_v44  ;;  %v10117_v61 = vpop.eup %8314  ;;  %v3578_v41 = vsel %vm2839_vm1, %v10101_v63, 0.0  ;;  %v3193_v37 = vsub.f32 %v11403_v35, %v10078_v47 }
 0x234   :  { %3558 = vadd.xlane.f32.xlu1 %v3557_v1  ;;  %v3439_v32 = vpop.xlane.xlu0 %3438  ;;  %7696 = vmatpush3.bf16.msra.mxu0 %v4105_v18  ;;  %v3563_v18 = vsel %vm2832_vm2, %v10086_v25, 0.0  ;;  %11398 = vst [vmem:[#allocation15_spill] sm:$0xff] %v10117_v61  ;;  %v10121_v16 = vpop.eup %8316  ;;  %v3344_v1 = vmul.f32 1.442695, %v3185_v14 }
 0x235   :  { %v3433_v59 = vpop.xlane.xlu1 %3432  ;;  %7703 = vmatprep.subr.bf16.mxu1 %v4171_v60  ;;  %7709 = vmatprep.subr.bf16.mxu0 %v10084_v15  ;;  %11400 = vst [vmem:[#allocation18_spill] sm:$0xff] %v10121_v16  ;;  %v10125_v40 = vpop.eup %8318  ;;  %v3575_v46 = vsel %vm2832_vm2, %v10121_v16, 0.0  ;;  %v8135_v14 = vld [vmem:[%s11218_s2 + $0x38] ss:$0 sps:$4 sm:$0x11]  }
 0x236   :  { %8330 = vrcp.f32 %v3433_v59  ;;  %11401 = vst [vmem:[#allocation14_spill] sm:$0xff] %v10125_v40  ;;  %v10129_v24 = vpop.eup %8320  ;;  %v3360_v16 = vmul.f32 1.442695, %v3193_v37 }
 0x237   :  { %3564 = vadd.xlane.f32.xlu0 %v3563_v18  ;;  %7704 = vmatpush3.bf16.msra.mxu1 %v4171_v60  ;;  %8332 = vrcp.f32 %v3439_v32  ;;  %v3587_v60 = vsel %vm2839_vm1, %v10112_v44, 0.0  ;;  %v8323_v36 = vpop.eup %8322  ;;  %v3346_v32 = vmul.f32 1.442695, %v3186_v8  ;;  %v3572_v18 = vsel %vm2832_vm2, %v10117_v61, 0.0  ;;  %v11407_v61 = vld [vmem:[#allocation34_spill] sm:$0xff] }
 0x238   :  { %3567 = vadd.xlane.f32.xlu1 %v3566_v9  ;;  %v3040_v6 = vpop.xlane.xlu0 %3039  ;;  %7717 = vmatprep.subr.bf16.mxu1 %v10099_v4  ;;  %8334 = vpow2.f32 %v3342_v58  ;;  %v11402_v58 = vld [vmem:[#allocation30_spill] sm:$0xff]  ;;  %v10132_v59 = vpop.eup %8324 }
 0x239   :  { %v3442_v26 = vpop.xlane.xlu1 %3441  ;;  %v3190_v22 = vsub.f32 %v11402_v58, %v3040_v6 }
 0x23a   :  { %8336 = vrcp.f32 %v3442_v26  ;;  %v11405_v26 = vld [vmem:[#allocation24_spill] sm:$0xff] }
 0x23b   :  { %3579 = vadd.xlane.f32.xlu0 %v3578_v41  ;;  %8338 = vpow2.f32 %v3338_v29  ;;  %v8327_v9 = vpop.eup %8326  ;;  %v11404_v29 = vld [vmem:[#allocation32_spill] sm:$0xff]  ;;  %v3802_v47 = vmul.f32 %v8323_v36, %v11405_v26  ;;  %v3354_v41 = vmul.f32 1.442695, %v3190_v22  ;;  %v11410_v36 = vld [vmem:[#allocation35_spill] sm:$0xff]  ;;  %v4237_v22 = vand.u32 %v8135_v14, %v9552_v21 }
 0x23c   :  { %3588 = vadd.xlane.f32.xlu1 %v3587_v60  ;;  %v3034_v49 = vpop.xlane.xlu0 %3033  ;;  %8340 = vpow2.f32 %v3340_v19  ;;  %v8329_v6 = vpop.eup %8328  ;;  %v11406_v60 = vld [vmem:[#allocation33_spill] sm:$0xff] }
 0x23d   :  { %v3037_v62 = vpop.xlane.xlu1 %3036  ;;  %8342 = vpow2.f32 %v3344_v1  ;;  %v3188_v0 = vsub.f32 %v11404_v29, %v3034_v49  ;;  %v11408_v1 = vld [vmem:[#allocation27_spill] sm:$0xff]  ;;  %v11409_v49 = vld [vmem:[#allocation29_spill] sm:$0xff] }
 0x23e   :  { %8344 = vpow2.f32 %v3346_v32  ;;  %v3189_v58 = vsub.f32 %v11406_v60, %v3037_v62  ;;  %v3800_v20 = vmul.f32 %v8327_v9, %v11408_v1  ;;  %v3584_v32 = vsel %vm2832_vm2, %v10129_v24, 0.0 }
 0x23f   :  { %3573 = vadd.xlane.f32.xlu0 %v3572_v18  ;;  %v3581_v18 = vsel %vm2832_vm2, %v10125_v40, 0.0  ;;  %v3350_v60 = vmul.f32 1.442695, %v3188_v0  ;;  %8346 = vpow2.f32 %v3354_v41 }
 0x240   :  { %3576 = vadd.xlane.f32.xlu1 %v3575_v46  ;;  %v3043_v8 = vpop.xlane.xlu0 %3042  ;;  %v8331_v19 = vpop.eup %8330  ;;  %8348 = vpow2.f32 %v3360_v16 }
 0x241   :  { %v3046_v35 = vpop.xlane.xlu1 %3045  ;;  %v8333_v44 = vpop.eup %8332  ;;  %v3191_v63 = vsub.f32 %v11407_v61, %v3043_v8  ;;  %v3801_v46 = vmul.f32 %v8331_v19, %v11409_v49  ;;  %v3895_v61 = vpack.c.bf16 %v3802_v47, %v3802_v47  ;;  %v11411_v8 = vld [vmem:[#allocation25_spill] sm:$0xff]  ;;  %v3352_v19 = vmul.f32 1.442695, %v3189_v58  ;;  %v11412_v49 = vld [vmem:[#allocation28_spill] sm:$0xff] }
 0x242   :  { %v10151_v29 = vpop.eup %8334  ;;  %v3192_v26 = vsub.f32 %v11410_v36, %v3046_v35  ;;  %v3805_v9 = vmul.f32 %v8329_v6, %v11411_v8  ;;  %v3803_v25 = vmul.f32 %v8333_v44, %v11412_v49  ;;  %v11413_v35 = vld [vmem:[#allocation31_spill] sm:$0xff]  ;;  %v8137_v36 = vld [vmem:[%s11218_s2 + $0x44] ss:$0 sps:$4 sm:$0x11]   ;;  %v3605_v44 = vsel %vm2839_vm1, %v10132_v59, 0.0  ;;  %v10195_v8 = vld [vmem:[%s11218_s2 + $0x54] sm:$0xff]  }
 0x243   :  { %3582 = vadd.xlane.f32.xlu0 %v3581_v18  ;;  %v3894_v37 = vpack.c.bf16 %v3801_v46, %v3800_v20  ;;  %v3356_v14 = vmul.f32 1.442695, %v3191_v63  ;;  %v3596_v20 = vsel %vm2839_vm1, %v10151_v29, 0.0  ;;  %8350 = vpow2.f32 %v3350_v60 }
 0x244   :  { %v8337_v62 = vpop.eup %8336  ;;  %3585 = vadd.xlane.f32.xlu1 %v3584_v32  ;;  %v3454_v40 = vpop.xlane.xlu0 %3453  ;;  %v3358_v6 = vmul.f32 1.442695, %v3192_v26  ;;  %v3897_v16 = vpack.c.bf16 %v3805_v9, %v3805_v9  ;;  %8352 = vpow2.f32 %v3352_v19  ;;  %v4303_v46 = vand.u32 %v8137_v36, %v9552_v21  ;;  %v10179_v26 = vld [vmem:[%s11218_s2 + $0x48] sm:$0xff]   ;;  %v11414_v32 = vld [vmem:[#allocation38_spill] sm:$0xff] }
 0x245   :  { %v3463_v1 = vpop.xlane.xlu1 %3462  ;;  %v3804_v18 = vmul.f32 %v8337_v62, %v11413_v35  ;;  %7697 = vmatprep.mubr.msk.bf16.mxu0 %vm2832_vm2, %v3894_v37  ;;  %v10166_v0 = vpop.eup %8338  ;;  %8354 = vpow2.f32 %v3356_v14 }
 0x246   :  { %7698 = vmatmul.mubr.msk.bf16.vlgmr.msra.gmra.mrb[68].mxu0 %vm2832_vm2, %v3895_v61  ;;  %v10171_v41 = vpop.eup %8340  ;;  %8356 = vpow2.f32 %v3358_v6 }
 0x247   :  { %3597 = vadd.xlane.f32.xlu0 %v3596_v20  ;;  %v3896_v47 = vpack.c.bf16 %v3804_v18, %v3803_v25  ;;  %7710 = vmatpush3.bf16.msra.mxu0 %v10084_v15  ;;  %v10181_v25 = vpop.eup %8342  ;;  %v3590_v15 = vsel %vm2832_vm2, %v10166_v0, 0.0  ;;  %v3593_v37 = vsel %vm2832_vm2, %v10171_v41, 0.0  ;;  %8358 = vrcp.f32 %v3454_v40  ;;  %v11417_v18 = vld [vmem:[#allocation41_spill] sm:$0xff] }
 0x248   :  { %3606 = vadd.xlane.f32.xlu1 %v3605_v44  ;;  %v3448_v63 = vpop.xlane.xlu0 %3447  ;;  %7711 = vmatprep.subr.bf16.mxu0 %v4237_v22  ;;  %v10187_v60 = vpop.eup %8344  ;;  %v3599_v49 = vsel %vm2832_vm2, %v10181_v25, 0.0 }
 0x249   :  { %7705 = vmatprep.mubr.msk.bf16.mxu1 %vm2832_vm2, %v3896_v47  ;;  %v3067_v58 = vpop.xlane.xlu1 %3066  ;;  %8360 = vrcp.f32 %v3448_v63  ;;  %v3602_v40 = vsel %vm2832_vm2, %v10187_v60, 0.0 }
 0x24a   :  { %v3199_v62 = vsub.f32 %v11414_v32, %v3067_v58  ;;  %7706 = vmatmul.mubr.msk.bf16.vlgmr.msra.gmra.mrb[68].mxu1 %vm2832_vm2, %v3897_v16  ;;  %8362 = vrcp.f32 %v3463_v1 }
 0x24b   :  { %3591 = vadd.xlane.f32.xlu0 %v3590_v15  ;;  %7718 = vmatpush3.bf16.msra.mxu1 %v10099_v4  ;;  %v10200_v4 = vpop.eup %8346 }
 0x24c   :  { %3594 = vadd.xlane.f32.xlu1 %v3593_v37  ;;  %v3457_v61 = vpop.xlane.xlu0 %3456  ;;  %7712 = vmatpush3.bf16.msra.mxu0 %v4237_v22  ;;  %v3372_v9 = vmul.f32 1.442695, %v3199_v62  ;;  %11415 = vst [vmem:[#allocation13_spill] sm:$0xff] %v10200_v4  ;;  %v10204_v22 = vpop.eup %8348  ;;  %v3614_v20 = vsel %vm2839_vm1, %v10200_v4, 0.0  ;;  %v11422_v37 = vld [vmem:[#allocation45_spill] sm:$0xff] }
 0x24d   :  { %v3451_v19 = vpop.xlane.xlu1 %3450  ;;  %7719 = vmatprep.subr.bf16.mxu1 %v4303_v46  ;;  %7725 = vmatprep.subr.bf16.mxu0 %v10179_v26  ;;  %11416 = vst [vmem:[#allocation16_spill] sm:$0xff] %v10204_v22  ;;  %v10208_v14 = vpop.eup %8350  ;;  %v3623_v47 = vsel %vm2839_vm1, %v10204_v22, 0.0  ;;  %v11426_v22 = vld [vmem:[#allocation39_spill] sm:$0xff] }
 0x24e   :  { %8364 = vrcp.f32 %v3451_v19  ;;  %11418 = vst [vmem:[#allocation19_spill] sm:$0xff] %v10208_v14  ;;  %v10212_v6 = vpop.eup %8352 }
 0x24f   :  { %3600 = vadd.xlane.f32.xlu0 %v3599_v49  ;;  %7720 = vmatpush3.bf16.msra.mxu1 %v4303_v46  ;;  %8366 = vrcp.f32 %v3457_v61  ;;  %11419 = vst [vmem:[#allocation17_spill] sm:$0xff] %v10212_v6  ;;  %v10216_v63 = vpop.eup %8354  ;;  %v11421_v46 = vld [vmem:[#allocation44_spill] sm:$0xff] }
 0x250   :  { %3603 = vadd.xlane.f32.xlu1 %v3602_v40  ;;  %v3058_v35 = vpop.xlane.xlu0 %3057  ;;  %7733 = vmatprep.subr.bf16.mxu1 %v10195_v8  ;;  %8368 = vpow2.f32 %v3372_v9  ;;  %11420 = vst [vmem:[#allocation46_spill] sm:$0xff] %v10216_v63  ;;  %v10218_v58 = vpop.eup %8356  ;;  %v3608_v9 = vsel %vm2832_vm2, %v10208_v14, 0.0  ;;  %v3611_v40 = vsel %vm2832_vm2, %v10212_v6, 0.0  ;;  %v11427_v14 = vld [vmem:[#allocation42_spill] sm:$0xff] }
 0x251   :  { %v3460_v1 = vpop.xlane.xlu1 %3459  ;;  %v3196_v36 = vsub.f32 %v11417_v18, %v3058_v35  ;;  %v8359_v15 = vpop.eup %8358 }
 0x252   :  { %8370 = vrcp.f32 %v3460_v1 }
 0x253   :  { %v3366_v44 = vmul.f32 1.442695, %v3196_v36  ;;  %3615 = vadd.xlane.f32.xlu0 %v3614_v20  ;;  %v8361_v19 = vpop.eup %8360  ;;  %v11423_v20 = vld [vmem:[#allocation47_spill] sm:$0xff] }
 0x254   :  { %3624 = vadd.xlane.f32.xlu1 %v3623_v47  ;;  %v3052_v16 = vpop.xlane.xlu0 %3051  ;;  %v8363_v35 = vpop.eup %8362  ;;  %v3806_v6 = vmul.f32 %v8361_v19, %v11426_v22 }
 0x255   :  { %8372 = vpow2.f32 %v3366_v44  ;;  %v3194_v32 = vsub.f32 %v11421_v46, %v3052_v16  ;;  %v3055_v62 = vpop.xlane.xlu1 %3054  ;;  %v3617_v16 = vsel %vm2832_vm2, %v10216_v63, 0.0  ;;  %v11424_v46 = vld [vmem:[#allocation36_spill] sm:$0xff] }
 0x256   :  { %v3195_v61 = vsub.f32 %v11422_v37, %v3055_v62  ;;  %v3808_v62 = vmul.f32 %v8359_v15, %v11424_v46  ;;  %v11429_v63 = vld [vmem:[#allocation40_spill] sm:$0xff] }
 0x257   :  { %v3362_v49 = vmul.f32 1.442695, %v3194_v32  ;;  %3609 = vadd.xlane.f32.xlu0 %v3608_v9  ;;  %v11425_v32 = vld [vmem:[#allocation48_spill] sm:$0xff] }
 0x258   :  { %v3364_v1 = vmul.f32 1.442695, %v3195_v61  ;;  %3612 = vadd.xlane.f32.xlu1 %v3611_v40  ;;  %v3061_v18 = vpop.xlane.xlu0 %3060  ;;  %v8365_v36 = vpop.eup %8364 }
 0x259   :  { %8374 = vpow2.f32 %v3362_v49  ;;  %v3197_v44 = vsub.f32 %v11423_v20, %v3061_v18  ;;  %v3064_v47 = vpop.xlane.xlu1 %3063  ;;  %v8367_v37 = vpop.eup %8366  ;;  %v3807_v61 = vmul.f32 %v8365_v36, %v11427_v14  ;;  %v8139_v49 = vld [vmem:[%s11218_s2 + $0x50] ss:$0 sps:$4 sm:$0x11]   ;;  %v3620_v20 = vsel %vm2832_vm2, %v10218_v58, 0.0 }
 0x25a   :  { %8376 = vpow2.f32 %v3364_v1  ;;  %v3198_v9 = vsub.f32 %v11425_v32, %v3064_v47  ;;  %v10236_v40 = vpop.eup %8368  ;;  %v11428_v32 = vld [vmem:[#allocation37_spill] sm:$0xff]  ;;  %v3899_v36 = vpack.c.bf16 %v3808_v62, %v3808_v62 }
 0x25b   :  { %v3368_v18 = vmul.f32 1.442695, %v3197_v44  ;;  %3618 = vadd.xlane.f32.xlu0 %v3617_v16  ;;  %v3898_v1 = vpack.c.bf16 %v3807_v61, %v3806_v6  ;;  %v3811_v22 = vmul.f32 %v8363_v35, %v11428_v32  ;;  %v8141_v14 = vld [vmem:[%s11218_s2 + $0x5c] ss:$0 sps:$4 sm:$0x11]   ;;  %v3809_v44 = vmul.f32 %v8367_v37, %v11429_v63  ;;  %v11430_v16 = vld [vmem:[#allocation43_spill] sm:$0xff] }
 0x25c   :  { %v8371_v15 = vpop.eup %8370  ;;  %v3370_v46 = vmul.f32 1.442695, %v3198_v9  ;;  %3621 = vadd.xlane.f32.xlu1 %v3620_v20  ;;  %v3472_v47 = vpop.xlane.xlu0 %3471  ;;  %v4369_v9 = vand.u32 %v8139_v49, %v9552_v21  ;;  %v3641_v35 = vsel %vm2839_vm1, %v10236_v40, 0.0  ;;  %v4435_v37 = vand.u32 %v8141_v14, %v9552_v21  ;;  %v10261_v20 = vld [vmem:[%s11218_s2 + $0x60] sm:$0xff]   ;;  %v10275_v14 = vld [vmem:[%s11218_s2 + $0x6c] sm:$0xff]  }
 0x25d   :  { %8378 = vpow2.f32 %v3368_v18  ;;  %v3481_v19 = vpop.xlane.xlu1 %3480  ;;  %v3810_v4 = vmul.f32 %v8371_v15, %v11430_v16  ;;  %7713 = vmatprep.mubr.msk.bf16.mxu0 %vm2832_vm2, %v3898_v1  ;;  %v3901_v62 = vpack.c.bf16 %v3811_v22, %v3811_v22 }
 0x25e   :  { %8380 = vpow2.f32 %v3370_v46  ;;  %7714 = vmatmul.mubr.msk.bf16.vlgmr.msra.gmra.mrb[72].mxu0 %vm2832_vm2, %v3899_v36 }
 0x25f   :  { %v10248_v6 = vpop.eup %8372  ;;  %v3900_v61 = vpack.c.bf16 %v3810_v4, %v3809_v44  ;;  %7726 = vmatpush3.bf16.msra.mxu0 %v10179_v26  ;;  %v11431_v4 = vld [vmem:[#allocation51_spill] sm:$0xff]  ;;  %8382 = vrcp.f32 %v3472_v47 }
 0x260   :  { %3642 = vadd.xlane.f32.xlu1 %v3641_v35  ;;  %v3466_v18 = vpop.xlane.xlu0 %3465  ;;  %v3632_v63 = vsel %vm2839_vm1, %v10248_v6, 0.0  ;;  %7727 = vmatprep.subr.bf16.mxu0 %v4369_v9  ;;  %8384 = vrcp.f32 %v3481_v19 }
 0x261   :  { %7721 = vmatprep.mubr.msk.bf16.mxu1 %vm2832_vm2, %v3900_v61  ;;  %v3085_v49 = vpop.xlane.xlu1 %3084  ;;  %3633 = vadd.xlane.f32.xlu0 %v3632_v63  ;;  %8386 = vrcp.f32 %v3466_v18 }
 0x262   :  { %v3205_v15 = vsub.f32 %v11431_v4, %v3085_v49  ;;  %7722 = vmatmul.mubr.msk.bf16.vlgmr.msra.gmra.mrb[72].mxu1 %vm2832_vm2, %v3901_v62 }
 0x263   :  { %v10265_v46 = vpop.eup %8374  ;;  %7734 = vmatpush3.bf16.msra.mxu1 %v10195_v8  ;;  %7728 = vmatpush3.bf16.msra.mxu0 %v4369_v9 }
 0x264   :  { %v10268_v26 = vpop.eup %8376  ;;  %v3384_v1 = vmul.f32 1.442695, %v3205_v15  ;;  %v3475_v32 = vpop.xlane.xlu0 %3474  ;;  %v3626_v22 = vsel %vm2832_vm2, %v10265_v46, 0.0  ;;  %7735 = vmatprep.subr.bf16.mxu1 %v4435_v37  ;;  %7741 = vmatprep.subr.bf16.mxu0 %v10261_v20 }
 0x265   :  { %v3469_v36 = vpop.xlane.xlu1 %3468  ;;  %3627 = vadd.xlane.f32.xlu0 %v3626_v22  ;;  %v3629_v8 = vsel %vm2832_vm2, %v10268_v26, 0.0 }
 0x266   :  { %8388 = vpow2.f32 %v3384_v1  ;;  %3630 = vadd.xlane.f32.xlu1 %v3629_v8 }
 0x267   :  { %v10280_v47 = vpop.eup %8378  ;;  %8390 = vrcp.f32 %v3469_v36  ;;  %7736 = vmatpush3.bf16.msra.mxu1 %v4435_v37 }
 0x268   :  { %v10282_v19 = vpop.eup %8380  ;;  %8392 = vrcp.f32 %v3475_v32  ;;  %v3076_v44 = vpop.xlane.xlu0 %3075  ;;  %v3635_v16 = vsel %vm2832_vm2, %v10280_v47, 0.0  ;;  %7749 = vmatprep.subr.bf16.mxu1 %v10275_v14 }
 0x269   :  { %11432 = vst [vmem:[#allocation20_spill] sm:$0xff] %v10282_v19  ;;  %v3478_v9 = vpop.xlane.xlu1 %3477  ;;  %v3202_v35 = vsub.f32 %v9711_v11, %v3076_v44  ;;  %3636 = vadd.xlane.f32.xlu0 %v3635_v16  ;;  %v3638_v61 = vsel %vm2832_vm2, %v10282_v19, 0.0  ;;  %v8383_v63 = vpop.eup %8382  ;;  %v11434_v44 = vld [vmem:[#allocation49_spill] sm:$0xff] }
 0x26a   :  { %8394 = vrcp.f32 %v3478_v9  ;;  %3639 = vadd.xlane.f32.xlu1 %v3638_v61  ;;  %v8385_v4 = vpop.eup %8384  ;;  %v3814_v16 = vmul.f32 %v8383_v63, %v11434_v44  ;;  %v8143_v63 = vld [vmem:[%s11218_s2 + $0x68] ss:$0 sps:$4 sm:$0x11]  }
 0x26b   :  { %v3378_v18 = vmul.f32 1.442695, %v3202_v35  ;;  %v8387_v1 = vpop.eup %8386 }
 0x26c   :  { %v3070_v62 = vpop.xlane.xlu0 %3069 }
 0x26d   :  { %8396 = vpow2.f32 %v3378_v18  ;;  %v3200_v37 = vsub.f32 %v9748_v42, %v3070_v62  ;;  %v3073_v49 = vpop.xlane.xlu1 %3072  ;;  %v11435_v18 = vld [vmem:[#allocation52_spill] sm:$0xff] }
 0x26e   :  { %v3201_v15 = vsub.f32 %v9756_v43, %v3073_v49  ;;  %v3812_v62 = vmul.f32 %v8387_v1, %v11435_v18  ;;  %v3903_v1 = vpack.c.bf16 %v3814_v16, %v3814_v16 }
 0x26f   :  { %v3374_v32 = vmul.f32 1.442695, %v3200_v37  ;;  %v11436_v37 = vld [vmem:[#allocation54_spill] sm:$0xff] }
 0x270   :  { %v10292_v22 = vpop.eup %8388  ;;  %v3376_v11 = vmul.f32 1.442695, %v3201_v15  ;;  %v3079_v36 = vpop.xlane.xlu0 %3078 }
 0x271   :  { %11433 = vst [vmem:[#allocation21_spill] sm:$0xff] %v10292_v22  ;;  %v8391_v8 = vpop.eup %8390  ;;  %8398 = vpow2.f32 %v3374_v32  ;;  %v3203_v9 = vsub.f32 %v9753_v51, %v3079_v36  ;;  %v3082_v35 = vpop.xlane.xlu1 %3081  ;;  %v3659_v42 = vsel %vm2839_vm1, %v10292_v22, 0.0  ;;  %v11437_v51 = vld [vmem:[#allocation50_spill] sm:$0xff] }
 0x272   :  { %v8393_v61 = vpop.eup %8392  ;;  %8400 = vpow2.f32 %v3376_v11  ;;  %v3204_v43 = vsub.f32 %v9767_v23, %v3082_v35  ;;  %3660 = vadd.xlane.f32.xlu1 %v3659_v42  ;;  %v3813_v49 = vmul.f32 %v8391_v8, %v11436_v37  ;;  %v3817_v36 = vmul.f32 %v8385_v4, %v11437_v51  ;;  %v8145_v23 = vld [vmem:[%s11218_s2 + $0x74] ss:$0 sps:$4 sm:$0x11]   ;;  %v11438_v35 = vld [vmem:[#allocation53_spill] sm:$0xff] }
 0x273   :  { %v3380_v15 = vmul.f32 1.442695, %v3203_v9  ;;  %v3815_v8 = vmul.f32 %v8393_v61, %v11438_v35  ;;  %v4501_v9 = vand.u32 %v8143_v63, %v9552_v21  ;;  %v4567_v16 = vand.u32 %v8145_v23, %v9552_v21 }
 0x274   :  { %v8395_v32 = vpop.eup %8394  ;;  %v3382_v44 = vmul.f32 1.442695, %v3204_v43  ;;  %v3902_v19 = vpack.c.bf16 %v3813_v49, %v3812_v62  ;;  %v3490_v22 = vpop.xlane.xlu0 %3489  ;;  %v3905_v62 = vpack.c.bf16 %v3817_v36, %v3817_v36 }
 0x275   :  { %8402 = vpow2.f32 %v3380_v15  ;;  %v3499_v11 = vpop.xlane.xlu1 %3498  ;;  %v3816_v42 = vmul.f32 %v8395_v32, %v9735_v57 }
 0x276   :  { %8404 = vpow2.f32 %v3382_v44  ;;  %7729 = vmatprep.mubr.msk.bf16.mxu0 %vm2832_vm2, %v3902_v19  ;;  %v10323_v19 = vld [vmem:[%s11218_s2 + $0x78] sm:$0xff]  }
 0x277   :  { %v10312_v4 = vpop.eup %8396  ;;  %7730 = vmatmul.mubr.msk.bf16.vlgmr.msra.gmra.mrb[76].mxu0 %vm2832_vm2, %v3903_v1  ;;  %v3904_v43 = vpack.c.bf16 %v3816_v42, %v3815_v8  ;;  %8406 = vrcp.f32 %v3490_v22 }
 0x278   :  { %v3484_v18 = vpop.xlane.xlu0 %3483  ;;  %v3650_v37 = vsel %vm2839_vm1, %v10312_v4, 0.0  ;;  %7742 = vmatpush3.bf16.msra.mxu0 %v10261_v20  ;;  %8408 = vrcp.f32 %v3499_v11 }
 0x279   :  { %7737 = vmatprep.mubr.msk.bf16.mxu1 %vm2832_vm2, %v3904_v43  ;;  %v3103_v57 = vpop.xlane.xlu1 %3102  ;;  %3651 = vadd.xlane.f32.xlu0 %v3650_v37  ;;  %8410 = vrcp.f32 %v3484_v18 }
 0x27a   :  { %v3211_v61 = vsub.f32 %v9780_v17, %v3103_v57  ;;  %7738 = vmatmul.mubr.msk.bf16.vlgmr.msra.gmra.mrb[76].mxu1 %vm2832_vm2, %v3905_v62  ;;  %7743 = vmatprep.subr.bf16.mxu0 %v4501_v9  ;;  %v10337_v17 = vld [vmem:[%s11218_s2 + $0x84] sm:$0xff]  }
 0x27b   :  { %v10327_v49 = vpop.eup %8398  ;;  %7750 = vmatpush3.bf16.msra.mxu1 %v10275_v14 }
 0x27c   :  { %v10330_v20 = vpop.eup %8400  ;;  %v3396_v63 = vmul.f32 1.442695, %v3211_v61  ;;  %v3493_v15 = vpop.xlane.xlu0 %3492  ;;  %v3644_v32 = vsel %vm2832_vm2, %v10327_v49, 0.0  ;;  %7744 = vmatpush3.bf16.msra.mxu0 %v4501_v9  ;;  %7751 = vmatprep.subr.bf16.mxu1 %v4567_v16 }
 0x27d   :  { %v3487_v51 = vpop.xlane.xlu1 %3486  ;;  %3645 = vadd.xlane.f32.xlu0 %v3644_v32  ;;  %v3647_v14 = vsel %vm2832_vm2, %v10330_v20, 0.0  ;;  %7757 = vmatprep.subr.bf16.mxu0 %v10323_v19  ;;  %v11439_v32 = vld [vmem:[#allocation55_spill] sm:$0xff] }
 0x27e   :  { %8412 = vpow2.f32 %v3396_v63  ;;  %3648 = vadd.xlane.f32.xlu1 %v3647_v14 }
 0x27f   :  { %v10342_v22 = vpop.eup %8402  ;;  %8414 = vrcp.f32 %v3487_v51  ;;  %7752 = vmatpush3.bf16.msra.mxu1 %v4567_v16 }
 0x280   :  { %v10344_v36 = vpop.eup %8404  ;;  %8416 = vrcp.f32 %v3493_v15  ;;  %v3094_v44 = vpop.xlane.xlu0 %3093  ;;  %v3653_v23 = vsel %vm2832_vm2, %v10342_v22, 0.0  ;;  %7765 = vmatprep.subr.bf16.mxu1 %v10337_v17 }
 0x281   :  { %v3496_v11 = vpop.xlane.xlu1 %3495  ;;  %v3208_v1 = vsub.f32 %v9813_v7, %v3094_v44  ;;  %3654 = vadd.xlane.f32.xlu0 %v3653_v23  ;;  %v3656_v35 = vsel %vm2832_vm2, %v10344_v36, 0.0  ;;  %v8407_v9 = vpop.eup %8406 }
 0x282   :  { %8418 = vrcp.f32 %v3496_v11  ;;  %3657 = vadd.xlane.f32.xlu1 %v3656_v35  ;;  %v8409_v62 = vpop.eup %8408  ;;  %v3820_v51 = vmul.f32 %v8407_v9, %v11439_v32  ;;  %v11440_v11 = vld [vmem:[#allocation57_spill] sm:$0xff] }
 0x283   :  { %v3390_v8 = vmul.f32 1.442695, %v3208_v1  ;;  %v8411_v16 = vpop.eup %8410 }
 0x284   :  { %v3088_v42 = vpop.xlane.xlu0 %3087  ;;  %v3818_v1 = vmul.f32 %v8411_v16, %v11440_v11  ;;  %v3907_v16 = vpack.c.bf16 %v3820_v51, %v3820_v51  ;;  %v10385_v51 = vld [vmem:[%s11218_s2 + $0x90] sm:$0xff]  }
 0x285   :  { %8420 = vpow2.f32 %v3390_v8  ;;  %v3206_v43 = vsub.f32 %v9832_v45, %v3088_v42  ;;  %v3091_v18 = vpop.xlane.xlu1 %3090  ;;  %v8147_v8 = vld [vmem:[%s11218_s2 + $0x80] ss:$0 sps:$4 sm:$0x11]  }
 0x286   :  { %v3207_v37 = vsub.f32 %v9839_v55, %v3091_v18 }
 0x287   :  { %v3386_v57 = vmul.f32 1.442695, %v3206_v43 }
 0x288   :  { %v10354_v61 = vpop.eup %8412  ;;  %v3388_v7 = vmul.f32 1.442695, %v3207_v37  ;;  %v3097_v63 = vpop.xlane.xlu0 %3096 }
 0x289   :  { %v8415_v15 = vpop.eup %8414  ;;  %8422 = vpow2.f32 %v3386_v57  ;;  %v3209_v14 = vsub.f32 %v9846_v2, %v3097_v63  ;;  %v3100_v44 = vpop.xlane.xlu1 %3099  ;;  %v3677_v45 = vsel %vm2839_vm1, %v10354_v61, 0.0  ;;  %v11441_v2 = vld [vmem:[#allocation56_spill] sm:$0xff] }
 0x28a   :  { %v8417_v23 = vpop.eup %8416  ;;  %8424 = vpow2.f32 %v3388_v7  ;;  %v3210_v55 = vsub.f32 %v9853_v3, %v3100_v44  ;;  %3678 = vadd.xlane.f32.xlu1 %v3677_v45  ;;  %v3819_v35 = vmul.f32 %v8415_v15, %v9808_v39  ;;  %v3823_v43 = vmul.f32 %v8409_v62, %v11441_v2  ;;  %v8149_v3 = vld [vmem:[%s11218_s2 + $0x8c] ss:$0 sps:$4 sm:$0x11]  }
 0x28b   :  { %v3392_v42 = vmul.f32 1.442695, %v3209_v14  ;;  %v3821_v39 = vmul.f32 %v8417_v23, %v9806_v53  ;;  %v4633_v15 = vand.u32 %v8147_v8, %v9552_v21  ;;  %v4699_v53 = vand.u32 %v8149_v3, %v9552_v21 }
 0x28c   :  { %v8419_v9 = vpop.eup %8418  ;;  %v3394_v18 = vmul.f32 1.442695, %v3210_v55  ;;  %v3906_v37 = vpack.c.bf16 %v3819_v35, %v3818_v1  ;;  %v3508_v57 = vpop.xlane.xlu0 %3507  ;;  %v3909_v44 = vpack.c.bf16 %v3823_v43, %v3823_v43  ;;  %v10398_v1 = vld [vmem:[%s11218_s2 + $0x9c] sm:$0xff]  }
 0x28d   :  { %8426 = vpow2.f32 %v3392_v42  ;;  %v3517_v7 = vpop.xlane.xlu1 %3516  ;;  %v3822_v63 = vmul.f32 %v8419_v9, %v9823_v38 }
 0x28e   :  { %8428 = vpow2.f32 %v3394_v18  ;;  %7745 = vmatprep.mubr.msk.bf16.mxu0 %vm2832_vm2, %v3906_v37 }
 0x28f   :  { %v10374_v62 = vpop.eup %8420  ;;  %7746 = vmatmul.mubr.msk.bf16.vlgmr.msra.gmra.mrb[80].mxu0 %vm2832_vm2, %v3907_v16  ;;  %v3908_v32 = vpack.c.bf16 %v3822_v63, %v3821_v39  ;;  %8430 = vrcp.f32 %v3508_v57 }
 0x290   :  { %v3502_v14 = vpop.xlane.xlu0 %3501  ;;  %v3668_v45 = vsel %vm2839_vm1, %v10374_v62, 0.0  ;;  %7758 = vmatpush3.bf16.msra.mxu0 %v10323_v19 }
 0x291   :  { %7753 = vmatprep.mubr.msk.bf16.mxu1 %vm2832_vm2, %v3908_v32  ;;  %v3121_v38 = vpop.xlane.xlu1 %3120  ;;  %3669 = vadd.xlane.f32.xlu0 %v3668_v45  ;;  %8432 = vrcp.f32 %v3502_v14  ;;  %v8151_v14 = vld [vmem:[%s11218_s2 + $0x98] ss:$0 sps:$4 sm:$0x11]  }
 0x292   :  { %7754 = vmatmul.mubr.msk.bf16.vlgmr.msra.gmra.mrb[80].mxu1 %vm2832_vm2, %v3909_v44  ;;  %7759 = vmatprep.subr.bf16.mxu0 %v4633_v15  ;;  %8434 = vrcp.f32 %v3517_v7 }
 0x293   :  { %v10388_v23 = vpop.eup %8422  ;;  %7766 = vmatpush3.bf16.msra.mxu1 %v10337_v17 }
 0x294   :  { %v10391_v55 = vpop.eup %8424  ;;  %v3511_v19 = vpop.xlane.xlu0 %3510  ;;  %v3662_v11 = vsel %vm2832_vm2, %v10388_v23, 0.0  ;;  %7760 = vmatpush3.bf16.msra.mxu0 %v4633_v15  ;;  %7767 = vmatprep.subr.bf16.mxu1 %v4699_v53  ;;  %v3217_v15 = vsub.f32 %v9872_v56, %v3121_v38  ;;  %v11443_v38 = vld [vmem:[#allocation60_spill] sm:$0xff] }
 0x295   :  { %v3505_v35 = vpop.xlane.xlu1 %3504  ;;  %3663 = vadd.xlane.f32.xlu0 %v3662_v11  ;;  %v3665_v17 = vsel %vm2832_vm2, %v10391_v55, 0.0  ;;  %7773 = vmatprep.subr.bf16.mxu0 %v10385_v51  ;;  %v11442_v11 = vld [vmem:[#allocation58_spill] sm:$0xff] }
 0x296   :  { %3666 = vadd.xlane.f32.xlu1 %v3665_v17  ;;  %8436 = vrcp.f32 %v3505_v35 }
 0x297   :  { %v10403_v8 = vpop.eup %8426  ;;  %7768 = vmatpush3.bf16.msra.mxu1 %v4699_v53  ;;  %8438 = vrcp.f32 %v3511_v19 }
 0x298   :  { %v10405_v42 = vpop.eup %8428  ;;  %v3112_v9 = vpop.xlane.xlu0 %3111  ;;  %v3671_v2 = vsel %vm2832_vm2, %v10403_v8, 0.0  ;;  %7781 = vmatprep.subr.bf16.mxu1 %v10398_v1 }
 0x299   :  { %v3514_v43 = vpop.xlane.xlu1 %3513  ;;  %3672 = vadd.xlane.f32.xlu0 %v3671_v2  ;;  %v3674_v18 = vsel %vm2832_vm2, %v10405_v42, 0.0  ;;  %v3214_v37 = vsub.f32 %v9897_v27, %v3112_v9  ;;  %v8431_v16 = vpop.eup %8430 }
 0x29a   :  { %8440 = vrcp.f32 %v3514_v43  ;;  %3675 = vadd.xlane.f32.xlu1 %v3674_v18  ;;  %v3826_v35 = vmul.f32 %v8431_v16, %v11442_v11  ;;  %v3408_v43 = vmul.f32 1.442695, %v3217_v15 }
 0x29b   :  { %v8433_v63 = vpop.eup %8432  ;;  %v3402_v45 = vmul.f32 1.442695, %v3214_v37  ;;  %v4765_v37 = vand.u32 %v8151_v14, %v9552_v21 }
 0x29c   :  { %v3106_v57 = vpop.xlane.xlu0 %3105  ;;  %v8435_v44 = vpop.eup %8434  ;;  %v3824_v9 = vmul.f32 %v8433_v63, %v11443_v38  ;;  %v3911_v63 = vpack.c.bf16 %v3826_v35, %v3826_v35 }
 0x29d   :  { %v3212_v3 = vsub.f32 %v9920_v34, %v3106_v57  ;;  %v3109_v7 = vpop.xlane.xlu1 %3108 }
 0x29e   :  { %v3213_v39 = vsub.f32 %v9925_v30, %v3109_v7 }
 0x29f   :  { %v3398_v32 = vmul.f32 1.442695, %v3212_v3  ;;  %v11444_v3 = vld [vmem:[#allocation59_spill] sm:$0xff] }
 0x2a0   :  { %v3400_v53 = vmul.f32 1.442695, %v3213_v39  ;;  %v3115_v19 = vpop.xlane.xlu0 %3114  ;;  %v8437_v27 = vpop.eup %8436  ;;  %v3829_v7 = vmul.f32 %v8435_v44, %v11444_v3 }
 0x2a1   :  { %8442 = vpow2.f32 %v3398_v32  ;;  %v3215_v34 = vsub.f32 %v9934_v13, %v3115_v19  ;;  %v3118_v17 = vpop.xlane.xlu1 %3117  ;;  %v8439_v30 = vpop.eup %8438  ;;  %v3825_v2 = vmul.f32 %v8437_v27, %v9894_v10  ;;  %v8153_v32 = vld [vmem:[%s11218_s2 + $0xa4] ss:$0 sps:$4 sm:$0x11]  }
 0x2a2   :  { %8444 = vpow2.f32 %v3400_v53  ;;  %v3216_v56 = vsub.f32 %v9943_v33, %v3118_v17  ;;  %v11445_v53 = vld [vmem:[#allocation61_spill] sm:$0xff]  ;;  %v4831_v19 = vand.u32 %v8153_v32, %v9552_v21 }
 0x2a3   :  { %v3404_v18 = vmul.f32 1.442695, %v3215_v34  ;;  %8446 = vpow2.f32 %v3402_v45  ;;  %v3910_v39 = vpack.c.bf16 %v3825_v2, %v3824_v9  ;;  %v3827_v10 = vmul.f32 %v8439_v30, %v11445_v53  ;;  %v10452_v17 = vld [vmem:[%s11218_s2 + $0xb4] sm:$0xff]  }
 0x2a4   :  { %v8441_v57 = vpop.eup %8440  ;;  %v3406_v16 = vmul.f32 1.442695, %v3216_v56  ;;  %v3526_v13 = vpop.xlane.xlu0 %3525  ;;  %v3913_v45 = vpack.c.bf16 %v3829_v7, %v3829_v7 }
 0x2a5   :  { %8448 = vpow2.f32 %v3404_v18  ;;  %v3535_v33 = vpop.xlane.xlu1 %3534  ;;  %v3828_v15 = vmul.f32 %v8441_v57, %v9911_v52  ;;  %7761 = vmatprep.mubr.msk.bf16.mxu0 %vm2832_vm2, %v3910_v39  ;;  %v10439_v52 = vld [vmem:[%s11218_s2 + $0xa8] sm:$0xff]  }
 0x2a6   :  { %8450 = vpow2.f32 %v3406_v16  ;;  %7762 = vmatmul.mubr.msk.bf16.vlgmr.msra.gmra.mrb[84].mxu0 %vm2832_vm2, %v3911_v63  ;;  %v8155_v63 = vld [vmem:[%s11218_s2 + $0xb0] ss:$0 sps:$4 sm:$0x11]  }
 0x2a7   :  { %8452 = vrcp.f32 %v3526_v13  ;;  %v3912_v14 = vpack.c.bf16 %v3828_v15, %v3827_v10  ;;  %7774 = vmatpush3.bf16.msra.mxu0 %v10385_v51 }
 0x2a8   :  { %8454 = vpow2.f32 %v3408_v43  ;;  %v3520_v44 = vpop.xlane.xlu0 %3519  ;;  %7775 = vmatprep.subr.bf16.mxu0 %v4765_v37 }
 0x2a9   :  { %7769 = vmatprep.mubr.msk.bf16.mxu1 %vm2832_vm2, %v3912_v14  ;;  %8456 = vrcp.f32 %v3520_v44  ;;  %v3523_v27 = vpop.xlane.xlu1 %3522  ;;  %v11446_v14 = vld [vmem:[#allocation3_spill] sm:$0xff] }
 0x2aa   :  { %8458 = vrcp.f32 %v3523_v27  ;;  %7770 = vmatmul.mubr.msk.bf16.vlgmr.msra.gmra.mrb[84].mxu1 %vm2832_vm2, %v3913_v45 }
 0x2ab   :  { %v10442_v11 = vpop.eup %8442  ;;  %8460 = vrcp.f32 %v3535_v33  ;;  %7782 = vmatpush3.bf16.msra.mxu1 %v10398_v1  ;;  %7776 = vmatpush3.bf16.msra.mxu0 %v4765_v37 }
 0x2ac   :  { %v10445_v51 = vpop.eup %8444  ;;  %v3529_v35 = vpop.xlane.xlu0 %3528  ;;  %v3680_v34 = vsel %vm2832_vm2, %v10442_v11, 0.0  ;;  %7783 = vmatprep.subr.bf16.mxu1 %v4831_v19  ;;  %7789 = vmatprep.subr.bf16.mxu0 %v10439_v52 }
 0x2ad   :  { %8462 = vrcp.f32 %v3529_v35  ;;  %v3532_v30 = vpop.xlane.xlu1 %3531  ;;  %3681 = vadd.xlane.f32.xlu0 %v3680_v34  ;;  %v3683_v56 = vsel %vm2832_vm2, %v10445_v51, 0.0  ;;  %v10457_v1 = vpop.eup %8446 }
 0x2ae   :  { %8464 = vrcp.f32 %v3532_v30  ;;  %3684 = vadd.xlane.f32.xlu1 %v3683_v56  ;;  %v3686_v32 = vsel %vm2839_vm1, %v10457_v1, 0.0  ;;  %v11448_v30 = vld [vmem:[#allocation4_spill] sm:$0xff] }
 0x2af   :  { %v10459_v38 = vpop.eup %8448  ;;  %7784 = vmatpush3.bf16.msra.mxu1 %v4831_v19 }
 0x2b0   :  { %v10461_v9 = vpop.eup %8450  ;;  %v3544_v2 = vpop.xlane.xlu0 %3543  ;;  %v3689_v43 = vsel %vm2832_vm2, %v10459_v38, 0.0  ;;  %7797 = vmatprep.subr.bf16.mxu1 %v10452_v17 }
 0x2b1   :  { %v8453_v18 = vpop.eup %8452  ;;  %v3553_v37 = vpop.xlane.xlu1 %3552  ;;  %3690 = vadd.xlane.f32.xlu0 %v3689_v43  ;;  %v3692_v57 = vsel %vm2832_vm2, %v10461_v9, 0.0  ;;  %8466 = vrcp.f32 %v3544_v2  ;;  %v4897_v2 = vand.u32 %v8155_v63, %v9552_v21  ;;  %v8157_v43 = vld [vmem:[%s11218_s2 + $0xbc] ss:$0 sps:$4 sm:$0x11]  }
 0x2b2   :  { %v10468_v3 = vpop.eup %8454  ;;  %3693 = vadd.xlane.f32.xlu1 %v3692_v57  ;;  %v3832_v39 = vmul.f32 %v8453_v18, %v9959_v54  ;;  %v11449_v57 = vld [vmem:[#allocation62_spill] sm:$0xff] }
 0x2b3   :  { %v8457_v7 = vpop.eup %8456  ;;  %v3695_v15 = vsel %vm2839_vm1, %v10468_v3, 0.0 }
 0x2b4   :  { %v8459_v16 = vpop.eup %8458  ;;  %v3538_v13 = vpop.xlane.xlu0 %3537  ;;  %v3830_v33 = vmul.f32 %v8457_v7, %v9969_v48  ;;  %v11447_v48 = vld [vmem:[#allocation2_spill] sm:$0xff]  ;;  %v3915_v34 = vpack.c.bf16 %v3832_v39, %v3832_v39 }
 0x2b5   :  { %v8461_v53 = vpop.eup %8460  ;;  %8468 = vrcp.f32 %v3538_v13  ;;  %v3541_v10 = vpop.xlane.xlu1 %3540  ;;  %3687 = vadd.xlane.f32.xlu0 %v3686_v32  ;;  %v3831_v44 = vmul.f32 %v8459_v16, %v11446_v14  ;;  %v4963_v13 = vand.u32 %v8157_v43, %v9552_v21  ;;  %v8158_v32 = vld [vmem:[%s11218_s2 + $0xc0] sm:$0xff]  }
 0x2b6   :  { %8470 = vrcp.f32 %v3541_v10  ;;  %3696 = vadd.xlane.f32.xlu1 %v3695_v15  ;;  %v3835_v27 = vmul.f32 %v8461_v53, %v11447_v48  ;;  %v11450_v10 = vld [vmem:[#allocation5_spill] sm:$0xff] }
 0x2b7   :  { %v8463_v54 = vpop.eup %8462  ;;  %8472 = vrcp.f32 %v3553_v37  ;;  %v3914_v45 = vpack.c.bf16 %v3831_v44, %v3830_v33  ;;  %v11451_v44 = vld [vmem:[#allocation7_spill] sm:$0xff] }
 0x2b8   :  { %v8465_v19 = vpop.eup %8464  ;;  %v3547_v35 = vpop.xlane.xlu0 %3546  ;;  %v3833_v56 = vmul.f32 %v8463_v54, %v11448_v30  ;;  %v3917_v39 = vpack.c.bf16 %v3835_v27, %v3835_v27 }
 0x2b9   :  { %8474 = vrcp.f32 %v3547_v35  ;;  %7777 = vmatprep.mubr.msk.bf16.mxu0 %vm2832_vm2, %v3914_v45  ;;  %v3550_v18 = vpop.xlane.xlu1 %3549  ;;  %v3834_v37 = vmul.f32 %v8465_v19, %v11449_v57  ;;  %v8159_v45 = vld [vmem:[%s11218_s2 + $0xc8] ss:$0 sps:$4 sm:$0x11]   ;;  %v8160_v19 = vld [vmem:[%s11218_s2 + $0xcc] sm:$0xff]  }
 0x2ba   :  { %8476 = vrcp.f32 %v3550_v18  ;;  %7778 = vmatmul.mubr.msk.bf16.vlgmr.msra.gmra.mrb[88].mxu0 %vm2832_vm2, %v3915_v34 }
 0x2bb   :  { %v3916_v7 = vpack.c.bf16 %v3834_v37, %v3833_v56  ;;  %7790 = vmatpush3.bf16.msra.mxu0 %v10439_v52  ;;  %v8467_v33 = vpop.eup %8466  ;;  %v11454_v37 = vld [vmem:[#allocation63_spill] sm:$0xff] }
 0x2bc   :  { %v3562_v16 = vpop.xlane.xlu0 %3561  ;;  %7791 = vmatprep.subr.bf16.mxu0 %v4897_v2  ;;  %v3838_v15 = vmul.f32 %v8467_v33, %v11450_v10 }
 0x2bd   :  { %7785 = vmatprep.mubr.msk.bf16.mxu1 %vm2832_vm2, %v3916_v7  ;;  %v3571_v63 = vpop.xlane.xlu1 %3570  ;;  %8478 = vrcp.f32 %v3562_v16  ;;  %v5029_v16 = vand.u32 %v8159_v45, %v9552_v21 }
 0x2be   :  { %7786 = vmatmul.mubr.msk.bf16.vlgmr.msra.gmra.mrb[88].mxu1 %vm2832_vm2, %v3917_v39  ;;  %v3919_v57 = vpack.c.bf16 %v3838_v15, %v3838_v15  ;;  %v8161_v39 = vld [vmem:[%s11218_s2 + $0xd4] ss:$0 sps:$4 sm:$0x11]   ;;  %v8162_v15 = vld [vmem:[%s11218_s2 + $0xd8] sm:$0xff]  }
 0x2bf   :  { %v8469_v53 = vpop.eup %8468  ;;  %7792 = vmatpush3.bf16.msra.mxu0 %v4897_v2  ;;  %7798 = vmatpush3.bf16.msra.mxu1 %v10452_v17  ;;  %v11452_v17 = vld [vmem:[#allocation8_spill] sm:$0xff]  ;;  %v11453_v2 = vld [vmem:[#allocation6_spill] sm:$0xff]  ;;  %v5095_v10 = vand.u32 %v8161_v39, %v9552_v21 }
 0x2c0   :  { %v8471_v52 = vpop.eup %8470  ;;  %v3556_v14 = vpop.xlane.xlu0 %3555  ;;  %v3836_v54 = vmul.f32 %v8469_v53, %v11451_v44  ;;  %7799 = vmatprep.subr.bf16.mxu1 %v4963_v13  ;;  %7805 = vmatprep.subr.bf16.mxu0 %v8158_v32 }
 0x2c1   :  { %v8473_v48 = vpop.eup %8472  ;;  %8480 = vrcp.f32 %v3556_v14  ;;  %v3559_v27 = vpop.xlane.xlu1 %3558  ;;  %v3837_v35 = vmul.f32 %v8471_v52, %v11452_v17  ;;  %v8164_v17 = vld [vmem:[%s11218_s2 + $0xe4] sm:$0xff]  }
 0x2c2   :  { %8482 = vrcp.f32 %v3559_v27  ;;  %v3841_v43 = vmul.f32 %v8473_v48, %v11453_v2  ;;  %v8163_v27 = vld [vmem:[%s11218_s2 + $0xe0] ss:$0 sps:$4 sm:$0x11]  }
 0x2c3   :  { %v8475_v34 = vpop.eup %8474  ;;  %8484 = vrcp.f32 %v3571_v63  ;;  %v3918_v30 = vpack.c.bf16 %v3837_v35, %v3836_v54  ;;  %7800 = vmatpush3.bf16.msra.mxu1 %v4963_v13 }
 0x2c4   :  { %v8477_v56 = vpop.eup %8476  ;;  %v3565_v18 = vpop.xlane.xlu0 %3564  ;;  %v3839_v7 = vmul.f32 %v8475_v34, %v11454_v37  ;;  %7813 = vmatprep.subr.bf16.mxu1 %v8160_v19  ;;  %v3921_v52 = vpack.c.bf16 %v3841_v43, %v3841_v43  ;;  %v5161_v37 = vand.u32 %v8163_v27, %v9552_v21  ;;  %v8168_v27 = vld [vmem:[%s11218_s2 + $0xfc] sm:$0xff]  }
 0x2c5   :  { %8486 = vrcp.f32 %v3565_v18  ;;  %7793 = vmatprep.mubr.msk.bf16.mxu0 %vm2832_vm2, %v3918_v30  ;;  %v3568_v33 = vpop.xlane.xlu1 %3567  ;;  %v3840_v13 = vmul.f32 %v8477_v56, %v10017_v31  ;;  %v11455_v18 = vld [vmem:[#allocation9_spill] sm:$0xff] }
 0x2c6   :  { %8488 = vrcp.f32 %v3568_v33  ;;  %7794 = vmatmul.mubr.msk.bf16.vlgmr.msra.gmra.mrb[92].mxu0 %vm2832_vm2, %v3919_v57 }
 0x2c7   :  { %v3920_v63 = vpack.c.bf16 %v3840_v13, %v3839_v7  ;;  %7806 = vmatpush3.bf16.msra.mxu0 %v8158_v32  ;;  %v8479_v14 = vpop.eup %8478  ;;  %v8165_v7 = vld [vmem:[%s11218_s2 + $0xec] ss:$0 sps:$4 sm:$0x11]  }
 0x2c8   :  { %v3580_v53 = vpop.xlane.xlu0 %3579  ;;  %7807 = vmatprep.subr.bf16.mxu0 %v5029_v16  ;;  %v3844_v54 = vmul.f32 %v8479_v14, %v10021_v50 }
 0x2c9   :  { %7801 = vmatprep.mubr.msk.bf16.mxu1 %vm2832_vm2, %v3920_v63  ;;  %v3589_v44 = vpop.xlane.xlu1 %3588  ;;  %8490 = vrcp.f32 %v3580_v53  ;;  %v5227_v63 = vand.u32 %v8165_v7, %v9552_v21  ;;  %v8166_v53 = vld [vmem:[%s11218_s2 + $0xf0] sm:$0xff]  }
 0x2ca   :  { %7802 = vmatmul.mubr.msk.bf16.vlgmr.msra.gmra.mrb[92].mxu1 %vm2832_vm2, %v3921_v52  ;;  %v3923_v43 = vpack.c.bf16 %v3844_v54, %v3844_v54  ;;  %v11458_v54 = vld [vmem:[#allocation15_spill] sm:$0xff] }
 0x2cb   :  { %v8481_v31 = vpop.eup %8480  ;;  %7808 = vmatpush3.bf16.msra.mxu0 %v5029_v16  ;;  %7814 = vmatpush3.bf16.msra.mxu1 %v8160_v19  ;;  %v11456_v16 = vld [vmem:[#allocation10_spill] sm:$0xff] }
 0x2cc   :  { %v8483_v32 = vpop.eup %8482  ;;  %v3574_v45 = vpop.xlane.xlu0 %3573  ;;  %v3842_v48 = vmul.f32 %v8481_v31, %v10067_v28  ;;  %7815 = vmatprep.subr.bf16.mxu1 %v5095_v10  ;;  %7821 = vmatprep.subr.bf16.mxu0 %v8162_v15 }
 0x2cd   :  { %v8485_v35 = vpop.eup %8484  ;;  %8492 = vrcp.f32 %v3574_v45  ;;  %v3577_v34 = vpop.xlane.xlu1 %3576  ;;  %v3843_v19 = vmul.f32 %v8483_v32, %v10072_v12 }
 0x2ce   :  { %8494 = vrcp.f32 %v3577_v34  ;;  %v3847_v56 = vmul.f32 %v8485_v35, %v10051_v5 }
 0x2cf   :  { %v8487_v50 = vpop.eup %8486  ;;  %8496 = vrcp.f32 %v3589_v44  ;;  %v3922_v30 = vpack.c.bf16 %v3843_v19, %v3842_v48  ;;  %7816 = vmatpush3.bf16.msra.mxu1 %v5095_v10  ;;  %v11457_v44 = vld [vmem:[#allocation12_spill] sm:$0xff]  ;;  %v8167_v48 = vld [vmem:[%s11218_s2 + $0xf8] ss:$0 sps:$4 sm:$0x11]  }
 0x2d0   :  { %v8489_v28 = vpop.eup %8488  ;;  %v3583_v2 = vpop.xlane.xlu0 %3582  ;;  %v3845_v57 = vmul.f32 %v8487_v50, %v11455_v18  ;;  %7829 = vmatprep.subr.bf16.mxu1 %v8164_v17  ;;  %v3925_v13 = vpack.c.bf16 %v3847_v56, %v3847_v56  ;;  %v11460_v56 = vld [vmem:[#allocation11_spill] sm:$0xff]  ;;  %v5293_v7 = vand.u32 %v8167_v48, %v9552_v21 }
 0x2d1   :  { %8498 = vrcp.f32 %v3583_v2  ;;  %7809 = vmatprep.mubr.msk.bf16.mxu0 %vm2832_vm2, %v3922_v30  ;;  %v3586_v12 = vpop.xlane.xlu1 %3585  ;;  %v3846_v39 = vmul.f32 %v8489_v28, %v11456_v16 }
 0x2d2   :  { %8500 = vrcp.f32 %v3586_v12  ;;  %7810 = vmatmul.mubr.msk.bf16.vlgmr.msra.gmra.mrb[96].mxu0 %vm2832_vm2, %v3923_v43  ;;  %v8169_v12 = vld [vmem:[%s11218_s2 + $0x104] ss:$0 sps:$4 sm:$0x11]  }
 0x2d3   :  { %v3924_v5 = vpack.c.bf16 %v3846_v39, %v3845_v57  ;;  %7822 = vmatpush3.bf16.msra.mxu0 %v8162_v15  ;;  %v8491_v52 = vpop.eup %8490  ;;  %v11461_v57 = vld [vmem:[#allocation14_spill] sm:$0xff] }
 0x2d4   :  { %v3598_v33 = vpop.xlane.xlu0 %3597  ;;  %7823 = vmatprep.subr.bf16.mxu0 %v5161_v37  ;;  %v3850_v31 = vmul.f32 %v8491_v52, %v11457_v44  ;;  %v8170_v52 = vld [vmem:[%s11218_s2 + $0x108] sm:$0xff]  }
 0x2d5   :  { %7817 = vmatprep.mubr.msk.bf16.mxu1 %vm2832_vm2, %v3924_v5  ;;  %v3607_v10 = vpop.xlane.xlu1 %3606  ;;  %8502 = vrcp.f32 %v3598_v33 }
 0x2d6   :  { %7818 = vmatmul.mubr.msk.bf16.vlgmr.msra.gmra.mrb[96].mxu1 %vm2832_vm2, %v3925_v13  ;;  %v3927_v18 = vpack.c.bf16 %v3850_v31, %v3850_v31 }
 0x2d7   :  { %v8493_v14 = vpop.eup %8492  ;;  %7824 = vmatpush3.bf16.msra.mxu0 %v5161_v37  ;;  %7830 = vmatpush3.bf16.msra.mxu1 %v8164_v17  ;;  %v11459_v17 = vld [vmem:[#allocation18_spill] sm:$0xff] }
 0x2d8   :  { %v8495_v15 = vpop.eup %8494  ;;  %v3592_v32 = vpop.xlane.xlu0 %3591  ;;  %v3848_v45 = vmul.f32 %v8493_v14, %v11458_v54  ;;  %7831 = vmatprep.subr.bf16.mxu1 %v5227_v63  ;;  %7837 = vmatprep.subr.bf16.mxu0 %v8166_v53  ;;  %v8172_v54 = vld [vmem:[%s11218_s2 + $0x114] sm:$0xff]  }
 0x2d9   :  { %v8497_v35 = vpop.eup %8496  ;;  %8504 = vrcp.f32 %v3592_v32  ;;  %v3595_v34 = vpop.xlane.xlu1 %3594  ;;  %v3849_v19 = vmul.f32 %v8495_v15, %v11459_v17  ;;  %v8171_v32 = vld [vmem:[%s11218_s2 + $0x110] ss:$0 sps:$4 sm:$0x11]  }
 0x2da   :  { %8506 = vrcp.f32 %v3595_v34  ;;  %v3853_v2 = vmul.f32 %v8497_v35, %v11460_v56 }
 0x2db   :  { %v8499_v50 = vpop.eup %8498  ;;  %8508 = vrcp.f32 %v3607_v10  ;;  %v3926_v30 = vpack.c.bf16 %v3849_v19, %v3848_v45  ;;  %7832 = vmatpush3.bf16.msra.mxu1 %v5227_v63  ;;  %v5359_v63 = vand.u32 %v8169_v12, %v9552_v21 }
 0x2dc   :  { %v8501_v28 = vpop.eup %8500  ;;  %v3601_v43 = vpop.xlane.xlu0 %3600  ;;  %v3851_v37 = vmul.f32 %v8499_v50, %v11461_v57  ;;  %7845 = vmatprep.subr.bf16.mxu1 %v8168_v27  ;;  %v3929_v13 = vpack.c.bf16 %v3853_v2, %v3853_v2 }
 0x2dd   :  { %8510 = vrcp.f32 %v3601_v43  ;;  %7825 = vmatprep.mubr.msk.bf16.mxu0 %vm2832_vm2, %v3926_v30  ;;  %v3604_v16 = vpop.xlane.xlu1 %3603  ;;  %v3852_v39 = vmul.f32 %v8501_v28, %v10129_v24  ;;  %v5425_v30 = vand.u32 %v8171_v32, %v9552_v21  ;;  %v8173_v28 = vld [vmem:[%s11218_s2 + $0x11c] ss:$0 sps:$4 sm:$0x11]   ;;  %v8174_v43 = vld [vmem:[%s11218_s2 + $0x120] sm:$0xff]   ;;  %v11465_v32 = vld [vmem:[#allocation16_spill] sm:$0xff] }
 0x2de   :  { %8512 = vrcp.f32 %v3604_v16  ;;  %7826 = vmatmul.mubr.msk.bf16.vlgmr.msra.gmra.mrb[100].mxu0 %vm2832_vm2, %v3927_v18  ;;  %v11462_v16 = vld [vmem:[#allocation13_spill] sm:$0xff] }
 0x2df   :  { %v3928_v5 = vpack.c.bf16 %v3852_v39, %v3851_v37  ;;  %7838 = vmatpush3.bf16.msra.mxu0 %v8166_v53  ;;  %v8503_v10 = vpop.eup %8502 }
 0x2e0   :  { %v3616_v33 = vpop.xlane.xlu0 %3615  ;;  %7839 = vmatprep.subr.bf16.mxu0 %v5293_v7  ;;  %v3856_v15 = vmul.f32 %v8503_v10, %v10151_v29 }
 0x2e1   :  { %7833 = vmatprep.mubr.msk.bf16.mxu1 %vm2832_vm2, %v3928_v5  ;;  %v3625_v14 = vpop.xlane.xlu1 %3624  ;;  %8514 = vrcp.f32 %v3616_v33  ;;  %v11463_v5 = vld [vmem:[#allocation19_spill] sm:$0xff] }
 0x2e2   :  { %7834 = vmatmul.mubr.msk.bf16.vlgmr.msra.gmra.mrb[100].mxu1 %vm2832_vm2, %v3929_v13  ;;  %v3931_v19 = vpack.c.bf16 %v3856_v15, %v3856_v15  ;;  %v8176_v13 = vld [vmem:[%s11218_s2 + $0x12c] sm:$0xff]  }
 0x2e3   :  { %v8505_v24 = vpop.eup %8504  ;;  %7840 = vmatpush3.bf16.msra.mxu0 %v5293_v7  ;;  %7846 = vmatpush3.bf16.msra.mxu1 %v8168_v27  ;;  %v8175_v7 = vld [vmem:[%s11218_s2 + $0x128] ss:$0 sps:$4 sm:$0x11]  }
 0x2e4   :  { %v8507_v53 = vpop.eup %8506  ;;  %v3610_v44 = vpop.xlane.xlu0 %3609  ;;  %v3854_v31 = vmul.f32 %v8505_v24, %v10166_v0  ;;  %7847 = vmatprep.subr.bf16.mxu1 %v5359_v63  ;;  %7853 = vmatprep.subr.bf16.mxu0 %v8170_v52 }
 0x2e5   :  { %v8509_v45 = vpop.eup %8508  ;;  %8516 = vrcp.f32 %v3610_v44  ;;  %v3613_v48 = vpop.xlane.xlu1 %3612  ;;  %v3855_v27 = vmul.f32 %v8507_v53, %v10171_v41  ;;  %v5557_v44 = vand.u32 %v8175_v7, %v9552_v21 }
 0x2e6   :  { %8518 = vrcp.f32 %v3613_v48  ;;  %v3859_v34 = vmul.f32 %v8509_v45, %v10132_v59  ;;  %v11466_v48 = vld [vmem:[#allocation46_spill] sm:$0xff] }
 0x2e7   :  { %v8511_v29 = vpop.eup %8510  ;;  %8520 = vrcp.f32 %v3625_v14  ;;  %v3930_v35 = vpack.c.bf16 %v3855_v27, %v3854_v31  ;;  %7848 = vmatpush3.bf16.msra.mxu1 %v5359_v63 }
 0x2e8   :  { %v8513_v0 = vpop.eup %8512  ;;  %v3619_v17 = vpop.xlane.xlu0 %3618  ;;  %v3857_v50 = vmul.f32 %v8511_v29, %v10181_v25  ;;  %7861 = vmatprep.subr.bf16.mxu1 %v8172_v54  ;;  %v3933_v2 = vpack.c.bf16 %v3859_v34, %v3859_v34  ;;  %v5491_v25 = vand.u32 %v8173_v28, %v9552_v21  ;;  %v8177_v29 = vld [vmem:[%s11218_s2 + $0x134] ss:$0 sps:$4 sm:$0x11]   ;;  %v8180_v28 = vld [vmem:[%s11218_s2 + $0x144] sm:$0xff]  }
 0x2e9   :  { %8522 = vrcp.f32 %v3619_v17  ;;  %7841 = vmatprep.mubr.msk.bf16.mxu0 %vm2832_vm2, %v3930_v35  ;;  %v3622_v41 = vpop.xlane.xlu1 %3621  ;;  %v3858_v56 = vmul.f32 %v8513_v0, %v10187_v60 }
 0x2ea   :  { %8524 = vrcp.f32 %v3622_v41  ;;  %7842 = vmatmul.mubr.msk.bf16.vlgmr.msra.gmra.mrb[104].mxu0 %vm2832_vm2, %v3931_v19 }
 0x2eb   :  { %v3932_v59 = vpack.c.bf16 %v3858_v56, %v3857_v50  ;;  %7854 = vmatpush3.bf16.msra.mxu0 %v8170_v52  ;;  %v8515_v18 = vpop.eup %8514  ;;  %v11464_v52 = vld [vmem:[#allocation17_spill] sm:$0xff]  ;;  %v5623_v50 = vand.u32 %v8177_v29, %v9552_v21 }
 0x2ec   :  { %7855 = vmatprep.subr.bf16.mxu0 %v5425_v30  ;;  %v3862_v39 = vmul.f32 %v8515_v18, %v11462_v16 }
 0x2ed   :  { %7849 = vmatprep.mubr.msk.bf16.mxu1 %vm2832_vm2, %v3932_v59  ;;  %v3643_v37 = vpop.xlane.xlu1 %3642 }
 0x2ee   :  { %7850 = vmatmul.mubr.msk.bf16.vlgmr.msra.gmra.mrb[104].mxu1 %vm2832_vm2, %v3933_v2  ;;  %v3634_v57 = vpop.xlane.xlu0 %3633  ;;  %v3935_v45 = vpack.c.bf16 %v3862_v39, %v3862_v39 }
 0x2ef   :  { %v8517_v60 = vpop.eup %8516  ;;  %7856 = vmatpush3.bf16.msra.mxu0 %v5425_v30  ;;  %7862 = vmatpush3.bf16.msra.mxu1 %v8172_v54  ;;  %8526 = vrcp.f32 %v3634_v57  ;;  %v8178_v30 = vld [vmem:[%s11218_s2 + $0x138] sm:$0xff]  }
 0x2f0   :  { %v8519_v12 = vpop.eup %8518  ;;  %v3860_v33 = vmul.f32 %v8517_v60, %v11463_v5  ;;  %7863 = vmatprep.subr.bf16.mxu1 %v5491_v25  ;;  %7869 = vmatprep.subr.bf16.mxu0 %v8174_v43  ;;  %v8181_v5 = vld [vmem:[%s11218_s2 + $0x14c] ss:$0 sps:$4 sm:$0x11]  }
 0x2f1   :  { %v8521_v63 = vpop.eup %8520  ;;  %v3861_v10 = vmul.f32 %v8519_v12, %v11464_v52 }
 0x2f2   :  { %v3628_v14 = vpop.xlane.xlu0 %3627  ;;  %v3865_v54 = vmul.f32 %v8521_v63, %v11465_v32 }
 0x2f3   :  { %v8523_v24 = vpop.eup %8522  ;;  %8528 = vrcp.f32 %v3628_v14  ;;  %v3631_v53 = vpop.xlane.xlu1 %3630  ;;  %v3934_v15 = vpack.c.bf16 %v3861_v10, %v3860_v33  ;;  %7864 = vmatpush3.bf16.msra.mxu1 %v5491_v25  ;;  %v8179_v25 = vld [vmem:[%s11218_s2 + $0x140] ss:$0 sps:$4 sm:$0x11]  }
 0x2f4   :  { %v8525_v31 = vpop.eup %8524  ;;  %8530 = vrcp.f32 %v3631_v53  ;;  %v3863_v27 = vmul.f32 %v8523_v24, %v11466_v48  ;;  %7877 = vmatprep.subr.bf16.mxu1 %v8176_v13  ;;  %v3937_v19 = vpack.c.bf16 %v3865_v54, %v3865_v54  ;;  %v6496_v53 = vld [vmem:[%s11219_s3 + $0x14] sm:$0x1]  ;;  %v5755_v48 = vand.u32 %v8181_v5, %v9552_v21 }
 0x2f5   :  { %8532 = vrcp.f32 %v3643_v37  ;;  %7857 = vmatprep.mubr.msk.bf16.mxu0 %vm2832_vm2, %v3934_v15  ;;  %v3864_v35 = vmul.f32 %v8525_v31, %v10218_v58 }
 0x2f6   :  { %7858 = vmatmul.mubr.msk.bf16.vlgmr.msra.gmra.mrb[108].mxu0 %vm2832_vm2, %v3935_v45  ;;  %v3637_v0 = vpop.xlane.xlu0 %3636 }
 0x2f7   :  { %8534 = vrcp.f32 %v3637_v0  ;;  %v3640_v34 = vpop.xlane.xlu1 %3639  ;;  %v3936_v17 = vpack.c.bf16 %v3864_v35, %v3863_v27  ;;  %7870 = vmatpush3.bf16.msra.mxu0 %v8174_v43  ;;  %v8182_v27 = vld [vmem:[%s11218_s2 + $0x150] sm:$0xff]  }
 0x2f8   :  { %8536 = vrcp.f32 %v3640_v34  ;;  %7871 = vmatprep.subr.bf16.mxu0 %v5557_v44 }
 0x2f9   :  { %7865 = vmatprep.mubr.msk.bf16.mxu1 %vm2832_vm2, %v3936_v17  ;;  %v8527_v58 = vpop.eup %8526 }
 0x2fa   :  { %7866 = vmatmul.mubr.msk.bf16.vlgmr.msra.gmra.mrb[108].mxu1 %vm2832_vm2, %v3937_v19  ;;  %v3868_v59 = vmul.f32 %v8527_v58, %v10248_v6 }
 0x2fb   :  { %7872 = vmatpush3.bf16.msra.mxu0 %v5557_v44  ;;  %7878 = vmatpush3.bf16.msra.mxu1 %v8176_v13  ;;  %v11469_v13 = vld [vmem:[#allocation20_spill] sm:$0xff] }
 0x2fc   :  { %7879 = vmatprep.subr.bf16.mxu1 %v5623_v50  ;;  %7885 = vmatprep.subr.bf16.mxu0 %v8178_v30  ;;  %v3939_v16 = vpack.c.bf16 %v3868_v59, %v3868_v59 }
 0x2fd   :  { %v8529_v41 = vpop.eup %8528 }
 0x2fe   :  { %v8531_v56 = vpop.eup %8530  ;;  %v3866_v2 = vmul.f32 %v8529_v41, %v10265_v46  ;;  %v6491_v46 = vld [vmem:[%s11219_s3 + $0x8] sm:$0x1] }
 0x2ff   :  { %v8533_v43 = vpop.eup %8532  ;;  %v3867_v18 = vmul.f32 %v8531_v56, %v10268_v26  ;;  %7880 = vmatpush3.bf16.msra.mxu1 %v5623_v50  ;;  %v5689_v26 = vand.u32 %v8179_v25, %v9552_v21  ;;  %v3661_v29 = vpop.xlane.xlu1 %3660 }
 0x300   :  { %7893 = vmatprep.subr.bf16.mxu1 %v8180_v28  ;;  %v3871_v7 = vmul.f32 %v8533_v43, %v10236_v40 }
 0x301   :  { %v8535_v57 = vpop.eup %8534  ;;  %v3938_v60 = vpack.c.bf16 %v3867_v18, %v3866_v2  ;;  %v7683_v12 = vpop.f32.mrb[64].mxu0  ;;  %v8183_v18 = vld [vmem:[%s11218_s2 + $0x158] ss:$0 sps:$4 sm:$0x11]  }
 0x302   :  { %v8537_v37 = vpop.eup %8536  ;;  %v3869_v39 = vmul.f32 %v8535_v57, %v10280_v47  ;;  %v7071_v33 = vpack.c.bf16 %v7683_v12, %v7683_v12  ;;  %v4009_v40 = vpop.f32.mrb[65].mxu0  ;;  %v3941_v45 = vpack.c.bf16 %v3871_v7, %v3871_v7  ;;  %v5821_v5 = vand.u32 %v8183_v18, %v9552_v21 }
 0x303   :  { %7873 = vmatprep.mubr.msk.bf16.mxu0 %vm2832_vm2, %v3938_v60  ;;  %v3870_v63 = vmul.f32 %v8537_v37, %v11469_v13  ;;  %v7069_v52 = vpack.c.bf16 %v4009_v40, %v4009_v40  ;;  %v7684_v10 = vpop.f32.mrb[66].mxu0 }
 0x304   :  { %7874 = vmatmul.mubr.msk.bf16.vlgmr.msra.gmra.mrb[112].mxu0 %vm2832_vm2, %v3939_v16  ;;  %v6492_v47 = vsel %vm10627_vm6, %v7071_v33, %v6491_v46  ;;  %v4012_v14 = vpop.f32.mrb[67].mxu0  ;;  %v11470_v46 = vld [vmem:[#allocation21_spill] sm:$0xff]  ;;  %v8185_v33 = vld [vmem:[%s11218_s2 + $0x164] ss:$0 sps:$4 sm:$0x11]  }
 0x305   :  { %v7691_v24 = vpop.f32.mrb[64].mxu1  ;;  %v3940_v15 = vpack.c.bf16 %v3870_v63, %v3869_v39  ;;  %7886 = vmatpush3.bf16.msra.mxu0 %v8178_v30  ;;  %6493 = vst [vmem:[%s11219_s3 + $0x8] sm:$0x1] %v6492_v47  ;;  %6486 = vst.msk [vmem:[%s11219_s3] sm:$0xf] %vm6485_vm7, %v7069_v52  ;;  %v7070_v44 = vpack.c.bf16 %v4012_v14, %v4012_v14  ;;  %v10676_v30 = vld [vmem:[%s11218_s2 + $0x15c] sm:$0xff]  }
 0x306   :  { %v7074_v31 = vpack.c.bf16 %v7691_v24, %v7691_v24  ;;  %v4075_v32 = vpop.f32.mrb[65].mxu1  ;;  %v3652_v54 = vpop.xlane.xlu0 %3651  ;;  %7887 = vmatprep.subr.bf16.mxu0 %v5689_v26  ;;  %v6506_v14 = vld [vmem:[%s11219_s3 + $0x2c] sm:$0x1] }
 0x307   :  { %v7072_v35 = vpack.c.bf16 %v4075_v32, %v4075_v32  ;;  %v7692_v0 = vpop.f32.mrb[66].mxu1  ;;  %7881 = vmatprep.mubr.msk.bf16.mxu1 %vm2832_vm2, %v3940_v15  ;;  %6487 = vst.msk [vmem:[%s11219_s3 + $0x4] sm:$0xf] %vm6485_vm7, %v7070_v44  ;;  %8538 = vrcp.f32 %v3652_v54  ;;  %v5887_v32 = vand.u32 %v8185_v33, %v9552_v21  ;;  %v8186_v54 = vld [vmem:[%s11218_s2 + $0x168] sm:$0xff]   ;;  %v6516_v33 = vld [vmem:[%s11219_s3 + $0x44] sm:$0x1] }
 0x308   :  { %v6497_v34 = vsel %vm10627_vm6, %v7074_v31, %v6496_v53  ;;  %v4078_v17 = vpop.f32.mrb[67].mxu1  ;;  %7882 = vmatmul.mubr.msk.bf16.vlgmr.msra.gmra.mrb[112].mxu1 %vm2832_vm2, %v3941_v45 }
 0x309   :  { %6498 = vst [vmem:[%s11219_s3 + $0x14] sm:$0x1] %v6497_v34  ;;  %6494 = vst.msk [vmem:[%s11219_s3 + $0xc] sm:$0xf] %vm6485_vm7, %v7072_v35  ;;  %v7073_v19 = vpack.c.bf16 %v4078_v17, %v4078_v17  ;;  %7888 = vmatpush3.bf16.msra.mxu0 %v5689_v26  ;;  %7894 = vmatpush3.bf16.msra.mxu1 %v8180_v28  ;;  %v6501_v26 = vld [vmem:[%s11219_s3 + $0x20] sm:$0x1] }
 0x30a   :  { %v3646_v50 = vpop.xlane.xlu0 %3645  ;;  %7895 = vmatprep.subr.bf16.mxu1 %v5755_v48  ;;  %7901 = vmatprep.subr.bf16.mxu0 %v8182_v27  ;;  %v8187_v17 = vld [vmem:[%s11218_s2 + $0x174] sm:$0xff]  }
 0x30b   :  { %6495 = vst.msk [vmem:[%s11219_s3 + $0x10] sm:$0xf] %vm6485_vm7, %v7073_v19  ;;  %8540 = vrcp.f32 %v3646_v50  ;;  %v3649_v58 = vpop.xlane.xlu1 %3648 }
 0x30c   :  { %8542 = vrcp.f32 %v3649_v58 }
 0x30d   :  { %8544 = vrcp.f32 %v3661_v29  ;;  %7896 = vmatpush3.bf16.msra.mxu1 %v5755_v48 }
 0x30e   :  { %v3655_v41 = vpop.xlane.xlu0 %3654  ;;  %7909 = vmatprep.subr.bf16.mxu1 %v10676_v30 }
 0x30f   :  { %8546 = vrcp.f32 %v3655_v41  ;;  %v3658_v28 = vpop.xlane.xlu1 %3657 }
 0x310   :  { %8548 = vrcp.f32 %v3658_v28 }
 0x311   :  { %v8539_v56 = vpop.eup %8538 }
 0x312   :  { %v3874_v25 = vmul.f32 %v8539_v56, %v10312_v4 }
 0x314   :  { %v3943_v4 = vpack.c.bf16 %v3874_v25, %v3874_v25 }
 0x315   :  { %v8541_v59 = vpop.eup %8540 }
 0x316   :  { %v8543_v2 = vpop.eup %8542  ;;  %v3872_v43 = vmul.f32 %v8541_v59, %v10327_v49 }
 0x317   :  { %v8545_v57 = vpop.eup %8544  ;;  %v3873_v60 = vmul.f32 %v8543_v2, %v10330_v20  ;;  %v3679_v45 = vpop.xlane.xlu1 %3678  ;;  %v8188_v2 = vld [vmem:[%s11218_s2 + $0x170] ss:$0 sps:$4 sm:$0x11]  }
 0x318   :  { %v3877_v16 = vmul.f32 %v8545_v57, %v11470_v46  ;;  %v5953_v46 = vand.u32 %v8188_v2, %v9552_v21 }
 0x319   :  { %v8547_v37 = vpop.eup %8546  ;;  %v3942_v7 = vpack.c.bf16 %v3873_v60, %v3872_v43  ;;  %v7699_v39 = vpop.f32.mrb[68].mxu0 }
 0x31a   :  { %v8549_v12 = vpop.eup %8548  ;;  %v3875_v49 = vmul.f32 %v8547_v37, %v10342_v22  ;;  %v7077_v20 = vpack.c.bf16 %v7699_v39, %v7699_v39  ;;  %v4141_v40 = vpop.f32.mrb[69].mxu0  ;;  %v3945_v31 = vpack.c.bf16 %v3877_v16, %v3877_v16  ;;  %v8189_v16 = vld [vmem:[%s11218_s2 + $0x17c] ss:$0 sps:$4 sm:$0x11]  }
 0x31b   :  { %7889 = vmatprep.mubr.msk.bf16.mxu0 %vm2832_vm2, %v3942_v7  ;;  %v3876_v13 = vmul.f32 %v8549_v12, %v10344_v36  ;;  %v7075_v63 = vpack.c.bf16 %v4141_v40, %v4141_v40  ;;  %v7700_v52 = vpop.f32.mrb[70].mxu0  ;;  %v6511_v12 = vld [vmem:[%s11219_s3 + $0x38] sm:$0x1] }
 0x31c   :  { %7890 = vmatmul.mubr.msk.bf16.vlgmr.msra.gmra.mrb[116].mxu0 %vm2832_vm2, %v3943_v4  ;;  %v6502_v10 = vsel %vm10627_vm6, %v7077_v20, %v6501_v26  ;;  %v4144_v22 = vpop.f32.mrb[71].mxu0  ;;  %v6019_v52 = vand.u32 %v8189_v16, %v9552_v21 }
 0x31d   :  { %v7707_v47 = vpop.f32.mrb[68].mxu1  ;;  %v3944_v24 = vpack.c.bf16 %v3876_v13, %v3875_v49  ;;  %7902 = vmatpush3.bf16.msra.mxu0 %v8182_v27  ;;  %6503 = vst [vmem:[%s11219_s3 + $0x20] sm:$0x1] %v6502_v10  ;;  %6499 = vst.msk [vmem:[%s11219_s3 + $0x18] sm:$0xf] %vm6485_vm7, %v7075_v63  ;;  %v7076_v36 = vpack.c.bf16 %v4144_v22, %v4144_v22 }
 0x31e   :  { %v7080_v53 = vpack.c.bf16 %v7707_v47, %v7707_v47  ;;  %v4207_v15 = vpop.f32.mrb[69].mxu1  ;;  %v3670_v44 = vpop.xlane.xlu0 %3669  ;;  %7903 = vmatprep.subr.bf16.mxu0 %v5821_v5 }
 0x31f   :  { %v7078_v48 = vpack.c.bf16 %v4207_v15, %v4207_v15  ;;  %v7708_v27 = vpop.f32.mrb[70].mxu1  ;;  %7897 = vmatprep.mubr.msk.bf16.mxu1 %vm2832_vm2, %v3944_v24  ;;  %6500 = vst.msk [vmem:[%s11219_s3 + $0x1c] sm:$0xf] %vm6485_vm7, %v7076_v36  ;;  %8550 = vrcp.f32 %v3670_v44 }
 0x320   :  { %v6507_v29 = vsel %vm10627_vm6, %v7080_v53, %v6506_v14  ;;  %v4210_v35 = vpop.f32.mrb[71].mxu1  ;;  %7898 = vmatmul.mubr.msk.bf16.vlgmr.msra.gmra.mrb[116].mxu1 %vm2832_vm2, %v3945_v31 }
 0x321   :  { %6508 = vst [vmem:[%s11219_s3 + $0x2c] sm:$0x1] %v6507_v29  ;;  %6504 = vst.msk [vmem:[%s11219_s3 + $0x24] sm:$0xf] %vm6485_vm7, %v7078_v48  ;;  %v7079_v0 = vpack.c.bf16 %v4210_v35, %v4210_v35  ;;  %7904 = vmatpush3.bf16.msra.mxu0 %v5821_v5  ;;  %7910 = vmatpush3.bf16.msra.mxu1 %v10676_v30 }
 0x322   :  { %v3664_v34 = vpop.xlane.xlu0 %3663  ;;  %7911 = vmatprep.subr.bf16.mxu1 %v5887_v32  ;;  %7917 = vmatprep.subr.bf16.mxu0 %v8186_v54 }
 0x323   :  { %6505 = vst.msk [vmem:[%s11219_s3 + $0x28] sm:$0xf] %vm6485_vm7, %v7079_v0  ;;  %8552 = vrcp.f32 %v3664_v34  ;;  %v3667_v19 = vpop.xlane.xlu1 %3666  ;;  %v6521_v34 = vld [vmem:[%s11219_s3 + $0x50] sm:$0x1] }
 0x324   :  { %8554 = vrcp.f32 %v3667_v19 }
 0x325   :  { %8556 = vrcp.f32 %v3679_v45  ;;  %7912 = vmatpush3.bf16.msra.mxu1 %v5887_v32 }
 0x326   :  { %v3673_v50 = vpop.xlane.xlu0 %3672  ;;  %7925 = vmatprep.subr.bf16.mxu1 %v8187_v17 }
 0x327   :  { %8558 = vrcp.f32 %v3673_v50  ;;  %v3676_v30 = vpop.xlane.xlu1 %3675 }
 0x328   :  { %8560 = vrcp.f32 %v3676_v30 }
 0x329   :  { %v8551_v58 = vpop.eup %8550 }
 0x32a   :  { %v3880_v56 = vmul.f32 %v8551_v58, %v10374_v62 }
 0x32c   :  { %v3947_v62 = vpack.c.bf16 %v3880_v56, %v3880_v56 }
 0x32d   :  { %v8553_v41 = vpop.eup %8552 }
 0x32e   :  { %v8555_v28 = vpop.eup %8554  ;;  %v3878_v59 = vmul.f32 %v8553_v41, %v10388_v23 }
 0x32f   :  { %v8557_v25 = vpop.eup %8556  ;;  %v3879_v43 = vmul.f32 %v8555_v28, %v10391_v55 }
 0x330   :  { %v3883_v37 = vmul.f32 %v8557_v25, %v10354_v61 }
 0x331   :  { %v8559_v18 = vpop.eup %8558  ;;  %v3946_v57 = vpack.c.bf16 %v3879_v43, %v3878_v59  ;;  %v7715_v7 = vpop.f32.mrb[72].mxu0  ;;  %v6526_v59 = vld [vmem:[%s11219_s3 + $0x5c] sm:$0x1] }
 0x332   :  { %v8561_v60 = vpop.eup %8560  ;;  %v3881_v23 = vmul.f32 %v8559_v18, %v10403_v8  ;;  %v7083_v55 = vpack.c.bf16 %v7715_v7, %v7715_v7  ;;  %v4273_v39 = vpop.f32.mrb[73].mxu0  ;;  %v3949_v63 = vpack.c.bf16 %v3883_v37, %v3883_v37 }
 0x333   :  { %7905 = vmatprep.mubr.msk.bf16.mxu0 %vm2832_vm2, %v3946_v57  ;;  %v3882_v61 = vmul.f32 %v8561_v60, %v10405_v42  ;;  %v7081_v26 = vpack.c.bf16 %v4273_v39, %v4273_v39  ;;  %v7716_v4 = vpop.f32.mrb[74].mxu0 }
 0x334   :  { %7906 = vmatmul.mubr.msk.bf16.vlgmr.msra.gmra.mrb[120].mxu0 %vm2832_vm2, %v3947_v62  ;;  %v6512_v49 = vsel %vm10627_vm6, %v7083_v55, %v6511_v12  ;;  %v4276_v8 = vpop.f32.mrb[75].mxu0 }
 0x335   :  { %v7723_v5 = vpop.f32.mrb[72].mxu1  ;;  %v3948_v20 = vpack.c.bf16 %v3882_v61, %v3881_v23  ;;  %7918 = vmatpush3.bf16.msra.mxu0 %v8186_v54  ;;  %6513 = vst [vmem:[%s11219_s3 + $0x38] sm:$0x1] %v6512_v49  ;;  %6509 = vst.msk [vmem:[%s11219_s3 + $0x30] sm:$0xf] %vm6485_vm7, %v7081_v26  ;;  %v7082_v42 = vpack.c.bf16 %v4276_v8, %v4276_v8 }
 0x336   :  { %v7086_v40 = vpack.c.bf16 %v7723_v5, %v7723_v5  ;;  %v4339_v13 = vpop.f32.mrb[73].mxu1  ;;  %7919 = vmatprep.subr.bf16.mxu0 %v5953_v46  ;;  %v6536_v8 = vld [vmem:[%s11219_s3 + $0x74] sm:$0x1] }
 0x337   :  { %v7084_v10 = vpack.c.bf16 %v4339_v13, %v4339_v13  ;;  %v7724_v22 = vpop.f32.mrb[74].mxu1  ;;  %7913 = vmatprep.mubr.msk.bf16.mxu1 %vm2832_vm2, %v3948_v20  ;;  %6510 = vst.msk [vmem:[%s11219_s3 + $0x34] sm:$0xf] %vm6485_vm7, %v7082_v42 }
 0x338   :  { %v6517_v47 = vsel %vm10627_vm6, %v7086_v40, %v6516_v33  ;;  %v4342_v14 = vpop.f32.mrb[75].mxu1  ;;  %7914 = vmatmul.mubr.msk.bf16.vlgmr.msra.gmra.mrb[120].mxu1 %vm2832_vm2, %v3949_v63  ;;  %v6541_v22 = vld [vmem:[%s11219_s3 + $0x80] sm:$0x1] }
 0x339   :  { %6518 = vst [vmem:[%s11219_s3 + $0x44] sm:$0x1] %v6517_v47  ;;  %6514 = vst.msk [vmem:[%s11219_s3 + $0x3c] sm:$0xf] %vm6485_vm7, %v7084_v10  ;;  %v7085_v21 = vpack.c.bf16 %v4342_v14, %v4342_v14  ;;  %7926 = vmatpush3.bf16.msra.mxu1 %v8187_v17  ;;  %7920 = vmatpush3.bf16.msra.mxu0 %v5953_v46  ;;  %v6531_v46 = vld [vmem:[%s11219_s3 + $0x68] sm:$0x1] }
 0x33a   :  { %v3682_v24 = vpop.xlane.xlu0 %3681  ;;  %7927 = vmatprep.subr.bf16.mxu1 %v6019_v52 }
 0x33b   :  { %6515 = vst.msk [vmem:[%s11219_s3 + $0x40] sm:$0xf] %vm6485_vm7, %v7085_v21  ;;  %8562 = vrcp.f32 %v3682_v24  ;;  %v3685_v36 = vpop.xlane.xlu1 %3684 }
 0x33c   :  { %8564 = vrcp.f32 %v3685_v36 }
 0x33d   :  { %7928 = vmatpush3.bf16.msra.mxu1 %v6019_v52 }
 0x33e   :  { %v3691_v53 = vpop.xlane.xlu0 %3690 }
 0x33f   :  { %8566 = vrcp.f32 %v3691_v53  ;;  %v3694_v15 = vpop.xlane.xlu1 %3693 }
 0x340   :  { %8568 = vrcp.f32 %v3694_v15 }
 0x342   :  { %v3688_v44 = vpop.xlane.xlu0 %3687 }
 0x343   :  { %8570 = vrcp.f32 %v3688_v44  ;;  %v3697_v31 = vpop.xlane.xlu1 %3696  ;;  %v6546_v44 = vld [vmem:[%s11219_s3 + $0x8c] sm:$0x1] }
 0x344   :  { %8572 = vrcp.f32 %v3697_v31 }
 0x345   :  { %v8563_v32 = vpop.eup %8562 }
 0x346   :  { %v8565_v54 = vpop.eup %8564  ;;  %v3884_v45 = vmul.f32 %v8563_v32, %v10442_v11 }
 0x347   :  { %v3885_v48 = vmul.f32 %v8565_v54, %v10445_v51 }
 0x349   :  { %v8567_v27 = vpop.eup %8566  ;;  %v3950_v29 = vpack.c.bf16 %v3885_v48, %v3884_v45 }
 0x34a   :  { %v8569_v35 = vpop.eup %8568  ;;  %v7731_v0 = vpop.f32.mrb[76].mxu0  ;;  %v3887_v17 = vmul.f32 %v8567_v27, %v10459_v38 }
 0x34b   :  { %v7089_v19 = vpack.c.bf16 %v7731_v0, %v7731_v0  ;;  %v4405_v50 = vpop.f32.mrb[77].mxu0  ;;  %7921 = vmatprep.mubr.msk.bf16.mxu0 %vm2832_vm2, %v3950_v29  ;;  %v3888_v30 = vmul.f32 %v8569_v35, %v10461_v9 }
 0x34c   :  { %v7087_v58 = vpack.c.bf16 %v4405_v50, %v4405_v50  ;;  %v7732_v11 = vpop.f32.mrb[78].mxu0 }
 0x34d   :  { %v8571_v41 = vpop.eup %8570  ;;  %v6522_v51 = vsel %vm10627_vm6, %v7089_v19, %v6521_v34  ;;  %v4408_v28 = vpop.f32.mrb[79].mxu0  ;;  %v3952_v2 = vpack.c.bf16 %v3888_v30, %v3887_v17  ;;  %v6551_v34 = vld [vmem:[%s11219_s3 + $0x98] sm:$0x1] }
 0x34e   :  { %v7739_v56 = vpop.f32.mrb[76].mxu1  ;;  %v8573_v38 = vpop.eup %8572  ;;  %v3886_v25 = vmul.f32 %v8571_v41, %v10457_v1  ;;  %6523 = vst [vmem:[%s11219_s3 + $0x50] sm:$0x1] %v6522_v51  ;;  %6519 = vst.msk [vmem:[%s11219_s3 + $0x48] sm:$0xf] %vm6485_vm7, %v7087_v58  ;;  %v7088_v9 = vpack.c.bf16 %v4408_v28, %v4408_v28 }
 0x34f   :  { %v7092_v43 = vpack.c.bf16 %v7739_v56, %v7739_v56  ;;  %v4471_v18 = vpop.f32.mrb[77].mxu1  ;;  %v3889_v57 = vmul.f32 %v8573_v38, %v10468_v3  ;;  %7929 = vmatprep.mubr.msk.bf16.mxu1 %vm2832_vm2, %v3952_v2  ;;  %v6556_v28 = vld [vmem:[%s11219_s3 + $0xa4] sm:$0x1] }
 0x350   :  { %v7090_v60 = vpack.c.bf16 %v4471_v18, %v4471_v18  ;;  %v7740_v37 = vpop.f32.mrb[78].mxu1  ;;  %v3951_v7 = vpack.c.bf16 %v3886_v25, %v3886_v25  ;;  %6520 = vst.msk [vmem:[%s11219_s3 + $0x4c] sm:$0xf] %vm6485_vm7, %v7088_v9 }
 0x351   :  { %v6527_v1 = vsel %vm10627_vm6, %v7092_v43, %v6526_v59  ;;  %v4474_v12 = vpop.f32.mrb[79].mxu1  ;;  %v3953_v62 = vpack.c.bf16 %v3889_v57, %v3889_v57  ;;  %v6561_v57 = vld [vmem:[%s11219_s3 + $0xb0] sm:$0x1] }
 0x352   :  { %6528 = vst [vmem:[%s11219_s3 + $0x5c] sm:$0x1] %v6527_v1  ;;  %6524 = vst.msk [vmem:[%s11219_s3 + $0x54] sm:$0xf] %vm6485_vm7, %v7090_v60  ;;  %v7091_v3 = vpack.c.bf16 %v4474_v12, %v4474_v12  ;;  %7922 = vmatmul.mubr.msk.bf16.vlgmr.msra.gmra.mrb[124].mxu0 %vm2832_vm2, %v3951_v7 }
 0x353   :  { %7930 = vmatmul.mubr.msk.bf16.vlgmr.msra.gmra.mrb[124].mxu1 %vm2832_vm2, %v3953_v62 }
 0x354   :  { %6525 = vst.msk [vmem:[%s11219_s3 + $0x58] sm:$0xf] %vm6485_vm7, %v7091_v3 }
 0x362   :  { %v7747_v23 = vpop.f32.mrb[80].mxu0 }
 0x363   :  { %v7095_v16 = vpack.c.bf16 %v7747_v23, %v7747_v23  ;;  %v4537_v55 = vpop.f32.mrb[81].mxu0 }
 0x364   :  { %v7093_v39 = vpack.c.bf16 %v4537_v55, %v4537_v55  ;;  %v7748_v61 = vpop.f32.mrb[82].mxu0 }
 0x365   :  { %v6532_v26 = vsel %vm10627_vm6, %v7095_v16, %v6531_v46  ;;  %v4540_v4 = vpop.f32.mrb[83].mxu0  ;;  %v7755_v49 = vpop.f32.mrb[80].mxu1  ;;  %v6566_v46 = vld [vmem:[%s11219_s3 + $0xbc] sm:$0x1] }
 0x366   :  { %6533 = vst [vmem:[%s11219_s3 + $0x68] sm:$0x1] %v6532_v26  ;;  %6529 = vst.msk [vmem:[%s11219_s3 + $0x60] sm:$0xf] %vm6485_vm7, %v7093_v39  ;;  %v7094_v5 = vpack.c.bf16 %v4540_v4, %v4540_v4  ;;  %v7098_v33 = vpack.c.bf16 %v7755_v49, %v7755_v49  ;;  %v4603_v20 = vpop.f32.mrb[81].mxu1 }
 0x367   :  { %v7096_v42 = vpack.c.bf16 %v4603_v20, %v4603_v20  ;;  %v7756_v40 = vpop.f32.mrb[82].mxu1 }
 0x368   :  { %6530 = vst.msk [vmem:[%s11219_s3 + $0x64] sm:$0xf] %vm6485_vm7, %v7094_v5  ;;  %v6537_v13 = vsel %vm10627_vm6, %v7098_v33, %v6536_v8  ;;  %v4606_v63 = vpop.f32.mrb[83].mxu1  ;;  %v6571_v5 = vld [vmem:[%s11219_s3 + $0xc8] sm:$0x1] }
 0x369   :  { %6538 = vst [vmem:[%s11219_s3 + $0x74] sm:$0x1] %v6537_v13  ;;  %6534 = vst.msk [vmem:[%s11219_s3 + $0x6c] sm:$0xf] %vm6485_vm7, %v7096_v42  ;;  %v7097_v52 = vpack.c.bf16 %v4606_v63, %v4606_v63 }
 0x36b   :  { %6535 = vst.msk [vmem:[%s11219_s3 + $0x70] sm:$0xf] %vm6485_vm7, %v7097_v52 }
 0x379   :  { %v7763_v10 = vpop.f32.mrb[84].mxu0 }
 0x37a   :  { %v7101_v47 = vpack.c.bf16 %v7763_v10, %v7763_v10  ;;  %v4669_v14 = vpop.f32.mrb[85].mxu0 }
 0x37b   :  { %v7099_v21 = vpack.c.bf16 %v4669_v14, %v4669_v14  ;;  %v7764_v24 = vpop.f32.mrb[86].mxu0 }
 0x37c   :  { %v6542_v36 = vsel %vm10627_vm6, %v7101_v47, %v6541_v22  ;;  %v4672_v53 = vpop.f32.mrb[87].mxu0  ;;  %v6576_v22 = vld [vmem:[%s11219_s3 + $0xd4] sm:$0x1] }
 0x37d   :  { %v7771_v15 = vpop.f32.mrb[84].mxu1  ;;  %6543 = vst [vmem:[%s11219_s3 + $0x80] sm:$0x1] %v6542_v36  ;;  %6539 = vst.msk [vmem:[%s11219_s3 + $0x78] sm:$0xf] %vm6485_vm7, %v7099_v21  ;;  %v7100_v31 = vpack.c.bf16 %v4672_v53, %v4672_v53 }
 0x37e   :  { %v7104_v32 = vpack.c.bf16 %v7771_v15, %v7771_v15  ;;  %v4735_v54 = vpop.f32.mrb[85].mxu1 }
 0x37f   :  { %v7102_v45 = vpack.c.bf16 %v4735_v54, %v4735_v54  ;;  %v7772_v48 = vpop.f32.mrb[86].mxu1  ;;  %6540 = vst.msk [vmem:[%s11219_s3 + $0x7c] sm:$0xf] %vm6485_vm7, %v7100_v31  ;;  %v6581_v31 = vld [vmem:[%s11219_s3 + $0xe0] sm:$0x1] }
 0x380   :  { %v6547_v27 = vsel %vm10627_vm6, %v7104_v32, %v6546_v44  ;;  %v4738_v29 = vpop.f32.mrb[87].mxu1 }
 0x381   :  { %6548 = vst [vmem:[%s11219_s3 + $0x8c] sm:$0x1] %v6547_v27  ;;  %6544 = vst.msk [vmem:[%s11219_s3 + $0x84] sm:$0xf] %vm6485_vm7, %v7102_v45  ;;  %v7103_v35 = vpack.c.bf16 %v4738_v29, %v4738_v29 }
 0x383   :  { %6545 = vst.msk [vmem:[%s11219_s3 + $0x88] sm:$0xf] %vm6485_vm7, %v7103_v35 }
 0x38d   :  { %v7779_v0 = vpop.f32.mrb[88].mxu0 }
 0x38e   :  { %v7107_v17 = vpack.c.bf16 %v7779_v0, %v7779_v0  ;;  %v4801_v19 = vpop.f32.mrb[89].mxu0 }
 0x38f   :  { %v7105_v50 = vpack.c.bf16 %v4801_v19, %v4801_v19  ;;  %v7780_v30 = vpop.f32.mrb[90].mxu0 }
 0x390   :  { %v6552_v58 = vsel %vm10627_vm6, %v7107_v17, %v6551_v34  ;;  %v4804_v11 = vpop.f32.mrb[91].mxu0  ;;  %v6586_v34 = vld [vmem:[%s11219_s3 + $0xec] sm:$0x1] }
 0x391   :  { %6553 = vst [vmem:[%s11219_s3 + $0x98] sm:$0x1] %v6552_v58  ;;  %6549 = vst.msk [vmem:[%s11219_s3 + $0x90] sm:$0xf] %vm6485_vm7, %v7105_v50  ;;  %v7106_v41 = vpack.c.bf16 %v4804_v11, %v4804_v11  ;;  %v7787_v51 = vpop.f32.mrb[88].mxu1 }
 0x392   :  { %v7110_v56 = vpack.c.bf16 %v7787_v51, %v7787_v51  ;;  %v4867_v59 = vpop.f32.mrb[89].mxu1 }
 0x393   :  { %6550 = vst.msk [vmem:[%s11219_s3 + $0x94] sm:$0xf] %vm6485_vm7, %v7106_v41  ;;  %v7108_v2 = vpack.c.bf16 %v4867_v59, %v4867_v59  ;;  %v7788_v38 = vpop.f32.mrb[90].mxu1 }
 0x394   :  { %v6557_v25 = vsel %vm10627_vm6, %v7110_v56, %v6556_v28  ;;  %v4870_v9 = vpop.f32.mrb[91].mxu1  ;;  %v6591_v28 = vld [vmem:[%s11219_s3 + $0xf8] sm:$0x1] }
 0x395   :  { %6558 = vst [vmem:[%s11219_s3 + $0xa4] sm:$0x1] %v6557_v25  ;;  %6554 = vst.msk [vmem:[%s11219_s3 + $0x9c] sm:$0xf] %vm6485_vm7, %v7108_v2  ;;  %v7109_v43 = vpack.c.bf16 %v4870_v9, %v4870_v9 }
 0x397   :  { %6555 = vst.msk [vmem:[%s11219_s3 + $0xa0] sm:$0xf] %vm6485_vm7, %v7109_v43 }
 0x399   :  { %v7795_v18 = vpop.f32.mrb[92].mxu0 }
 0x39a   :  { %v7113_v60 = vpack.c.bf16 %v7795_v18, %v7795_v18  ;;  %v4933_v37 = vpop.f32.mrb[93].mxu0 }
 0x39b   :  { %v7111_v7 = vpack.c.bf16 %v4933_v37, %v4933_v37  ;;  %v7796_v1 = vpop.f32.mrb[94].mxu0 }
 0x39c   :  { %v6562_v12 = vsel %vm10627_vm6, %v7113_v60, %v6561_v57  ;;  %v4936_v62 = vpop.f32.mrb[95].mxu0  ;;  %v6596_v57 = vld [vmem:[%s11219_s3 + $0x104] sm:$0x1] }
 0x39d   :  { %6563 = vst [vmem:[%s11219_s3 + $0xb0] sm:$0x1] %v6562_v12  ;;  %6559 = vst.msk [vmem:[%s11219_s3 + $0xa8] sm:$0xf] %vm6485_vm7, %v7111_v7  ;;  %v7112_v3 = vpack.c.bf16 %v4936_v62, %v4936_v62  ;;  %v7803_v23 = vpop.f32.mrb[92].mxu1 }
 0x39e   :  { %v7116_v16 = vpack.c.bf16 %v7803_v23, %v7803_v23  ;;  %v4999_v55 = vpop.f32.mrb[93].mxu1 }
 0x39f   :  { %6560 = vst.msk [vmem:[%s11219_s3 + $0xac] sm:$0xf] %vm6485_vm7, %v7112_v3  ;;  %v7114_v39 = vpack.c.bf16 %v4999_v55, %v4999_v55  ;;  %v7804_v61 = vpop.f32.mrb[94].mxu1 }
 0x3a0   :  { %v6567_v26 = vsel %vm10627_vm6, %v7116_v16, %v6566_v46  ;;  %v5002_v4 = vpop.f32.mrb[95].mxu1  ;;  %v6601_v46 = vld [vmem:[%s11219_s3 + $0x110] sm:$0x1] }
 0x3a1   :  { %6568 = vst [vmem:[%s11219_s3 + $0xbc] sm:$0x1] %v6567_v26  ;;  %6564 = vst.msk [vmem:[%s11219_s3 + $0xb4] sm:$0xf] %vm6485_vm7, %v7114_v39  ;;  %v7115_v49 = vpack.c.bf16 %v5002_v4, %v5002_v4 }
 0x3a3   :  { %6565 = vst.msk [vmem:[%s11219_s3 + $0xb8] sm:$0xf] %vm6485_vm7, %v7115_v49 }
 0x3a5   :  { %v7811_v8 = vpop.f32.mrb[96].mxu0 }
 0x3a6   :  { %v7119_v33 = vpack.c.bf16 %v7811_v8, %v7811_v8  ;;  %v5065_v20 = vpop.f32.mrb[97].mxu0 }
 0x3a7   :  { %v7117_v42 = vpack.c.bf16 %v5065_v20, %v5065_v20  ;;  %v7812_v40 = vpop.f32.mrb[98].mxu0 }
 0x3a8   :  { %v6572_v13 = vsel %vm10627_vm6, %v7119_v33, %v6571_v5  ;;  %v5068_v63 = vpop.f32.mrb[99].mxu0  ;;  %v6606_v5 = vld [vmem:[%s11219_s3 + $0x11c] sm:$0x1] }
 0x3a9   :  { %6573 = vst [vmem:[%s11219_s3 + $0xc8] sm:$0x1] %v6572_v13  ;;  %6569 = vst.msk [vmem:[%s11219_s3 + $0xc0] sm:$0xf] %vm6485_vm7, %v7117_v42  ;;  %v7118_v52 = vpack.c.bf16 %v5068_v63, %v5068_v63  ;;  %v7819_v10 = vpop.f32.mrb[96].mxu1 }
 0x3aa   :  { %v7122_v47 = vpack.c.bf16 %v7819_v10, %v7819_v10  ;;  %v5131_v14 = vpop.f32.mrb[97].mxu1 }
 0x3ab   :  { %6570 = vst.msk [vmem:[%s11219_s3 + $0xc4] sm:$0xf] %vm6485_vm7, %v7118_v52  ;;  %v7120_v21 = vpack.c.bf16 %v5131_v14, %v5131_v14  ;;  %v7820_v24 = vpop.f32.mrb[98].mxu1 }
 0x3ac   :  { %v6577_v36 = vsel %vm10627_vm6, %v7122_v47, %v6576_v22  ;;  %v5134_v53 = vpop.f32.mrb[99].mxu1  ;;  %v6611_v22 = vld [vmem:[%s11219_s3 + $0x128] sm:$0x1] }
 0x3ad   :  { %6578 = vst [vmem:[%s11219_s3 + $0xd4] sm:$0x1] %v6577_v36  ;;  %6574 = vst.msk [vmem:[%s11219_s3 + $0xcc] sm:$0xf] %vm6485_vm7, %v7120_v21  ;;  %v7121_v15 = vpack.c.bf16 %v5134_v53, %v5134_v53 }
 0x3af   :  { %6575 = vst.msk [vmem:[%s11219_s3 + $0xd0] sm:$0xf] %vm6485_vm7, %v7121_v15 }
 0x3b1   :  { %v7827_v44 = vpop.f32.mrb[100].mxu0 }
 0x3b2   :  { %v7125_v32 = vpack.c.bf16 %v7827_v44, %v7827_v44  ;;  %v5197_v54 = vpop.f32.mrb[101].mxu0 }
 0x3b3   :  { %v7123_v45 = vpack.c.bf16 %v5197_v54, %v5197_v54  ;;  %v7828_v48 = vpop.f32.mrb[102].mxu0 }
 0x3b4   :  { %v6582_v27 = vsel %vm10627_vm6, %v7125_v32, %v6581_v31  ;;  %v5200_v29 = vpop.f32.mrb[103].mxu0  ;;  %v6616_v31 = vld [vmem:[%s11219_s3 + $0x134] sm:$0x1] }
 0x3b5   :  { %6583 = vst [vmem:[%s11219_s3 + $0xe0] sm:$0x1] %v6582_v27  ;;  %6579 = vst.msk [vmem:[%s11219_s3 + $0xd8] sm:$0xf] %vm6485_vm7, %v7123_v45  ;;  %v7124_v35 = vpack.c.bf16 %v5200_v29, %v5200_v29  ;;  %v7835_v0 = vpop.f32.mrb[100].mxu1 }
 0x3b6   :  { %v7128_v17 = vpack.c.bf16 %v7835_v0, %v7835_v0  ;;  %v5263_v19 = vpop.f32.mrb[101].mxu1 }
 0x3b7   :  { %6580 = vst.msk [vmem:[%s11219_s3 + $0xdc] sm:$0xf] %vm6485_vm7, %v7124_v35  ;;  %v7126_v50 = vpack.c.bf16 %v5263_v19, %v5263_v19  ;;  %v7836_v30 = vpop.f32.mrb[102].mxu1 }
 0x3b8   :  { %v6587_v58 = vsel %vm10627_vm6, %v7128_v17, %v6586_v34  ;;  %v5266_v11 = vpop.f32.mrb[103].mxu1  ;;  %v6621_v34 = vld [vmem:[%s11219_s3 + $0x140] sm:$0x1] }
 0x3b9   :  { %6588 = vst [vmem:[%s11219_s3 + $0xec] sm:$0x1] %v6587_v58  ;;  %6584 = vst.msk [vmem:[%s11219_s3 + $0xe4] sm:$0xf] %vm6485_vm7, %v7126_v50  ;;  %v7127_v41 = vpack.c.bf16 %v5266_v11, %v5266_v11 }
 0x3bb   :  { %6585 = vst.msk [vmem:[%s11219_s3 + $0xe8] sm:$0xf] %vm6485_vm7, %v7127_v41 }
 0x3bd   :  { %v7843_v51 = vpop.f32.mrb[104].mxu0 }
 0x3be   :  { %v7131_v56 = vpack.c.bf16 %v7843_v51, %v7843_v51  ;;  %v5329_v59 = vpop.f32.mrb[105].mxu0 }
 0x3bf   :  { %v7129_v2 = vpack.c.bf16 %v5329_v59, %v5329_v59  ;;  %v7844_v38 = vpop.f32.mrb[106].mxu0 }
 0x3c0   :  { %v6592_v25 = vsel %vm10627_vm6, %v7131_v56, %v6591_v28  ;;  %v5332_v9 = vpop.f32.mrb[107].mxu0  ;;  %v6626_v28 = vld [vmem:[%s11219_s3 + $0x14c] sm:$0x1] }
 0x3c1   :  { %6593 = vst [vmem:[%s11219_s3 + $0xf8] sm:$0x1] %v6592_v25  ;;  %6589 = vst.msk [vmem:[%s11219_s3 + $0xf0] sm:$0xf] %vm6485_vm7, %v7129_v2  ;;  %v7130_v43 = vpack.c.bf16 %v5332_v9, %v5332_v9  ;;  %v7851_v18 = vpop.f32.mrb[104].mxu1 }
 0x3c2   :  { %v7134_v60 = vpack.c.bf16 %v7851_v18, %v7851_v18  ;;  %v5395_v37 = vpop.f32.mrb[105].mxu1 }
 0x3c3   :  { %6590 = vst.msk [vmem:[%s11219_s3 + $0xf4] sm:$0xf] %vm6485_vm7, %v7130_v43  ;;  %v7132_v7 = vpack.c.bf16 %v5395_v37, %v5395_v37  ;;  %v7852_v1 = vpop.f32.mrb[106].mxu1 }
 0x3c4   :  { %v6597_v12 = vsel %vm10627_vm6, %v7134_v60, %v6596_v57  ;;  %v5398_v62 = vpop.f32.mrb[107].mxu1  ;;  %v6631_v57 = vld [vmem:[%s11219_s3 + $0x158] sm:$0x1] }
 0x3c5   :  { %6598 = vst [vmem:[%s11219_s3 + $0x104] sm:$0x1] %v6597_v12  ;;  %6594 = vst.msk [vmem:[%s11219_s3 + $0xfc] sm:$0xf] %vm6485_vm7, %v7132_v7  ;;  %v7133_v3 = vpack.c.bf16 %v5398_v62, %v5398_v62 }
 0x3c7   :  { %6595 = vst.msk [vmem:[%s11219_s3 + $0x100] sm:$0xf] %vm6485_vm7, %v7133_v3 }
 0x3c9   :  { %v7859_v23 = vpop.f32.mrb[108].mxu0 }
 0x3ca   :  { %v7137_v16 = vpack.c.bf16 %v7859_v23, %v7859_v23  ;;  %v5461_v55 = vpop.f32.mrb[109].mxu0 }
 0x3cb   :  { %v7135_v39 = vpack.c.bf16 %v5461_v55, %v5461_v55  ;;  %v7860_v61 = vpop.f32.mrb[110].mxu0 }
 0x3cc   :  { %v6602_v26 = vsel %vm10627_vm6, %v7137_v16, %v6601_v46  ;;  %v5464_v4 = vpop.f32.mrb[111].mxu0  ;;  %v6636_v46 = vld [vmem:[%s11219_s3 + $0x164] sm:$0x1] }
 0x3cd   :  { %6603 = vst [vmem:[%s11219_s3 + $0x110] sm:$0x1] %v6602_v26  ;;  %6599 = vst.msk [vmem:[%s11219_s3 + $0x108] sm:$0xf] %vm6485_vm7, %v7135_v39  ;;  %v7136_v49 = vpack.c.bf16 %v5464_v4, %v5464_v4  ;;  %v7867_v8 = vpop.f32.mrb[108].mxu1 }
 0x3ce   :  { %v7140_v33 = vpack.c.bf16 %v7867_v8, %v7867_v8  ;;  %v5527_v20 = vpop.f32.mrb[109].mxu1 }
 0x3cf   :  { %6600 = vst.msk [vmem:[%s11219_s3 + $0x10c] sm:$0xf] %vm6485_vm7, %v7136_v49  ;;  %v7138_v42 = vpack.c.bf16 %v5527_v20, %v5527_v20  ;;  %v7868_v40 = vpop.f32.mrb[110].mxu1 }
 0x3d0   :  { %v6607_v13 = vsel %vm10627_vm6, %v7140_v33, %v6606_v5  ;;  %v5530_v63 = vpop.f32.mrb[111].mxu1  ;;  %v6641_v5 = vld [vmem:[%s11219_s3 + $0x170] sm:$0x1] }
 0x3d1   :  { %6608 = vst [vmem:[%s11219_s3 + $0x11c] sm:$0x1] %v6607_v13  ;;  %6604 = vst.msk [vmem:[%s11219_s3 + $0x114] sm:$0xf] %vm6485_vm7, %v7138_v42  ;;  %v7139_v52 = vpack.c.bf16 %v5530_v63, %v5530_v63  ;;  %v6646_v42 = vld [vmem:[%s11219_s3 + $0x17c] sm:$0x1] }
 0x3d3   :  { %6605 = vst.msk [vmem:[%s11219_s3 + $0x118] sm:$0xf] %vm6485_vm7, %v7139_v52 }
 0x3d7   :  { %v7875_v10 = vpop.f32.mrb[112].mxu0 }
 0x3d8   :  { %v7143_v47 = vpack.c.bf16 %v7875_v10, %v7875_v10  ;;  %v5593_v14 = vpop.f32.mrb[113].mxu0 }
 0x3d9   :  { %v7141_v21 = vpack.c.bf16 %v5593_v14, %v5593_v14  ;;  %v7876_v24 = vpop.f32.mrb[114].mxu0 }
 0x3da   :  { %v6612_v36 = vsel %vm10627_vm6, %v7143_v47, %v6611_v22  ;;  %v5596_v53 = vpop.f32.mrb[115].mxu0 }
 0x3db   :  { %6613 = vst [vmem:[%s11219_s3 + $0x128] sm:$0x1] %v6612_v36  ;;  %6609 = vst.msk [vmem:[%s11219_s3 + $0x120] sm:$0xf] %vm6485_vm7, %v7141_v21  ;;  %v7142_v15 = vpack.c.bf16 %v5596_v53, %v5596_v53  ;;  %v7883_v44 = vpop.f32.mrb[112].mxu1 }
 0x3dc   :  { %v7146_v32 = vpack.c.bf16 %v7883_v44, %v7883_v44  ;;  %v5659_v54 = vpop.f32.mrb[113].mxu1 }
 0x3dd   :  { %6610 = vst.msk [vmem:[%s11219_s3 + $0x124] sm:$0xf] %vm6485_vm7, %v7142_v15  ;;  %v7144_v45 = vpack.c.bf16 %v5659_v54, %v5659_v54  ;;  %v7884_v48 = vpop.f32.mrb[114].mxu1 }
 0x3de   :  { %v6617_v27 = vsel %vm10627_vm6, %v7146_v32, %v6616_v31  ;;  %v5662_v29 = vpop.f32.mrb[115].mxu1 }
 0x3df   :  { %6618 = vst [vmem:[%s11219_s3 + $0x134] sm:$0x1] %v6617_v27  ;;  %6614 = vst.msk [vmem:[%s11219_s3 + $0x12c] sm:$0xf] %vm6485_vm7, %v7144_v45  ;;  %v7145_v35 = vpack.c.bf16 %v5662_v29, %v5662_v29 }
 0x3e1   :  { %6615 = vst.msk [vmem:[%s11219_s3 + $0x130] sm:$0xf] %vm6485_vm7, %v7145_v35 }
 0x3ef   :  { %v7891_v0 = vpop.f32.mrb[116].mxu0 }
 0x3f0   :  { %v7149_v17 = vpack.c.bf16 %v7891_v0, %v7891_v0  ;;  %v5725_v19 = vpop.f32.mrb[117].mxu0 }
 0x3f1   :  { %v7147_v50 = vpack.c.bf16 %v5725_v19, %v5725_v19  ;;  %v7892_v30 = vpop.f32.mrb[118].mxu0 }
 0x3f2   :  { %v6622_v58 = vsel %vm10627_vm6, %v7149_v17, %v6621_v34  ;;  %v5728_v11 = vpop.f32.mrb[119].mxu0 }
 0x3f3   :  { %6623 = vst [vmem:[%s11219_s3 + $0x140] sm:$0x1] %v6622_v58  ;;  %6619 = vst.msk [vmem:[%s11219_s3 + $0x138] sm:$0xf] %vm6485_vm7, %v7147_v50  ;;  %v7148_v41 = vpack.c.bf16 %v5728_v11, %v5728_v11  ;;  %v7899_v51 = vpop.f32.mrb[116].mxu1 }
 0x3f4   :  { %v7152_v56 = vpack.c.bf16 %v7899_v51, %v7899_v51  ;;  %v5791_v59 = vpop.f32.mrb[117].mxu1 }
 0x3f5   :  { %6620 = vst.msk [vmem:[%s11219_s3 + $0x13c] sm:$0xf] %vm6485_vm7, %v7148_v41  ;;  %v7150_v2 = vpack.c.bf16 %v5791_v59, %v5791_v59  ;;  %v7900_v38 = vpop.f32.mrb[118].mxu1 }
 0x3f6   :  { %v6627_v25 = vsel %vm10627_vm6, %v7152_v56, %v6626_v28  ;;  %v5794_v9 = vpop.f32.mrb[119].mxu1 }
 0x3f7   :  { %6628 = vst [vmem:[%s11219_s3 + $0x14c] sm:$0x1] %v6627_v25  ;;  %6624 = vst.msk [vmem:[%s11219_s3 + $0x144] sm:$0xf] %vm6485_vm7, %v7150_v2  ;;  %v7151_v43 = vpack.c.bf16 %v5794_v9, %v5794_v9 }
 0x3f9   :  { %6625 = vst.msk [vmem:[%s11219_s3 + $0x148] sm:$0xf] %vm6485_vm7, %v7151_v43 }
 0x407   :  { %v7907_v18 = vpop.f32.mrb[120].mxu0 }
 0x408   :  { %v7155_v60 = vpack.c.bf16 %v7907_v18, %v7907_v18  ;;  %v5857_v37 = vpop.f32.mrb[121].mxu0 }
 0x409   :  { %v7153_v7 = vpack.c.bf16 %v5857_v37, %v5857_v37  ;;  %v7908_v1 = vpop.f32.mrb[122].mxu0 }
 0x40a   :  { %v6632_v12 = vsel %vm10627_vm6, %v7155_v60, %v6631_v57  ;;  %v5860_v62 = vpop.f32.mrb[123].mxu0 }
 0x40b   :  { %6633 = vst [vmem:[%s11219_s3 + $0x158] sm:$0x1] %v6632_v12  ;;  %6629 = vst.msk [vmem:[%s11219_s3 + $0x150] sm:$0xf] %vm6485_vm7, %v7153_v7  ;;  %v7154_v3 = vpack.c.bf16 %v5860_v62, %v5860_v62  ;;  %v7915_v23 = vpop.f32.mrb[120].mxu1 }
 0x40c   :  { %v7158_v16 = vpack.c.bf16 %v7915_v23, %v7915_v23  ;;  %v5923_v55 = vpop.f32.mrb[121].mxu1 }
 0x40d   :  { %6630 = vst.msk [vmem:[%s11219_s3 + $0x154] sm:$0xf] %vm6485_vm7, %v7154_v3  ;;  %v7156_v39 = vpack.c.bf16 %v5923_v55, %v5923_v55  ;;  %v7916_v61 = vpop.f32.mrb[122].mxu1 }
 0x40e   :  { %v6637_v26 = vsel %vm10627_vm6, %v7158_v16, %v6636_v46  ;;  %v5926_v4 = vpop.f32.mrb[123].mxu1 }
 0x40f   :  { %6638 = vst [vmem:[%s11219_s3 + $0x164] sm:$0x1] %v6637_v26  ;;  %6634 = vst.msk [vmem:[%s11219_s3 + $0x15c] sm:$0xf] %vm6485_vm7, %v7156_v39  ;;  %v7157_v49 = vpack.c.bf16 %v5926_v4, %v5926_v4 }
 0x411   :  { %6635 = vst.msk [vmem:[%s11219_s3 + $0x160] sm:$0xf] %vm6485_vm7, %v7157_v49 }
 0x425   :  { %v7923_v8 = vpop.f32.mrb[124].mxu0 }
 0x426   :  { %v7161_v33 = vpack.c.bf16 %v7923_v8, %v7923_v8  ;;  %v7931_v20 = vpop.f32.mrb[124].mxu1  ;;  %v5989_v40 = vpop.f32.mrb[125].mxu0 }
 0x427   :  { %v7164_v13 = vpack.c.bf16 %v7931_v20, %v7931_v20  ;;  %v7159_v63 = vpack.c.bf16 %v5989_v40, %v5989_v40  ;;  %v6055_v52 = vpop.f32.mrb[125].mxu1  ;;  %v7924_v10 = vpop.f32.mrb[126].mxu0 }
 0x428   :  { %v6642_v22 = vsel %vm10627_vm6, %v7161_v33, %v6641_v5  ;;  %v7162_v47 = vpack.c.bf16 %v6055_v52, %v6055_v52  ;;  %v7932_v14 = vpop.f32.mrb[126].mxu1  ;;  %v5992_v21 = vpop.f32.mrb[127].mxu0 }
 0x429   :  { %6643 = vst [vmem:[%s11219_s3 + $0x170] sm:$0x1] %v6642_v22  ;;  %v6647_v24 = vsel %vm10627_vm6, %v7164_v13, %v6646_v42  ;;  %6639 = vst.msk [vmem:[%s11219_s3 + $0x168] sm:$0xf] %vm6485_vm7, %v7159_v63  ;;  %v7160_v36 = vpack.c.bf16 %v5992_v21, %v5992_v21  ;;  %v6058_v53 = vpop.f32.mrb[127].mxu1 }
 0x42a   :  { %6648 = vst [vmem:[%s11219_s3 + $0x17c] sm:$0x1] %v6647_v24  ;;  %6644 = vst.msk [vmem:[%s11219_s3 + $0x174] sm:$0xf] %vm6485_vm7, %v7162_v47  ;;  %v7163_v15 = vpack.c.bf16 %v6058_v53, %v6058_v53 }
 0x42b   :  { %6640 = vst.msk [vmem:[%s11219_s3 + $0x16c] sm:$0xf] %vm6485_vm7, %v7160_v36 }
 0x42c   :  { %6645 = vst.msk [vmem:[%s11219_s3 + $0x178] sm:$0xf] %vm6485_vm7, %v7163_v15 }

</bundles_post_ra>
